<compile_context>
chip_gen: v7x
topology: tpu7x:2x2x1
jax: 0.10.0
libtpu: 0.0.40
codegen_flags: <defaults>
</compile_context>

<pallas_src>
import math
import functools

import jax
import jax.numpy as jnp
from jax.experimental import pallas as pl
from jax.experimental.pallas import tpu as pltpu


# ------------------------- helpers -------------------------

VMEM_LIMIT_BYTES = 48 * 1024 * 1024   # explicit scoped-VMEM budget (< v7x 64 MiB)


def _cparams(dims):
    return pltpu.CompilerParams(dimension_semantics=dims,
                                vmem_limit_bytes=VMEM_LIMIT_BYTES)


def _pick_tile(dim, max_tile=512):
    """Largest of (512, 256, 128) dividing `dim`, else the full dim.

    Prefers >=256 tiles (v6e/v7x MXU is 2x256x256); 128 is a fallback (v5e);
    degenerates to a single whole-array block at toy sizes.
    """
    for t in (512, 256, 128):
        if t <= max_tile and dim % t == 0:
            return t
    return dim


def _round_up(n, m):
    return ((n + m - 1) // m) * m


# ------------------------- tiled linear (matmul + bias) -------------------------

def _matmul_kernel(x_ref, w_ref, b_ref, o_ref, acc_ref):
    @pl.when(pl.program_id(2) == 0)
    def _():
        acc_ref[...] = jnp.zeros_like(acc_ref)

    # weights arrive already in bf16; only the f32 activation is cast on-chip
    acc_ref[...] += jnp.dot(x_ref[...].astype(jnp.bfloat16), w_ref[...],
                            preferred_element_type=jnp.float32)

    @pl.when(pl.program_id(2) == pl.num_programs(2) - 1)
    def _():
        o_ref[...] = (acc_ref[...] + b_ref[...]).astype(o_ref.dtype)


def linear(x, w_bf16, b):
    """y = x @ w + b.  x:(M,K) f32, w:(K,N) bf16, b:(1,N) f32 -> (M,N) f32."""
    M, K = x.shape
    N = w_bf16.shape[1]
    tm = _pick_tile(M, 256)
    tn = _pick_tile(N, 256)
    tk = _pick_tile(K, 512)
    return pl.pallas_call(
        _matmul_kernel,
        out_shape=jax.ShapeDtypeStruct((M, N), jnp.float32),
        grid=(M // tm, N // tn, K // tk),
        in_specs=[
            pl.BlockSpec((tm, tk), lambda i, j, k: (i, k)),
            pl.BlockSpec((tk, tn), lambda i, j, k: (k, j)),
            pl.BlockSpec((1, tn), lambda i, j, k: (0, j)),
        ],
        out_specs=pl.BlockSpec((tm, tn), lambda i, j, k: (i, j)),
        scratch_shapes=[pltpu.VMEM((tm, tn), jnp.float32)],
        compiler_params=_cparams(("parallel", "parallel", "arbitrary")),
    )(x, w_bf16, b)


# ------------------------- fused residual-add + LayerNorm -------------------------

def _add_ln_kernel(x_ref, r_ref, g_ref, b_ref, o_ref):
    # LayerNorm(x + residual) over the last axis, eps = 1e-5 (nn.LayerNorm default)
    x = x_ref[...] + r_ref[...]
    mean = jnp.mean(x, axis=-1, keepdims=True)
    c = x - mean
    var = jnp.mean(c * c, axis=-1, keepdims=True)
    o_ref[...] = c * jax.lax.rsqrt(var + 1e-5) * g_ref[...] + b_ref[...]


def add_layer_norm(x, res, gamma, beta):
    """LayerNorm(x + res).  x,res:(M,D), gamma/beta:(1,D)."""
    M, D = x.shape
    tm = _pick_tile(M, 512)
    return pl.pallas_call(
        _add_ln_kernel,
        out_shape=jax.ShapeDtypeStruct((M, D), jnp.float32),
        grid=(M // tm,),
        in_specs=[
            pl.BlockSpec((tm, D), lambda i: (i, 0)),
            pl.BlockSpec((tm, D), lambda i: (i, 0)),
            pl.BlockSpec((1, D), lambda i: (0, 0)),
            pl.BlockSpec((1, D), lambda i: (0, 0)),
        ],
        out_specs=pl.BlockSpec((tm, D), lambda i: (i, 0)),
        compiler_params=_cparams(("parallel",)),
    )(x, res, gamma, beta)


# ------------------------- fused feed-forward (w1 + ReLU + w2, F tiled) -------------------------

def _ffn_kernel(x_ref, w1_ref, b1_ref, w2_ref, b2_ref, o_ref, acc_ref):
    @pl.when(pl.program_id(1) == 0)
    def _():
        acc_ref[...] = jnp.zeros_like(acc_ref)

    h = jnp.dot(x_ref[...].astype(jnp.bfloat16), w1_ref[...],
                preferred_element_type=jnp.float32) + b1_ref[...]
    h = jnp.maximum(h, 0.0)
    acc_ref[...] += jnp.dot(h.astype(jnp.bfloat16), w2_ref[...],
                            preferred_element_type=jnp.float32)

    @pl.when(pl.program_id(1) == pl.num_programs(1) - 1)
    def _():
        o_ref[...] = (acc_ref[...] + b2_ref[...]).astype(o_ref.dtype)


def feed_forward(x2d, p):
    """Fused FFN; hidden dim F is tiled as a reduction grid axis (VMEM bounded)."""
    M, D = x2d.shape
    F = p['w1'].shape[1]
    tm = _pick_tile(M, 256)
    tf = _pick_tile(F, 512)
    return pl.pallas_call(
        _ffn_kernel,
        out_shape=jax.ShapeDtypeStruct((M, D), jnp.float32),
        grid=(M // tm, F // tf),
        in_specs=[
            pl.BlockSpec((tm, D), lambda i, f: (i, 0)),
            pl.BlockSpec((D, tf), lambda i, f: (0, f)),
            pl.BlockSpec((1, tf), lambda i, f: (0, f)),
            pl.BlockSpec((tf, D), lambda i, f: (f, 0)),
            pl.BlockSpec((1, D), lambda i, f: (0, 0)),
        ],
        out_specs=pl.BlockSpec((tm, D), lambda i, f: (i, 0)),
        scratch_shapes=[pltpu.VMEM((tm, D), jnp.float32)],
        compiler_params=_cparams(("parallel", "arbitrary")),
    )(x2d, p['w1'], p['b1'], p['w2'], p['b2'])


# ------------------------- flash-style fused multi-head attention -------------------------

def _flash_mha_kernel(*refs, n_head, causal, use_pad, scale):
    # grid = (batch, q-tile, kv-tile); inputs per step:
    #   x_q:(1,tq,D)  x_kv:(1,tk,D)  [key_pad:(1,1,tk)]
    #   wq/wk/wv:(H,D,Dh) bf16   bq/bk/bv:(H,1,Dh) f32
    #   wo:(H,Dh,D) bf16         bo:(1,D) f32
    # scratch: q_s:(H,tq,Dh) f32, m:(H,tq,1), l:(H,tq,1), acc:(H,tq,Dh)
    if use_pad:
        (xq_ref, xkv_ref, kpad_ref,
         wq_ref, bq_ref, wk_ref, bk_ref, wv_ref, bv_ref,
         wo_ref, bo_ref, o_ref,
         q_s, m_s, l_s, acc_s) = refs
    else:
        kpad_ref = None
        (xq_ref, xkv_ref,
         wq_ref, bq_ref, wk_ref, bk_ref, wv_ref, bv_ref,
         wo_ref, bo_ref, o_ref,
         q_s, m_s, l_s, acc_s) = refs

    ki = pl.program_id(2)
    n_kv = pl.num_programs(2)
    H, tq, Dh = q_s.shape
    tk = xkv_ref.shape[1]
    D = xq_ref.shape[2]

    # ---- init per (batch, q-tile): project Q once (softmax scale folded in) ----
    @pl.when(ki == 0)
    def _():
        xq = xq_ref[0].astype(jnp.bfloat16)                          # (tq, D)
        for h in range(n_head):
            qh = jnp.dot(xq, wq_ref[h], preferred_element_type=jnp.float32)
            q_s[h] = (qh + bq_ref[h]) * scale
        m_s[...] = jnp.full(m_s.shape, -jnp.inf, jnp.float32)
        l_s[...] = jnp.zeros_like(l_s)
        acc_s[...] = jnp.zeros_like(acc_s)

    xkv = xkv_ref[0].astype(jnp.bfloat16)                            # (tk, D)

    # ---- additive mask bias for this (q-tile, kv-tile), built in-kernel ----
    bias = None
    neg = jnp.float32(-1e9)
    if use_pad:
        kp = kpad_ref[0]                                             # (1, tk), 1.0 = pad
        bias = jnp.where(kp > 0.5, neg, jnp.float32(0.0))
    if causal:
        r = pl.program_id(1) * tq + jax.lax.broadcasted_iota(jnp.int32, (tq, tk), 0)
        c = ki * tk + jax.lax.broadcasted_iota(jnp.int32, (tq, tk), 1)
        cb = jnp.where(c > r, neg, jnp.float32(0.0))
        bias = cb if bias is None else bias + cb
    # TODO(synk): skip fully-causally-masked kv tiles with pl.when.

    # ---- per-head online softmax (head-major weights -> no lane slicing/concat) ----
    for h in range(n_head):
        kh = (jnp.dot(xkv, wk_ref[h], preferred_element_type=jnp.float32)
              + bk_ref[h]).astype(jnp.bfloat16)                      # (tk, Dh)
        vh = (jnp.dot(xkv, wv_ref[h], preferred_element_type=jnp.float32)
              + bv_ref[h]).astype(jnp.bfloat16)                      # (tk, Dh)
        s = jax.lax.dot_general(q_s[h].astype(jnp.bfloat16), kh,
                                (((1,), (1,)), ((), ())),
                                preferred_element_type=jnp.float32)  # (tq, tk)
        if bias is not None:
            s = s + bias
        m_prev = m_s[h]
        m_new = jnp.maximum(m_prev, jnp.max(s, axis=-1, keepdims=True))
        alpha = jnp.exp(m_prev - m_new)
        p = jnp.exp(s - m_new)
        l_s[h] = alpha * l_s[h] + jnp.sum(p, axis=-1, keepdims=True)
        acc_s[h] = alpha * acc_s[h] + jnp.dot(p.astype(jnp.bfloat16), vh,
                                              preferred_element_type=jnp.float32)
        m_s[h] = m_new

    # ---- finalize: normalize + fused output projection (per-head accumulation) ----
    @pl.when(ki == n_kv - 1)
    def _():
        out = jnp.zeros((tq, D), jnp.float32)
        for h in range(n_head):
            attn_h = acc_s[h] * pl.reciprocal(l_s[h], approx=True)   # (tq, Dh)
            out = out + jnp.dot(attn_h.astype(jnp.bfloat16), wo_ref[h],
                                preferred_element_type=jnp.float32)
        o_ref[0] = (out + bo_ref[...]).astype(o_ref.dtype)


def fused_mha(x_q2d, x_kv2d, B, Sq, Sk, p, n_head, key_pad=None, causal=False):
    """Fused flash MHA: QKV proj + online-softmax attention + output proj.

    x_q2d:(B*Sq,D), x_kv2d:(B*Sk,D), key_pad:(B,1,Sk) f32 (1=pad) or None.
    Returns (B*Sq, D) f32.
    """
    D = x_q2d.shape[1]
    Dh = D // n_head
    scale = 1.0 / math.sqrt(Dh)
    x_q = x_q2d.reshape(B, Sq, D)
    x_kv = x_kv2d.reshape(B, Sk, D)
    use_pad = key_pad is not None

    tq = _pick_tile(Sq, 256)
    tk = _pick_tile(Sk, 256)

    args = [x_q, x_kv]
    in_specs = [
        pl.BlockSpec((1, tq, D), lambda b, qi, ki: (b, qi, 0)),
        pl.BlockSpec((1, tk, D), lambda b, qi, ki: (b, ki, 0)),
    ]
    if use_pad:
        args.append(key_pad.astype(jnp.float32).reshape(B, 1, Sk))
        in_specs.append(pl.BlockSpec((1, 1, tk), lambda b, qi, ki: (b, 0, ki)))
    # head-major bf16 weights (reshaped on the host at init time)
    for wname, bname in (('wq', 'bq'), ('wk', 'bk'), ('wv', 'bv')):
        args += [p[wname], p[bname]]
        in_specs += [pl.BlockSpec((n_head, D, Dh), lambda b, qi, ki: (0, 0, 0)),
                     pl.BlockSpec((n_head, 1, Dh), lambda b, qi, ki: (0, 0, 0))]
    args += [p['wo'], p['bo']]
    in_specs += [pl.BlockSpec((n_head, Dh, D), lambda b, qi, ki: (0, 0, 0)),
                 pl.BlockSpec((1, D), lambda b, qi, ki: (0, 0))]

    kernel = functools.partial(_flash_mha_kernel, n_head=n_head,
                               causal=causal, use_pad=use_pad, scale=scale)
    out = pl.pallas_call(
        kernel,
        out_shape=jax.ShapeDtypeStruct((B, Sq, D), jnp.float32),
        grid=(B, Sq // tq, Sk // tk),
        in_specs=in_specs,
        out_specs=pl.BlockSpec((1, tq, D), lambda b, qi, ki: (b, qi, 0)),
        scratch_shapes=[
            pltpu.VMEM((n_head, tq, Dh), jnp.float32),   # scaled Q
            pltpu.VMEM((n_head, tq, 1), jnp.float32),    # running max m
            pltpu.VMEM((n_head, tq, 1), jnp.float32),    # running sum l
            pltpu.VMEM((n_head, tq, Dh), jnp.float32),   # output accumulator
        ],
        compiler_params=_cparams(("parallel", "parallel", "arbitrary")),
    )(*args)
    return out.reshape(B * Sq, D)


# ------------------------- model building blocks -------------------------

def encoder_layer(x2d, B, S, p, n_head):
    # encoder self-attention is maskless in the reference forward
    a = fused_mha(x2d, x2d, B, S, S, p['attn'], n_head, key_pad=None, causal=False)
    x2 = add_layer_norm(x2d, a, p['ln1_g'], p['ln1_b'])
    h = feed_forward(x2, p['ffn'])
    return add_layer_norm(x2, h, p['ln2_g'], p['ln2_b'])


def decoder_layer(y2d, ctx2d, B, n, m, tgt_kpad, src_kpad, p, n_head):
    a = fused_mha(y2d, y2d, B, n, n, p['self_attn'], n_head,
                  key_pad=tgt_kpad, causal=True)
    x2 = add_layer_norm(y2d, a, p['ln1_g'], p['ln1_b'])
    c = fused_mha(x2, ctx2d, B, n, m, p['cross_attn'], n_head,
                  key_pad=src_kpad, causal=False)
    x3 = add_layer_norm(x2, c, p['ln2_g'], p['ln2_b'])
    h = feed_forward(x3, p['ffn'])
    return add_layer_norm(x3, h, p['ln3_g'], p['ln3_b'])


# ------------------------- embeddings / PE (plain-JAX glue) -------------------------

def sinusoidal_pe(max_len, d_model):
    pos = jnp.arange(max_len, dtype=jnp.float32)[:, None]
    i = jnp.arange(0, d_model, 2, dtype=jnp.float32)
    div = jnp.exp(-math.log(10000.0) * i / d_model)
    pe = jnp.zeros((max_len, d_model), jnp.float32)
    pe = pe.at[:, 0::2].set(jnp.sin(pos * div))
    pe = pe.at[:, 1::2].set(jnp.cos(pos * div))
    return pe


def embed(tokens, table, pe, d_model):
    # PositionalEncodedEmbedding: emb(x) * sqrt(d_model) + PE[:seq_len]
    S = tokens.shape[-1]
    return table[tokens] * math.sqrt(d_model) + pe[:S][None, :, :]


# ------------------------- parameters -------------------------

def _init_attn(key, d_model, n_head):
    """Head-major bf16 projection weights: wq/wk/wv:(H,D,Dh), wo:(H,Dh,D)."""
    Dh = d_model // n_head
    ks = jax.random.split(key, 4)
    p = {}
    for name, k in zip(('q', 'k', 'v'), ks[:3]):
        w = jax.random.normal(k, (d_model, d_model), jnp.float32) * 0.02
        p['w' + name] = (w.reshape(d_model, n_head, Dh)
                          .transpose(1, 0, 2).astype(jnp.bfloat16))
        p['b' + name] = jnp.zeros((n_head, 1, Dh), jnp.float32)
    wo = jax.random.normal(ks[3], (d_model, d_model), jnp.float32) * 0.02
    p['wo'] = wo.reshape(n_head, Dh, d_model).astype(jnp.bfloat16)
    p['bo'] = jnp.zeros((1, d_model), jnp.float32)
    return p


def _init_ffn(key, d_model, d_ff):
    k1, k2 = jax.random.split(key)
    w1 = (jax.random.normal(k1, (d_model, d_ff), jnp.float32) * 0.02).astype(jnp.bfloat16)
    w2 = (jax.random.normal(k2, (d_ff, d_model), jnp.float32) * 0.02).astype(jnp.bfloat16)
    return {'w1': w1, 'b1': jnp.zeros((1, d_ff), jnp.float32),
            'w2': w2, 'b2': jnp.zeros((1, d_model), jnp.float32)}


def _ln_params(d_model):
    return jnp.ones((1, d_model), jnp.float32), jnp.zeros((1, d_model), jnp.float32)


def init_params(key, cfg):
    d_model, d_ff, n_head = cfg['d_model'], cfg['d_ff'], cfg['n_head']
    keys = jax.random.split(key, 8)
    src_emb = jax.random.normal(keys[0], (cfg['src_vocab'], d_model), jnp.float32) * 0.02
    tgt_emb = jax.random.normal(keys[1], (cfg['tgt_vocab'], d_model), jnp.float32) * 0.02
    if cfg['src_pad'] is not None:
        src_emb = src_emb.at[cfg['src_pad']].set(0.0)
    if cfg['tgt_pad'] is not None:
        tgt_emb = tgt_emb.at[cfg['tgt_pad']].set(0.0)

    enc_layers = []
    for lk in jax.random.split(keys[2], cfg['n_enc']):
        k1, k2 = jax.random.split(lk)
        g1, b1 = _ln_params(d_model)
        g2, b2 = _ln_params(d_model)
        enc_layers.append({'attn': _init_attn(k1, d_model, n_head),
                           'ffn': _init_ffn(k2, d_model, d_ff),
                           'ln1_g': g1, 'ln1_b': b1,
                           'ln2_g': g2, 'ln2_b': b2})

    dec_layers = []
    for lk in jax.random.split(keys[3], cfg['n_dec']):
        k1, k2, k3 = jax.random.split(lk, 3)
        g1, b1 = _ln_params(d_model)
        g2, b2 = _ln_params(d_model)
        g3, b3 = _ln_params(d_model)
        dec_layers.append({'self_attn': _init_attn(k1, d_model, n_head),
                           'cross_attn': _init_attn(k2, d_model, n_head),
                           'ffn': _init_ffn(k3, d_model, d_ff),
                           'ln1_g': g1, 'ln1_b': b1,
                           'ln2_g': g2, 'ln2_b': b2,
                           'ln3_g': g3, 'ln3_b': b3})

    # vocab projection, padded to a multiple of 128 columns (lane-dense output
    # tiles); padded columns are zero and sliced off after the kernel.
    v_pad = _round_up(cfg['tgt_vocab'], 128)
    out_w = jnp.zeros((d_model, v_pad), jnp.float32)
    out_w = out_w.at[:, :cfg['tgt_vocab']].set(
        jax.random.normal(keys[4], (d_model, cfg['tgt_vocab']), jnp.float32) * 0.02)
    out_w = out_w.astype(jnp.bfloat16)
    out_b = jnp.zeros((1, v_pad), jnp.float32)

    return {'src_emb': src_emb, 'tgt_emb': tgt_emb,
            'pe': sinusoidal_pe(cfg['max_seq_len'], d_model),
            'enc': enc_layers, 'dec': dec_layers,
            'out_w': out_w, 'out_b': out_b}


# ------------------------- full forward -------------------------

def transformer_forward(params, input_encoder, input_decoder, cfg):
    B, m = input_encoder.shape
    _, n = input_decoder.shape
    d_model, n_head = cfg['d_model'], cfg['n_head']

    # tiny per-key pad flags instead of dense (B,1,Sq,Sk) float masks;
    # the causal part of the decoder self-mask is generated inside the kernel.
    src_kpad = None
    if cfg['src_pad'] is not None:
        src_kpad = (input_encoder == cfg['src_pad']).astype(jnp.float32).reshape(B, 1, m)
    tgt_kpad = None
    if cfg['tgt_pad'] is not None:
        tgt_kpad = (input_decoder == cfg['tgt_pad']).astype(jnp.float32).reshape(B, 1, n)

    # embeddings + positional encoding (glue); activations stay (B*S, D) between kernels
    x_enc = embed(input_encoder, params['src_emb'], params['pe'],
                  d_model).reshape(B * m, d_model)
    x_dec = embed(input_decoder, params['tgt_emb'], params['pe'],
                  d_model).reshape(B * n, d_model)

    # encoder
    ctx = x_enc
    for lp in params['enc']:
        ctx = encoder_layer(ctx, B, m, lp, n_head)

    # decoder
    y = x_dec
    for lp in params['dec']:
        y = decoder_layer(y, ctx, B, n, m, tgt_kpad, src_kpad, lp, n_head)

    # final projection to (padded) tgt vocab, then drop the padding columns
    logits = linear(y, params['out_w'], params['out_b'])
    logits = logits[:, :cfg['tgt_vocab']]
    # TODO(synk): nn.Dropout after the final linear is identity in eval mode.
    return logits.reshape(B, n, cfg['tgt_vocab'])


# ------------------------- main -------------------------

if __name__ == "__main__":
    cfg = dict(max_seq_len=16, n_enc=2, n_dec=2, d_model=32, n_head=4,
               d_ff=64, src_vocab=40, tgt_vocab=48, src_pad=0, tgt_pad=0)

    key = jax.random.PRNGKey(0)
    kp, ke, kd = jax.random.split(key, 3)

    params = init_params(kp, cfg)

    B, m, n = 2, 10, 8
    input_encoder = jax.random.randint(ke, (B, m), 1, cfg['src_vocab'], dtype=jnp.int32)
    input_decoder = jax.random.randint(kd, (B, n), 1, cfg['tgt_vocab'], dtype=jnp.int32)
    # introduce some padding tokens to exercise the pad-mask paths
    input_encoder = input_encoder.at[1, -2:].set(0)
    input_decoder = input_decoder.at[1, -1].set(0)

    fwd = jax.jit(lambda p, a, b: transformer_forward(p, a, b, cfg))
    out = fwd(params, input_encoder, input_decoder)
    out = jax.block_until_ready(out)

    assert out.shape == (B, n, cfg['tgt_vocab']), out.shape
    assert bool(jnp.all(jnp.isfinite(out)))
    print("KERNEL_OK")
</pallas_src>

<mosaic_0001>
module attributes {stable_mosaic.version = 11 : i64} {
  func.func @_add_ln_kernel(%arg0: i32, %arg1: memref<20x32xf32, #tpu.memory_space<vmem>>, %arg2: memref<20x32xf32, #tpu.memory_space<vmem>>, %arg3: memref<1x32xf32, #tpu.memory_space<vmem>>, %arg4: memref<1x32xf32, #tpu.memory_space<vmem>>, %arg5: memref<20x32xf32, #tpu.memory_space<vmem>>) attributes {dimension_semantics = [#tpu.dimension_semantics<parallel>], iteration_bounds = array<i64: 1>, scalar_prefetch = 0 : i64, scratch_operands = 0 : i64, tpu.core_type = #tpu.core_type<tc>, window_params = [{transform_indices = @transform_0, window_bounds = array<i64: 20, 32>}, {transform_indices = @transform_1, window_bounds = array<i64: 20, 32>}, {pipeline_mode = #tpu.pipeline_mode<synchronous>, transform_indices = @transform_2, window_bounds = array<i64: 1, 32>}, {pipeline_mode = #tpu.pipeline_mode<synchronous>, transform_indices = @transform_3, window_bounds = array<i64: 1, 32>}, {transform_indices = @transform_4, window_bounds = array<i64: 20, 32>}]} {
    %c0 = arith.constant 0 : index
    %c0_0 = arith.constant 0 : index
    %0 = vector.load %arg1[%c0, %c0_0] : memref<20x32xf32, #tpu.memory_space<vmem>>, vector<20x32xf32>
    %c0_1 = arith.constant 0 : index
    %c0_2 = arith.constant 0 : index
    %1 = vector.load %arg2[%c0_1, %c0_2] : memref<20x32xf32, #tpu.memory_space<vmem>>, vector<20x32xf32>
    %2 = arith.addf %0, %1 : vector<20x32xf32>
    %cst = arith.constant dense<0.000000e+00> : vector<20xf32>
    %3 = vector.multi_reduction <add>, %2, %cst [1] : vector<20x32xf32> to vector<20xf32>
    %4 = vector.shape_cast %3 : vector<20xf32> to vector<20x1xf32>
    %cst_3 = arith.constant 3.200000e+01 : f32
    %5 = vector.broadcast %cst_3 : f32 to vector<20x1xf32>
    %6 = arith.divf %4, %5 : vector<20x1xf32>
    %7 = vector.broadcast %6 : vector<20x1xf32> to vector<20x32xf32>
    %8 = arith.subf %2, %7 : vector<20x32xf32>
    %9 = arith.mulf %8, %8 : vector<20x32xf32>
    %cst_4 = arith.constant dense<0.000000e+00> : vector<20xf32>
    %10 = vector.multi_reduction <add>, %9, %cst_4 [1] : vector<20x32xf32> to vector<20xf32>
    %11 = vector.shape_cast %10 : vector<20xf32> to vector<20x1xf32>
    %cst_5 = arith.constant 3.200000e+01 : f32
    %12 = vector.broadcast %cst_5 : f32 to vector<20x1xf32>
    %13 = arith.divf %11, %12 : vector<20x1xf32>
    %cst_6 = arith.constant 9.99999974E-6 : f32
    %14 = vector.broadcast %cst_6 : f32 to vector<20x1xf32>
    %15 = arith.addf %13, %14 : vector<20x1xf32>
    %16 = math.rsqrt %15 : vector<20x1xf32>
    %17 = vector.broadcast %16 : vector<20x1xf32> to vector<20x32xf32>
    %18 = arith.mulf %8, %17 : vector<20x32xf32>
    %c0_7 = arith.constant 0 : index
    %c0_8 = arith.constant 0 : index
    %19 = vector.load %arg3[%c0_7, %c0_8] : memref<1x32xf32, #tpu.memory_space<vmem>>, vector<1x32xf32>
    %20 = vector.broadcast %19 : vector<1x32xf32> to vector<20x32xf32>
    %21 = arith.mulf %18, %20 : vector<20x32xf32>
    %c0_9 = arith.constant 0 : index
    %c0_10 = arith.constant 0 : index
    %22 = vector.load %arg4[%c0_9, %c0_10] : memref<1x32xf32, #tpu.memory_space<vmem>>, vector<1x32xf32>
    %23 = vector.broadcast %22 : vector<1x32xf32> to vector<20x32xf32>
    %24 = arith.addf %21, %23 : vector<20x32xf32>
    %c0_11 = arith.constant 0 : index
    %c0_12 = arith.constant 0 : index
    %25 = vector.load %arg5[%c0_11, %c0_12] : memref<20x32xf32, #tpu.memory_space<vmem>>, vector<20x32xf32>
    tpu.vector_store %arg5[%c0_11, %c0_12], %24 {strides = array<i32>} : memref<20x32xf32, #tpu.memory_space<vmem>>, vector<20x32xf32>,
    return
  }
  func.func @transform_0(%arg0: i32) -> (i32, i32) {
    %c0_i32 = arith.constant 0 : i32
    %c0_i32_0 = arith.constant 0 : i32
    return %arg0, %c0_i32 : i32, i32
  }
  func.func @transform_1(%arg0: i32) -> (i32, i32) {
    %c0_i32 = arith.constant 0 : i32
    %c0_i32_0 = arith.constant 0 : i32
    return %arg0, %c0_i32 : i32, i32
  }
  func.func @transform_2(%arg0: i32) -> (i32, i32) {
    %c0_i32 = arith.constant 0 : i32
    %c0_i32_0 = arith.constant 0 : i32
    %c0_i32_1 = arith.constant 0 : i32
    return %c0_i32, %c0_i32_0 : i32, i32
  }
  func.func @transform_3(%arg0: i32) -> (i32, i32) {
    %c0_i32 = arith.constant 0 : i32
    %c0_i32_0 = arith.constant 0 : i32
    %c0_i32_1 = arith.constant 0 : i32
    return %c0_i32, %c0_i32_0 : i32, i32
  }
  func.func @transform_4(%arg0: i32) -> (i32, i32) {
    %c0_i32 = arith.constant 0 : i32
    %c0_i32_0 = arith.constant 0 : i32
    return %arg0, %c0_i32 : i32, i32
  }
}

module attributes {stable_mosaic.version = 11 : i64} {
  func.func @_ffn_kernel(%arg0: i32, %arg1: i32, %arg2: memref<20x32xf32, #tpu.memory_space<vmem>>, %arg3: memref<32x64xbf16, #tpu.memory_space<vmem>>, %arg4: memref<1x64xf32, #tpu.memory_space<vmem>>, %arg5: memref<64x32xbf16, #tpu.memory_space<vmem>>, %arg6: memref<1x32xf32, #tpu.memory_space<vmem>>, %arg7: memref<20x32xf32, #tpu.memory_space<vmem>>, %arg8: memref<20x32xf32, #tpu.memory_space<vmem>>) attributes {dimension_semantics = [#tpu.dimension_semantics<parallel>, #tpu.dimension_semantics<arbitrary>], iteration_bounds = array<i64: 1, 1>, scalar_prefetch = 0 : i64, scratch_operands = 1 : i64, tpu.core_type = #tpu.core_type<tc>, window_params = [{transform_indices = @transform_0, window_bounds = array<i64: 20, 32>}, {transform_indices = @transform_1, window_bounds = array<i64: 32, 64>}, {transform_indices = @transform_2, window_bounds = array<i64: 1, 64>}, {transform_indices = @transform_3, window_bounds = array<i64: 64, 32>}, {pipeline_mode = #tpu.pipeline_mode<synchronous>, transform_indices = @transform_4, window_bounds = array<i64: 1, 32>}, {transform_indices = @transform_5, window_bounds = array<i64: 20, 32>}]} {
    %c0_i32 = arith.constant 0 : i32
    %0 = arith.cmpi eq, %arg1, %c0_i32 : i32
    %1 = arith.extui %0 : i1 to i32
    %c0_i32_0 = arith.constant 0 : i32
    %2 = arith.cmpi ne, %1, %c0_i32_0 : i32
    scf.if %2 {
      %cst_16 = arith.constant 0.000000e+00 : f32
      %21 = vector.broadcast %cst_16 : f32 to vector<20x32xf32>
      %c0_17 = arith.constant 0 : index
      %c0_18 = arith.constant 0 : index
      %22 = vector.load %arg8[%c0_17, %c0_18] : memref<20x32xf32, #tpu.memory_space<vmem>>, vector<20x32xf32>
      tpu.vector_store %arg8[%c0_17, %c0_18], %21 {strides = array<i32>} : memref<20x32xf32, #tpu.memory_space<vmem>>, vector<20x32xf32>,
    } else {
    }
    %c0 = arith.constant 0 : index
    %c0_1 = arith.constant 0 : index
    %3 = vector.load %arg2[%c0, %c0_1] : memref<20x32xf32, #tpu.memory_space<vmem>>, vector<20x32xf32>
    %4 = arith.truncf %3 : vector<20x32xf32> to vector<20x32xbf16>
    %c0_2 = arith.constant 0 : index
    %c0_3 = arith.constant 0 : index
    %5 = vector.load %arg3[%c0_2, %c0_3] : memref<32x64xbf16, #tpu.memory_space<vmem>>, vector<32x64xbf16>
    %cst = arith.constant dense<0.000000e+00> : vector<20x64xf32>
    %6 = tpu.matmul %4, %5, %cst {dimension_numbers = #tpu.dot_dimension_numbers<[1], [0], [0], [1], [0, 0, 1, 1], [], []>} : vector<20x32xbf16>, vector<32x64xbf16>, vector<20x64xf32> -> vector<20x64xf32>
    %c0_4 = arith.constant 0 : index
    %c0_5 = arith.constant 0 : index
    %7 = vector.load %arg4[%c0_4, %c0_5] : memref<1x64xf32, #tpu.memory_space<vmem>>, vector<1x64xf32>
    %8 = vector.broadcast %7 : vector<1x64xf32> to vector<20x64xf32>
    %9 = arith.addf %6, %8 : vector<20x64xf32>
    %cst_6 = arith.constant 0.000000e+00 : f32
    %10 = vector.broadcast %cst_6 : f32 to vector<20x64xf32>
    %11 = arith.maximumf %9, %10 : vector<20x64xf32>
    %c0_7 = arith.constant 0 : index
    %c0_8 = arith.constant 0 : index
    %12 = vector.load %arg8[%c0_7, %c0_8] : memref<20x32xf32, #tpu.memory_space<vmem>>, vector<20x32xf32>
    %13 = arith.truncf %11 : vector<20x64xf32> to vector<20x64xbf16>
    %c0_9 = arith.constant 0 : index
    %c0_10 = arith.constant 0 : index
    %14 = vector.load %arg5[%c0_9, %c0_10] : memref<64x32xbf16, #tpu.memory_space<vmem>>, vector<64x32xbf16>
    %cst_11 = arith.constant dense<0.000000e+00> : vector<20x32xf32>
    %15 = tpu.matmul %13, %14, %cst_11 {dimension_numbers = #tpu.dot_dimension_numbers<[1], [0], [0], [1], [0, 0, 1, 1], [], []>} : vector<20x64xbf16>, vector<64x32xbf16>, vector<20x32xf32> -> vector<20x32xf32>
    %16 = arith.addf %12, %15 : vector<20x32xf32>
    %c0_12 = arith.constant 0 : index
    %c0_13 = arith.constant 0 : index
    %17 = vector.load %arg8[%c0_12, %c0_13] : memref<20x32xf32, #tpu.memory_space<vmem>>, vector<20x32xf32>
    tpu.vector_store %arg8[%c0_12, %c0_13], %16 {strides = array<i32>} : memref<20x32xf32, #tpu.memory_space<vmem>>, vector<20x32xf32>,
    %c0_i32_14 = arith.constant 0 : i32
    %18 = arith.cmpi eq, %arg1, %c0_i32_14 : i32
    %19 = arith.extui %18 : i1 to i32
    %c0_i32_15 = arith.constant 0 : i32
    %20 = arith.cmpi ne, %19, %c0_i32_15 : i32
    scf.if %20 {
      %c0_16 = arith.constant 0 : index
      %c0_17 = arith.constant 0 : index
      %21 = vector.load %arg8[%c0_16, %c0_17] : memref<20x32xf32, #tpu.memory_space<vmem>>, vector<20x32xf32>
      %c0_18 = arith.constant 0 : index
      %c0_19 = arith.constant 0 : index
      %22 = vector.load %arg6[%c0_18, %c0_19] : memref<1x32xf32, #tpu.memory_space<vmem>>, vector<1x32xf32>
      %23 = vector.broadcast %22 : vector<1x32xf32> to vector<20x32xf32>
      %24 = arith.addf %21, %23 : vector<20x32xf32>
      %c0_20 = arith.constant 0 : index
      %c0_21 = arith.constant 0 : index
      %25 = vector.load %arg7[%c0_20, %c0_21] : memref<20x32xf32, #tpu.memory_space<vmem>>, vector<20x32xf32>
      tpu.vector_store %arg7[%c0_20, %c0_21], %24 {strides = array<i32>} : memref<20x32xf32, #tpu.memory_space<vmem>>, vector<20x32xf32>,
    } else {
    }
    return
  }
  func.func @transform_0(%arg0: i32, %arg1: i32) -> (i32, i32) {
    %c0_i32 = arith.constant 0 : i32
    %c0_i32_0 = arith.constant 0 : i32
    return %arg0, %c0_i32 : i32, i32
  }
  func.func @transform_1(%arg0: i32, %arg1: i32) -> (i32, i32) {
    %c0_i32 = arith.constant 0 : i32
    %c0_i32_0 = arith.constant 0 : i32
    return %c0_i32, %arg1 : i32, i32
  }
  func.func @transform_2(%arg0: i32, %arg1: i32) -> (i32, i32) {
    %c0_i32 = arith.constant 0 : i32
    %c0_i32_0 = arith.constant 0 : i32
    return %c0_i32, %arg1 : i32, i32
  }
  func.func @transform_3(%arg0: i32, %arg1: i32) -> (i32, i32) {
    %c0_i32 = arith.constant 0 : i32
    %c0_i32_0 = arith.constant 0 : i32
    return %arg1, %c0_i32 : i32, i32
  }
  func.func @transform_4(%arg0: i32, %arg1: i32) -> (i32, i32) {
    %c0_i32 = arith.constant 0 : i32
    %c0_i32_0 = arith.constant 0 : i32
    %c0_i32_1 = arith.constant 0 : i32
    return %c0_i32, %c0_i32_0 : i32, i32
  }
  func.func @transform_5(%arg0: i32, %arg1: i32) -> (i32, i32) {
    %c0_i32 = arith.constant 0 : i32
    %c0_i32_0 = arith.constant 0 : i32
    return %arg0, %c0_i32 : i32, i32
  }
}

module attributes {stable_mosaic.version = 11 : i64} {
  func.func @_flash_mha_kernel(%arg0: i32, %arg1: i32, %arg2: i32, %arg3: memref<1x10x32xf32, #tpu.memory_space<vmem>>, %arg4: memref<1x10x32xf32, #tpu.memory_space<vmem>>, %arg5: memref<4x32x8xbf16, #tpu.memory_space<vmem>>, %arg6: memref<4x1x8xf32, #tpu.memory_space<vmem>>, %arg7: memref<4x32x8xbf16, #tpu.memory_space<vmem>>, %arg8: memref<4x1x8xf32, #tpu.memory_space<vmem>>, %arg9: memref<4x32x8xbf16, #tpu.memory_space<vmem>>, %arg10: memref<4x1x8xf32, #tpu.memory_space<vmem>>, %arg11: memref<4x8x32xbf16, #tpu.memory_space<vmem>>, %arg12: memref<1x32xf32, #tpu.memory_space<vmem>>, %arg13: memref<1x10x32xf32, #tpu.memory_space<vmem>>, %arg14: memref<4x10x8xf32, #tpu.memory_space<vmem>>, %arg15: memref<4x10x1xf32, #tpu.memory_space<vmem>>, %arg16: memref<4x10x1xf32, #tpu.memory_space<vmem>>, %arg17: memref<4x10x8xf32, #tpu.memory_space<vmem>>) attributes {dimension_semantics = [#tpu.dimension_semantics<parallel>, #tpu.dimension_semantics<parallel>, #tpu.dimension_semantics<arbitrary>], iteration_bounds = array<i64: 2, 1, 1>, scalar_prefetch = 0 : i64, scratch_operands = 4 : i64, tpu.core_type = #tpu.core_type<tc>, window_params = [{transform_indices = @transform_0, window_bounds = array<i64: 1, 10, 32>}, {transform_indices = @transform_1, window_bounds = array<i64: 1, 10, 32>}, {pipeline_mode = #tpu.pipeline_mode<synchronous>, transform_indices = @transform_2, window_bounds = array<i64: 4, 32, 8>}, {pipeline_mode = #tpu.pipeline_mode<synchronous>, transform_indices = @transform_3, window_bounds = array<i64: 4, 1, 8>}, {pipeline_mode = #tpu.pipeline_mode<synchronous>, transform_indices = @transform_4, window_bounds = array<i64: 4, 32, 8>}, {pipeline_mode = #tpu.pipeline_mode<synchronous>, transform_indices = @transform_5, window_bounds = array<i64: 4, 1, 8>}, {pipeline_mode = #tpu.pipeline_mode<synchronous>, transform_indices = @transform_6, window_bounds = array<i64: 4, 32, 8>}, {pipeline_mode = #tpu.pipeline_mode<synchronous>, transform_indices = @transform_7, window_bounds = array<i64: 4, 1, 8>}, {pipeline_mode = #tpu.pipeline_mode<synchronous>, transform_indices = @transform_8, window_bounds = array<i64: 4, 8, 32>}, {pipeline_mode = #tpu.pipeline_mode<synchronous>, transform_indices = @transform_9, window_bounds = array<i64: 1, 32>}, {transform_indices = @transform_10, window_bounds = array<i64: 1, 10, 32>}]} {
    %c0_i32 = arith.constant 0 : i32
    %0 = arith.cmpi eq, %arg2, %c0_i32 : i32
    %1 = arith.extui %0 : i1 to i32
    %c0_i32_0 = arith.constant 0 : i32
    %2 = arith.cmpi ne, %1, %c0_i32_0 : i32
    scf.if %2 {
      %c0_157 = arith.constant 0 : index
      %c0_158 = arith.constant 0 : index
      %c0_159 = arith.constant 0 : index
      %217 = vector.load %arg3[%c0_157, %c0_158, %c0_159] : memref<1x10x32xf32, #tpu.memory_space<vmem>>, vector<1x10x32xf32>
      %218 = vector.shape_cast %217 : vector<1x10x32xf32> to vector<10x32xf32>
      %219 = arith.truncf %218 : vector<10x32xf32> to vector<10x32xbf16>
      %c0_160 = arith.constant 0 : index
      %c0_161 = arith.constant 0 : index
      %c0_162 = arith.constant 0 : index
      %220 = vector.load %arg5[%c0_160, %c0_161, %c0_162] : memref<4x32x8xbf16, #tpu.memory_space<vmem>>, vector<1x32x8xbf16>
      %221 = vector.shape_cast %220 : vector<1x32x8xbf16> to vector<32x8xbf16>
      %cst_163 = arith.constant dense<0.000000e+00> : vector<10x8xf32>
      %222 = tpu.matmul %219, %221, %cst_163 {dimension_numbers = #tpu.dot_dimension_numbers<[1], [0], [0], [1], [0, 0, 1, 1], [], []>} : vector<10x32xbf16>, vector<32x8xbf16>, vector<10x8xf32> -> vector<10x8xf32>
      %c0_164 = arith.constant 0 : index
      %c0_165 = arith.constant 0 : index
      %c0_166 = arith.constant 0 : index
      %223 = vector.load %arg6[%c0_164, %c0_165, %c0_166] : memref<4x1x8xf32, #tpu.memory_space<vmem>>, vector<1x1x8xf32>
      %224 = vector.shape_cast %223 : vector<1x1x8xf32> to vector<1x8xf32>
      %225 = vector.broadcast %224 : vector<1x8xf32> to vector<10x8xf32>
      %226 = arith.addf %222, %225 : vector<10x8xf32>
      %cst_167 = arith.constant 0.353553385 : f32
      %227 = vector.broadcast %cst_167 : f32 to vector<10x8xf32>
      %228 = arith.mulf %226, %227 : vector<10x8xf32>
      %c0_168 = arith.constant 0 : index
      %c0_169 = arith.constant 0 : index
      %c0_170 = arith.constant 0 : index
      %229 = vector.load %arg14[%c0_168, %c0_169, %c0_170] : memref<4x10x8xf32, #tpu.memory_space<vmem>>, vector<1x10x8xf32>
      %230 = vector.shape_cast %229 : vector<1x10x8xf32> to vector<10x8xf32>
      %231 = vector.shape_cast %228 : vector<10x8xf32> to vector<1x10x8xf32>
      tpu.vector_store %arg14[%c0_168, %c0_169, %c0_170], %231 {strides = array<i32>} : memref<4x10x8xf32, #tpu.memory_space<vmem>>, vector<1x10x8xf32>,
      %c1_171 = arith.constant 1 : index
      %c0_172 = arith.constant 0 : index
      %c0_173 = arith.constant 0 : index
      %232 = vector.load %arg5[%c1_171, %c0_172, %c0_173] : memref<4x32x8xbf16, #tpu.memory_space<vmem>>, vector<1x32x8xbf16>
      %233 = vector.shape_cast %232 : vector<1x32x8xbf16> to vector<32x8xbf16>
      %cst_174 = arith.constant dense<0.000000e+00> : vector<10x8xf32>
      %234 = tpu.matmul %219, %233, %cst_174 {dimension_numbers = #tpu.dot_dimension_numbers<[1], [0], [0], [1], [0, 0, 1, 1], [], []>} : vector<10x32xbf16>, vector<32x8xbf16>, vector<10x8xf32> -> vector<10x8xf32>
      %c1_175 = arith.constant 1 : index
      %c0_176 = arith.constant 0 : index
      %c0_177 = arith.constant 0 : index
      %235 = vector.load %arg6[%c1_175, %c0_176, %c0_177] : memref<4x1x8xf32, #tpu.memory_space<vmem>>, vector<1x1x8xf32>
      %236 = vector.shape_cast %235 : vector<1x1x8xf32> to vector<1x8xf32>
      %237 = vector.broadcast %236 : vector<1x8xf32> to vector<10x8xf32>
      %238 = arith.addf %234, %237 : vector<10x8xf32>
      %cst_178 = arith.constant 0.353553385 : f32
      %239 = vector.broadcast %cst_178 : f32 to vector<10x8xf32>
      %240 = arith.mulf %238, %239 : vector<10x8xf32>
      %c1_179 = arith.constant 1 : index
      %c0_180 = arith.constant 0 : index
      %c0_181 = arith.constant 0 : index
      %241 = vector.load %arg14[%c1_179, %c0_180, %c0_181] : memref<4x10x8xf32, #tpu.memory_space<vmem>>, vector<1x10x8xf32>
      %242 = vector.shape_cast %241 : vector<1x10x8xf32> to vector<10x8xf32>
      %243 = vector.shape_cast %240 : vector<10x8xf32> to vector<1x10x8xf32>
      tpu.vector_store %arg14[%c1_179, %c0_180, %c0_181], %243 {strides = array<i32>} : memref<4x10x8xf32, #tpu.memory_space<vmem>>, vector<1x10x8xf32>,
      %c2_182 = arith.constant 2 : index
      %c0_183 = arith.constant 0 : index
      %c0_184 = arith.constant 0 : index
      %244 = vector.load %arg5[%c2_182, %c0_183, %c0_184] : memref<4x32x8xbf16, #tpu.memory_space<vmem>>, vector<1x32x8xbf16>
      %245 = vector.shape_cast %244 : vector<1x32x8xbf16> to vector<32x8xbf16>
      %cst_185 = arith.constant dense<0.000000e+00> : vector<10x8xf32>
      %246 = tpu.matmul %219, %245, %cst_185 {dimension_numbers = #tpu.dot_dimension_numbers<[1], [0], [0], [1], [0, 0, 1, 1], [], []>} : vector<10x32xbf16>, vector<32x8xbf16>, vector<10x8xf32> -> vector<10x8xf32>
      %c2_186 = arith.constant 2 : index
      %c0_187 = arith.constant 0 : index
      %c0_188 = arith.constant 0 : index
      %247 = vector.load %arg6[%c2_186, %c0_187, %c0_188] : memref<4x1x8xf32, #tpu.memory_space<vmem>>, vector<1x1x8xf32>
      %248 = vector.shape_cast %247 : vector<1x1x8xf32> to vector<1x8xf32>
      %249 = vector.broadcast %248 : vector<1x8xf32> to vector<10x8xf32>
      %250 = arith.addf %246, %249 : vector<10x8xf32>
      %cst_189 = arith.constant 0.353553385 : f32
      %251 = vector.broadcast %cst_189 : f32 to vector<10x8xf32>
      %252 = arith.mulf %250, %251 : vector<10x8xf32>
      %c2_190 = arith.constant 2 : index
      %c0_191 = arith.constant 0 : index
      %c0_192 = arith.constant 0 : index
      %253 = vector.load %arg14[%c2_190, %c0_191, %c0_192] : memref<4x10x8xf32, #tpu.memory_space<vmem>>, vector<1x10x8xf32>
      %254 = vector.shape_cast %253 : vector<1x10x8xf32> to vector<10x8xf32>
      %255 = vector.shape_cast %252 : vector<10x8xf32> to vector<1x10x8xf32>
      tpu.vector_store %arg14[%c2_190, %c0_191, %c0_192], %255 {strides = array<i32>} : memref<4x10x8xf32, #tpu.memory_space<vmem>>, vector<1x10x8xf32>,
      %c3_193 = arith.constant 3 : index
      %c0_194 = arith.constant 0 : index
      %c0_195 = arith.constant 0 : index
      %256 = vector.load %arg5[%c3_193, %c0_194, %c0_195] : memref<4x32x8xbf16, #tpu.memory_space<vmem>>, vector<1x32x8xbf16>
      %257 = vector.shape_cast %256 : vector<1x32x8xbf16> to vector<32x8xbf16>
      %cst_196 = arith.constant dense<0.000000e+00> : vector<10x8xf32>
      %258 = tpu.matmul %219, %257, %cst_196 {dimension_numbers = #tpu.dot_dimension_numbers<[1], [0], [0], [1], [0, 0, 1, 1], [], []>} : vector<10x32xbf16>, vector<32x8xbf16>, vector<10x8xf32> -> vector<10x8xf32>
      %c3_197 = arith.constant 3 : index
      %c0_198 = arith.constant 0 : index
      %c0_199 = arith.constant 0 : index
      %259 = vector.load %arg6[%c3_197, %c0_198, %c0_199] : memref<4x1x8xf32, #tpu.memory_space<vmem>>, vector<1x1x8xf32>
      %260 = vector.shape_cast %259 : vector<1x1x8xf32> to vector<1x8xf32>
      %261 = vector.broadcast %260 : vector<1x8xf32> to vector<10x8xf32>
      %262 = arith.addf %258, %261 : vector<10x8xf32>
      %cst_200 = arith.constant 0.353553385 : f32
      %263 = vector.broadcast %cst_200 : f32 to vector<10x8xf32>
      %264 = arith.mulf %262, %263 : vector<10x8xf32>
      %c3_201 = arith.constant 3 : index
      %c0_202 = arith.constant 0 : index
      %c0_203 = arith.constant 0 : index
      %265 = vector.load %arg14[%c3_201, %c0_202, %c0_203] : memref<4x10x8xf32, #tpu.memory_space<vmem>>, vector<1x10x8xf32>
      %266 = vector.shape_cast %265 : vector<1x10x8xf32> to vector<10x8xf32>
      %267 = vector.shape_cast %264 : vector<10x8xf32> to vector<1x10x8xf32>
      tpu.vector_store %arg14[%c3_201, %c0_202, %c0_203], %267 {strides = array<i32>} : memref<4x10x8xf32, #tpu.memory_space<vmem>>, vector<1x10x8xf32>,
      %cst_204 = arith.constant 0xFF800000 : f32
      %268 = vector.broadcast %cst_204 : f32 to vector<4x10x1xf32>
      %c0_205 = arith.constant 0 : index
      %c0_206 = arith.constant 0 : index
      %c0_207 = arith.constant 0 : index
      %269 = vector.load %arg15[%c0_205, %c0_206, %c0_207] : memref<4x10x1xf32, #tpu.memory_space<vmem>>, vector<4x10x1xf32>
      tpu.vector_store %arg15[%c0_205, %c0_206, %c0_207], %268 {strides = array<i32>} : memref<4x10x1xf32, #tpu.memory_space<vmem>>, vector<4x10x1xf32>,
      %cst_208 = arith.constant 0.000000e+00 : f32
      %270 = vector.broadcast %cst_208 : f32 to vector<4x10x1xf32>
      %c0_209 = arith.constant 0 : index
      %c0_210 = arith.constant 0 : index
      %c0_211 = arith.constant 0 : index
      %271 = vector.load %arg16[%c0_209, %c0_210, %c0_211] : memref<4x10x1xf32, #tpu.memory_space<vmem>>, vector<4x10x1xf32>
      tpu.vector_store %arg16[%c0_209, %c0_210, %c0_211], %270 {strides = array<i32>} : memref<4x10x1xf32, #tpu.memory_space<vmem>>, vector<4x10x1xf32>,
      %cst_212 = arith.constant 0.000000e+00 : f32
      %272 = vector.broadcast %cst_212 : f32 to vector<4x10x8xf32>
      %c0_213 = arith.constant 0 : index
      %c0_214 = arith.constant 0 : index
      %c0_215 = arith.constant 0 : index
      %273 = vector.load %arg17[%c0_213, %c0_214, %c0_215] : memref<4x10x8xf32, #tpu.memory_space<vmem>>, vector<4x10x8xf32>
      tpu.vector_store %arg17[%c0_213, %c0_214, %c0_215], %272 {strides = array<i32>} : memref<4x10x8xf32, #tpu.memory_space<vmem>>, vector<4x10x8xf32>,
    } else {
    }
    %c0 = arith.constant 0 : index
    %c0_1 = arith.constant 0 : index
    %c0_2 = arith.constant 0 : index
    %3 = vector.load %arg4[%c0, %c0_1, %c0_2] : memref<1x10x32xf32, #tpu.memory_space<vmem>>, vector<1x10x32xf32>
    %4 = vector.shape_cast %3 : vector<1x10x32xf32> to vector<10x32xf32>
    %5 = arith.truncf %4 : vector<10x32xf32> to vector<10x32xbf16>
    %c0_3 = arith.constant 0 : index
    %c0_4 = arith.constant 0 : index
    %c0_5 = arith.constant 0 : index
    %6 = vector.load %arg7[%c0_3, %c0_4, %c0_5] : memref<4x32x8xbf16, #tpu.memory_space<vmem>>, vector<1x32x8xbf16>
    %7 = vector.shape_cast %6 : vector<1x32x8xbf16> to vector<32x8xbf16>
    %cst = arith.constant dense<0.000000e+00> : vector<10x8xf32>
    %8 = tpu.matmul %5, %7, %cst {dimension_numbers = #tpu.dot_dimension_numbers<[1], [0], [0], [1], [0, 0, 1, 1], [], []>} : vector<10x32xbf16>, vector<32x8xbf16>, vector<10x8xf32> -> vector<10x8xf32>
    %c0_6 = arith.constant 0 : index
    %c0_7 = arith.constant 0 : index
    %c0_8 = arith.constant 0 : index
    %9 = vector.load %arg8[%c0_6, %c0_7, %c0_8] : memref<4x1x8xf32, #tpu.memory_space<vmem>>, vector<1x1x8xf32>
    %10 = vector.shape_cast %9 : vector<1x1x8xf32> to vector<1x8xf32>
    %11 = vector.broadcast %10 : vector<1x8xf32> to vector<10x8xf32>
    %12 = arith.addf %8, %11 : vector<10x8xf32>
    %13 = arith.truncf %12 : vector<10x8xf32> to vector<10x8xbf16>
    %c0_9 = arith.constant 0 : index
    %c0_10 = arith.constant 0 : index
    %c0_11 = arith.constant 0 : index
    %14 = vector.load %arg9[%c0_9, %c0_10, %c0_11] : memref<4x32x8xbf16, #tpu.memory_space<vmem>>, vector<1x32x8xbf16>
    %15 = vector.shape_cast %14 : vector<1x32x8xbf16> to vector<32x8xbf16>
    %cst_12 = arith.constant dense<0.000000e+00> : vector<10x8xf32>
    %16 = tpu.matmul %5, %15, %cst_12 {dimension_numbers = #tpu.dot_dimension_numbers<[1], [0], [0], [1], [0, 0, 1, 1], [], []>} : vector<10x32xbf16>, vector<32x8xbf16>, vector<10x8xf32> -> vector<10x8xf32>
    %c0_13 = arith.constant 0 : index
    %c0_14 = arith.constant 0 : index
    %c0_15 = arith.constant 0 : index
    %17 = vector.load %arg10[%c0_13, %c0_14, %c0_15] : memref<4x1x8xf32, #tpu.memory_space<vmem>>, vector<1x1x8xf32>
    %18 = vector.shape_cast %17 : vector<1x1x8xf32> to vector<1x8xf32>
    %19 = vector.broadcast %18 : vector<1x8xf32> to vector<10x8xf32>
    %20 = arith.addf %16, %19 : vector<10x8xf32>
    %21 = arith.truncf %20 : vector<10x8xf32> to vector<10x8xbf16>
    %c0_16 = arith.constant 0 : index
    %c0_17 = arith.constant 0 : index
    %c0_18 = arith.constant 0 : index
    %22 = vector.load %arg14[%c0_16, %c0_17, %c0_18] : memref<4x10x8xf32, #tpu.memory_space<vmem>>, vector<1x10x8xf32>
    %23 = vector.shape_cast %22 : vector<1x10x8xf32> to vector<10x8xf32>
    %24 = arith.truncf %23 : vector<10x8xf32> to vector<10x8xbf16>
    %cst_19 = arith.constant dense<0.000000e+00> : vector<10x10xf32>
    %25 = tpu.matmul %24, %13, %cst_19 {dimension_numbers = #tpu.dot_dimension_numbers<[1], [1], [0], [0], [0, 0, 1, 0], [], []>} : vector<10x8xbf16>, vector<10x8xbf16>, vector<10x10xf32> -> vector<10x10xf32>
    %c0_20 = arith.constant 0 : index
    %c0_21 = arith.constant 0 : index
    %c0_22 = arith.constant 0 : index
    %26 = vector.load %arg15[%c0_20, %c0_21, %c0_22] : memref<4x10x1xf32, #tpu.memory_space<vmem>>, vector<1x10x1xf32>
    %27 = vector.shape_cast %26 : vector<1x10x1xf32> to vector<10x1xf32>
    %cst_23 = arith.constant dense<0xFF800000> : vector<10xf32>
    %28 = vector.multi_reduction <maximumf>, %25, %cst_23 [1] : vector<10x10xf32> to vector<10xf32>
    %29 = vector.shape_cast %28 : vector<10xf32> to vector<10x1xf32>
    %30 = arith.maximumf %27, %29 : vector<10x1xf32>
    %31 = arith.subf %27, %30 : vector<10x1xf32>
    %32 = math.exp %31 : vector<10x1xf32>
    %33 = vector.broadcast %30 : vector<10x1xf32> to vector<10x10xf32>
    %34 = arith.subf %25, %33 : vector<10x10xf32>
    %35 = math.exp %34 : vector<10x10xf32>
    %c0_24 = arith.constant 0 : index
    %c0_25 = arith.constant 0 : index
    %c0_26 = arith.constant 0 : index
    %36 = vector.load %arg16[%c0_24, %c0_25, %c0_26] : memref<4x10x1xf32, #tpu.memory_space<vmem>>, vector<1x10x1xf32>
    %37 = vector.shape_cast %36 : vector<1x10x1xf32> to vector<10x1xf32>
    %38 = arith.mulf %32, %37 : vector<10x1xf32>
    %cst_27 = arith.constant dense<0.000000e+00> : vector<10xf32>
    %39 = vector.multi_reduction <add>, %35, %cst_27 [1] : vector<10x10xf32> to vector<10xf32>
    %40 = vector.shape_cast %39 : vector<10xf32> to vector<10x1xf32>
    %41 = arith.addf %38, %40 : vector<10x1xf32>
    %c0_28 = arith.constant 0 : index
    %c0_29 = arith.constant 0 : index
    %c0_30 = arith.constant 0 : index
    %42 = vector.load %arg16[%c0_28, %c0_29, %c0_30] : memref<4x10x1xf32, #tpu.memory_space<vmem>>, vector<1x10x1xf32>
    %43 = vector.shape_cast %42 : vector<1x10x1xf32> to vector<10x1xf32>
    %44 = vector.shape_cast %41 : vector<10x1xf32> to vector<1x10x1xf32>
    tpu.vector_store %arg16[%c0_28, %c0_29, %c0_30], %44 {strides = array<i32>} : memref<4x10x1xf32, #tpu.memory_space<vmem>>, vector<1x10x1xf32>,
    %c0_31 = arith.constant 0 : index
    %c0_32 = arith.constant 0 : index
    %c0_33 = arith.constant 0 : index
    %45 = vector.load %arg17[%c0_31, %c0_32, %c0_33] : memref<4x10x8xf32, #tpu.memory_space<vmem>>, vector<1x10x8xf32>
    %46 = vector.shape_cast %45 : vector<1x10x8xf32> to vector<10x8xf32>
    %47 = vector.broadcast %32 : vector<10x1xf32> to vector<10x8xf32>
    %48 = arith.mulf %47, %46 : vector<10x8xf32>
    %49 = arith.truncf %35 : vector<10x10xf32> to vector<10x10xbf16>
    %cst_34 = arith.constant dense<0.000000e+00> : vector<10x8xf32>
    %50 = tpu.matmul %49, %21, %cst_34 {dimension_numbers = #tpu.dot_dimension_numbers<[1], [0], [0], [1], [0, 0, 1, 1], [], []>} : vector<10x10xbf16>, vector<10x8xbf16>, vector<10x8xf32> -> vector<10x8xf32>
    %51 = arith.addf %48, %50 : vector<10x8xf32>
    %c0_35 = arith.constant 0 : index
    %c0_36 = arith.constant 0 : index
    %c0_37 = arith.constant 0 : index
    %52 = vector.load %arg17[%c0_35, %c0_36, %c0_37] : memref<4x10x8xf32, #tpu.memory_space<vmem>>, vector<1x10x8xf32>
    %53 = vector.shape_cast %52 : vector<1x10x8xf32> to vector<10x8xf32>
    %54 = vector.shape_cast %51 : vector<10x8xf32> to vector<1x10x8xf32>
    tpu.vector_store %arg17[%c0_35, %c0_36, %c0_37], %54 {strides = array<i32>} : memref<4x10x8xf32, #tpu.memory_space<vmem>>, vector<1x10x8xf32>,
    %c0_38 = arith.constant 0 : index
    %c0_39 = arith.constant 0 : index
    %c0_40 = arith.constant 0 : index
    %55 = vector.load %arg15[%c0_38, %c0_39, %c0_40] : memref<4x10x1xf32, #tpu.memory_space<vmem>>, vector<1x10x1xf32>
    %56 = vector.shape_cast %55 : vector<1x10x1xf32> to vector<10x1xf32>
    %57 = vector.shape_cast %30 : vector<10x1xf32> to vector<1x10x1xf32>
    tpu.vector_store %arg15[%c0_38, %c0_39, %c0_40], %57 {strides = array<i32>} : memref<4x10x1xf32, #tpu.memory_space<vmem>>, vector<1x10x1xf32>,
    %c1 = arith.constant 1 : index
    %c0_41 = arith.constant 0 : index
    %c0_42 = arith.constant 0 : index
    %58 = vector.load %arg7[%c1, %c0_41, %c0_42] : memref<4x32x8xbf16, #tpu.memory_space<vmem>>, vector<1x32x8xbf16>
    %59 = vector.shape_cast %58 : vector<1x32x8xbf16> to vector<32x8xbf16>
    %cst_43 = arith.constant dense<0.000000e+00> : vector<10x8xf32>
    %60 = tpu.matmul %5, %59, %cst_43 {dimension_numbers = #tpu.dot_dimension_numbers<[1], [0], [0], [1], [0, 0, 1, 1], [], []>} : vector<10x32xbf16>, vector<32x8xbf16>, vector<10x8xf32> -> vector<10x8xf32>
    %c1_44 = arith.constant 1 : index
    %c0_45 = arith.constant 0 : index
    %c0_46 = arith.constant 0 : index
    %61 = vector.load %arg8[%c1_44, %c0_45, %c0_46] : memref<4x1x8xf32, #tpu.memory_space<vmem>>, vector<1x1x8xf32>
    %62 = vector.shape_cast %61 : vector<1x1x8xf32> to vector<1x8xf32>
    %63 = vector.broadcast %62 : vector<1x8xf32> to vector<10x8xf32>
    %64 = arith.addf %60, %63 : vector<10x8xf32>
    %65 = arith.truncf %64 : vector<10x8xf32> to vector<10x8xbf16>
    %c1_47 = arith.constant 1 : index
    %c0_48 = arith.constant 0 : index
    %c0_49 = arith.constant 0 : index
    %66 = vector.load %arg9[%c1_47, %c0_48, %c0_49] : memref<4x32x8xbf16, #tpu.memory_space<vmem>>, vector<1x32x8xbf16>
    %67 = vector.shape_cast %66 : vector<1x32x8xbf16> to vector<32x8xbf16>
    %cst_50 = arith.constant dense<0.000000e+00> : vector<10x8xf32>
    %68 = tpu.matmul %5, %67, %cst_50 {dimension_numbers = #tpu.dot_dimension_numbers<[1], [0], [0], [1], [0, 0, 1, 1], [], []>} : vector<10x32xbf16>, vector<32x8xbf16>, vector<10x8xf32> -> vector<10x8xf32>
    %c1_51 = arith.constant 1 : index
    %c0_52 = arith.constant 0 : index
    %c0_53 = arith.constant 0 : index
    %69 = vector.load %arg10[%c1_51, %c0_52, %c0_53] : memref<4x1x8xf32, #tpu.memory_space<vmem>>, vector<1x1x8xf32>
    %70 = vector.shape_cast %69 : vector<1x1x8xf32> to vector<1x8xf32>
    %71 = vector.broadcast %70 : vector<1x8xf32> to vector<10x8xf32>
    %72 = arith.addf %68, %71 : vector<10x8xf32>
    %73 = arith.truncf %72 : vector<10x8xf32> to vector<10x8xbf16>
    %c1_54 = arith.constant 1 : index
    %c0_55 = arith.constant 0 : index
    %c0_56 = arith.constant 0 : index
    %74 = vector.load %arg14[%c1_54, %c0_55, %c0_56] : memref<4x10x8xf32, #tpu.memory_space<vmem>>, vector<1x10x8xf32>
    %75 = vector.shape_cast %74 : vector<1x10x8xf32> to vector<10x8xf32>
    %76 = arith.truncf %75 : vector<10x8xf32> to vector<10x8xbf16>
    %cst_57 = arith.constant dense<0.000000e+00> : vector<10x10xf32>
    %77 = tpu.matmul %76, %65, %cst_57 {dimension_numbers = #tpu.dot_dimension_numbers<[1], [1], [0], [0], [0, 0, 1, 0], [], []>} : vector<10x8xbf16>, vector<10x8xbf16>, vector<10x10xf32> -> vector<10x10xf32>
    %c1_58 = arith.constant 1 : index
    %c0_59 = arith.constant 0 : index
    %c0_60 = arith.constant 0 : index
    %78 = vector.load %arg15[%c1_58, %c0_59, %c0_60] : memref<4x10x1xf32, #tpu.memory_space<vmem>>, vector<1x10x1xf32>
    %79 = vector.shape_cast %78 : vector<1x10x1xf32> to vector<10x1xf32>
    %cst_61 = arith.constant dense<0xFF800000> : vector<10xf32>
    %80 = vector.multi_reduction <maximumf>, %77, %cst_61 [1] : vector<10x10xf32> to vector<10xf32>
    %81 = vector.shape_cast %80 : vector<10xf32> to vector<10x1xf32>
    %82 = arith.maximumf %79, %81 : vector<10x1xf32>
    %83 = arith.subf %79, %82 : vector<10x1xf32>
    %84 = math.exp %83 : vector<10x1xf32>
    %85 = vector.broadcast %82 : vector<10x1xf32> to vector<10x10xf32>
    %86 = arith.subf %77, %85 : vector<10x10xf32>
    %87 = math.exp %86 : vector<10x10xf32>
    %c1_62 = arith.constant 1 : index
    %c0_63 = arith.constant 0 : index
    %c0_64 = arith.constant 0 : index
    %88 = vector.load %arg16[%c1_62, %c0_63, %c0_64] : memref<4x10x1xf32, #tpu.memory_space<vmem>>, vector<1x10x1xf32>
    %89 = vector.shape_cast %88 : vector<1x10x1xf32> to vector<10x1xf32>
    %90 = arith.mulf %84, %89 : vector<10x1xf32>
    %cst_65 = arith.constant dense<0.000000e+00> : vector<10xf32>
    %91 = vector.multi_reduction <add>, %87, %cst_65 [1] : vector<10x10xf32> to vector<10xf32>
    %92 = vector.shape_cast %91 : vector<10xf32> to vector<10x1xf32>
    %93 = arith.addf %90, %92 : vector<10x1xf32>
    %c1_66 = arith.constant 1 : index
    %c0_67 = arith.constant 0 : index
    %c0_68 = arith.constant 0 : index
    %94 = vector.load %arg16[%c1_66, %c0_67, %c0_68] : memref<4x10x1xf32, #tpu.memory_space<vmem>>, vector<1x10x1xf32>
    %95 = vector.shape_cast %94 : vector<1x10x1xf32> to vector<10x1xf32>
    %96 = vector.shape_cast %93 : vector<10x1xf32> to vector<1x10x1xf32>
    tpu.vector_store %arg16[%c1_66, %c0_67, %c0_68], %96 {strides = array<i32>} : memref<4x10x1xf32, #tpu.memory_space<vmem>>, vector<1x10x1xf32>,
    %c1_69 = arith.constant 1 : index
    %c0_70 = arith.constant 0 : index
    %c0_71 = arith.constant 0 : index
    %97 = vector.load %arg17[%c1_69, %c0_70, %c0_71] : memref<4x10x8xf32, #tpu.memory_space<vmem>>, vector<1x10x8xf32>
    %98 = vector.shape_cast %97 : vector<1x10x8xf32> to vector<10x8xf32>
    %99 = vector.broadcast %84 : vector<10x1xf32> to vector<10x8xf32>
    %100 = arith.mulf %99, %98 : vector<10x8xf32>
    %101 = arith.truncf %87 : vector<10x10xf32> to vector<10x10xbf16>
    %cst_72 = arith.constant dense<0.000000e+00> : vector<10x8xf32>
    %102 = tpu.matmul %101, %73, %cst_72 {dimension_numbers = #tpu.dot_dimension_numbers<[1], [0], [0], [1], [0, 0, 1, 1], [], []>} : vector<10x10xbf16>, vector<10x8xbf16>, vector<10x8xf32> -> vector<10x8xf32>
    %103 = arith.addf %100, %102 : vector<10x8xf32>
    %c1_73 = arith.constant 1 : index
    %c0_74 = arith.constant 0 : index
    %c0_75 = arith.constant 0 : index
    %104 = vector.load %arg17[%c1_73, %c0_74, %c0_75] : memref<4x10x8xf32, #tpu.memory_space<vmem>>, vector<1x10x8xf32>
    %105 = vector.shape_cast %104 : vector<1x10x8xf32> to vector<10x8xf32>
    %106 = vector.shape_cast %103 : vector<10x8xf32> to vector<1x10x8xf32>
    tpu.vector_store %arg17[%c1_73, %c0_74, %c0_75], %106 {strides = array<i32>} : memref<4x10x8xf32, #tpu.memory_space<vmem>>, vector<1x10x8xf32>,
    %c1_76 = arith.constant 1 : index
    %c0_77 = arith.constant 0 : index
    %c0_78 = arith.constant 0 : index
    %107 = vector.load %arg15[%c1_76, %c0_77, %c0_78] : memref<4x10x1xf32, #tpu.memory_space<vmem>>, vector<1x10x1xf32>
    %108 = vector.shape_cast %107 : vector<1x10x1xf32> to vector<10x1xf32>
    %109 = vector.shape_cast %82 : vector<10x1xf32> to vector<1x10x1xf32>
    tpu.vector_store %arg15[%c1_76, %c0_77, %c0_78], %109 {strides = array<i32>} : memref<4x10x1xf32, #tpu.memory_space<vmem>>, vector<1x10x1xf32>,
    %c2 = arith.constant 2 : index
    %c0_79 = arith.constant 0 : index
    %c0_80 = arith.constant 0 : index
    %110 = vector.load %arg7[%c2, %c0_79, %c0_80] : memref<4x32x8xbf16, #tpu.memory_space<vmem>>, vector<1x32x8xbf16>
    %111 = vector.shape_cast %110 : vector<1x32x8xbf16> to vector<32x8xbf16>
    %cst_81 = arith.constant dense<0.000000e+00> : vector<10x8xf32>
    %112 = tpu.matmul %5, %111, %cst_81 {dimension_numbers = #tpu.dot_dimension_numbers<[1], [0], [0], [1], [0, 0, 1, 1], [], []>} : vector<10x32xbf16>, vector<32x8xbf16>, vector<10x8xf32> -> vector<10x8xf32>
    %c2_82 = arith.constant 2 : index
    %c0_83 = arith.constant 0 : index
    %c0_84 = arith.constant 0 : index
    %113 = vector.load %arg8[%c2_82, %c0_83, %c0_84] : memref<4x1x8xf32, #tpu.memory_space<vmem>>, vector<1x1x8xf32>
    %114 = vector.shape_cast %113 : vector<1x1x8xf32> to vector<1x8xf32>
    %115 = vector.broadcast %114 : vector<1x8xf32> to vector<10x8xf32>
    %116 = arith.addf %112, %115 : vector<10x8xf32>
    %117 = arith.truncf %116 : vector<10x8xf32> to vector<10x8xbf16>
    %c2_85 = arith.constant 2 : index
    %c0_86 = arith.constant 0 : index
    %c0_87 = arith.constant 0 : index
    %118 = vector.load %arg9[%c2_85, %c0_86, %c0_87] : memref<4x32x8xbf16, #tpu.memory_space<vmem>>, vector<1x32x8xbf16>
    %119 = vector.shape_cast %118 : vector<1x32x8xbf16> to vector<32x8xbf16>
    %cst_88 = arith.constant dense<0.000000e+00> : vector<10x8xf32>
    %120 = tpu.matmul %5, %119, %cst_88 {dimension_numbers = #tpu.dot_dimension_numbers<[1], [0], [0], [1], [0, 0, 1, 1], [], []>} : vector<10x32xbf16>, vector<32x8xbf16>, vector<10x8xf32> -> vector<10x8xf32>
    %c2_89 = arith.constant 2 : index
    %c0_90 = arith.constant 0 : index
    %c0_91 = arith.constant 0 : index
    %121 = vector.load %arg10[%c2_89, %c0_90, %c0_91] : memref<4x1x8xf32, #tpu.memory_space<vmem>>, vector<1x1x8xf32>
    %122 = vector.shape_cast %121 : vector<1x1x8xf32> to vector<1x8xf32>
    %123 = vector.broadcast %122 : vector<1x8xf32> to vector<10x8xf32>
    %124 = arith.addf %120, %123 : vector<10x8xf32>
    %125 = arith.truncf %124 : vector<10x8xf32> to vector<10x8xbf16>
    %c2_92 = arith.constant 2 : index
    %c0_93 = arith.constant 0 : index
    %c0_94 = arith.constant 0 : index
    %126 = vector.load %arg14[%c2_92, %c0_93, %c0_94] : memref<4x10x8xf32, #tpu.memory_space<vmem>>, vector<1x10x8xf32>
    %127 = vector.shape_cast %126 : vector<1x10x8xf32> to vector<10x8xf32>
    %128 = arith.truncf %127 : vector<10x8xf32> to vector<10x8xbf16>
    %cst_95 = arith.constant dense<0.000000e+00> : vector<10x10xf32>
    %129 = tpu.matmul %128, %117, %cst_95 {dimension_numbers = #tpu.dot_dimension_numbers<[1], [1], [0], [0], [0, 0, 1, 0], [], []>} : vector<10x8xbf16>, vector<10x8xbf16>, vector<10x10xf32> -> vector<10x10xf32>
    %c2_96 = arith.constant 2 : index
    %c0_97 = arith.constant 0 : index
    %c0_98 = arith.constant 0 : index
    %130 = vector.load %arg15[%c2_96, %c0_97, %c0_98] : memref<4x10x1xf32, #tpu.memory_space<vmem>>, vector<1x10x1xf32>
    %131 = vector.shape_cast %130 : vector<1x10x1xf32> to vector<10x1xf32>
    %cst_99 = arith.constant dense<0xFF800000> : vector<10xf32>
    %132 = vector.multi_reduction <maximumf>, %129, %cst_99 [1] : vector<10x10xf32> to vector<10xf32>
    %133 = vector.shape_cast %132 : vector<10xf32> to vector<10x1xf32>
    %134 = arith.maximumf %131, %133 : vector<10x1xf32>
    %135 = arith.subf %131, %134 : vector<10x1xf32>
    %136 = math.exp %135 : vector<10x1xf32>
    %137 = vector.broadcast %134 : vector<10x1xf32> to vector<10x10xf32>
    %138 = arith.subf %129, %137 : vector<10x10xf32>
    %139 = math.exp %138 : vector<10x10xf32>
    %c2_100 = arith.constant 2 : index
    %c0_101 = arith.constant 0 : index
    %c0_102 = arith.constant 0 : index
    %140 = vector.load %arg16[%c2_100, %c0_101, %c0_102] : memref<4x10x1xf32, #tpu.memory_space<vmem>>, vector<1x10x1xf32>
    %141 = vector.shape_cast %140 : vector<1x10x1xf32> to vector<10x1xf32>
    %142 = arith.mulf %136, %141 : vector<10x1xf32>
    %cst_103 = arith.constant dense<0.000000e+00> : vector<10xf32>
    %143 = vector.multi_reduction <add>, %139, %cst_103 [1] : vector<10x10xf32> to vector<10xf32>
    %144 = vector.shape_cast %143 : vector<10xf32> to vector<10x1xf32>
    %145 = arith.addf %142, %144 : vector<10x1xf32>
    %c2_104 = arith.constant 2 : index
    %c0_105 = arith.constant 0 : index
    %c0_106 = arith.constant 0 : index
    %146 = vector.load %arg16[%c2_104, %c0_105, %c0_106] : memref<4x10x1xf32, #tpu.memory_space<vmem>>, vector<1x10x1xf32>
    %147 = vector.shape_cast %146 : vector<1x10x1xf32> to vector<10x1xf32>
    %148 = vector.shape_cast %145 : vector<10x1xf32> to vector<1x10x1xf32>
    tpu.vector_store %arg16[%c2_104, %c0_105, %c0_106], %148 {strides = array<i32>} : memref<4x10x1xf32, #tpu.memory_space<vmem>>, vector<1x10x1xf32>,
    %c2_107 = arith.constant 2 : index
    %c0_108 = arith.constant 0 : index
    %c0_109 = arith.constant 0 : index
    %149 = vector.load %arg17[%c2_107, %c0_108, %c0_109] : memref<4x10x8xf32, #tpu.memory_space<vmem>>, vector<1x10x8xf32>
    %150 = vector.shape_cast %149 : vector<1x10x8xf32> to vector<10x8xf32>
    %151 = vector.broadcast %136 : vector<10x1xf32> to vector<10x8xf32>
    %152 = arith.mulf %151, %150 : vector<10x8xf32>
    %153 = arith.truncf %139 : vector<10x10xf32> to vector<10x10xbf16>
    %cst_110 = arith.constant dense<0.000000e+00> : vector<10x8xf32>
    %154 = tpu.matmul %153, %125, %cst_110 {dimension_numbers = #tpu.dot_dimension_numbers<[1], [0], [0], [1], [0, 0, 1, 1], [], []>} : vector<10x10xbf16>, vector<10x8xbf16>, vector<10x8xf32> -> vector<10x8xf32>
    %155 = arith.addf %152, %154 : vector<10x8xf32>
    %c2_111 = arith.constant 2 : index
    %c0_112 = arith.constant 0 : index
    %c0_113 = arith.constant 0 : index
    %156 = vector.load %arg17[%c2_111, %c0_112, %c0_113] : memref<4x10x8xf32, #tpu.memory_space<vmem>>, vector<1x10x8xf32>
    %157 = vector.shape_cast %156 : vector<1x10x8xf32> to vector<10x8xf32>
    %158 = vector.shape_cast %155 : vector<10x8xf32> to vector<1x10x8xf32>
    tpu.vector_store %arg17[%c2_111, %c0_112, %c0_113], %158 {strides = array<i32>} : memref<4x10x8xf32, #tpu.memory_space<vmem>>, vector<1x10x8xf32>,
    %c2_114 = arith.constant 2 : index
    %c0_115 = arith.constant 0 : index
    %c0_116 = arith.constant 0 : index
    %159 = vector.load %arg15[%c2_114, %c0_115, %c0_116] : memref<4x10x1xf32, #tpu.memory_space<vmem>>, vector<1x10x1xf32>
    %160 = vector.shape_cast %159 : vector<1x10x1xf32> to vector<10x1xf32>
    %161 = vector.shape_cast %134 : vector<10x1xf32> to vector<1x10x1xf32>
    tpu.vector_store %arg15[%c2_114, %c0_115, %c0_116], %161 {strides = array<i32>} : memref<4x10x1xf32, #tpu.memory_space<vmem>>, vector<1x10x1xf32>,
    %c3 = arith.constant 3 : index
    %c0_117 = arith.constant 0 : index
    %c0_118 = arith.constant 0 : index
    %162 = vector.load %arg7[%c3, %c0_117, %c0_118] : memref<4x32x8xbf16, #tpu.memory_space<vmem>>, vector<1x32x8xbf16>
    %163 = vector.shape_cast %162 : vector<1x32x8xbf16> to vector<32x8xbf16>
    %cst_119 = arith.constant dense<0.000000e+00> : vector<10x8xf32>
    %164 = tpu.matmul %5, %163, %cst_119 {dimension_numbers = #tpu.dot_dimension_numbers<[1], [0], [0], [1], [0, 0, 1, 1], [], []>} : vector<10x32xbf16>, vector<32x8xbf16>, vector<10x8xf32> -> vector<10x8xf32>
    %c3_120 = arith.constant 3 : index
    %c0_121 = arith.constant 0 : index
    %c0_122 = arith.constant 0 : index
    %165 = vector.load %arg8[%c3_120, %c0_121, %c0_122] : memref<4x1x8xf32, #tpu.memory_space<vmem>>, vector<1x1x8xf32>
    %166 = vector.shape_cast %165 : vector<1x1x8xf32> to vector<1x8xf32>
    %167 = vector.broadcast %166 : vector<1x8xf32> to vector<10x8xf32>
    %168 = arith.addf %164, %167 : vector<10x8xf32>
    %169 = arith.truncf %168 : vector<10x8xf32> to vector<10x8xbf16>
    %c3_123 = arith.constant 3 : index
    %c0_124 = arith.constant 0 : index
    %c0_125 = arith.constant 0 : index
    %170 = vector.load %arg9[%c3_123, %c0_124, %c0_125] : memref<4x32x8xbf16, #tpu.memory_space<vmem>>, vector<1x32x8xbf16>
    %171 = vector.shape_cast %170 : vector<1x32x8xbf16> to vector<32x8xbf16>
    %cst_126 = arith.constant dense<0.000000e+00> : vector<10x8xf32>
    %172 = tpu.matmul %5, %171, %cst_126 {dimension_numbers = #tpu.dot_dimension_numbers<[1], [0], [0], [1], [0, 0, 1, 1], [], []>} : vector<10x32xbf16>, vector<32x8xbf16>, vector<10x8xf32> -> vector<10x8xf32>
    %c3_127 = arith.constant 3 : index
    %c0_128 = arith.constant 0 : index
    %c0_129 = arith.constant 0 : index
    %173 = vector.load %arg10[%c3_127, %c0_128, %c0_129] : memref<4x1x8xf32, #tpu.memory_space<vmem>>, vector<1x1x8xf32>
    %174 = vector.shape_cast %173 : vector<1x1x8xf32> to vector<1x8xf32>
    %175 = vector.broadcast %174 : vector<1x8xf32> to vector<10x8xf32>
    %176 = arith.addf %172, %175 : vector<10x8xf32>
    %177 = arith.truncf %176 : vector<10x8xf32> to vector<10x8xbf16>
    %c3_130 = arith.constant 3 : index
    %c0_131 = arith.constant 0 : index
    %c0_132 = arith.constant 0 : index
    %178 = vector.load %arg14[%c3_130, %c0_131, %c0_132] : memref<4x10x8xf32, #tpu.memory_space<vmem>>, vector<1x10x8xf32>
    %179 = vector.shape_cast %178 : vector<1x10x8xf32> to vector<10x8xf32>
    %180 = arith.truncf %179 : vector<10x8xf32> to vector<10x8xbf16>
    %cst_133 = arith.constant dense<0.000000e+00> : vector<10x10xf32>
    %181 = tpu.matmul %180, %169, %cst_133 {dimension_numbers = #tpu.dot_dimension_numbers<[1], [1], [0], [0], [0, 0, 1, 0], [], []>} : vector<10x8xbf16>, vector<10x8xbf16>, vector<10x10xf32> -> vector<10x10xf32>
    %c3_134 = arith.constant 3 : index
    %c0_135 = arith.constant 0 : index
    %c0_136 = arith.constant 0 : index
    %182 = vector.load %arg15[%c3_134, %c0_135, %c0_136] : memref<4x10x1xf32, #tpu.memory_space<vmem>>, vector<1x10x1xf32>
    %183 = vector.shape_cast %182 : vector<1x10x1xf32> to vector<10x1xf32>
    %cst_137 = arith.constant dense<0xFF800000> : vector<10xf32>
    %184 = vector.multi_reduction <maximumf>, %181, %cst_137 [1] : vector<10x10xf32> to vector<10xf32>
    %185 = vector.shape_cast %184 : vector<10xf32> to vector<10x1xf32>
    %186 = arith.maximumf %183, %185 : vector<10x1xf32>
    %187 = arith.subf %183, %186 : vector<10x1xf32>
    %188 = math.exp %187 : vector<10x1xf32>
    %189 = vector.broadcast %186 : vector<10x1xf32> to vector<10x10xf32>
    %190 = arith.subf %181, %189 : vector<10x10xf32>
    %191 = math.exp %190 : vector<10x10xf32>
    %c3_138 = arith.constant 3 : index
    %c0_139 = arith.constant 0 : index
    %c0_140 = arith.constant 0 : index
    %192 = vector.load %arg16[%c3_138, %c0_139, %c0_140] : memref<4x10x1xf32, #tpu.memory_space<vmem>>, vector<1x10x1xf32>
    %193 = vector.shape_cast %192 : vector<1x10x1xf32> to vector<10x1xf32>
    %194 = arith.mulf %188, %193 : vector<10x1xf32>
    %cst_141 = arith.constant dense<0.000000e+00> : vector<10xf32>
    %195 = vector.multi_reduction <add>, %191, %cst_141 [1] : vector<10x10xf32> to vector<10xf32>
    %196 = vector.shape_cast %195 : vector<10xf32> to vector<10x1xf32>
    %197 = arith.addf %194, %196 : vector<10x1xf32>
    %c3_142 = arith.constant 3 : index
    %c0_143 = arith.constant 0 : index
    %c0_144 = arith.constant 0 : index
    %198 = vector.load %arg16[%c3_142, %c0_143, %c0_144] : memref<4x10x1xf32, #tpu.memory_space<vmem>>, vector<1x10x1xf32>
    %199 = vector.shape_cast %198 : vector<1x10x1xf32> to vector<10x1xf32>
    %200 = vector.shape_cast %197 : vector<10x1xf32> to vector<1x10x1xf32>
    tpu.vector_store %arg16[%c3_142, %c0_143, %c0_144], %200 {strides = array<i32>} : memref<4x10x1xf32, #tpu.memory_space<vmem>>, vector<1x10x1xf32>,
    %c3_145 = arith.constant 3 : index
    %c0_146 = arith.constant 0 : index
    %c0_147 = arith.constant 0 : index
    %201 = vector.load %arg17[%c3_145, %c0_146, %c0_147] : memref<4x10x8xf32, #tpu.memory_space<vmem>>, vector<1x10x8xf32>
    %202 = vector.shape_cast %201 : vector<1x10x8xf32> to vector<10x8xf32>
    %203 = vector.broadcast %188 : vector<10x1xf32> to vector<10x8xf32>
    %204 = arith.mulf %203, %202 : vector<10x8xf32>
    %205 = arith.truncf %191 : vector<10x10xf32> to vector<10x10xbf16>
    %cst_148 = arith.constant dense<0.000000e+00> : vector<10x8xf32>
    %206 = tpu.matmul %205, %177, %cst_148 {dimension_numbers = #tpu.dot_dimension_numbers<[1], [0], [0], [1], [0, 0, 1, 1], [], []>} : vector<10x10xbf16>, vector<10x8xbf16>, vector<10x8xf32> -> vector<10x8xf32>
    %207 = arith.addf %204, %206 : vector<10x8xf32>
    %c3_149 = arith.constant 3 : index
    %c0_150 = arith.constant 0 : index
    %c0_151 = arith.constant 0 : index
    %208 = vector.load %arg17[%c3_149, %c0_150, %c0_151] : memref<4x10x8xf32, #tpu.memory_space<vmem>>, vector<1x10x8xf32>
    %209 = vector.shape_cast %208 : vector<1x10x8xf32> to vector<10x8xf32>
    %210 = vector.shape_cast %207 : vector<10x8xf32> to vector<1x10x8xf32>
    tpu.vector_store %arg17[%c3_149, %c0_150, %c0_151], %210 {strides = array<i32>} : memref<4x10x8xf32, #tpu.memory_space<vmem>>, vector<1x10x8xf32>,
    %c3_152 = arith.constant 3 : index
    %c0_153 = arith.constant 0 : index
    %c0_154 = arith.constant 0 : index
    %211 = vector.load %arg15[%c3_152, %c0_153, %c0_154] : memref<4x10x1xf32, #tpu.memory_space<vmem>>, vector<1x10x1xf32>
    %212 = vector.shape_cast %211 : vector<1x10x1xf32> to vector<10x1xf32>
    %213 = vector.shape_cast %186 : vector<10x1xf32> to vector<1x10x1xf32>
    tpu.vector_store %arg15[%c3_152, %c0_153, %c0_154], %213 {strides = array<i32>} : memref<4x10x1xf32, #tpu.memory_space<vmem>>, vector<1x10x1xf32>,
    %c0_i32_155 = arith.constant 0 : i32
    %214 = arith.cmpi eq, %arg2, %c0_i32_155 : i32
    %215 = arith.extui %214 : i1 to i32
    %c0_i32_156 = arith.constant 0 : i32
    %216 = arith.cmpi ne, %215, %c0_i32_156 : i32
    scf.if %216 {
      %cst_157 = arith.constant 0.000000e+00 : f32
      %217 = vector.broadcast %cst_157 : f32 to vector<10x32xf32>
      %c0_158 = arith.constant 0 : index
      %c0_159 = arith.constant 0 : index
      %c0_160 = arith.constant 0 : index
      %218 = vector.load %arg17[%c0_158, %c0_159, %c0_160] : memref<4x10x8xf32, #tpu.memory_space<vmem>>, vector<1x10x8xf32>
      %219 = vector.shape_cast %218 : vector<1x10x8xf32> to vector<10x8xf32>
      %c0_161 = arith.constant 0 : index
      %c0_162 = arith.constant 0 : index
      %c0_163 = arith.constant 0 : index
      %220 = vector.load %arg16[%c0_161, %c0_162, %c0_163] : memref<4x10x1xf32, #tpu.memory_space<vmem>>, vector<1x10x1xf32>
      %221 = vector.shape_cast %220 : vector<1x10x1xf32> to vector<10x1xf32>
      %222 = tpu.reciprocal %221 {approx = true} : vector<10x1xf32> -> vector<10x1xf32>
      %223 = vector.broadcast %222 : vector<10x1xf32> to vector<10x8xf32>
      %224 = arith.mulf %219, %223 : vector<10x8xf32>
      %225 = arith.truncf %224 : vector<10x8xf32> to vector<10x8xbf16>
      %c0_164 = arith.constant 0 : index
      %c0_165 = arith.constant 0 : index
      %c0_166 = arith.constant 0 : index
      %226 = vector.load %arg11[%c0_164, %c0_165, %c0_166] : memref<4x8x32xbf16, #tpu.memory_space<vmem>>, vector<1x8x32xbf16>
      %227 = vector.shape_cast %226 : vector<1x8x32xbf16> to vector<8x32xbf16>
      %cst_167 = arith.constant dense<0.000000e+00> : vector<10x32xf32>
      %228 = tpu.matmul %225, %227, %cst_167 {dimension_numbers = #tpu.dot_dimension_numbers<[1], [0], [0], [1], [0, 0, 1, 1], [], []>} : vector<10x8xbf16>, vector<8x32xbf16>, vector<10x32xf32> -> vector<10x32xf32>
      %229 = arith.addf %217, %228 : vector<10x32xf32>
      %c1_168 = arith.constant 1 : index
      %c0_169 = arith.constant 0 : index
      %c0_170 = arith.constant 0 : index
      %230 = vector.load %arg17[%c1_168, %c0_169, %c0_170] : memref<4x10x8xf32, #tpu.memory_space<vmem>>, vector<1x10x8xf32>
      %231 = vector.shape_cast %230 : vector<1x10x8xf32> to vector<10x8xf32>
      %c1_171 = arith.constant 1 : index
      %c0_172 = arith.constant 0 : index
      %c0_173 = arith.constant 0 : index
      %232 = vector.load %arg16[%c1_171, %c0_172, %c0_173] : memref<4x10x1xf32, #tpu.memory_space<vmem>>, vector<1x10x1xf32>
      %233 = vector.shape_cast %232 : vector<1x10x1xf32> to vector<10x1xf32>
      %234 = tpu.reciprocal %233 {approx = true} : vector<10x1xf32> -> vector<10x1xf32>
      %235 = vector.broadcast %234 : vector<10x1xf32> to vector<10x8xf32>
      %236 = arith.mulf %231, %235 : vector<10x8xf32>
      %237 = arith.truncf %236 : vector<10x8xf32> to vector<10x8xbf16>
      %c1_174 = arith.constant 1 : index
      %c0_175 = arith.constant 0 : index
      %c0_176 = arith.constant 0 : index
      %238 = vector.load %arg11[%c1_174, %c0_175, %c0_176] : memref<4x8x32xbf16, #tpu.memory_space<vmem>>, vector<1x8x32xbf16>
      %239 = vector.shape_cast %238 : vector<1x8x32xbf16> to vector<8x32xbf16>
      %cst_177 = arith.constant dense<0.000000e+00> : vector<10x32xf32>
      %240 = tpu.matmul %237, %239, %cst_177 {dimension_numbers = #tpu.dot_dimension_numbers<[1], [0], [0], [1], [0, 0, 1, 1], [], []>} : vector<10x8xbf16>, vector<8x32xbf16>, vector<10x32xf32> -> vector<10x32xf32>
      %241 = arith.addf %229, %240 : vector<10x32xf32>
      %c2_178 = arith.constant 2 : index
      %c0_179 = arith.constant 0 : index
      %c0_180 = arith.constant 0 : index
      %242 = vector.load %arg17[%c2_178, %c0_179, %c0_180] : memref<4x10x8xf32, #tpu.memory_space<vmem>>, vector<1x10x8xf32>
      %243 = vector.shape_cast %242 : vector<1x10x8xf32> to vector<10x8xf32>
      %c2_181 = arith.constant 2 : index
      %c0_182 = arith.constant 0 : index
      %c0_183 = arith.constant 0 : index
      %244 = vector.load %arg16[%c2_181, %c0_182, %c0_183] : memref<4x10x1xf32, #tpu.memory_space<vmem>>, vector<1x10x1xf32>
      %245 = vector.shape_cast %244 : vector<1x10x1xf32> to vector<10x1xf32>
      %246 = tpu.reciprocal %245 {approx = true} : vector<10x1xf32> -> vector<10x1xf32>
      %247 = vector.broadcast %246 : vector<10x1xf32> to vector<10x8xf32>
      %248 = arith.mulf %243, %247 : vector<10x8xf32>
      %249 = arith.truncf %248 : vector<10x8xf32> to vector<10x8xbf16>
      %c2_184 = arith.constant 2 : index
      %c0_185 = arith.constant 0 : index
      %c0_186 = arith.constant 0 : index
      %250 = vector.load %arg11[%c2_184, %c0_185, %c0_186] : memref<4x8x32xbf16, #tpu.memory_space<vmem>>, vector<1x8x32xbf16>
      %251 = vector.shape_cast %250 : vector<1x8x32xbf16> to vector<8x32xbf16>
      %cst_187 = arith.constant dense<0.000000e+00> : vector<10x32xf32>
      %252 = tpu.matmul %249, %251, %cst_187 {dimension_numbers = #tpu.dot_dimension_numbers<[1], [0], [0], [1], [0, 0, 1, 1], [], []>} : vector<10x8xbf16>, vector<8x32xbf16>, vector<10x32xf32> -> vector<10x32xf32>
      %253 = arith.addf %241, %252 : vector<10x32xf32>
      %c3_188 = arith.constant 3 : index
      %c0_189 = arith.constant 0 : index
      %c0_190 = arith.constant 0 : index
      %254 = vector.load %arg17[%c3_188, %c0_189, %c0_190] : memref<4x10x8xf32, #tpu.memory_space<vmem>>, vector<1x10x8xf32>
      %255 = vector.shape_cast %254 : vector<1x10x8xf32> to vector<10x8xf32>
      %c3_191 = arith.constant 3 : index
      %c0_192 = arith.constant 0 : index
      %c0_193 = arith.constant 0 : index
      %256 = vector.load %arg16[%c3_191, %c0_192, %c0_193] : memref<4x10x1xf32, #tpu.memory_space<vmem>>, vector<1x10x1xf32>
      %257 = vector.shape_cast %256 : vector<1x10x1xf32> to vector<10x1xf32>
      %258 = tpu.reciprocal %257 {approx = true} : vector<10x1xf32> -> vector<10x1xf32>
      %259 = vector.broadcast %258 : vector<10x1xf32> to vector<10x8xf32>
      %260 = arith.mulf %255, %259 : vector<10x8xf32>
      %261 = arith.truncf %260 : vector<10x8xf32> to vector<10x8xbf16>
      %c3_194 = arith.constant 3 : index
      %c0_195 = arith.constant 0 : index
      %c0_196 = arith.constant 0 : index
      %262 = vector.load %arg11[%c3_194, %c0_195, %c0_196] : memref<4x8x32xbf16, #tpu.memory_space<vmem>>, vector<1x8x32xbf16>
      %263 = vector.shape_cast %262 : vector<1x8x32xbf16> to vector<8x32xbf16>
      %cst_197 = arith.constant dense<0.000000e+00> : vector<10x32xf32>
      %264 = tpu.matmul %261, %263, %cst_197 {dimension_numbers = #tpu.dot_dimension_numbers<[1], [0], [0], [1], [0, 0, 1, 1], [], []>} : vector<10x8xbf16>, vector<8x32xbf16>, vector<10x32xf32> -> vector<10x32xf32>
      %265 = arith.addf %253, %264 : vector<10x32xf32>
      %c0_198 = arith.constant 0 : index
      %c0_199 = arith.constant 0 : index
      %266 = vector.load %arg12[%c0_198, %c0_199] : memref<1x32xf32, #tpu.memory_space<vmem>>, vector<1x32xf32>
      %267 = vector.broadcast %266 : vector<1x32xf32> to vector<10x32xf32>
      %268 = arith.addf %265, %267 : vector<10x32xf32>
      %c0_200 = arith.constant 0 : index
      %c0_201 = arith.constant 0 : index
      %c0_202 = arith.constant 0 : index
      %269 = vector.load %arg13[%c0_200, %c0_201, %c0_202] : memref<1x10x32xf32, #tpu.memory_space<vmem>>, vector<1x10x32xf32>
      %270 = vector.shape_cast %269 : vector<1x10x32xf32> to vector<10x32xf32>
      %271 = vector.shape_cast %268 : vector<10x32xf32> to vector<1x10x32xf32>
      tpu.vector_store %arg13[%c0_200, %c0_201, %c0_202], %271 {strides = array<i32>} : memref<1x10x32xf32, #tpu.memory_space<vmem>>, vector<1x10x32xf32>,
    } else {
    }
    return
  }
  func.func @transform_0(%arg0: i32, %arg1: i32, %arg2: i32) -> (i32, i32, i32) {
    %c0_i32 = arith.constant 0 : i32
    %c0_i32_0 = arith.constant 0 : i32
    return %arg0, %arg1, %c0_i32 : i32, i32, i32
  }
  func.func @transform_1(%arg0: i32, %arg1: i32, %arg2: i32) -> (i32, i32, i32) {
    %c0_i32 = arith.constant 0 : i32
    %c0_i32_0 = arith.constant 0 : i32
    return %arg0, %arg2, %c0_i32 : i32, i32, i32
  }
  func.func @transform_2(%arg0: i32, %arg1: i32, %arg2: i32) -> (i32, i32, i32) {
    %c0_i32 = arith.constant 0 : i32
    %c0_i32_0 = arith.constant 0 : i32
    %c0_i32_1 = arith.constant 0 : i32
    %c0_i32_2 = arith.constant 0 : i32
    return %c0_i32, %c0_i32_0, %c0_i32_1 : i32, i32, i32
  }
  func.func @transform_3(%arg0: i32, %arg1: i32, %arg2: i32) -> (i32, i32, i32) {
    %c0_i32 = arith.constant 0 : i32
    %c0_i32_0 = arith.constant 0 : i32
    %c0_i32_1 = arith.constant 0 : i32
    %c0_i32_2 = arith.constant 0 : i32
    return %c0_i32, %c0_i32_0, %c0_i32_1 : i32, i32, i32
  }
  func.func @transform_4(%arg0: i32, %arg1: i32, %arg2: i32) -> (i32, i32, i32) {
    %c0_i32 = arith.constant 0 : i32
    %c0_i32_0 = arith.constant 0 : i32
    %c0_i32_1 = arith.constant 0 : i32
    %c0_i32_2 = arith.constant 0 : i32
    return %c0_i32, %c0_i32_0, %c0_i32_1 : i32, i32, i32
  }
  func.func @transform_5(%arg0: i32, %arg1: i32, %arg2: i32) -> (i32, i32, i32) {
    %c0_i32 = arith.constant 0 : i32
    %c0_i32_0 = arith.constant 0 : i32
    %c0_i32_1 = arith.constant 0 : i32
    %c0_i32_2 = arith.constant 0 : i32
    return %c0_i32, %c0_i32_0, %c0_i32_1 : i32, i32, i32
  }
  func.func @transform_6(%arg0: i32, %arg1: i32, %arg2: i32) -> (i32, i32, i32) {
    %c0_i32 = arith.constant 0 : i32
    %c0_i32_0 = arith.constant 0 : i32
    %c0_i32_1 = arith.constant 0 : i32
    %c0_i32_2 = arith.constant 0 : i32
    return %c0_i32, %c0_i32_0, %c0_i32_1 : i32, i32, i32
  }
  func.func @transform_7(%arg0: i32, %arg1: i32, %arg2: i32) -> (i32, i32, i32) {
    %c0_i32 = arith.constant 0 : i32
    %c0_i32_0 = arith.constant 0 : i32
    %c0_i32_1 = arith.constant 0 : i32
    %c0_i32_2 = arith.constant 0 : i32
    return %c0_i32, %c0_i32_0, %c0_i32_1 : i32, i32, i32
  }
  func.func @transform_8(%arg0: i32, %arg1: i32, %arg2: i32) -> (i32, i32, i32) {
    %c0_i32 = arith.constant 0 : i32
    %c0_i32_0 = arith.constant 0 : i32
    %c0_i32_1 = arith.constant 0 : i32
    %c0_i32_2 = arith.constant 0 : i32
    return %c0_i32, %c0_i32_0, %c0_i32_1 : i32, i32, i32
  }
  func.func @transform_9(%arg0: i32, %arg1: i32, %arg2: i32) -> (i32, i32) {
    %c0_i32 = arith.constant 0 : i32
    %c0_i32_0 = arith.constant 0 : i32
    %c0_i32_1 = arith.constant 0 : i32
    return %c0_i32, %c0_i32_0 : i32, i32
  }
  func.func @transform_10(%arg0: i32, %arg1: i32, %arg2: i32) -> (i32, i32, i32) {
    %c0_i32 = arith.constant 0 : i32
    %c0_i32_0 = arith.constant 0 : i32
    return %arg0, %arg1, %c0_i32 : i32, i32, i32
  }
}

module attributes {stable_mosaic.version = 11 : i64} {
  func.func @_flash_mha_kernel(%arg0: i32, %arg1: i32, %arg2: i32, %arg3: memref<1x8x32xf32, #tpu.memory_space<vmem>>, %arg4: memref<1x8x32xf32, #tpu.memory_space<vmem>>, %arg5: memref<1x1x8xf32, #tpu.memory_space<vmem>>, %arg6: memref<4x32x8xbf16, #tpu.memory_space<vmem>>, %arg7: memref<4x1x8xf32, #tpu.memory_space<vmem>>, %arg8: memref<4x32x8xbf16, #tpu.memory_space<vmem>>, %arg9: memref<4x1x8xf32, #tpu.memory_space<vmem>>, %arg10: memref<4x32x8xbf16, #tpu.memory_space<vmem>>, %arg11: memref<4x1x8xf32, #tpu.memory_space<vmem>>, %arg12: memref<4x8x32xbf16, #tpu.memory_space<vmem>>, %arg13: memref<1x32xf32, #tpu.memory_space<vmem>>, %arg14: memref<1x8x32xf32, #tpu.memory_space<vmem>>, %arg15: memref<4x8x8xf32, #tpu.memory_space<vmem>>, %arg16: memref<4x8x1xf32, #tpu.memory_space<vmem>>, %arg17: memref<4x8x1xf32, #tpu.memory_space<vmem>>, %arg18: memref<4x8x8xf32, #tpu.memory_space<vmem>>) attributes {dimension_semantics = [#tpu.dimension_semantics<parallel>, #tpu.dimension_semantics<parallel>, #tpu.dimension_semantics<arbitrary>], iteration_bounds = array<i64: 2, 1, 1>, scalar_prefetch = 0 : i64, scratch_operands = 4 : i64, tpu.core_type = #tpu.core_type<tc>, window_params = [{transform_indices = @transform_0, window_bounds = array<i64: 1, 8, 32>}, {transform_indices = @transform_1, window_bounds = array<i64: 1, 8, 32>}, {transform_indices = @transform_2, window_bounds = array<i64: 1, 1, 8>}, {pipeline_mode = #tpu.pipeline_mode<synchronous>, transform_indices = @transform_3, window_bounds = array<i64: 4, 32, 8>}, {pipeline_mode = #tpu.pipeline_mode<synchronous>, transform_indices = @transform_4, window_bounds = array<i64: 4, 1, 8>}, {pipeline_mode = #tpu.pipeline_mode<synchronous>, transform_indices = @transform_5, window_bounds = array<i64: 4, 32, 8>}, {pipeline_mode = #tpu.pipeline_mode<synchronous>, transform_indices = @transform_6, window_bounds = array<i64: 4, 1, 8>}, {pipeline_mode = #tpu.pipeline_mode<synchronous>, transform_indices = @transform_7, window_bounds = array<i64: 4, 32, 8>}, {pipeline_mode = #tpu.pipeline_mode<synchronous>, transform_indices = @transform_8, window_bounds = array<i64: 4, 1, 8>}, {pipeline_mode = #tpu.pipeline_mode<synchronous>, transform_indices = @transform_9, window_bounds = array<i64: 4, 8, 32>}, {pipeline_mode = #tpu.pipeline_mode<synchronous>, transform_indices = @transform_10, window_bounds = array<i64: 1, 32>}, {transform_indices = @transform_11, window_bounds = array<i64: 1, 8, 32>}]} {
    %c0_i32 = arith.constant 0 : i32
    %0 = arith.cmpi eq, %arg2, %c0_i32 : i32
    %1 = arith.extui %0 : i1 to i32
    %c0_i32_0 = arith.constant 0 : i32
    %2 = arith.cmpi ne, %1, %c0_i32_0 : i32
    scf.if %2 {
      %c0_166 = arith.constant 0 : index
      %c0_167 = arith.constant 0 : index
      %c0_168 = arith.constant 0 : index
      %242 = vector.load %arg3[%c0_166, %c0_167, %c0_168] : memref<1x8x32xf32, #tpu.memory_space<vmem>>, vector<1x8x32xf32>
      %243 = vector.shape_cast %242 : vector<1x8x32xf32> to vector<8x32xf32>
      %244 = arith.truncf %243 : vector<8x32xf32> to vector<8x32xbf16>
      %c0_169 = arith.constant 0 : index
      %c0_170 = arith.constant 0 : index
      %c0_171 = arith.constant 0 : index
      %245 = vector.load %arg6[%c0_169, %c0_170, %c0_171] : memref<4x32x8xbf16, #tpu.memory_space<vmem>>, vector<1x32x8xbf16>
      %246 = vector.shape_cast %245 : vector<1x32x8xbf16> to vector<32x8xbf16>
      %cst_172 = arith.constant dense<0.000000e+00> : vector<8x8xf32>
      %247 = tpu.matmul %244, %246, %cst_172 {dimension_numbers = #tpu.dot_dimension_numbers<[1], [0], [0], [1], [0, 0, 1, 1], [], []>} : vector<8x32xbf16>, vector<32x8xbf16>, vector<8x8xf32> -> vector<8x8xf32>
      %c0_173 = arith.constant 0 : index
      %c0_174 = arith.constant 0 : index
      %c0_175 = arith.constant 0 : index
      %248 = vector.load %arg7[%c0_173, %c0_174, %c0_175] : memref<4x1x8xf32, #tpu.memory_space<vmem>>, vector<1x1x8xf32>
      %249 = vector.shape_cast %248 : vector<1x1x8xf32> to vector<1x8xf32>
      %250 = vector.broadcast %249 : vector<1x8xf32> to vector<8x8xf32>
      %251 = arith.addf %247, %250 : vector<8x8xf32>
      %cst_176 = arith.constant 0.353553385 : f32
      %252 = vector.broadcast %cst_176 : f32 to vector<8x8xf32>
      %253 = arith.mulf %251, %252 : vector<8x8xf32>
      %c0_177 = arith.constant 0 : index
      %c0_178 = arith.constant 0 : index
      %c0_179 = arith.constant 0 : index
      %254 = vector.load %arg15[%c0_177, %c0_178, %c0_179] : memref<4x8x8xf32, #tpu.memory_space<vmem>>, vector<1x8x8xf32>
      %255 = vector.shape_cast %254 : vector<1x8x8xf32> to vector<8x8xf32>
      %256 = vector.shape_cast %253 : vector<8x8xf32> to vector<1x8x8xf32>
      tpu.vector_store %arg15[%c0_177, %c0_178, %c0_179], %256 {strides = array<i32>} : memref<4x8x8xf32, #tpu.memory_space<vmem>>, vector<1x8x8xf32>,
      %c1_180 = arith.constant 1 : index
      %c0_181 = arith.constant 0 : index
      %c0_182 = arith.constant 0 : index
      %257 = vector.load %arg6[%c1_180, %c0_181, %c0_182] : memref<4x32x8xbf16, #tpu.memory_space<vmem>>, vector<1x32x8xbf16>
      %258 = vector.shape_cast %257 : vector<1x32x8xbf16> to vector<32x8xbf16>
      %cst_183 = arith.constant dense<0.000000e+00> : vector<8x8xf32>
      %259 = tpu.matmul %244, %258, %cst_183 {dimension_numbers = #tpu.dot_dimension_numbers<[1], [0], [0], [1], [0, 0, 1, 1], [], []>} : vector<8x32xbf16>, vector<32x8xbf16>, vector<8x8xf32> -> vector<8x8xf32>
      %c1_184 = arith.constant 1 : index
      %c0_185 = arith.constant 0 : index
      %c0_186 = arith.constant 0 : index
      %260 = vector.load %arg7[%c1_184, %c0_185, %c0_186] : memref<4x1x8xf32, #tpu.memory_space<vmem>>, vector<1x1x8xf32>
      %261 = vector.shape_cast %260 : vector<1x1x8xf32> to vector<1x8xf32>
      %262 = vector.broadcast %261 : vector<1x8xf32> to vector<8x8xf32>
      %263 = arith.addf %259, %262 : vector<8x8xf32>
      %cst_187 = arith.constant 0.353553385 : f32
      %264 = vector.broadcast %cst_187 : f32 to vector<8x8xf32>
      %265 = arith.mulf %263, %264 : vector<8x8xf32>
      %c1_188 = arith.constant 1 : index
      %c0_189 = arith.constant 0 : index
      %c0_190 = arith.constant 0 : index
      %266 = vector.load %arg15[%c1_188, %c0_189, %c0_190] : memref<4x8x8xf32, #tpu.memory_space<vmem>>, vector<1x8x8xf32>
      %267 = vector.shape_cast %266 : vector<1x8x8xf32> to vector<8x8xf32>
      %268 = vector.shape_cast %265 : vector<8x8xf32> to vector<1x8x8xf32>
      tpu.vector_store %arg15[%c1_188, %c0_189, %c0_190], %268 {strides = array<i32>} : memref<4x8x8xf32, #tpu.memory_space<vmem>>, vector<1x8x8xf32>,
      %c2_191 = arith.constant 2 : index
      %c0_192 = arith.constant 0 : index
      %c0_193 = arith.constant 0 : index
      %269 = vector.load %arg6[%c2_191, %c0_192, %c0_193] : memref<4x32x8xbf16, #tpu.memory_space<vmem>>, vector<1x32x8xbf16>
      %270 = vector.shape_cast %269 : vector<1x32x8xbf16> to vector<32x8xbf16>
      %cst_194 = arith.constant dense<0.000000e+00> : vector<8x8xf32>
      %271 = tpu.matmul %244, %270, %cst_194 {dimension_numbers = #tpu.dot_dimension_numbers<[1], [0], [0], [1], [0, 0, 1, 1], [], []>} : vector<8x32xbf16>, vector<32x8xbf16>, vector<8x8xf32> -> vector<8x8xf32>
      %c2_195 = arith.constant 2 : index
      %c0_196 = arith.constant 0 : index
      %c0_197 = arith.constant 0 : index
      %272 = vector.load %arg7[%c2_195, %c0_196, %c0_197] : memref<4x1x8xf32, #tpu.memory_space<vmem>>, vector<1x1x8xf32>
      %273 = vector.shape_cast %272 : vector<1x1x8xf32> to vector<1x8xf32>
      %274 = vector.broadcast %273 : vector<1x8xf32> to vector<8x8xf32>
      %275 = arith.addf %271, %274 : vector<8x8xf32>
      %cst_198 = arith.constant 0.353553385 : f32
      %276 = vector.broadcast %cst_198 : f32 to vector<8x8xf32>
      %277 = arith.mulf %275, %276 : vector<8x8xf32>
      %c2_199 = arith.constant 2 : index
      %c0_200 = arith.constant 0 : index
      %c0_201 = arith.constant 0 : index
      %278 = vector.load %arg15[%c2_199, %c0_200, %c0_201] : memref<4x8x8xf32, #tpu.memory_space<vmem>>, vector<1x8x8xf32>
      %279 = vector.shape_cast %278 : vector<1x8x8xf32> to vector<8x8xf32>
      %280 = vector.shape_cast %277 : vector<8x8xf32> to vector<1x8x8xf32>
      tpu.vector_store %arg15[%c2_199, %c0_200, %c0_201], %280 {strides = array<i32>} : memref<4x8x8xf32, #tpu.memory_space<vmem>>, vector<1x8x8xf32>,
      %c3_202 = arith.constant 3 : index
      %c0_203 = arith.constant 0 : index
      %c0_204 = arith.constant 0 : index
      %281 = vector.load %arg6[%c3_202, %c0_203, %c0_204] : memref<4x32x8xbf16, #tpu.memory_space<vmem>>, vector<1x32x8xbf16>
      %282 = vector.shape_cast %281 : vector<1x32x8xbf16> to vector<32x8xbf16>
      %cst_205 = arith.constant dense<0.000000e+00> : vector<8x8xf32>
      %283 = tpu.matmul %244, %282, %cst_205 {dimension_numbers = #tpu.dot_dimension_numbers<[1], [0], [0], [1], [0, 0, 1, 1], [], []>} : vector<8x32xbf16>, vector<32x8xbf16>, vector<8x8xf32> -> vector<8x8xf32>
      %c3_206 = arith.constant 3 : index
      %c0_207 = arith.constant 0 : index
      %c0_208 = arith.constant 0 : index
      %284 = vector.load %arg7[%c3_206, %c0_207, %c0_208] : memref<4x1x8xf32, #tpu.memory_space<vmem>>, vector<1x1x8xf32>
      %285 = vector.shape_cast %284 : vector<1x1x8xf32> to vector<1x8xf32>
      %286 = vector.broadcast %285 : vector<1x8xf32> to vector<8x8xf32>
      %287 = arith.addf %283, %286 : vector<8x8xf32>
      %cst_209 = arith.constant 0.353553385 : f32
      %288 = vector.broadcast %cst_209 : f32 to vector<8x8xf32>
      %289 = arith.mulf %287, %288 : vector<8x8xf32>
      %c3_210 = arith.constant 3 : index
      %c0_211 = arith.constant 0 : index
      %c0_212 = arith.constant 0 : index
      %290 = vector.load %arg15[%c3_210, %c0_211, %c0_212] : memref<4x8x8xf32, #tpu.memory_space<vmem>>, vector<1x8x8xf32>
      %291 = vector.shape_cast %290 : vector<1x8x8xf32> to vector<8x8xf32>
      %292 = vector.shape_cast %289 : vector<8x8xf32> to vector<1x8x8xf32>
      tpu.vector_store %arg15[%c3_210, %c0_211, %c0_212], %292 {strides = array<i32>} : memref<4x8x8xf32, #tpu.memory_space<vmem>>, vector<1x8x8xf32>,
      %cst_213 = arith.constant 0xFF800000 : f32
      %293 = vector.broadcast %cst_213 : f32 to vector<4x8x1xf32>
      %c0_214 = arith.constant 0 : index
      %c0_215 = arith.constant 0 : index
      %c0_216 = arith.constant 0 : index
      %294 = vector.load %arg16[%c0_214, %c0_215, %c0_216] : memref<4x8x1xf32, #tpu.memory_space<vmem>>, vector<4x8x1xf32>
      tpu.vector_store %arg16[%c0_214, %c0_215, %c0_216], %293 {strides = array<i32>} : memref<4x8x1xf32, #tpu.memory_space<vmem>>, vector<4x8x1xf32>,
      %cst_217 = arith.constant 0.000000e+00 : f32
      %295 = vector.broadcast %cst_217 : f32 to vector<4x8x1xf32>
      %c0_218 = arith.constant 0 : index
      %c0_219 = arith.constant 0 : index
      %c0_220 = arith.constant 0 : index
      %296 = vector.load %arg17[%c0_218, %c0_219, %c0_220] : memref<4x8x1xf32, #tpu.memory_space<vmem>>, vector<4x8x1xf32>
      tpu.vector_store %arg17[%c0_218, %c0_219, %c0_220], %295 {strides = array<i32>} : memref<4x8x1xf32, #tpu.memory_space<vmem>>, vector<4x8x1xf32>,
      %cst_221 = arith.constant 0.000000e+00 : f32
      %297 = vector.broadcast %cst_221 : f32 to vector<4x8x8xf32>
      %c0_222 = arith.constant 0 : index
      %c0_223 = arith.constant 0 : index
      %c0_224 = arith.constant 0 : index
      %298 = vector.load %arg18[%c0_222, %c0_223, %c0_224] : memref<4x8x8xf32, #tpu.memory_space<vmem>>, vector<4x8x8xf32>
      tpu.vector_store %arg18[%c0_222, %c0_223, %c0_224], %297 {strides = array<i32>} : memref<4x8x8xf32, #tpu.memory_space<vmem>>, vector<4x8x8xf32>,
    } else {
    }
    %c0 = arith.constant 0 : index
    %c0_1 = arith.constant 0 : index
    %c0_2 = arith.constant 0 : index
    %3 = vector.load %arg4[%c0, %c0_1, %c0_2] : memref<1x8x32xf32, #tpu.memory_space<vmem>>, vector<1x8x32xf32>
    %4 = vector.shape_cast %3 : vector<1x8x32xf32> to vector<8x32xf32>
    %5 = arith.truncf %4 : vector<8x32xf32> to vector<8x32xbf16>
    %c0_3 = arith.constant 0 : index
    %c0_4 = arith.constant 0 : index
    %c0_5 = arith.constant 0 : index
    %6 = vector.load %arg5[%c0_3, %c0_4, %c0_5] : memref<1x1x8xf32, #tpu.memory_space<vmem>>, vector<1x1x8xf32>
    %7 = vector.shape_cast %6 : vector<1x1x8xf32> to vector<1x8xf32>
    %cst = arith.constant 5.000000e-01 : f32
    %8 = vector.broadcast %cst : f32 to vector<1x8xf32>
    %9 = arith.cmpf ogt, %7, %8 : vector<1x8xf32>
    %cst_6 = arith.constant -1.000000e+09 : f32
    %cst_7 = arith.constant 0.000000e+00 : f32
    %10 = vector.broadcast %cst_6 : f32 to vector<1x8xf32>
    %11 = vector.broadcast %cst_7 : f32 to vector<1x8xf32>
    %12 = arith.select %9, %10, %11 : vector<1x8xi1>, vector<1x8xf32>
    %c8_i32 = arith.constant 8 : i32
    %13 = arith.muli %arg1, %c8_i32 : i32
    %14 = tpu.iota {dimensions = array<i32: 0>} : vector<8x8xi32>
    %15 = vector.broadcast %13 : i32 to vector<8x8xi32>
    %16 = arith.addi %15, %14 : vector<8x8xi32>
    %c8_i32_8 = arith.constant 8 : i32
    %17 = arith.muli %arg2, %c8_i32_8 : i32
    %18 = tpu.iota {dimensions = array<i32: 1>} : vector<8x8xi32>
    %19 = vector.broadcast %17 : i32 to vector<8x8xi32>
    %20 = arith.addi %19, %18 : vector<8x8xi32>
    %21 = arith.cmpi sgt, %20, %16 : vector<8x8xi32>
    %cst_9 = arith.constant -1.000000e+09 : f32
    %cst_10 = arith.constant 0.000000e+00 : f32
    %22 = vector.broadcast %cst_9 : f32 to vector<8x8xf32>
    %23 = vector.broadcast %cst_10 : f32 to vector<8x8xf32>
    %24 = arith.select %21, %22, %23 : vector<8x8xi1>, vector<8x8xf32>
    %25 = vector.broadcast %12 : vector<1x8xf32> to vector<8x8xf32>
    %26 = arith.addf %25, %24 : vector<8x8xf32>
    %c0_11 = arith.constant 0 : index
    %c0_12 = arith.constant 0 : index
    %c0_13 = arith.constant 0 : index
    %27 = vector.load %arg8[%c0_11, %c0_12, %c0_13] : memref<4x32x8xbf16, #tpu.memory_space<vmem>>, vector<1x32x8xbf16>
    %28 = vector.shape_cast %27 : vector<1x32x8xbf16> to vector<32x8xbf16>
    %cst_14 = arith.constant dense<0.000000e+00> : vector<8x8xf32>
    %29 = tpu.matmul %5, %28, %cst_14 {dimension_numbers = #tpu.dot_dimension_numbers<[1], [0], [0], [1], [0, 0, 1, 1], [], []>} : vector<8x32xbf16>, vector<32x8xbf16>, vector<8x8xf32> -> vector<8x8xf32>
    %c0_15 = arith.constant 0 : index
    %c0_16 = arith.constant 0 : index
    %c0_17 = arith.constant 0 : index
    %30 = vector.load %arg9[%c0_15, %c0_16, %c0_17] : memref<4x1x8xf32, #tpu.memory_space<vmem>>, vector<1x1x8xf32>
    %31 = vector.shape_cast %30 : vector<1x1x8xf32> to vector<1x8xf32>
    %32 = vector.broadcast %31 : vector<1x8xf32> to vector<8x8xf32>
    %33 = arith.addf %29, %32 : vector<8x8xf32>
    %34 = arith.truncf %33 : vector<8x8xf32> to vector<8x8xbf16>
    %c0_18 = arith.constant 0 : index
    %c0_19 = arith.constant 0 : index
    %c0_20 = arith.constant 0 : index
    %35 = vector.load %arg10[%c0_18, %c0_19, %c0_20] : memref<4x32x8xbf16, #tpu.memory_space<vmem>>, vector<1x32x8xbf16>
    %36 = vector.shape_cast %35 : vector<1x32x8xbf16> to vector<32x8xbf16>
    %cst_21 = arith.constant dense<0.000000e+00> : vector<8x8xf32>
    %37 = tpu.matmul %5, %36, %cst_21 {dimension_numbers = #tpu.dot_dimension_numbers<[1], [0], [0], [1], [0, 0, 1, 1], [], []>} : vector<8x32xbf16>, vector<32x8xbf16>, vector<8x8xf32> -> vector<8x8xf32>
    %c0_22 = arith.constant 0 : index
    %c0_23 = arith.constant 0 : index
    %c0_24 = arith.constant 0 : index
    %38 = vector.load %arg11[%c0_22, %c0_23, %c0_24] : memref<4x1x8xf32, #tpu.memory_space<vmem>>, vector<1x1x8xf32>
    %39 = vector.shape_cast %38 : vector<1x1x8xf32> to vector<1x8xf32>
    %40 = vector.broadcast %39 : vector<1x8xf32> to vector<8x8xf32>
    %41 = arith.addf %37, %40 : vector<8x8xf32>
    %42 = arith.truncf %41 : vector<8x8xf32> to vector<8x8xbf16>
    %c0_25 = arith.constant 0 : index
    %c0_26 = arith.constant 0 : index
    %c0_27 = arith.constant 0 : index
    %43 = vector.load %arg15[%c0_25, %c0_26, %c0_27] : memref<4x8x8xf32, #tpu.memory_space<vmem>>, vector<1x8x8xf32>
    %44 = vector.shape_cast %43 : vector<1x8x8xf32> to vector<8x8xf32>
    %45 = arith.truncf %44 : vector<8x8xf32> to vector<8x8xbf16>
    %cst_28 = arith.constant dense<0.000000e+00> : vector<8x8xf32>
    %46 = tpu.matmul %45, %34, %cst_28 {dimension_numbers = #tpu.dot_dimension_numbers<[1], [1], [0], [0], [0, 0, 1, 0], [], []>} : vector<8x8xbf16>, vector<8x8xbf16>, vector<8x8xf32> -> vector<8x8xf32>
    %47 = arith.addf %46, %26 : vector<8x8xf32>
    %c0_29 = arith.constant 0 : index
    %c0_30 = arith.constant 0 : index
    %c0_31 = arith.constant 0 : index
    %48 = vector.load %arg16[%c0_29, %c0_30, %c0_31] : memref<4x8x1xf32, #tpu.memory_space<vmem>>, vector<1x8x1xf32>
    %49 = vector.shape_cast %48 : vector<1x8x1xf32> to vector<8x1xf32>
    %cst_32 = arith.constant dense<0xFF800000> : vector<8xf32>
    %50 = vector.multi_reduction <maximumf>, %47, %cst_32 [1] : vector<8x8xf32> to vector<8xf32>
    %51 = vector.shape_cast %50 : vector<8xf32> to vector<8x1xf32>
    %52 = arith.maximumf %49, %51 : vector<8x1xf32>
    %53 = arith.subf %49, %52 : vector<8x1xf32>
    %54 = math.exp %53 : vector<8x1xf32>
    %55 = vector.broadcast %52 : vector<8x1xf32> to vector<8x8xf32>
    %56 = arith.subf %47, %55 : vector<8x8xf32>
    %57 = math.exp %56 : vector<8x8xf32>
    %c0_33 = arith.constant 0 : index
    %c0_34 = arith.constant 0 : index
    %c0_35 = arith.constant 0 : index
    %58 = vector.load %arg17[%c0_33, %c0_34, %c0_35] : memref<4x8x1xf32, #tpu.memory_space<vmem>>, vector<1x8x1xf32>
    %59 = vector.shape_cast %58 : vector<1x8x1xf32> to vector<8x1xf32>
    %60 = arith.mulf %54, %59 : vector<8x1xf32>
    %cst_36 = arith.constant dense<0.000000e+00> : vector<8xf32>
    %61 = vector.multi_reduction <add>, %57, %cst_36 [1] : vector<8x8xf32> to vector<8xf32>
    %62 = vector.shape_cast %61 : vector<8xf32> to vector<8x1xf32>
    %63 = arith.addf %60, %62 : vector<8x1xf32>
    %c0_37 = arith.constant 0 : index
    %c0_38 = arith.constant 0 : index
    %c0_39 = arith.constant 0 : index
    %64 = vector.load %arg17[%c0_37, %c0_38, %c0_39] : memref<4x8x1xf32, #tpu.memory_space<vmem>>, vector<1x8x1xf32>
    %65 = vector.shape_cast %64 : vector<1x8x1xf32> to vector<8x1xf32>
    %66 = vector.shape_cast %63 : vector<8x1xf32> to vector<1x8x1xf32>
    tpu.vector_store %arg17[%c0_37, %c0_38, %c0_39], %66 {strides = array<i32>} : memref<4x8x1xf32, #tpu.memory_space<vmem>>, vector<1x8x1xf32>,
    %c0_40 = arith.constant 0 : index
    %c0_41 = arith.constant 0 : index
    %c0_42 = arith.constant 0 : index
    %67 = vector.load %arg18[%c0_40, %c0_41, %c0_42] : memref<4x8x8xf32, #tpu.memory_space<vmem>>, vector<1x8x8xf32>
    %68 = vector.shape_cast %67 : vector<1x8x8xf32> to vector<8x8xf32>
    %69 = vector.broadcast %54 : vector<8x1xf32> to vector<8x8xf32>
    %70 = arith.mulf %69, %68 : vector<8x8xf32>
    %71 = arith.truncf %57 : vector<8x8xf32> to vector<8x8xbf16>
    %cst_43 = arith.constant dense<0.000000e+00> : vector<8x8xf32>
    %72 = tpu.matmul %71, %42, %cst_43 {dimension_numbers = #tpu.dot_dimension_numbers<[1], [0], [0], [1], [0, 0, 1, 1], [], []>} : vector<8x8xbf16>, vector<8x8xbf16>, vector<8x8xf32> -> vector<8x8xf32>
    %73 = arith.addf %70, %72 : vector<8x8xf32>
    %c0_44 = arith.constant 0 : index
    %c0_45 = arith.constant 0 : index
    %c0_46 = arith.constant 0 : index
    %74 = vector.load %arg18[%c0_44, %c0_45, %c0_46] : memref<4x8x8xf32, #tpu.memory_space<vmem>>, vector<1x8x8xf32>
    %75 = vector.shape_cast %74 : vector<1x8x8xf32> to vector<8x8xf32>
    %76 = vector.shape_cast %73 : vector<8x8xf32> to vector<1x8x8xf32>
    tpu.vector_store %arg18[%c0_44, %c0_45, %c0_46], %76 {strides = array<i32>} : memref<4x8x8xf32, #tpu.memory_space<vmem>>, vector<1x8x8xf32>,
    %c0_47 = arith.constant 0 : index
    %c0_48 = arith.constant 0 : index
    %c0_49 = arith.constant 0 : index
    %77 = vector.load %arg16[%c0_47, %c0_48, %c0_49] : memref<4x8x1xf32, #tpu.memory_space<vmem>>, vector<1x8x1xf32>
    %78 = vector.shape_cast %77 : vector<1x8x1xf32> to vector<8x1xf32>
    %79 = vector.shape_cast %52 : vector<8x1xf32> to vector<1x8x1xf32>
    tpu.vector_store %arg16[%c0_47, %c0_48, %c0_49], %79 {strides = array<i32>} : memref<4x8x1xf32, #tpu.memory_space<vmem>>, vector<1x8x1xf32>,
    %c1 = arith.constant 1 : index
    %c0_50 = arith.constant 0 : index
    %c0_51 = arith.constant 0 : index
    %80 = vector.load %arg8[%c1, %c0_50, %c0_51] : memref<4x32x8xbf16, #tpu.memory_space<vmem>>, vector<1x32x8xbf16>
    %81 = vector.shape_cast %80 : vector<1x32x8xbf16> to vector<32x8xbf16>
    %cst_52 = arith.constant dense<0.000000e+00> : vector<8x8xf32>
    %82 = tpu.matmul %5, %81, %cst_52 {dimension_numbers = #tpu.dot_dimension_numbers<[1], [0], [0], [1], [0, 0, 1, 1], [], []>} : vector<8x32xbf16>, vector<32x8xbf16>, vector<8x8xf32> -> vector<8x8xf32>
    %c1_53 = arith.constant 1 : index
    %c0_54 = arith.constant 0 : index
    %c0_55 = arith.constant 0 : index
    %83 = vector.load %arg9[%c1_53, %c0_54, %c0_55] : memref<4x1x8xf32, #tpu.memory_space<vmem>>, vector<1x1x8xf32>
    %84 = vector.shape_cast %83 : vector<1x1x8xf32> to vector<1x8xf32>
    %85 = vector.broadcast %84 : vector<1x8xf32> to vector<8x8xf32>
    %86 = arith.addf %82, %85 : vector<8x8xf32>
    %87 = arith.truncf %86 : vector<8x8xf32> to vector<8x8xbf16>
    %c1_56 = arith.constant 1 : index
    %c0_57 = arith.constant 0 : index
    %c0_58 = arith.constant 0 : index
    %88 = vector.load %arg10[%c1_56, %c0_57, %c0_58] : memref<4x32x8xbf16, #tpu.memory_space<vmem>>, vector<1x32x8xbf16>
    %89 = vector.shape_cast %88 : vector<1x32x8xbf16> to vector<32x8xbf16>
    %cst_59 = arith.constant dense<0.000000e+00> : vector<8x8xf32>
    %90 = tpu.matmul %5, %89, %cst_59 {dimension_numbers = #tpu.dot_dimension_numbers<[1], [0], [0], [1], [0, 0, 1, 1], [], []>} : vector<8x32xbf16>, vector<32x8xbf16>, vector<8x8xf32> -> vector<8x8xf32>
    %c1_60 = arith.constant 1 : index
    %c0_61 = arith.constant 0 : index
    %c0_62 = arith.constant 0 : index
    %91 = vector.load %arg11[%c1_60, %c0_61, %c0_62] : memref<4x1x8xf32, #tpu.memory_space<vmem>>, vector<1x1x8xf32>
    %92 = vector.shape_cast %91 : vector<1x1x8xf32> to vector<1x8xf32>
    %93 = vector.broadcast %92 : vector<1x8xf32> to vector<8x8xf32>
    %94 = arith.addf %90, %93 : vector<8x8xf32>
    %95 = arith.truncf %94 : vector<8x8xf32> to vector<8x8xbf16>
    %c1_63 = arith.constant 1 : index
    %c0_64 = arith.constant 0 : index
    %c0_65 = arith.constant 0 : index
    %96 = vector.load %arg15[%c1_63, %c0_64, %c0_65] : memref<4x8x8xf32, #tpu.memory_space<vmem>>, vector<1x8x8xf32>
    %97 = vector.shape_cast %96 : vector<1x8x8xf32> to vector<8x8xf32>
    %98 = arith.truncf %97 : vector<8x8xf32> to vector<8x8xbf16>
    %cst_66 = arith.constant dense<0.000000e+00> : vector<8x8xf32>
    %99 = tpu.matmul %98, %87, %cst_66 {dimension_numbers = #tpu.dot_dimension_numbers<[1], [1], [0], [0], [0, 0, 1, 0], [], []>} : vector<8x8xbf16>, vector<8x8xbf16>, vector<8x8xf32> -> vector<8x8xf32>
    %100 = arith.addf %99, %26 : vector<8x8xf32>
    %c1_67 = arith.constant 1 : index
    %c0_68 = arith.constant 0 : index
    %c0_69 = arith.constant 0 : index
    %101 = vector.load %arg16[%c1_67, %c0_68, %c0_69] : memref<4x8x1xf32, #tpu.memory_space<vmem>>, vector<1x8x1xf32>
    %102 = vector.shape_cast %101 : vector<1x8x1xf32> to vector<8x1xf32>
    %cst_70 = arith.constant dense<0xFF800000> : vector<8xf32>
    %103 = vector.multi_reduction <maximumf>, %100, %cst_70 [1] : vector<8x8xf32> to vector<8xf32>
    %104 = vector.shape_cast %103 : vector<8xf32> to vector<8x1xf32>
    %105 = arith.maximumf %102, %104 : vector<8x1xf32>
    %106 = arith.subf %102, %105 : vector<8x1xf32>
    %107 = math.exp %106 : vector<8x1xf32>
    %108 = vector.broadcast %105 : vector<8x1xf32> to vector<8x8xf32>
    %109 = arith.subf %100, %108 : vector<8x8xf32>
    %110 = math.exp %109 : vector<8x8xf32>
    %c1_71 = arith.constant 1 : index
    %c0_72 = arith.constant 0 : index
    %c0_73 = arith.constant 0 : index
    %111 = vector.load %arg17[%c1_71, %c0_72, %c0_73] : memref<4x8x1xf32, #tpu.memory_space<vmem>>, vector<1x8x1xf32>
    %112 = vector.shape_cast %111 : vector<1x8x1xf32> to vector<8x1xf32>
    %113 = arith.mulf %107, %112 : vector<8x1xf32>
    %cst_74 = arith.constant dense<0.000000e+00> : vector<8xf32>
    %114 = vector.multi_reduction <add>, %110, %cst_74 [1] : vector<8x8xf32> to vector<8xf32>
    %115 = vector.shape_cast %114 : vector<8xf32> to vector<8x1xf32>
    %116 = arith.addf %113, %115 : vector<8x1xf32>
    %c1_75 = arith.constant 1 : index
    %c0_76 = arith.constant 0 : index
    %c0_77 = arith.constant 0 : index
    %117 = vector.load %arg17[%c1_75, %c0_76, %c0_77] : memref<4x8x1xf32, #tpu.memory_space<vmem>>, vector<1x8x1xf32>
    %118 = vector.shape_cast %117 : vector<1x8x1xf32> to vector<8x1xf32>
    %119 = vector.shape_cast %116 : vector<8x1xf32> to vector<1x8x1xf32>
    tpu.vector_store %arg17[%c1_75, %c0_76, %c0_77], %119 {strides = array<i32>} : memref<4x8x1xf32, #tpu.memory_space<vmem>>, vector<1x8x1xf32>,
    %c1_78 = arith.constant 1 : index
    %c0_79 = arith.constant 0 : index
    %c0_80 = arith.constant 0 : index
    %120 = vector.load %arg18[%c1_78, %c0_79, %c0_80] : memref<4x8x8xf32, #tpu.memory_space<vmem>>, vector<1x8x8xf32>
    %121 = vector.shape_cast %120 : vector<1x8x8xf32> to vector<8x8xf32>
    %122 = vector.broadcast %107 : vector<8x1xf32> to vector<8x8xf32>
    %123 = arith.mulf %122, %121 : vector<8x8xf32>
    %124 = arith.truncf %110 : vector<8x8xf32> to vector<8x8xbf16>
    %cst_81 = arith.constant dense<0.000000e+00> : vector<8x8xf32>
    %125 = tpu.matmul %124, %95, %cst_81 {dimension_numbers = #tpu.dot_dimension_numbers<[1], [0], [0], [1], [0, 0, 1, 1], [], []>} : vector<8x8xbf16>, vector<8x8xbf16>, vector<8x8xf32> -> vector<8x8xf32>
    %126 = arith.addf %123, %125 : vector<8x8xf32>
    %c1_82 = arith.constant 1 : index
    %c0_83 = arith.constant 0 : index
    %c0_84 = arith.constant 0 : index
    %127 = vector.load %arg18[%c1_82, %c0_83, %c0_84] : memref<4x8x8xf32, #tpu.memory_space<vmem>>, vector<1x8x8xf32>
    %128 = vector.shape_cast %127 : vector<1x8x8xf32> to vector<8x8xf32>
    %129 = vector.shape_cast %126 : vector<8x8xf32> to vector<1x8x8xf32>
    tpu.vector_store %arg18[%c1_82, %c0_83, %c0_84], %129 {strides = array<i32>} : memref<4x8x8xf32, #tpu.memory_space<vmem>>, vector<1x8x8xf32>,
    %c1_85 = arith.constant 1 : index
    %c0_86 = arith.constant 0 : index
    %c0_87 = arith.constant 0 : index
    %130 = vector.load %arg16[%c1_85, %c0_86, %c0_87] : memref<4x8x1xf32, #tpu.memory_space<vmem>>, vector<1x8x1xf32>
    %131 = vector.shape_cast %130 : vector<1x8x1xf32> to vector<8x1xf32>
    %132 = vector.shape_cast %105 : vector<8x1xf32> to vector<1x8x1xf32>
    tpu.vector_store %arg16[%c1_85, %c0_86, %c0_87], %132 {strides = array<i32>} : memref<4x8x1xf32, #tpu.memory_space<vmem>>, vector<1x8x1xf32>,
    %c2 = arith.constant 2 : index
    %c0_88 = arith.constant 0 : index
    %c0_89 = arith.constant 0 : index
    %133 = vector.load %arg8[%c2, %c0_88, %c0_89] : memref<4x32x8xbf16, #tpu.memory_space<vmem>>, vector<1x32x8xbf16>
    %134 = vector.shape_cast %133 : vector<1x32x8xbf16> to vector<32x8xbf16>
    %cst_90 = arith.constant dense<0.000000e+00> : vector<8x8xf32>
    %135 = tpu.matmul %5, %134, %cst_90 {dimension_numbers = #tpu.dot_dimension_numbers<[1], [0], [0], [1], [0, 0, 1, 1], [], []>} : vector<8x32xbf16>, vector<32x8xbf16>, vector<8x8xf32> -> vector<8x8xf32>
    %c2_91 = arith.constant 2 : index
    %c0_92 = arith.constant 0 : index
    %c0_93 = arith.constant 0 : index
    %136 = vector.load %arg9[%c2_91, %c0_92, %c0_93] : memref<4x1x8xf32, #tpu.memory_space<vmem>>, vector<1x1x8xf32>
    %137 = vector.shape_cast %136 : vector<1x1x8xf32> to vector<1x8xf32>
    %138 = vector.broadcast %137 : vector<1x8xf32> to vector<8x8xf32>
    %139 = arith.addf %135, %138 : vector<8x8xf32>
    %140 = arith.truncf %139 : vector<8x8xf32> to vector<8x8xbf16>
    %c2_94 = arith.constant 2 : index
    %c0_95 = arith.constant 0 : index
    %c0_96 = arith.constant 0 : index
    %141 = vector.load %arg10[%c2_94, %c0_95, %c0_96] : memref<4x32x8xbf16, #tpu.memory_space<vmem>>, vector<1x32x8xbf16>
    %142 = vector.shape_cast %141 : vector<1x32x8xbf16> to vector<32x8xbf16>
    %cst_97 = arith.constant dense<0.000000e+00> : vector<8x8xf32>
    %143 = tpu.matmul %5, %142, %cst_97 {dimension_numbers = #tpu.dot_dimension_numbers<[1], [0], [0], [1], [0, 0, 1, 1], [], []>} : vector<8x32xbf16>, vector<32x8xbf16>, vector<8x8xf32> -> vector<8x8xf32>
    %c2_98 = arith.constant 2 : index
    %c0_99 = arith.constant 0 : index
    %c0_100 = arith.constant 0 : index
    %144 = vector.load %arg11[%c2_98, %c0_99, %c0_100] : memref<4x1x8xf32, #tpu.memory_space<vmem>>, vector<1x1x8xf32>
    %145 = vector.shape_cast %144 : vector<1x1x8xf32> to vector<1x8xf32>
    %146 = vector.broadcast %145 : vector<1x8xf32> to vector<8x8xf32>
    %147 = arith.addf %143, %146 : vector<8x8xf32>
    %148 = arith.truncf %147 : vector<8x8xf32> to vector<8x8xbf16>
    %c2_101 = arith.constant 2 : index
    %c0_102 = arith.constant 0 : index
    %c0_103 = arith.constant 0 : index
    %149 = vector.load %arg15[%c2_101, %c0_102, %c0_103] : memref<4x8x8xf32, #tpu.memory_space<vmem>>, vector<1x8x8xf32>
    %150 = vector.shape_cast %149 : vector<1x8x8xf32> to vector<8x8xf32>
    %151 = arith.truncf %150 : vector<8x8xf32> to vector<8x8xbf16>
    %cst_104 = arith.constant dense<0.000000e+00> : vector<8x8xf32>
    %152 = tpu.matmul %151, %140, %cst_104 {dimension_numbers = #tpu.dot_dimension_numbers<[1], [1], [0], [0], [0, 0, 1, 0], [], []>} : vector<8x8xbf16>, vector<8x8xbf16>, vector<8x8xf32> -> vector<8x8xf32>
    %153 = arith.addf %152, %26 : vector<8x8xf32>
    %c2_105 = arith.constant 2 : index
    %c0_106 = arith.constant 0 : index
    %c0_107 = arith.constant 0 : index
    %154 = vector.load %arg16[%c2_105, %c0_106, %c0_107] : memref<4x8x1xf32, #tpu.memory_space<vmem>>, vector<1x8x1xf32>
    %155 = vector.shape_cast %154 : vector<1x8x1xf32> to vector<8x1xf32>
    %cst_108 = arith.constant dense<0xFF800000> : vector<8xf32>
    %156 = vector.multi_reduction <maximumf>, %153, %cst_108 [1] : vector<8x8xf32> to vector<8xf32>
    %157 = vector.shape_cast %156 : vector<8xf32> to vector<8x1xf32>
    %158 = arith.maximumf %155, %157 : vector<8x1xf32>
    %159 = arith.subf %155, %158 : vector<8x1xf32>
    %160 = math.exp %159 : vector<8x1xf32>
    %161 = vector.broadcast %158 : vector<8x1xf32> to vector<8x8xf32>
    %162 = arith.subf %153, %161 : vector<8x8xf32>
    %163 = math.exp %162 : vector<8x8xf32>
    %c2_109 = arith.constant 2 : index
    %c0_110 = arith.constant 0 : index
    %c0_111 = arith.constant 0 : index
    %164 = vector.load %arg17[%c2_109, %c0_110, %c0_111] : memref<4x8x1xf32, #tpu.memory_space<vmem>>, vector<1x8x1xf32>
    %165 = vector.shape_cast %164 : vector<1x8x1xf32> to vector<8x1xf32>
    %166 = arith.mulf %160, %165 : vector<8x1xf32>
    %cst_112 = arith.constant dense<0.000000e+00> : vector<8xf32>
    %167 = vector.multi_reduction <add>, %163, %cst_112 [1] : vector<8x8xf32> to vector<8xf32>
    %168 = vector.shape_cast %167 : vector<8xf32> to vector<8x1xf32>
    %169 = arith.addf %166, %168 : vector<8x1xf32>
    %c2_113 = arith.constant 2 : index
    %c0_114 = arith.constant 0 : index
    %c0_115 = arith.constant 0 : index
    %170 = vector.load %arg17[%c2_113, %c0_114, %c0_115] : memref<4x8x1xf32, #tpu.memory_space<vmem>>, vector<1x8x1xf32>
    %171 = vector.shape_cast %170 : vector<1x8x1xf32> to vector<8x1xf32>
    %172 = vector.shape_cast %169 : vector<8x1xf32> to vector<1x8x1xf32>
    tpu.vector_store %arg17[%c2_113, %c0_114, %c0_115], %172 {strides = array<i32>} : memref<4x8x1xf32, #tpu.memory_space<vmem>>, vector<1x8x1xf32>,
    %c2_116 = arith.constant 2 : index
    %c0_117 = arith.constant 0 : index
    %c0_118 = arith.constant 0 : index
    %173 = vector.load %arg18[%c2_116, %c0_117, %c0_118] : memref<4x8x8xf32, #tpu.memory_space<vmem>>, vector<1x8x8xf32>
    %174 = vector.shape_cast %173 : vector<1x8x8xf32> to vector<8x8xf32>
    %175 = vector.broadcast %160 : vector<8x1xf32> to vector<8x8xf32>
    %176 = arith.mulf %175, %174 : vector<8x8xf32>
    %177 = arith.truncf %163 : vector<8x8xf32> to vector<8x8xbf16>
    %cst_119 = arith.constant dense<0.000000e+00> : vector<8x8xf32>
    %178 = tpu.matmul %177, %148, %cst_119 {dimension_numbers = #tpu.dot_dimension_numbers<[1], [0], [0], [1], [0, 0, 1, 1], [], []>} : vector<8x8xbf16>, vector<8x8xbf16>, vector<8x8xf32> -> vector<8x8xf32>
    %179 = arith.addf %176, %178 : vector<8x8xf32>
    %c2_120 = arith.constant 2 : index
    %c0_121 = arith.constant 0 : index
    %c0_122 = arith.constant 0 : index
    %180 = vector.load %arg18[%c2_120, %c0_121, %c0_122] : memref<4x8x8xf32, #tpu.memory_space<vmem>>, vector<1x8x8xf32>
    %181 = vector.shape_cast %180 : vector<1x8x8xf32> to vector<8x8xf32>
    %182 = vector.shape_cast %179 : vector<8x8xf32> to vector<1x8x8xf32>
    tpu.vector_store %arg18[%c2_120, %c0_121, %c0_122], %182 {strides = array<i32>} : memref<4x8x8xf32, #tpu.memory_space<vmem>>, vector<1x8x8xf32>,
    %c2_123 = arith.constant 2 : index
    %c0_124 = arith.constant 0 : index
    %c0_125 = arith.constant 0 : index
    %183 = vector.load %arg16[%c2_123, %c0_124, %c0_125] : memref<4x8x1xf32, #tpu.memory_space<vmem>>, vector<1x8x1xf32>
    %184 = vector.shape_cast %183 : vector<1x8x1xf32> to vector<8x1xf32>
    %185 = vector.shape_cast %158 : vector<8x1xf32> to vector<1x8x1xf32>
    tpu.vector_store %arg16[%c2_123, %c0_124, %c0_125], %185 {strides = array<i32>} : memref<4x8x1xf32, #tpu.memory_space<vmem>>, vector<1x8x1xf32>,
    %c3 = arith.constant 3 : index
    %c0_126 = arith.constant 0 : index
    %c0_127 = arith.constant 0 : index
    %186 = vector.load %arg8[%c3, %c0_126, %c0_127] : memref<4x32x8xbf16, #tpu.memory_space<vmem>>, vector<1x32x8xbf16>
    %187 = vector.shape_cast %186 : vector<1x32x8xbf16> to vector<32x8xbf16>
    %cst_128 = arith.constant dense<0.000000e+00> : vector<8x8xf32>
    %188 = tpu.matmul %5, %187, %cst_128 {dimension_numbers = #tpu.dot_dimension_numbers<[1], [0], [0], [1], [0, 0, 1, 1], [], []>} : vector<8x32xbf16>, vector<32x8xbf16>, vector<8x8xf32> -> vector<8x8xf32>
    %c3_129 = arith.constant 3 : index
    %c0_130 = arith.constant 0 : index
    %c0_131 = arith.constant 0 : index
    %189 = vector.load %arg9[%c3_129, %c0_130, %c0_131] : memref<4x1x8xf32, #tpu.memory_space<vmem>>, vector<1x1x8xf32>
    %190 = vector.shape_cast %189 : vector<1x1x8xf32> to vector<1x8xf32>
    %191 = vector.broadcast %190 : vector<1x8xf32> to vector<8x8xf32>
    %192 = arith.addf %188, %191 : vector<8x8xf32>
    %193 = arith.truncf %192 : vector<8x8xf32> to vector<8x8xbf16>
    %c3_132 = arith.constant 3 : index
    %c0_133 = arith.constant 0 : index
    %c0_134 = arith.constant 0 : index
    %194 = vector.load %arg10[%c3_132, %c0_133, %c0_134] : memref<4x32x8xbf16, #tpu.memory_space<vmem>>, vector<1x32x8xbf16>
    %195 = vector.shape_cast %194 : vector<1x32x8xbf16> to vector<32x8xbf16>
    %cst_135 = arith.constant dense<0.000000e+00> : vector<8x8xf32>
    %196 = tpu.matmul %5, %195, %cst_135 {dimension_numbers = #tpu.dot_dimension_numbers<[1], [0], [0], [1], [0, 0, 1, 1], [], []>} : vector<8x32xbf16>, vector<32x8xbf16>, vector<8x8xf32> -> vector<8x8xf32>
    %c3_136 = arith.constant 3 : index
    %c0_137 = arith.constant 0 : index
    %c0_138 = arith.constant 0 : index
    %197 = vector.load %arg11[%c3_136, %c0_137, %c0_138] : memref<4x1x8xf32, #tpu.memory_space<vmem>>, vector<1x1x8xf32>
    %198 = vector.shape_cast %197 : vector<1x1x8xf32> to vector<1x8xf32>
    %199 = vector.broadcast %198 : vector<1x8xf32> to vector<8x8xf32>
    %200 = arith.addf %196, %199 : vector<8x8xf32>
    %201 = arith.truncf %200 : vector<8x8xf32> to vector<8x8xbf16>
    %c3_139 = arith.constant 3 : index
    %c0_140 = arith.constant 0 : index
    %c0_141 = arith.constant 0 : index
    %202 = vector.load %arg15[%c3_139, %c0_140, %c0_141] : memref<4x8x8xf32, #tpu.memory_space<vmem>>, vector<1x8x8xf32>
    %203 = vector.shape_cast %202 : vector<1x8x8xf32> to vector<8x8xf32>
    %204 = arith.truncf %203 : vector<8x8xf32> to vector<8x8xbf16>
    %cst_142 = arith.constant dense<0.000000e+00> : vector<8x8xf32>
    %205 = tpu.matmul %204, %193, %cst_142 {dimension_numbers = #tpu.dot_dimension_numbers<[1], [1], [0], [0], [0, 0, 1, 0], [], []>} : vector<8x8xbf16>, vector<8x8xbf16>, vector<8x8xf32> -> vector<8x8xf32>
    %206 = arith.addf %205, %26 : vector<8x8xf32>
    %c3_143 = arith.constant 3 : index
    %c0_144 = arith.constant 0 : index
    %c0_145 = arith.constant 0 : index
    %207 = vector.load %arg16[%c3_143, %c0_144, %c0_145] : memref<4x8x1xf32, #tpu.memory_space<vmem>>, vector<1x8x1xf32>
    %208 = vector.shape_cast %207 : vector<1x8x1xf32> to vector<8x1xf32>
    %cst_146 = arith.constant dense<0xFF800000> : vector<8xf32>
    %209 = vector.multi_reduction <maximumf>, %206, %cst_146 [1] : vector<8x8xf32> to vector<8xf32>
    %210 = vector.shape_cast %209 : vector<8xf32> to vector<8x1xf32>
    %211 = arith.maximumf %208, %210 : vector<8x1xf32>
    %212 = arith.subf %208, %211 : vector<8x1xf32>
    %213 = math.exp %212 : vector<8x1xf32>
    %214 = vector.broadcast %211 : vector<8x1xf32> to vector<8x8xf32>
    %215 = arith.subf %206, %214 : vector<8x8xf32>
    %216 = math.exp %215 : vector<8x8xf32>
    %c3_147 = arith.constant 3 : index
    %c0_148 = arith.constant 0 : index
    %c0_149 = arith.constant 0 : index
    %217 = vector.load %arg17[%c3_147, %c0_148, %c0_149] : memref<4x8x1xf32, #tpu.memory_space<vmem>>, vector<1x8x1xf32>
    %218 = vector.shape_cast %217 : vector<1x8x1xf32> to vector<8x1xf32>
    %219 = arith.mulf %213, %218 : vector<8x1xf32>
    %cst_150 = arith.constant dense<0.000000e+00> : vector<8xf32>
    %220 = vector.multi_reduction <add>, %216, %cst_150 [1] : vector<8x8xf32> to vector<8xf32>
    %221 = vector.shape_cast %220 : vector<8xf32> to vector<8x1xf32>
    %222 = arith.addf %219, %221 : vector<8x1xf32>
    %c3_151 = arith.constant 3 : index
    %c0_152 = arith.constant 0 : index
    %c0_153 = arith.constant 0 : index
    %223 = vector.load %arg17[%c3_151, %c0_152, %c0_153] : memref<4x8x1xf32, #tpu.memory_space<vmem>>, vector<1x8x1xf32>
    %224 = vector.shape_cast %223 : vector<1x8x1xf32> to vector<8x1xf32>
    %225 = vector.shape_cast %222 : vector<8x1xf32> to vector<1x8x1xf32>
    tpu.vector_store %arg17[%c3_151, %c0_152, %c0_153], %225 {strides = array<i32>} : memref<4x8x1xf32, #tpu.memory_space<vmem>>, vector<1x8x1xf32>,
    %c3_154 = arith.constant 3 : index
    %c0_155 = arith.constant 0 : index
    %c0_156 = arith.constant 0 : index
    %226 = vector.load %arg18[%c3_154, %c0_155, %c0_156] : memref<4x8x8xf32, #tpu.memory_space<vmem>>, vector<1x8x8xf32>
    %227 = vector.shape_cast %226 : vector<1x8x8xf32> to vector<8x8xf32>
    %228 = vector.broadcast %213 : vector<8x1xf32> to vector<8x8xf32>
    %229 = arith.mulf %228, %227 : vector<8x8xf32>
    %230 = arith.truncf %216 : vector<8x8xf32> to vector<8x8xbf16>
    %cst_157 = arith.constant dense<0.000000e+00> : vector<8x8xf32>
    %231 = tpu.matmul %230, %201, %cst_157 {dimension_numbers = #tpu.dot_dimension_numbers<[1], [0], [0], [1], [0, 0, 1, 1], [], []>} : vector<8x8xbf16>, vector<8x8xbf16>, vector<8x8xf32> -> vector<8x8xf32>
    %232 = arith.addf %229, %231 : vector<8x8xf32>
    %c3_158 = arith.constant 3 : index
    %c0_159 = arith.constant 0 : index
    %c0_160 = arith.constant 0 : index
    %233 = vector.load %arg18[%c3_158, %c0_159, %c0_160] : memref<4x8x8xf32, #tpu.memory_space<vmem>>, vector<1x8x8xf32>
    %234 = vector.shape_cast %233 : vector<1x8x8xf32> to vector<8x8xf32>
    %235 = vector.shape_cast %232 : vector<8x8xf32> to vector<1x8x8xf32>
    tpu.vector_store %arg18[%c3_158, %c0_159, %c0_160], %235 {strides = array<i32>} : memref<4x8x8xf32, #tpu.memory_space<vmem>>, vector<1x8x8xf32>,
    %c3_161 = arith.constant 3 : index
    %c0_162 = arith.constant 0 : index
    %c0_163 = arith.constant 0 : index
    %236 = vector.load %arg16[%c3_161, %c0_162, %c0_163] : memref<4x8x1xf32, #tpu.memory_space<vmem>>, vector<1x8x1xf32>
    %237 = vector.shape_cast %236 : vector<1x8x1xf32> to vector<8x1xf32>
    %238 = vector.shape_cast %211 : vector<8x1xf32> to vector<1x8x1xf32>
    tpu.vector_store %arg16[%c3_161, %c0_162, %c0_163], %238 {strides = array<i32>} : memref<4x8x1xf32, #tpu.memory_space<vmem>>, vector<1x8x1xf32>,
    %c0_i32_164 = arith.constant 0 : i32
    %239 = arith.cmpi eq, %arg2, %c0_i32_164 : i32
    %240 = arith.extui %239 : i1 to i32
    %c0_i32_165 = arith.constant 0 : i32
    %241 = arith.cmpi ne, %240, %c0_i32_165 : i32
    scf.if %241 {
      %cst_166 = arith.constant 0.000000e+00 : f32
      %242 = vector.broadcast %cst_166 : f32 to vector<8x32xf32>
      %c0_167 = arith.constant 0 : index
      %c0_168 = arith.constant 0 : index
      %c0_169 = arith.constant 0 : index
      %243 = vector.load %arg18[%c0_167, %c0_168, %c0_169] : memref<4x8x8xf32, #tpu.memory_space<vmem>>, vector<1x8x8xf32>
      %244 = vector.shape_cast %243 : vector<1x8x8xf32> to vector<8x8xf32>
      %c0_170 = arith.constant 0 : index
      %c0_171 = arith.constant 0 : index
      %c0_172 = arith.constant 0 : index
      %245 = vector.load %arg17[%c0_170, %c0_171, %c0_172] : memref<4x8x1xf32, #tpu.memory_space<vmem>>, vector<1x8x1xf32>
      %246 = vector.shape_cast %245 : vector<1x8x1xf32> to vector<8x1xf32>
      %247 = tpu.reciprocal %246 {approx = true} : vector<8x1xf32> -> vector<8x1xf32>
      %248 = vector.broadcast %247 : vector<8x1xf32> to vector<8x8xf32>
      %249 = arith.mulf %244, %248 : vector<8x8xf32>
      %250 = arith.truncf %249 : vector<8x8xf32> to vector<8x8xbf16>
      %c0_173 = arith.constant 0 : index
      %c0_174 = arith.constant 0 : index
      %c0_175 = arith.constant 0 : index
      %251 = vector.load %arg12[%c0_173, %c0_174, %c0_175] : memref<4x8x32xbf16, #tpu.memory_space<vmem>>, vector<1x8x32xbf16>
      %252 = vector.shape_cast %251 : vector<1x8x32xbf16> to vector<8x32xbf16>
      %cst_176 = arith.constant dense<0.000000e+00> : vector<8x32xf32>
      %253 = tpu.matmul %250, %252, %cst_176 {dimension_numbers = #tpu.dot_dimension_numbers<[1], [0], [0], [1], [0, 0, 1, 1], [], []>} : vector<8x8xbf16>, vector<8x32xbf16>, vector<8x32xf32> -> vector<8x32xf32>
      %254 = arith.addf %242, %253 : vector<8x32xf32>
      %c1_177 = arith.constant 1 : index
      %c0_178 = arith.constant 0 : index
      %c0_179 = arith.constant 0 : index
      %255 = vector.load %arg18[%c1_177, %c0_178, %c0_179] : memref<4x8x8xf32, #tpu.memory_space<vmem>>, vector<1x8x8xf32>
      %256 = vector.shape_cast %255 : vector<1x8x8xf32> to vector<8x8xf32>
      %c1_180 = arith.constant 1 : index
      %c0_181 = arith.constant 0 : index
      %c0_182 = arith.constant 0 : index
      %257 = vector.load %arg17[%c1_180, %c0_181, %c0_182] : memref<4x8x1xf32, #tpu.memory_space<vmem>>, vector<1x8x1xf32>
      %258 = vector.shape_cast %257 : vector<1x8x1xf32> to vector<8x1xf32>
      %259 = tpu.reciprocal %258 {approx = true} : vector<8x1xf32> -> vector<8x1xf32>
      %260 = vector.broadcast %259 : vector<8x1xf32> to vector<8x8xf32>
      %261 = arith.mulf %256, %260 : vector<8x8xf32>
      %262 = arith.truncf %261 : vector<8x8xf32> to vector<8x8xbf16>
      %c1_183 = arith.constant 1 : index
      %c0_184 = arith.constant 0 : index
      %c0_185 = arith.constant 0 : index
      %263 = vector.load %arg12[%c1_183, %c0_184, %c0_185] : memref<4x8x32xbf16, #tpu.memory_space<vmem>>, vector<1x8x32xbf16>
      %264 = vector.shape_cast %263 : vector<1x8x32xbf16> to vector<8x32xbf16>
      %cst_186 = arith.constant dense<0.000000e+00> : vector<8x32xf32>
      %265 = tpu.matmul %262, %264, %cst_186 {dimension_numbers = #tpu.dot_dimension_numbers<[1], [0], [0], [1], [0, 0, 1, 1], [], []>} : vector<8x8xbf16>, vector<8x32xbf16>, vector<8x32xf32> -> vector<8x32xf32>
      %266 = arith.addf %254, %265 : vector<8x32xf32>
      %c2_187 = arith.constant 2 : index
      %c0_188 = arith.constant 0 : index
      %c0_189 = arith.constant 0 : index
      %267 = vector.load %arg18[%c2_187, %c0_188, %c0_189] : memref<4x8x8xf32, #tpu.memory_space<vmem>>, vector<1x8x8xf32>
      %268 = vector.shape_cast %267 : vector<1x8x8xf32> to vector<8x8xf32>
      %c2_190 = arith.constant 2 : index
      %c0_191 = arith.constant 0 : index
      %c0_192 = arith.constant 0 : index
      %269 = vector.load %arg17[%c2_190, %c0_191, %c0_192] : memref<4x8x1xf32, #tpu.memory_space<vmem>>, vector<1x8x1xf32>
      %270 = vector.shape_cast %269 : vector<1x8x1xf32> to vector<8x1xf32>
      %271 = tpu.reciprocal %270 {approx = true} : vector<8x1xf32> -> vector<8x1xf32>
      %272 = vector.broadcast %271 : vector<8x1xf32> to vector<8x8xf32>
      %273 = arith.mulf %268, %272 : vector<8x8xf32>
      %274 = arith.truncf %273 : vector<8x8xf32> to vector<8x8xbf16>
      %c2_193 = arith.constant 2 : index
      %c0_194 = arith.constant 0 : index
      %c0_195 = arith.constant 0 : index
      %275 = vector.load %arg12[%c2_193, %c0_194, %c0_195] : memref<4x8x32xbf16, #tpu.memory_space<vmem>>, vector<1x8x32xbf16>
      %276 = vector.shape_cast %275 : vector<1x8x32xbf16> to vector<8x32xbf16>
      %cst_196 = arith.constant dense<0.000000e+00> : vector<8x32xf32>
      %277 = tpu.matmul %274, %276, %cst_196 {dimension_numbers = #tpu.dot_dimension_numbers<[1], [0], [0], [1], [0, 0, 1, 1], [], []>} : vector<8x8xbf16>, vector<8x32xbf16>, vector<8x32xf32> -> vector<8x32xf32>
      %278 = arith.addf %266, %277 : vector<8x32xf32>
      %c3_197 = arith.constant 3 : index
      %c0_198 = arith.constant 0 : index
      %c0_199 = arith.constant 0 : index
      %279 = vector.load %arg18[%c3_197, %c0_198, %c0_199] : memref<4x8x8xf32, #tpu.memory_space<vmem>>, vector<1x8x8xf32>
      %280 = vector.shape_cast %279 : vector<1x8x8xf32> to vector<8x8xf32>
      %c3_200 = arith.constant 3 : index
      %c0_201 = arith.constant 0 : index
      %c0_202 = arith.constant 0 : index
      %281 = vector.load %arg17[%c3_200, %c0_201, %c0_202] : memref<4x8x1xf32, #tpu.memory_space<vmem>>, vector<1x8x1xf32>
      %282 = vector.shape_cast %281 : vector<1x8x1xf32> to vector<8x1xf32>
      %283 = tpu.reciprocal %282 {approx = true} : vector<8x1xf32> -> vector<8x1xf32>
      %284 = vector.broadcast %283 : vector<8x1xf32> to vector<8x8xf32>
      %285 = arith.mulf %280, %284 : vector<8x8xf32>
      %286 = arith.truncf %285 : vector<8x8xf32> to vector<8x8xbf16>
      %c3_203 = arith.constant 3 : index
      %c0_204 = arith.constant 0 : index
      %c0_205 = arith.constant 0 : index
      %287 = vector.load %arg12[%c3_203, %c0_204, %c0_205] : memref<4x8x32xbf16, #tpu.memory_space<vmem>>, vector<1x8x32xbf16>
      %288 = vector.shape_cast %287 : vector<1x8x32xbf16> to vector<8x32xbf16>
      %cst_206 = arith.constant dense<0.000000e+00> : vector<8x32xf32>
      %289 = tpu.matmul %286, %288, %cst_206 {dimension_numbers = #tpu.dot_dimension_numbers<[1], [0], [0], [1], [0, 0, 1, 1], [], []>} : vector<8x8xbf16>, vector<8x32xbf16>, vector<8x32xf32> -> vector<8x32xf32>
      %290 = arith.addf %278, %289 : vector<8x32xf32>
      %c0_207 = arith.constant 0 : index
      %c0_208 = arith.constant 0 : index
      %291 = vector.load %arg13[%c0_207, %c0_208] : memref<1x32xf32, #tpu.memory_space<vmem>>, vector<1x32xf32>
      %292 = vector.broadcast %291 : vector<1x32xf32> to vector<8x32xf32>
      %293 = arith.addf %290, %292 : vector<8x32xf32>
      %c0_209 = arith.constant 0 : index
      %c0_210 = arith.constant 0 : index
      %c0_211 = arith.constant 0 : index
      %294 = vector.load %arg14[%c0_209, %c0_210, %c0_211] : memref<1x8x32xf32, #tpu.memory_space<vmem>>, vector<1x8x32xf32>
      %295 = vector.shape_cast %294 : vector<1x8x32xf32> to vector<8x32xf32>
      %296 = vector.shape_cast %293 : vector<8x32xf32> to vector<1x8x32xf32>
      tpu.vector_store %arg14[%c0_209, %c0_210, %c0_211], %296 {strides = array<i32>} : memref<1x8x32xf32, #tpu.memory_space<vmem>>, vector<1x8x32xf32>,
    } else {
    }
    return
  }
  func.func @transform_0(%arg0: i32, %arg1: i32, %arg2: i32) -> (i32, i32, i32) {
    %c0_i32 = arith.constant 0 : i32
    %c0_i32_0 = arith.constant 0 : i32
    return %arg0, %arg1, %c0_i32 : i32, i32, i32
  }
  func.func @transform_1(%arg0: i32, %arg1: i32, %arg2: i32) -> (i32, i32, i32) {
    %c0_i32 = arith.constant 0 : i32
    %c0_i32_0 = arith.constant 0 : i32
    return %arg0, %arg2, %c0_i32 : i32, i32, i32
  }
  func.func @transform_2(%arg0: i32, %arg1: i32, %arg2: i32) -> (i32, i32, i32) {
    %c0_i32 = arith.constant 0 : i32
    %c0_i32_0 = arith.constant 0 : i32
    return %arg0, %c0_i32, %arg2 : i32, i32, i32
  }
  func.func @transform_3(%arg0: i32, %arg1: i32, %arg2: i32) -> (i32, i32, i32) {
    %c0_i32 = arith.constant 0 : i32
    %c0_i32_0 = arith.constant 0 : i32
    %c0_i32_1 = arith.constant 0 : i32
    %c0_i32_2 = arith.constant 0 : i32
    return %c0_i32, %c0_i32_0, %c0_i32_1 : i32, i32, i32
  }
  func.func @transform_4(%arg0: i32, %arg1: i32, %arg2: i32) -> (i32, i32, i32) {
    %c0_i32 = arith.constant 0 : i32
    %c0_i32_0 = arith.constant 0 : i32
    %c0_i32_1 = arith.constant 0 : i32
    %c0_i32_2 = arith.constant 0 : i32
    return %c0_i32, %c0_i32_0, %c0_i32_1 : i32, i32, i32
  }
  func.func @transform_5(%arg0: i32, %arg1: i32, %arg2: i32) -> (i32, i32, i32) {
    %c0_i32 = arith.constant 0 : i32
    %c0_i32_0 = arith.constant 0 : i32
    %c0_i32_1 = arith.constant 0 : i32
    %c0_i32_2 = arith.constant 0 : i32
    return %c0_i32, %c0_i32_0, %c0_i32_1 : i32, i32, i32
  }
  func.func @transform_6(%arg0: i32, %arg1: i32, %arg2: i32) -> (i32, i32, i32) {
    %c0_i32 = arith.constant 0 : i32
    %c0_i32_0 = arith.constant 0 : i32
    %c0_i32_1 = arith.constant 0 : i32
    %c0_i32_2 = arith.constant 0 : i32
    return %c0_i32, %c0_i32_0, %c0_i32_1 : i32, i32, i32
  }
  func.func @transform_7(%arg0: i32, %arg1: i32, %arg2: i32) -> (i32, i32, i32) {
    %c0_i32 = arith.constant 0 : i32
    %c0_i32_0 = arith.constant 0 : i32
    %c0_i32_1 = arith.constant 0 : i32
    %c0_i32_2 = arith.constant 0 : i32
    return %c0_i32, %c0_i32_0, %c0_i32_1 : i32, i32, i32
  }
  func.func @transform_8(%arg0: i32, %arg1: i32, %arg2: i32) -> (i32, i32, i32) {
    %c0_i32 = arith.constant 0 : i32
    %c0_i32_0 = arith.constant 0 : i32
    %c0_i32_1 = arith.constant 0 : i32
    %c0_i32_2 = arith.constant 0 : i32
    return %c0_i32, %c0_i32_0, %c0_i32_1 : i32, i32, i32
  }
  func.func @transform_9(%arg0: i32, %arg1: i32, %arg2: i32) -> (i32, i32, i32) {
    %c0_i32 = arith.constant 0 : i32
    %c0_i32_0 = arith.constant 0 : i32
    %c0_i32_1 = arith.constant 0 : i32
    %c0_i32_2 = arith.constant 0 : i32
    return %c0_i32, %c0_i32_0, %c0_i32_1 : i32, i32, i32
  }
  func.func @transform_10(%arg0: i32, %arg1: i32, %arg2: i32) -> (i32, i32) {
    %c0_i32 = arith.constant 0 : i32
    %c0_i32_0 = arith.constant 0 : i32
    %c0_i32_1 = arith.constant 0 : i32
    return %c0_i32, %c0_i32_0 : i32, i32
  }
  func.func @transform_11(%arg0: i32, %arg1: i32, %arg2: i32) -> (i32, i32, i32) {
    %c0_i32 = arith.constant 0 : i32
    %c0_i32_0 = arith.constant 0 : i32
    return %arg0, %arg1, %c0_i32 : i32, i32, i32
  }
}

module attributes {stable_mosaic.version = 11 : i64} {
  func.func @_add_ln_kernel(%arg0: i32, %arg1: memref<16x32xf32, #tpu.memory_space<vmem>>, %arg2: memref<16x32xf32, #tpu.memory_space<vmem>>, %arg3: memref<1x32xf32, #tpu.memory_space<vmem>>, %arg4: memref<1x32xf32, #tpu.memory_space<vmem>>, %arg5: memref<16x32xf32, #tpu.memory_space<vmem>>) attributes {dimension_semantics = [#tpu.dimension_semantics<parallel>], iteration_bounds = array<i64: 1>, scalar_prefetch = 0 : i64, scratch_operands = 0 : i64, tpu.core_type = #tpu.core_type<tc>, window_params = [{transform_indices = @transform_0, window_bounds = array<i64: 16, 32>}, {transform_indices = @transform_1, window_bounds = array<i64: 16, 32>}, {pipeline_mode = #tpu.pipeline_mode<synchronous>, transform_indices = @transform_2, window_bounds = array<i64: 1, 32>}, {pipeline_mode = #tpu.pipeline_mode<synchronous>, transform_indices = @transform_3, window_bounds = array<i64: 1, 32>}, {transform_indices = @transform_4, window_bounds = array<i64: 16, 32>}]} {
    %c0 = arith.constant 0 : index
    %c0_0 = arith.constant 0 : index
    %0 = vector.load %arg1[%c0, %c0_0] : memref<16x32xf32, #tpu.memory_space<vmem>>, vector<16x32xf32>
    %c0_1 = arith.constant 0 : index
    %c0_2 = arith.constant 0 : index
    %1 = vector.load %arg2[%c0_1, %c0_2] : memref<16x32xf32, #tpu.memory_space<vmem>>, vector<16x32xf32>
    %2 = arith.addf %0, %1 : vector<16x32xf32>
    %cst = arith.constant dense<0.000000e+00> : vector<16xf32>
    %3 = vector.multi_reduction <add>, %2, %cst [1] : vector<16x32xf32> to vector<16xf32>
    %4 = vector.shape_cast %3 : vector<16xf32> to vector<16x1xf32>
    %cst_3 = arith.constant 3.200000e+01 : f32
    %5 = vector.broadcast %cst_3 : f32 to vector<16x1xf32>
    %6 = arith.divf %4, %5 : vector<16x1xf32>
    %7 = vector.broadcast %6 : vector<16x1xf32> to vector<16x32xf32>
    %8 = arith.subf %2, %7 : vector<16x32xf32>
    %9 = arith.mulf %8, %8 : vector<16x32xf32>
    %cst_4 = arith.constant dense<0.000000e+00> : vector<16xf32>
    %10 = vector.multi_reduction <add>, %9, %cst_4 [1] : vector<16x32xf32> to vector<16xf32>
    %11 = vector.shape_cast %10 : vector<16xf32> to vector<16x1xf32>
    %cst_5 = arith.constant 3.200000e+01 : f32
    %12 = vector.broadcast %cst_5 : f32 to vector<16x1xf32>
    %13 = arith.divf %11, %12 : vector<16x1xf32>
    %cst_6 = arith.constant 9.99999974E-6 : f32
    %14 = vector.broadcast %cst_6 : f32 to vector<16x1xf32>
    %15 = arith.addf %13, %14 : vector<16x1xf32>
    %16 = math.rsqrt %15 : vector<16x1xf32>
    %17 = vector.broadcast %16 : vector<16x1xf32> to vector<16x32xf32>
    %18 = arith.mulf %8, %17 : vector<16x32xf32>
    %c0_7 = arith.constant 0 : index
    %c0_8 = arith.constant 0 : index
    %19 = vector.load %arg3[%c0_7, %c0_8] : memref<1x32xf32, #tpu.memory_space<vmem>>, vector<1x32xf32>
    %20 = vector.broadcast %19 : vector<1x32xf32> to vector<16x32xf32>
    %21 = arith.mulf %18, %20 : vector<16x32xf32>
    %c0_9 = arith.constant 0 : index
    %c0_10 = arith.constant 0 : index
    %22 = vector.load %arg4[%c0_9, %c0_10] : memref<1x32xf32, #tpu.memory_space<vmem>>, vector<1x32xf32>
    %23 = vector.broadcast %22 : vector<1x32xf32> to vector<16x32xf32>
    %24 = arith.addf %21, %23 : vector<16x32xf32>
    %c0_11 = arith.constant 0 : index
    %c0_12 = arith.constant 0 : index
    %25 = vector.load %arg5[%c0_11, %c0_12] : memref<16x32xf32, #tpu.memory_space<vmem>>, vector<16x32xf32>
    tpu.vector_store %arg5[%c0_11, %c0_12], %24 {strides = array<i32>} : memref<16x32xf32, #tpu.memory_space<vmem>>, vector<16x32xf32>,
    return
  }
  func.func @transform_0(%arg0: i32) -> (i32, i32) {
    %c0_i32 = arith.constant 0 : i32
    %c0_i32_0 = arith.constant 0 : i32
    return %arg0, %c0_i32 : i32, i32
  }
  func.func @transform_1(%arg0: i32) -> (i32, i32) {
    %c0_i32 = arith.constant 0 : i32
    %c0_i32_0 = arith.constant 0 : i32
    return %arg0, %c0_i32 : i32, i32
  }
  func.func @transform_2(%arg0: i32) -> (i32, i32) {
    %c0_i32 = arith.constant 0 : i32
    %c0_i32_0 = arith.constant 0 : i32
    %c0_i32_1 = arith.constant 0 : i32
    return %c0_i32, %c0_i32_0 : i32, i32
  }
  func.func @transform_3(%arg0: i32) -> (i32, i32) {
    %c0_i32 = arith.constant 0 : i32
    %c0_i32_0 = arith.constant 0 : i32
    %c0_i32_1 = arith.constant 0 : i32
    return %c0_i32, %c0_i32_0 : i32, i32
  }
  func.func @transform_4(%arg0: i32) -> (i32, i32) {
    %c0_i32 = arith.constant 0 : i32
    %c0_i32_0 = arith.constant 0 : i32
    return %arg0, %c0_i32 : i32, i32
  }
}

module attributes {stable_mosaic.version = 11 : i64} {
  func.func @_flash_mha_kernel(%arg0: i32, %arg1: i32, %arg2: i32, %arg3: memref<1x8x32xf32, #tpu.memory_space<vmem>>, %arg4: memref<1x10x32xf32, #tpu.memory_space<vmem>>, %arg5: memref<1x1x10xf32, #tpu.memory_space<vmem>>, %arg6: memref<4x32x8xbf16, #tpu.memory_space<vmem>>, %arg7: memref<4x1x8xf32, #tpu.memory_space<vmem>>, %arg8: memref<4x32x8xbf16, #tpu.memory_space<vmem>>, %arg9: memref<4x1x8xf32, #tpu.memory_space<vmem>>, %arg10: memref<4x32x8xbf16, #tpu.memory_space<vmem>>, %arg11: memref<4x1x8xf32, #tpu.memory_space<vmem>>, %arg12: memref<4x8x32xbf16, #tpu.memory_space<vmem>>, %arg13: memref<1x32xf32, #tpu.memory_space<vmem>>, %arg14: memref<1x8x32xf32, #tpu.memory_space<vmem>>, %arg15: memref<4x8x8xf32, #tpu.memory_space<vmem>>, %arg16: memref<4x8x1xf32, #tpu.memory_space<vmem>>, %arg17: memref<4x8x1xf32, #tpu.memory_space<vmem>>, %arg18: memref<4x8x8xf32, #tpu.memory_space<vmem>>) attributes {dimension_semantics = [#tpu.dimension_semantics<parallel>, #tpu.dimension_semantics<parallel>, #tpu.dimension_semantics<arbitrary>], iteration_bounds = array<i64: 2, 1, 1>, scalar_prefetch = 0 : i64, scratch_operands = 4 : i64, tpu.core_type = #tpu.core_type<tc>, window_params = [{transform_indices = @transform_0, window_bounds = array<i64: 1, 8, 32>}, {transform_indices = @transform_1, window_bounds = array<i64: 1, 10, 32>}, {transform_indices = @transform_2, window_bounds = array<i64: 1, 1, 10>}, {pipeline_mode = #tpu.pipeline_mode<synchronous>, transform_indices = @transform_3, window_bounds = array<i64: 4, 32, 8>}, {pipeline_mode = #tpu.pipeline_mode<synchronous>, transform_indices = @transform_4, window_bounds = array<i64: 4, 1, 8>}, {pipeline_mode = #tpu.pipeline_mode<synchronous>, transform_indices = @transform_5, window_bounds = array<i64: 4, 32, 8>}, {pipeline_mode = #tpu.pipeline_mode<synchronous>, transform_indices = @transform_6, window_bounds = array<i64: 4, 1, 8>}, {pipeline_mode = #tpu.pipeline_mode<synchronous>, transform_indices = @transform_7, window_bounds = array<i64: 4, 32, 8>}, {pipeline_mode = #tpu.pipeline_mode<synchronous>, transform_indices = @transform_8, window_bounds = array<i64: 4, 1, 8>}, {pipeline_mode = #tpu.pipeline_mode<synchronous>, transform_indices = @transform_9, window_bounds = array<i64: 4, 8, 32>}, {pipeline_mode = #tpu.pipeline_mode<synchronous>, transform_indices = @transform_10, window_bounds = array<i64: 1, 32>}, {transform_indices = @transform_11, window_bounds = array<i64: 1, 8, 32>}]} {
    %c0_i32 = arith.constant 0 : i32
    %0 = arith.cmpi eq, %arg2, %c0_i32 : i32
    %1 = arith.extui %0 : i1 to i32
    %c0_i32_0 = arith.constant 0 : i32
    %2 = arith.cmpi ne, %1, %c0_i32_0 : i32
    scf.if %2 {
      %c0_163 = arith.constant 0 : index
      %c0_164 = arith.constant 0 : index
      %c0_165 = arith.constant 0 : index
      %232 = vector.load %arg3[%c0_163, %c0_164, %c0_165] : memref<1x8x32xf32, #tpu.memory_space<vmem>>, vector<1x8x32xf32>
      %233 = vector.shape_cast %232 : vector<1x8x32xf32> to vector<8x32xf32>
      %234 = arith.truncf %233 : vector<8x32xf32> to vector<8x32xbf16>
      %c0_166 = arith.constant 0 : index
      %c0_167 = arith.constant 0 : index
      %c0_168 = arith.constant 0 : index
      %235 = vector.load %arg6[%c0_166, %c0_167, %c0_168] : memref<4x32x8xbf16, #tpu.memory_space<vmem>>, vector<1x32x8xbf16>
      %236 = vector.shape_cast %235 : vector<1x32x8xbf16> to vector<32x8xbf16>
      %cst_169 = arith.constant dense<0.000000e+00> : vector<8x8xf32>
      %237 = tpu.matmul %234, %236, %cst_169 {dimension_numbers = #tpu.dot_dimension_numbers<[1], [0], [0], [1], [0, 0, 1, 1], [], []>} : vector<8x32xbf16>, vector<32x8xbf16>, vector<8x8xf32> -> vector<8x8xf32>
      %c0_170 = arith.constant 0 : index
      %c0_171 = arith.constant 0 : index
      %c0_172 = arith.constant 0 : index
      %238 = vector.load %arg7[%c0_170, %c0_171, %c0_172] : memref<4x1x8xf32, #tpu.memory_space<vmem>>, vector<1x1x8xf32>
      %239 = vector.shape_cast %238 : vector<1x1x8xf32> to vector<1x8xf32>
      %240 = vector.broadcast %239 : vector<1x8xf32> to vector<8x8xf32>
      %241 = arith.addf %237, %240 : vector<8x8xf32>
      %cst_173 = arith.constant 0.353553385 : f32
      %242 = vector.broadcast %cst_173 : f32 to vector<8x8xf32>
      %243 = arith.mulf %241, %242 : vector<8x8xf32>
      %c0_174 = arith.constant 0 : index
      %c0_175 = arith.constant 0 : index
      %c0_176 = arith.constant 0 : index
      %244 = vector.load %arg15[%c0_174, %c0_175, %c0_176] : memref<4x8x8xf32, #tpu.memory_space<vmem>>, vector<1x8x8xf32>
      %245 = vector.shape_cast %244 : vector<1x8x8xf32> to vector<8x8xf32>
      %246 = vector.shape_cast %243 : vector<8x8xf32> to vector<1x8x8xf32>
      tpu.vector_store %arg15[%c0_174, %c0_175, %c0_176], %246 {strides = array<i32>} : memref<4x8x8xf32, #tpu.memory_space<vmem>>, vector<1x8x8xf32>,
      %c1_177 = arith.constant 1 : index
      %c0_178 = arith.constant 0 : index
      %c0_179 = arith.constant 0 : index
      %247 = vector.load %arg6[%c1_177, %c0_178, %c0_179] : memref<4x32x8xbf16, #tpu.memory_space<vmem>>, vector<1x32x8xbf16>
      %248 = vector.shape_cast %247 : vector<1x32x8xbf16> to vector<32x8xbf16>
      %cst_180 = arith.constant dense<0.000000e+00> : vector<8x8xf32>
      %249 = tpu.matmul %234, %248, %cst_180 {dimension_numbers = #tpu.dot_dimension_numbers<[1], [0], [0], [1], [0, 0, 1, 1], [], []>} : vector<8x32xbf16>, vector<32x8xbf16>, vector<8x8xf32> -> vector<8x8xf32>
      %c1_181 = arith.constant 1 : index
      %c0_182 = arith.constant 0 : index
      %c0_183 = arith.constant 0 : index
      %250 = vector.load %arg7[%c1_181, %c0_182, %c0_183] : memref<4x1x8xf32, #tpu.memory_space<vmem>>, vector<1x1x8xf32>
      %251 = vector.shape_cast %250 : vector<1x1x8xf32> to vector<1x8xf32>
      %252 = vector.broadcast %251 : vector<1x8xf32> to vector<8x8xf32>
      %253 = arith.addf %249, %252 : vector<8x8xf32>
      %cst_184 = arith.constant 0.353553385 : f32
      %254 = vector.broadcast %cst_184 : f32 to vector<8x8xf32>
      %255 = arith.mulf %253, %254 : vector<8x8xf32>
      %c1_185 = arith.constant 1 : index
      %c0_186 = arith.constant 0 : index
      %c0_187 = arith.constant 0 : index
      %256 = vector.load %arg15[%c1_185, %c0_186, %c0_187] : memref<4x8x8xf32, #tpu.memory_space<vmem>>, vector<1x8x8xf32>
      %257 = vector.shape_cast %256 : vector<1x8x8xf32> to vector<8x8xf32>
      %258 = vector.shape_cast %255 : vector<8x8xf32> to vector<1x8x8xf32>
      tpu.vector_store %arg15[%c1_185, %c0_186, %c0_187], %258 {strides = array<i32>} : memref<4x8x8xf32, #tpu.memory_space<vmem>>, vector<1x8x8xf32>,
      %c2_188 = arith.constant 2 : index
      %c0_189 = arith.constant 0 : index
      %c0_190 = arith.constant 0 : index
      %259 = vector.load %arg6[%c2_188, %c0_189, %c0_190] : memref<4x32x8xbf16, #tpu.memory_space<vmem>>, vector<1x32x8xbf16>
      %260 = vector.shape_cast %259 : vector<1x32x8xbf16> to vector<32x8xbf16>
      %cst_191 = arith.constant dense<0.000000e+00> : vector<8x8xf32>
      %261 = tpu.matmul %234, %260, %cst_191 {dimension_numbers = #tpu.dot_dimension_numbers<[1], [0], [0], [1], [0, 0, 1, 1], [], []>} : vector<8x32xbf16>, vector<32x8xbf16>, vector<8x8xf32> -> vector<8x8xf32>
      %c2_192 = arith.constant 2 : index
      %c0_193 = arith.constant 0 : index
      %c0_194 = arith.constant 0 : index
      %262 = vector.load %arg7[%c2_192, %c0_193, %c0_194] : memref<4x1x8xf32, #tpu.memory_space<vmem>>, vector<1x1x8xf32>
      %263 = vector.shape_cast %262 : vector<1x1x8xf32> to vector<1x8xf32>
      %264 = vector.broadcast %263 : vector<1x8xf32> to vector<8x8xf32>
      %265 = arith.addf %261, %264 : vector<8x8xf32>
      %cst_195 = arith.constant 0.353553385 : f32
      %266 = vector.broadcast %cst_195 : f32 to vector<8x8xf32>
      %267 = arith.mulf %265, %266 : vector<8x8xf32>
      %c2_196 = arith.constant 2 : index
      %c0_197 = arith.constant 0 : index
      %c0_198 = arith.constant 0 : index
      %268 = vector.load %arg15[%c2_196, %c0_197, %c0_198] : memref<4x8x8xf32, #tpu.memory_space<vmem>>, vector<1x8x8xf32>
      %269 = vector.shape_cast %268 : vector<1x8x8xf32> to vector<8x8xf32>
      %270 = vector.shape_cast %267 : vector<8x8xf32> to vector<1x8x8xf32>
      tpu.vector_store %arg15[%c2_196, %c0_197, %c0_198], %270 {strides = array<i32>} : memref<4x8x8xf32, #tpu.memory_space<vmem>>, vector<1x8x8xf32>,
      %c3_199 = arith.constant 3 : index
      %c0_200 = arith.constant 0 : index
      %c0_201 = arith.constant 0 : index
      %271 = vector.load %arg6[%c3_199, %c0_200, %c0_201] : memref<4x32x8xbf16, #tpu.memory_space<vmem>>, vector<1x32x8xbf16>
      %272 = vector.shape_cast %271 : vector<1x32x8xbf16> to vector<32x8xbf16>
      %cst_202 = arith.constant dense<0.000000e+00> : vector<8x8xf32>
      %273 = tpu.matmul %234, %272, %cst_202 {dimension_numbers = #tpu.dot_dimension_numbers<[1], [0], [0], [1], [0, 0, 1, 1], [], []>} : vector<8x32xbf16>, vector<32x8xbf16>, vector<8x8xf32> -> vector<8x8xf32>
      %c3_203 = arith.constant 3 : index
      %c0_204 = arith.constant 0 : index
      %c0_205 = arith.constant 0 : index
      %274 = vector.load %arg7[%c3_203, %c0_204, %c0_205] : memref<4x1x8xf32, #tpu.memory_space<vmem>>, vector<1x1x8xf32>
      %275 = vector.shape_cast %274 : vector<1x1x8xf32> to vector<1x8xf32>
      %276 = vector.broadcast %275 : vector<1x8xf32> to vector<8x8xf32>
      %277 = arith.addf %273, %276 : vector<8x8xf32>
      %cst_206 = arith.constant 0.353553385 : f32
      %278 = vector.broadcast %cst_206 : f32 to vector<8x8xf32>
      %279 = arith.mulf %277, %278 : vector<8x8xf32>
      %c3_207 = arith.constant 3 : index
      %c0_208 = arith.constant 0 : index
      %c0_209 = arith.constant 0 : index
      %280 = vector.load %arg15[%c3_207, %c0_208, %c0_209] : memref<4x8x8xf32, #tpu.memory_space<vmem>>, vector<1x8x8xf32>
      %281 = vector.shape_cast %280 : vector<1x8x8xf32> to vector<8x8xf32>
      %282 = vector.shape_cast %279 : vector<8x8xf32> to vector<1x8x8xf32>
      tpu.vector_store %arg15[%c3_207, %c0_208, %c0_209], %282 {strides = array<i32>} : memref<4x8x8xf32, #tpu.memory_space<vmem>>, vector<1x8x8xf32>,
      %cst_210 = arith.constant 0xFF800000 : f32
      %283 = vector.broadcast %cst_210 : f32 to vector<4x8x1xf32>
      %c0_211 = arith.constant 0 : index
      %c0_212 = arith.constant 0 : index
      %c0_213 = arith.constant 0 : index
      %284 = vector.load %arg16[%c0_211, %c0_212, %c0_213] : memref<4x8x1xf32, #tpu.memory_space<vmem>>, vector<4x8x1xf32>
      tpu.vector_store %arg16[%c0_211, %c0_212, %c0_213], %283 {strides = array<i32>} : memref<4x8x1xf32, #tpu.memory_space<vmem>>, vector<4x8x1xf32>,
      %cst_214 = arith.constant 0.000000e+00 : f32
      %285 = vector.broadcast %cst_214 : f32 to vector<4x8x1xf32>
      %c0_215 = arith.constant 0 : index
      %c0_216 = arith.constant 0 : index
      %c0_217 = arith.constant 0 : index
      %286 = vector.load %arg17[%c0_215, %c0_216, %c0_217] : memref<4x8x1xf32, #tpu.memory_space<vmem>>, vector<4x8x1xf32>
      tpu.vector_store %arg17[%c0_215, %c0_216, %c0_217], %285 {strides = array<i32>} : memref<4x8x1xf32, #tpu.memory_space<vmem>>, vector<4x8x1xf32>,
      %cst_218 = arith.constant 0.000000e+00 : f32
      %287 = vector.broadcast %cst_218 : f32 to vector<4x8x8xf32>
      %c0_219 = arith.constant 0 : index
      %c0_220 = arith.constant 0 : index
      %c0_221 = arith.constant 0 : index
      %288 = vector.load %arg18[%c0_219, %c0_220, %c0_221] : memref<4x8x8xf32, #tpu.memory_space<vmem>>, vector<4x8x8xf32>
      tpu.vector_store %arg18[%c0_219, %c0_220, %c0_221], %287 {strides = array<i32>} : memref<4x8x8xf32, #tpu.memory_space<vmem>>, vector<4x8x8xf32>,
    } else {
    }
    %c0 = arith.constant 0 : index
    %c0_1 = arith.constant 0 : index
    %c0_2 = arith.constant 0 : index
    %3 = vector.load %arg4[%c0, %c0_1, %c0_2] : memref<1x10x32xf32, #tpu.memory_space<vmem>>, vector<1x10x32xf32>
    %4 = vector.shape_cast %3 : vector<1x10x32xf32> to vector<10x32xf32>
    %5 = arith.truncf %4 : vector<10x32xf32> to vector<10x32xbf16>
    %c0_3 = arith.constant 0 : index
    %c0_4 = arith.constant 0 : index
    %c0_5 = arith.constant 0 : index
    %6 = vector.load %arg5[%c0_3, %c0_4, %c0_5] : memref<1x1x10xf32, #tpu.memory_space<vmem>>, vector<1x1x10xf32>
    %7 = vector.shape_cast %6 : vector<1x1x10xf32> to vector<1x10xf32>
    %cst = arith.constant 5.000000e-01 : f32
    %8 = vector.broadcast %cst : f32 to vector<1x10xf32>
    %9 = arith.cmpf ogt, %7, %8 : vector<1x10xf32>
    %cst_6 = arith.constant -1.000000e+09 : f32
    %cst_7 = arith.constant 0.000000e+00 : f32
    %10 = vector.broadcast %cst_6 : f32 to vector<1x10xf32>
    %11 = vector.broadcast %cst_7 : f32 to vector<1x10xf32>
    %12 = arith.select %9, %10, %11 : vector<1x10xi1>, vector<1x10xf32>
    %c0_8 = arith.constant 0 : index
    %c0_9 = arith.constant 0 : index
    %c0_10 = arith.constant 0 : index
    %13 = vector.load %arg8[%c0_8, %c0_9, %c0_10] : memref<4x32x8xbf16, #tpu.memory_space<vmem>>, vector<1x32x8xbf16>
    %14 = vector.shape_cast %13 : vector<1x32x8xbf16> to vector<32x8xbf16>
    %cst_11 = arith.constant dense<0.000000e+00> : vector<10x8xf32>
    %15 = tpu.matmul %5, %14, %cst_11 {dimension_numbers = #tpu.dot_dimension_numbers<[1], [0], [0], [1], [0, 0, 1, 1], [], []>} : vector<10x32xbf16>, vector<32x8xbf16>, vector<10x8xf32> -> vector<10x8xf32>
    %c0_12 = arith.constant 0 : index
    %c0_13 = arith.constant 0 : index
    %c0_14 = arith.constant 0 : index
    %16 = vector.load %arg9[%c0_12, %c0_13, %c0_14] : memref<4x1x8xf32, #tpu.memory_space<vmem>>, vector<1x1x8xf32>
    %17 = vector.shape_cast %16 : vector<1x1x8xf32> to vector<1x8xf32>
    %18 = vector.broadcast %17 : vector<1x8xf32> to vector<10x8xf32>
    %19 = arith.addf %15, %18 : vector<10x8xf32>
    %20 = arith.truncf %19 : vector<10x8xf32> to vector<10x8xbf16>
    %c0_15 = arith.constant 0 : index
    %c0_16 = arith.constant 0 : index
    %c0_17 = arith.constant 0 : index
    %21 = vector.load %arg10[%c0_15, %c0_16, %c0_17] : memref<4x32x8xbf16, #tpu.memory_space<vmem>>, vector<1x32x8xbf16>
    %22 = vector.shape_cast %21 : vector<1x32x8xbf16> to vector<32x8xbf16>
    %cst_18 = arith.constant dense<0.000000e+00> : vector<10x8xf32>
    %23 = tpu.matmul %5, %22, %cst_18 {dimension_numbers = #tpu.dot_dimension_numbers<[1], [0], [0], [1], [0, 0, 1, 1], [], []>} : vector<10x32xbf16>, vector<32x8xbf16>, vector<10x8xf32> -> vector<10x8xf32>
    %c0_19 = arith.constant 0 : index
    %c0_20 = arith.constant 0 : index
    %c0_21 = arith.constant 0 : index
    %24 = vector.load %arg11[%c0_19, %c0_20, %c0_21] : memref<4x1x8xf32, #tpu.memory_space<vmem>>, vector<1x1x8xf32>
    %25 = vector.shape_cast %24 : vector<1x1x8xf32> to vector<1x8xf32>
    %26 = vector.broadcast %25 : vector<1x8xf32> to vector<10x8xf32>
    %27 = arith.addf %23, %26 : vector<10x8xf32>
    %28 = arith.truncf %27 : vector<10x8xf32> to vector<10x8xbf16>
    %c0_22 = arith.constant 0 : index
    %c0_23 = arith.constant 0 : index
    %c0_24 = arith.constant 0 : index
    %29 = vector.load %arg15[%c0_22, %c0_23, %c0_24] : memref<4x8x8xf32, #tpu.memory_space<vmem>>, vector<1x8x8xf32>
    %30 = vector.shape_cast %29 : vector<1x8x8xf32> to vector<8x8xf32>
    %31 = arith.truncf %30 : vector<8x8xf32> to vector<8x8xbf16>
    %cst_25 = arith.constant dense<0.000000e+00> : vector<8x10xf32>
    %32 = tpu.matmul %31, %20, %cst_25 {dimension_numbers = #tpu.dot_dimension_numbers<[1], [1], [0], [0], [0, 0, 1, 0], [], []>} : vector<8x8xbf16>, vector<10x8xbf16>, vector<8x10xf32> -> vector<8x10xf32>
    %33 = vector.broadcast %12 : vector<1x10xf32> to vector<8x10xf32>
    %34 = arith.addf %32, %33 : vector<8x10xf32>
    %c0_26 = arith.constant 0 : index
    %c0_27 = arith.constant 0 : index
    %c0_28 = arith.constant 0 : index
    %35 = vector.load %arg16[%c0_26, %c0_27, %c0_28] : memref<4x8x1xf32, #tpu.memory_space<vmem>>, vector<1x8x1xf32>
    %36 = vector.shape_cast %35 : vector<1x8x1xf32> to vector<8x1xf32>
    %cst_29 = arith.constant dense<0xFF800000> : vector<8xf32>
    %37 = vector.multi_reduction <maximumf>, %34, %cst_29 [1] : vector<8x10xf32> to vector<8xf32>
    %38 = vector.shape_cast %37 : vector<8xf32> to vector<8x1xf32>
    %39 = arith.maximumf %36, %38 : vector<8x1xf32>
    %40 = arith.subf %36, %39 : vector<8x1xf32>
    %41 = math.exp %40 : vector<8x1xf32>
    %42 = vector.broadcast %39 : vector<8x1xf32> to vector<8x10xf32>
    %43 = arith.subf %34, %42 : vector<8x10xf32>
    %44 = math.exp %43 : vector<8x10xf32>
    %c0_30 = arith.constant 0 : index
    %c0_31 = arith.constant 0 : index
    %c0_32 = arith.constant 0 : index
    %45 = vector.load %arg17[%c0_30, %c0_31, %c0_32] : memref<4x8x1xf32, #tpu.memory_space<vmem>>, vector<1x8x1xf32>
    %46 = vector.shape_cast %45 : vector<1x8x1xf32> to vector<8x1xf32>
    %47 = arith.mulf %41, %46 : vector<8x1xf32>
    %cst_33 = arith.constant dense<0.000000e+00> : vector<8xf32>
    %48 = vector.multi_reduction <add>, %44, %cst_33 [1] : vector<8x10xf32> to vector<8xf32>
    %49 = vector.shape_cast %48 : vector<8xf32> to vector<8x1xf32>
    %50 = arith.addf %47, %49 : vector<8x1xf32>
    %c0_34 = arith.constant 0 : index
    %c0_35 = arith.constant 0 : index
    %c0_36 = arith.constant 0 : index
    %51 = vector.load %arg17[%c0_34, %c0_35, %c0_36] : memref<4x8x1xf32, #tpu.memory_space<vmem>>, vector<1x8x1xf32>
    %52 = vector.shape_cast %51 : vector<1x8x1xf32> to vector<8x1xf32>
    %53 = vector.shape_cast %50 : vector<8x1xf32> to vector<1x8x1xf32>
    tpu.vector_store %arg17[%c0_34, %c0_35, %c0_36], %53 {strides = array<i32>} : memref<4x8x1xf32, #tpu.memory_space<vmem>>, vector<1x8x1xf32>,
    %c0_37 = arith.constant 0 : index
    %c0_38 = arith.constant 0 : index
    %c0_39 = arith.constant 0 : index
    %54 = vector.load %arg18[%c0_37, %c0_38, %c0_39] : memref<4x8x8xf32, #tpu.memory_space<vmem>>, vector<1x8x8xf32>
    %55 = vector.shape_cast %54 : vector<1x8x8xf32> to vector<8x8xf32>
    %56 = vector.broadcast %41 : vector<8x1xf32> to vector<8x8xf32>
    %57 = arith.mulf %56, %55 : vector<8x8xf32>
    %58 = arith.truncf %44 : vector<8x10xf32> to vector<8x10xbf16>
    %cst_40 = arith.constant dense<0.000000e+00> : vector<8x8xf32>
    %59 = tpu.matmul %58, %28, %cst_40 {dimension_numbers = #tpu.dot_dimension_numbers<[1], [0], [0], [1], [0, 0, 1, 1], [], []>} : vector<8x10xbf16>, vector<10x8xbf16>, vector<8x8xf32> -> vector<8x8xf32>
    %60 = arith.addf %57, %59 : vector<8x8xf32>
    %c0_41 = arith.constant 0 : index
    %c0_42 = arith.constant 0 : index
    %c0_43 = arith.constant 0 : index
    %61 = vector.load %arg18[%c0_41, %c0_42, %c0_43] : memref<4x8x8xf32, #tpu.memory_space<vmem>>, vector<1x8x8xf32>
    %62 = vector.shape_cast %61 : vector<1x8x8xf32> to vector<8x8xf32>
    %63 = vector.shape_cast %60 : vector<8x8xf32> to vector<1x8x8xf32>
    tpu.vector_store %arg18[%c0_41, %c0_42, %c0_43], %63 {strides = array<i32>} : memref<4x8x8xf32, #tpu.memory_space<vmem>>, vector<1x8x8xf32>,
    %c0_44 = arith.constant 0 : index
    %c0_45 = arith.constant 0 : index
    %c0_46 = arith.constant 0 : index
    %64 = vector.load %arg16[%c0_44, %c0_45, %c0_46] : memref<4x8x1xf32, #tpu.memory_space<vmem>>, vector<1x8x1xf32>
    %65 = vector.shape_cast %64 : vector<1x8x1xf32> to vector<8x1xf32>
    %66 = vector.shape_cast %39 : vector<8x1xf32> to vector<1x8x1xf32>
    tpu.vector_store %arg16[%c0_44, %c0_45, %c0_46], %66 {strides = array<i32>} : memref<4x8x1xf32, #tpu.memory_space<vmem>>, vector<1x8x1xf32>,
    %c1 = arith.constant 1 : index
    %c0_47 = arith.constant 0 : index
    %c0_48 = arith.constant 0 : index
    %67 = vector.load %arg8[%c1, %c0_47, %c0_48] : memref<4x32x8xbf16, #tpu.memory_space<vmem>>, vector<1x32x8xbf16>
    %68 = vector.shape_cast %67 : vector<1x32x8xbf16> to vector<32x8xbf16>
    %cst_49 = arith.constant dense<0.000000e+00> : vector<10x8xf32>
    %69 = tpu.matmul %5, %68, %cst_49 {dimension_numbers = #tpu.dot_dimension_numbers<[1], [0], [0], [1], [0, 0, 1, 1], [], []>} : vector<10x32xbf16>, vector<32x8xbf16>, vector<10x8xf32> -> vector<10x8xf32>
    %c1_50 = arith.constant 1 : index
    %c0_51 = arith.constant 0 : index
    %c0_52 = arith.constant 0 : index
    %70 = vector.load %arg9[%c1_50, %c0_51, %c0_52] : memref<4x1x8xf32, #tpu.memory_space<vmem>>, vector<1x1x8xf32>
    %71 = vector.shape_cast %70 : vector<1x1x8xf32> to vector<1x8xf32>
    %72 = vector.broadcast %71 : vector<1x8xf32> to vector<10x8xf32>
    %73 = arith.addf %69, %72 : vector<10x8xf32>
    %74 = arith.truncf %73 : vector<10x8xf32> to vector<10x8xbf16>
    %c1_53 = arith.constant 1 : index
    %c0_54 = arith.constant 0 : index
    %c0_55 = arith.constant 0 : index
    %75 = vector.load %arg10[%c1_53, %c0_54, %c0_55] : memref<4x32x8xbf16, #tpu.memory_space<vmem>>, vector<1x32x8xbf16>
    %76 = vector.shape_cast %75 : vector<1x32x8xbf16> to vector<32x8xbf16>
    %cst_56 = arith.constant dense<0.000000e+00> : vector<10x8xf32>
    %77 = tpu.matmul %5, %76, %cst_56 {dimension_numbers = #tpu.dot_dimension_numbers<[1], [0], [0], [1], [0, 0, 1, 1], [], []>} : vector<10x32xbf16>, vector<32x8xbf16>, vector<10x8xf32> -> vector<10x8xf32>
    %c1_57 = arith.constant 1 : index
    %c0_58 = arith.constant 0 : index
    %c0_59 = arith.constant 0 : index
    %78 = vector.load %arg11[%c1_57, %c0_58, %c0_59] : memref<4x1x8xf32, #tpu.memory_space<vmem>>, vector<1x1x8xf32>
    %79 = vector.shape_cast %78 : vector<1x1x8xf32> to vector<1x8xf32>
    %80 = vector.broadcast %79 : vector<1x8xf32> to vector<10x8xf32>
    %81 = arith.addf %77, %80 : vector<10x8xf32>
    %82 = arith.truncf %81 : vector<10x8xf32> to vector<10x8xbf16>
    %c1_60 = arith.constant 1 : index
    %c0_61 = arith.constant 0 : index
    %c0_62 = arith.constant 0 : index
    %83 = vector.load %arg15[%c1_60, %c0_61, %c0_62] : memref<4x8x8xf32, #tpu.memory_space<vmem>>, vector<1x8x8xf32>
    %84 = vector.shape_cast %83 : vector<1x8x8xf32> to vector<8x8xf32>
    %85 = arith.truncf %84 : vector<8x8xf32> to vector<8x8xbf16>
    %cst_63 = arith.constant dense<0.000000e+00> : vector<8x10xf32>
    %86 = tpu.matmul %85, %74, %cst_63 {dimension_numbers = #tpu.dot_dimension_numbers<[1], [1], [0], [0], [0, 0, 1, 0], [], []>} : vector<8x8xbf16>, vector<10x8xbf16>, vector<8x10xf32> -> vector<8x10xf32>
    %87 = vector.broadcast %12 : vector<1x10xf32> to vector<8x10xf32>
    %88 = arith.addf %86, %87 : vector<8x10xf32>
    %c1_64 = arith.constant 1 : index
    %c0_65 = arith.constant 0 : index
    %c0_66 = arith.constant 0 : index
    %89 = vector.load %arg16[%c1_64, %c0_65, %c0_66] : memref<4x8x1xf32, #tpu.memory_space<vmem>>, vector<1x8x1xf32>
    %90 = vector.shape_cast %89 : vector<1x8x1xf32> to vector<8x1xf32>
    %cst_67 = arith.constant dense<0xFF800000> : vector<8xf32>
    %91 = vector.multi_reduction <maximumf>, %88, %cst_67 [1] : vector<8x10xf32> to vector<8xf32>
    %92 = vector.shape_cast %91 : vector<8xf32> to vector<8x1xf32>
    %93 = arith.maximumf %90, %92 : vector<8x1xf32>
    %94 = arith.subf %90, %93 : vector<8x1xf32>
    %95 = math.exp %94 : vector<8x1xf32>
    %96 = vector.broadcast %93 : vector<8x1xf32> to vector<8x10xf32>
    %97 = arith.subf %88, %96 : vector<8x10xf32>
    %98 = math.exp %97 : vector<8x10xf32>
    %c1_68 = arith.constant 1 : index
    %c0_69 = arith.constant 0 : index
    %c0_70 = arith.constant 0 : index
    %99 = vector.load %arg17[%c1_68, %c0_69, %c0_70] : memref<4x8x1xf32, #tpu.memory_space<vmem>>, vector<1x8x1xf32>
    %100 = vector.shape_cast %99 : vector<1x8x1xf32> to vector<8x1xf32>
    %101 = arith.mulf %95, %100 : vector<8x1xf32>
    %cst_71 = arith.constant dense<0.000000e+00> : vector<8xf32>
    %102 = vector.multi_reduction <add>, %98, %cst_71 [1] : vector<8x10xf32> to vector<8xf32>
    %103 = vector.shape_cast %102 : vector<8xf32> to vector<8x1xf32>
    %104 = arith.addf %101, %103 : vector<8x1xf32>
    %c1_72 = arith.constant 1 : index
    %c0_73 = arith.constant 0 : index
    %c0_74 = arith.constant 0 : index
    %105 = vector.load %arg17[%c1_72, %c0_73, %c0_74] : memref<4x8x1xf32, #tpu.memory_space<vmem>>, vector<1x8x1xf32>
    %106 = vector.shape_cast %105 : vector<1x8x1xf32> to vector<8x1xf32>
    %107 = vector.shape_cast %104 : vector<8x1xf32> to vector<1x8x1xf32>
    tpu.vector_store %arg17[%c1_72, %c0_73, %c0_74], %107 {strides = array<i32>} : memref<4x8x1xf32, #tpu.memory_space<vmem>>, vector<1x8x1xf32>,
    %c1_75 = arith.constant 1 : index
    %c0_76 = arith.constant 0 : index
    %c0_77 = arith.constant 0 : index
    %108 = vector.load %arg18[%c1_75, %c0_76, %c0_77] : memref<4x8x8xf32, #tpu.memory_space<vmem>>, vector<1x8x8xf32>
    %109 = vector.shape_cast %108 : vector<1x8x8xf32> to vector<8x8xf32>
    %110 = vector.broadcast %95 : vector<8x1xf32> to vector<8x8xf32>
    %111 = arith.mulf %110, %109 : vector<8x8xf32>
    %112 = arith.truncf %98 : vector<8x10xf32> to vector<8x10xbf16>
    %cst_78 = arith.constant dense<0.000000e+00> : vector<8x8xf32>
    %113 = tpu.matmul %112, %82, %cst_78 {dimension_numbers = #tpu.dot_dimension_numbers<[1], [0], [0], [1], [0, 0, 1, 1], [], []>} : vector<8x10xbf16>, vector<10x8xbf16>, vector<8x8xf32> -> vector<8x8xf32>
    %114 = arith.addf %111, %113 : vector<8x8xf32>
    %c1_79 = arith.constant 1 : index
    %c0_80 = arith.constant 0 : index
    %c0_81 = arith.constant 0 : index
    %115 = vector.load %arg18[%c1_79, %c0_80, %c0_81] : memref<4x8x8xf32, #tpu.memory_space<vmem>>, vector<1x8x8xf32>
    %116 = vector.shape_cast %115 : vector<1x8x8xf32> to vector<8x8xf32>
    %117 = vector.shape_cast %114 : vector<8x8xf32> to vector<1x8x8xf32>
    tpu.vector_store %arg18[%c1_79, %c0_80, %c0_81], %117 {strides = array<i32>} : memref<4x8x8xf32, #tpu.memory_space<vmem>>, vector<1x8x8xf32>,
    %c1_82 = arith.constant 1 : index
    %c0_83 = arith.constant 0 : index
    %c0_84 = arith.constant 0 : index
    %118 = vector.load %arg16[%c1_82, %c0_83, %c0_84] : memref<4x8x1xf32, #tpu.memory_space<vmem>>, vector<1x8x1xf32>
    %119 = vector.shape_cast %118 : vector<1x8x1xf32> to vector<8x1xf32>
    %120 = vector.shape_cast %93 : vector<8x1xf32> to vector<1x8x1xf32>
    tpu.vector_store %arg16[%c1_82, %c0_83, %c0_84], %120 {strides = array<i32>} : memref<4x8x1xf32, #tpu.memory_space<vmem>>, vector<1x8x1xf32>,
    %c2 = arith.constant 2 : index
    %c0_85 = arith.constant 0 : index
    %c0_86 = arith.constant 0 : index
    %121 = vector.load %arg8[%c2, %c0_85, %c0_86] : memref<4x32x8xbf16, #tpu.memory_space<vmem>>, vector<1x32x8xbf16>
    %122 = vector.shape_cast %121 : vector<1x32x8xbf16> to vector<32x8xbf16>
    %cst_87 = arith.constant dense<0.000000e+00> : vector<10x8xf32>
    %123 = tpu.matmul %5, %122, %cst_87 {dimension_numbers = #tpu.dot_dimension_numbers<[1], [0], [0], [1], [0, 0, 1, 1], [], []>} : vector<10x32xbf16>, vector<32x8xbf16>, vector<10x8xf32> -> vector<10x8xf32>
    %c2_88 = arith.constant 2 : index
    %c0_89 = arith.constant 0 : index
    %c0_90 = arith.constant 0 : index
    %124 = vector.load %arg9[%c2_88, %c0_89, %c0_90] : memref<4x1x8xf32, #tpu.memory_space<vmem>>, vector<1x1x8xf32>
    %125 = vector.shape_cast %124 : vector<1x1x8xf32> to vector<1x8xf32>
    %126 = vector.broadcast %125 : vector<1x8xf32> to vector<10x8xf32>
    %127 = arith.addf %123, %126 : vector<10x8xf32>
    %128 = arith.truncf %127 : vector<10x8xf32> to vector<10x8xbf16>
    %c2_91 = arith.constant 2 : index
    %c0_92 = arith.constant 0 : index
    %c0_93 = arith.constant 0 : index
    %129 = vector.load %arg10[%c2_91, %c0_92, %c0_93] : memref<4x32x8xbf16, #tpu.memory_space<vmem>>, vector<1x32x8xbf16>
    %130 = vector.shape_cast %129 : vector<1x32x8xbf16> to vector<32x8xbf16>
    %cst_94 = arith.constant dense<0.000000e+00> : vector<10x8xf32>
    %131 = tpu.matmul %5, %130, %cst_94 {dimension_numbers = #tpu.dot_dimension_numbers<[1], [0], [0], [1], [0, 0, 1, 1], [], []>} : vector<10x32xbf16>, vector<32x8xbf16>, vector<10x8xf32> -> vector<10x8xf32>
    %c2_95 = arith.constant 2 : index
    %c0_96 = arith.constant 0 : index
    %c0_97 = arith.constant 0 : index
    %132 = vector.load %arg11[%c2_95, %c0_96, %c0_97] : memref<4x1x8xf32, #tpu.memory_space<vmem>>, vector<1x1x8xf32>
    %133 = vector.shape_cast %132 : vector<1x1x8xf32> to vector<1x8xf32>
    %134 = vector.broadcast %133 : vector<1x8xf32> to vector<10x8xf32>
    %135 = arith.addf %131, %134 : vector<10x8xf32>
    %136 = arith.truncf %135 : vector<10x8xf32> to vector<10x8xbf16>
    %c2_98 = arith.constant 2 : index
    %c0_99 = arith.constant 0 : index
    %c0_100 = arith.constant 0 : index
    %137 = vector.load %arg15[%c2_98, %c0_99, %c0_100] : memref<4x8x8xf32, #tpu.memory_space<vmem>>, vector<1x8x8xf32>
    %138 = vector.shape_cast %137 : vector<1x8x8xf32> to vector<8x8xf32>
    %139 = arith.truncf %138 : vector<8x8xf32> to vector<8x8xbf16>
    %cst_101 = arith.constant dense<0.000000e+00> : vector<8x10xf32>
    %140 = tpu.matmul %139, %128, %cst_101 {dimension_numbers = #tpu.dot_dimension_numbers<[1], [1], [0], [0], [0, 0, 1, 0], [], []>} : vector<8x8xbf16>, vector<10x8xbf16>, vector<8x10xf32> -> vector<8x10xf32>
    %141 = vector.broadcast %12 : vector<1x10xf32> to vector<8x10xf32>
    %142 = arith.addf %140, %141 : vector<8x10xf32>
    %c2_102 = arith.constant 2 : index
    %c0_103 = arith.constant 0 : index
    %c0_104 = arith.constant 0 : index
    %143 = vector.load %arg16[%c2_102, %c0_103, %c0_104] : memref<4x8x1xf32, #tpu.memory_space<vmem>>, vector<1x8x1xf32>
    %144 = vector.shape_cast %143 : vector<1x8x1xf32> to vector<8x1xf32>
    %cst_105 = arith.constant dense<0xFF800000> : vector<8xf32>
    %145 = vector.multi_reduction <maximumf>, %142, %cst_105 [1] : vector<8x10xf32> to vector<8xf32>
    %146 = vector.shape_cast %145 : vector<8xf32> to vector<8x1xf32>
    %147 = arith.maximumf %144, %146 : vector<8x1xf32>
    %148 = arith.subf %144, %147 : vector<8x1xf32>
    %149 = math.exp %148 : vector<8x1xf32>
    %150 = vector.broadcast %147 : vector<8x1xf32> to vector<8x10xf32>
    %151 = arith.subf %142, %150 : vector<8x10xf32>
    %152 = math.exp %151 : vector<8x10xf32>
    %c2_106 = arith.constant 2 : index
    %c0_107 = arith.constant 0 : index
    %c0_108 = arith.constant 0 : index
    %153 = vector.load %arg17[%c2_106, %c0_107, %c0_108] : memref<4x8x1xf32, #tpu.memory_space<vmem>>, vector<1x8x1xf32>
    %154 = vector.shape_cast %153 : vector<1x8x1xf32> to vector<8x1xf32>
    %155 = arith.mulf %149, %154 : vector<8x1xf32>
    %cst_109 = arith.constant dense<0.000000e+00> : vector<8xf32>
    %156 = vector.multi_reduction <add>, %152, %cst_109 [1] : vector<8x10xf32> to vector<8xf32>
    %157 = vector.shape_cast %156 : vector<8xf32> to vector<8x1xf32>
    %158 = arith.addf %155, %157 : vector<8x1xf32>
    %c2_110 = arith.constant 2 : index
    %c0_111 = arith.constant 0 : index
    %c0_112 = arith.constant 0 : index
    %159 = vector.load %arg17[%c2_110, %c0_111, %c0_112] : memref<4x8x1xf32, #tpu.memory_space<vmem>>, vector<1x8x1xf32>
    %160 = vector.shape_cast %159 : vector<1x8x1xf32> to vector<8x1xf32>
    %161 = vector.shape_cast %158 : vector<8x1xf32> to vector<1x8x1xf32>
    tpu.vector_store %arg17[%c2_110, %c0_111, %c0_112], %161 {strides = array<i32>} : memref<4x8x1xf32, #tpu.memory_space<vmem>>, vector<1x8x1xf32>,
    %c2_113 = arith.constant 2 : index
    %c0_114 = arith.constant 0 : index
    %c0_115 = arith.constant 0 : index
    %162 = vector.load %arg18[%c2_113, %c0_114, %c0_115] : memref<4x8x8xf32, #tpu.memory_space<vmem>>, vector<1x8x8xf32>
    %163 = vector.shape_cast %162 : vector<1x8x8xf32> to vector<8x8xf32>
    %164 = vector.broadcast %149 : vector<8x1xf32> to vector<8x8xf32>
    %165 = arith.mulf %164, %163 : vector<8x8xf32>
    %166 = arith.truncf %152 : vector<8x10xf32> to vector<8x10xbf16>
    %cst_116 = arith.constant dense<0.000000e+00> : vector<8x8xf32>
    %167 = tpu.matmul %166, %136, %cst_116 {dimension_numbers = #tpu.dot_dimension_numbers<[1], [0], [0], [1], [0, 0, 1, 1], [], []>} : vector<8x10xbf16>, vector<10x8xbf16>, vector<8x8xf32> -> vector<8x8xf32>
    %168 = arith.addf %165, %167 : vector<8x8xf32>
    %c2_117 = arith.constant 2 : index
    %c0_118 = arith.constant 0 : index
    %c0_119 = arith.constant 0 : index
    %169 = vector.load %arg18[%c2_117, %c0_118, %c0_119] : memref<4x8x8xf32, #tpu.memory_space<vmem>>, vector<1x8x8xf32>
    %170 = vector.shape_cast %169 : vector<1x8x8xf32> to vector<8x8xf32>
    %171 = vector.shape_cast %168 : vector<8x8xf32> to vector<1x8x8xf32>
    tpu.vector_store %arg18[%c2_117, %c0_118, %c0_119], %171 {strides = array<i32>} : memref<4x8x8xf32, #tpu.memory_space<vmem>>, vector<1x8x8xf32>,
    %c2_120 = arith.constant 2 : index
    %c0_121 = arith.constant 0 : index
    %c0_122 = arith.constant 0 : index
    %172 = vector.load %arg16[%c2_120, %c0_121, %c0_122] : memref<4x8x1xf32, #tpu.memory_space<vmem>>, vector<1x8x1xf32>
    %173 = vector.shape_cast %172 : vector<1x8x1xf32> to vector<8x1xf32>
    %174 = vector.shape_cast %147 : vector<8x1xf32> to vector<1x8x1xf32>
    tpu.vector_store %arg16[%c2_120, %c0_121, %c0_122], %174 {strides = array<i32>} : memref<4x8x1xf32, #tpu.memory_space<vmem>>, vector<1x8x1xf32>,
    %c3 = arith.constant 3 : index
    %c0_123 = arith.constant 0 : index
    %c0_124 = arith.constant 0 : index
    %175 = vector.load %arg8[%c3, %c0_123, %c0_124] : memref<4x32x8xbf16, #tpu.memory_space<vmem>>, vector<1x32x8xbf16>
    %176 = vector.shape_cast %175 : vector<1x32x8xbf16> to vector<32x8xbf16>
    %cst_125 = arith.constant dense<0.000000e+00> : vector<10x8xf32>
    %177 = tpu.matmul %5, %176, %cst_125 {dimension_numbers = #tpu.dot_dimension_numbers<[1], [0], [0], [1], [0, 0, 1, 1], [], []>} : vector<10x32xbf16>, vector<32x8xbf16>, vector<10x8xf32> -> vector<10x8xf32>
    %c3_126 = arith.constant 3 : index
    %c0_127 = arith.constant 0 : index
    %c0_128 = arith.constant 0 : index
    %178 = vector.load %arg9[%c3_126, %c0_127, %c0_128] : memref<4x1x8xf32, #tpu.memory_space<vmem>>, vector<1x1x8xf32>
    %179 = vector.shape_cast %178 : vector<1x1x8xf32> to vector<1x8xf32>
    %180 = vector.broadcast %179 : vector<1x8xf32> to vector<10x8xf32>
    %181 = arith.addf %177, %180 : vector<10x8xf32>
    %182 = arith.truncf %181 : vector<10x8xf32> to vector<10x8xbf16>
    %c3_129 = arith.constant 3 : index
    %c0_130 = arith.constant 0 : index
    %c0_131 = arith.constant 0 : index
    %183 = vector.load %arg10[%c3_129, %c0_130, %c0_131] : memref<4x32x8xbf16, #tpu.memory_space<vmem>>, vector<1x32x8xbf16>
    %184 = vector.shape_cast %183 : vector<1x32x8xbf16> to vector<32x8xbf16>
    %cst_132 = arith.constant dense<0.000000e+00> : vector<10x8xf32>
    %185 = tpu.matmul %5, %184, %cst_132 {dimension_numbers = #tpu.dot_dimension_numbers<[1], [0], [0], [1], [0, 0, 1, 1], [], []>} : vector<10x32xbf16>, vector<32x8xbf16>, vector<10x8xf32> -> vector<10x8xf32>
    %c3_133 = arith.constant 3 : index
    %c0_134 = arith.constant 0 : index
    %c0_135 = arith.constant 0 : index
    %186 = vector.load %arg11[%c3_133, %c0_134, %c0_135] : memref<4x1x8xf32, #tpu.memory_space<vmem>>, vector<1x1x8xf32>
    %187 = vector.shape_cast %186 : vector<1x1x8xf32> to vector<1x8xf32>
    %188 = vector.broadcast %187 : vector<1x8xf32> to vector<10x8xf32>
    %189 = arith.addf %185, %188 : vector<10x8xf32>
    %190 = arith.truncf %189 : vector<10x8xf32> to vector<10x8xbf16>
    %c3_136 = arith.constant 3 : index
    %c0_137 = arith.constant 0 : index
    %c0_138 = arith.constant 0 : index
    %191 = vector.load %arg15[%c3_136, %c0_137, %c0_138] : memref<4x8x8xf32, #tpu.memory_space<vmem>>, vector<1x8x8xf32>
    %192 = vector.shape_cast %191 : vector<1x8x8xf32> to vector<8x8xf32>
    %193 = arith.truncf %192 : vector<8x8xf32> to vector<8x8xbf16>
    %cst_139 = arith.constant dense<0.000000e+00> : vector<8x10xf32>
    %194 = tpu.matmul %193, %182, %cst_139 {dimension_numbers = #tpu.dot_dimension_numbers<[1], [1], [0], [0], [0, 0, 1, 0], [], []>} : vector<8x8xbf16>, vector<10x8xbf16>, vector<8x10xf32> -> vector<8x10xf32>
    %195 = vector.broadcast %12 : vector<1x10xf32> to vector<8x10xf32>
    %196 = arith.addf %194, %195 : vector<8x10xf32>
    %c3_140 = arith.constant 3 : index
    %c0_141 = arith.constant 0 : index
    %c0_142 = arith.constant 0 : index
    %197 = vector.load %arg16[%c3_140, %c0_141, %c0_142] : memref<4x8x1xf32, #tpu.memory_space<vmem>>, vector<1x8x1xf32>
    %198 = vector.shape_cast %197 : vector<1x8x1xf32> to vector<8x1xf32>
    %cst_143 = arith.constant dense<0xFF800000> : vector<8xf32>
    %199 = vector.multi_reduction <maximumf>, %196, %cst_143 [1] : vector<8x10xf32> to vector<8xf32>
    %200 = vector.shape_cast %199 : vector<8xf32> to vector<8x1xf32>
    %201 = arith.maximumf %198, %200 : vector<8x1xf32>
    %202 = arith.subf %198, %201 : vector<8x1xf32>
    %203 = math.exp %202 : vector<8x1xf32>
    %204 = vector.broadcast %201 : vector<8x1xf32> to vector<8x10xf32>
    %205 = arith.subf %196, %204 : vector<8x10xf32>
    %206 = math.exp %205 : vector<8x10xf32>
    %c3_144 = arith.constant 3 : index
    %c0_145 = arith.constant 0 : index
    %c0_146 = arith.constant 0 : index
    %207 = vector.load %arg17[%c3_144, %c0_145, %c0_146] : memref<4x8x1xf32, #tpu.memory_space<vmem>>, vector<1x8x1xf32>
    %208 = vector.shape_cast %207 : vector<1x8x1xf32> to vector<8x1xf32>
    %209 = arith.mulf %203, %208 : vector<8x1xf32>
    %cst_147 = arith.constant dense<0.000000e+00> : vector<8xf32>
    %210 = vector.multi_reduction <add>, %206, %cst_147 [1] : vector<8x10xf32> to vector<8xf32>
    %211 = vector.shape_cast %210 : vector<8xf32> to vector<8x1xf32>
    %212 = arith.addf %209, %211 : vector<8x1xf32>
    %c3_148 = arith.constant 3 : index
    %c0_149 = arith.constant 0 : index
    %c0_150 = arith.constant 0 : index
    %213 = vector.load %arg17[%c3_148, %c0_149, %c0_150] : memref<4x8x1xf32, #tpu.memory_space<vmem>>, vector<1x8x1xf32>
    %214 = vector.shape_cast %213 : vector<1x8x1xf32> to vector<8x1xf32>
    %215 = vector.shape_cast %212 : vector<8x1xf32> to vector<1x8x1xf32>
    tpu.vector_store %arg17[%c3_148, %c0_149, %c0_150], %215 {strides = array<i32>} : memref<4x8x1xf32, #tpu.memory_space<vmem>>, vector<1x8x1xf32>,
    %c3_151 = arith.constant 3 : index
    %c0_152 = arith.constant 0 : index
    %c0_153 = arith.constant 0 : index
    %216 = vector.load %arg18[%c3_151, %c0_152, %c0_153] : memref<4x8x8xf32, #tpu.memory_space<vmem>>, vector<1x8x8xf32>
    %217 = vector.shape_cast %216 : vector<1x8x8xf32> to vector<8x8xf32>
    %218 = vector.broadcast %203 : vector<8x1xf32> to vector<8x8xf32>
    %219 = arith.mulf %218, %217 : vector<8x8xf32>
    %220 = arith.truncf %206 : vector<8x10xf32> to vector<8x10xbf16>
    %cst_154 = arith.constant dense<0.000000e+00> : vector<8x8xf32>
    %221 = tpu.matmul %220, %190, %cst_154 {dimension_numbers = #tpu.dot_dimension_numbers<[1], [0], [0], [1], [0, 0, 1, 1], [], []>} : vector<8x10xbf16>, vector<10x8xbf16>, vector<8x8xf32> -> vector<8x8xf32>
    %222 = arith.addf %219, %221 : vector<8x8xf32>
    %c3_155 = arith.constant 3 : index
    %c0_156 = arith.constant 0 : index
    %c0_157 = arith.constant 0 : index
    %223 = vector.load %arg18[%c3_155, %c0_156, %c0_157] : memref<4x8x8xf32, #tpu.memory_space<vmem>>, vector<1x8x8xf32>
    %224 = vector.shape_cast %223 : vector<1x8x8xf32> to vector<8x8xf32>
    %225 = vector.shape_cast %222 : vector<8x8xf32> to vector<1x8x8xf32>
    tpu.vector_store %arg18[%c3_155, %c0_156, %c0_157], %225 {strides = array<i32>} : memref<4x8x8xf32, #tpu.memory_space<vmem>>, vector<1x8x8xf32>,
    %c3_158 = arith.constant 3 : index
    %c0_159 = arith.constant 0 : index
    %c0_160 = arith.constant 0 : index
    %226 = vector.load %arg16[%c3_158, %c0_159, %c0_160] : memref<4x8x1xf32, #tpu.memory_space<vmem>>, vector<1x8x1xf32>
    %227 = vector.shape_cast %226 : vector<1x8x1xf32> to vector<8x1xf32>
    %228 = vector.shape_cast %201 : vector<8x1xf32> to vector<1x8x1xf32>
    tpu.vector_store %arg16[%c3_158, %c0_159, %c0_160], %228 {strides = array<i32>} : memref<4x8x1xf32, #tpu.memory_space<vmem>>, vector<1x8x1xf32>,
    %c0_i32_161 = arith.constant 0 : i32
    %229 = arith.cmpi eq, %arg2, %c0_i32_161 : i32
    %230 = arith.extui %229 : i1 to i32
    %c0_i32_162 = arith.constant 0 : i32
    %231 = arith.cmpi ne, %230, %c0_i32_162 : i32
    scf.if %231 {
      %cst_163 = arith.constant 0.000000e+00 : f32
      %232 = vector.broadcast %cst_163 : f32 to vector<8x32xf32>
      %c0_164 = arith.constant 0 : index
      %c0_165 = arith.constant 0 : index
      %c0_166 = arith.constant 0 : index
      %233 = vector.load %arg18[%c0_164, %c0_165, %c0_166] : memref<4x8x8xf32, #tpu.memory_space<vmem>>, vector<1x8x8xf32>
      %234 = vector.shape_cast %233 : vector<1x8x8xf32> to vector<8x8xf32>
      %c0_167 = arith.constant 0 : index
      %c0_168 = arith.constant 0 : index
      %c0_169 = arith.constant 0 : index
      %235 = vector.load %arg17[%c0_167, %c0_168, %c0_169] : memref<4x8x1xf32, #tpu.memory_space<vmem>>, vector<1x8x1xf32>
      %236 = vector.shape_cast %235 : vector<1x8x1xf32> to vector<8x1xf32>
      %237 = tpu.reciprocal %236 {approx = true} : vector<8x1xf32> -> vector<8x1xf32>
      %238 = vector.broadcast %237 : vector<8x1xf32> to vector<8x8xf32>
      %239 = arith.mulf %234, %238 : vector<8x8xf32>
      %240 = arith.truncf %239 : vector<8x8xf32> to vector<8x8xbf16>
      %c0_170 = arith.constant 0 : index
      %c0_171 = arith.constant 0 : index
      %c0_172 = arith.constant 0 : index
      %241 = vector.load %arg12[%c0_170, %c0_171, %c0_172] : memref<4x8x32xbf16, #tpu.memory_space<vmem>>, vector<1x8x32xbf16>
      %242 = vector.shape_cast %241 : vector<1x8x32xbf16> to vector<8x32xbf16>
      %cst_173 = arith.constant dense<0.000000e+00> : vector<8x32xf32>
      %243 = tpu.matmul %240, %242, %cst_173 {dimension_numbers = #tpu.dot_dimension_numbers<[1], [0], [0], [1], [0, 0, 1, 1], [], []>} : vector<8x8xbf16>, vector<8x32xbf16>, vector<8x32xf32> -> vector<8x32xf32>
      %244 = arith.addf %232, %243 : vector<8x32xf32>
      %c1_174 = arith.constant 1 : index
      %c0_175 = arith.constant 0 : index
      %c0_176 = arith.constant 0 : index
      %245 = vector.load %arg18[%c1_174, %c0_175, %c0_176] : memref<4x8x8xf32, #tpu.memory_space<vmem>>, vector<1x8x8xf32>
      %246 = vector.shape_cast %245 : vector<1x8x8xf32> to vector<8x8xf32>
      %c1_177 = arith.constant 1 : index
      %c0_178 = arith.constant 0 : index
      %c0_179 = arith.constant 0 : index
      %247 = vector.load %arg17[%c1_177, %c0_178, %c0_179] : memref<4x8x1xf32, #tpu.memory_space<vmem>>, vector<1x8x1xf32>
      %248 = vector.shape_cast %247 : vector<1x8x1xf32> to vector<8x1xf32>
      %249 = tpu.reciprocal %248 {approx = true} : vector<8x1xf32> -> vector<8x1xf32>
      %250 = vector.broadcast %249 : vector<8x1xf32> to vector<8x8xf32>
      %251 = arith.mulf %246, %250 : vector<8x8xf32>
      %252 = arith.truncf %251 : vector<8x8xf32> to vector<8x8xbf16>
      %c1_180 = arith.constant 1 : index
      %c0_181 = arith.constant 0 : index
      %c0_182 = arith.constant 0 : index
      %253 = vector.load %arg12[%c1_180, %c0_181, %c0_182] : memref<4x8x32xbf16, #tpu.memory_space<vmem>>, vector<1x8x32xbf16>
      %254 = vector.shape_cast %253 : vector<1x8x32xbf16> to vector<8x32xbf16>
      %cst_183 = arith.constant dense<0.000000e+00> : vector<8x32xf32>
      %255 = tpu.matmul %252, %254, %cst_183 {dimension_numbers = #tpu.dot_dimension_numbers<[1], [0], [0], [1], [0, 0, 1, 1], [], []>} : vector<8x8xbf16>, vector<8x32xbf16>, vector<8x32xf32> -> vector<8x32xf32>
      %256 = arith.addf %244, %255 : vector<8x32xf32>
      %c2_184 = arith.constant 2 : index
      %c0_185 = arith.constant 0 : index
      %c0_186 = arith.constant 0 : index
      %257 = vector.load %arg18[%c2_184, %c0_185, %c0_186] : memref<4x8x8xf32, #tpu.memory_space<vmem>>, vector<1x8x8xf32>
      %258 = vector.shape_cast %257 : vector<1x8x8xf32> to vector<8x8xf32>
      %c2_187 = arith.constant 2 : index
      %c0_188 = arith.constant 0 : index
      %c0_189 = arith.constant 0 : index
      %259 = vector.load %arg17[%c2_187, %c0_188, %c0_189] : memref<4x8x1xf32, #tpu.memory_space<vmem>>, vector<1x8x1xf32>
      %260 = vector.shape_cast %259 : vector<1x8x1xf32> to vector<8x1xf32>
      %261 = tpu.reciprocal %260 {approx = true} : vector<8x1xf32> -> vector<8x1xf32>
      %262 = vector.broadcast %261 : vector<8x1xf32> to vector<8x8xf32>
      %263 = arith.mulf %258, %262 : vector<8x8xf32>
      %264 = arith.truncf %263 : vector<8x8xf32> to vector<8x8xbf16>
      %c2_190 = arith.constant 2 : index
      %c0_191 = arith.constant 0 : index
      %c0_192 = arith.constant 0 : index
      %265 = vector.load %arg12[%c2_190, %c0_191, %c0_192] : memref<4x8x32xbf16, #tpu.memory_space<vmem>>, vector<1x8x32xbf16>
      %266 = vector.shape_cast %265 : vector<1x8x32xbf16> to vector<8x32xbf16>
      %cst_193 = arith.constant dense<0.000000e+00> : vector<8x32xf32>
      %267 = tpu.matmul %264, %266, %cst_193 {dimension_numbers = #tpu.dot_dimension_numbers<[1], [0], [0], [1], [0, 0, 1, 1], [], []>} : vector<8x8xbf16>, vector<8x32xbf16>, vector<8x32xf32> -> vector<8x32xf32>
      %268 = arith.addf %256, %267 : vector<8x32xf32>
      %c3_194 = arith.constant 3 : index
      %c0_195 = arith.constant 0 : index
      %c0_196 = arith.constant 0 : index
      %269 = vector.load %arg18[%c3_194, %c0_195, %c0_196] : memref<4x8x8xf32, #tpu.memory_space<vmem>>, vector<1x8x8xf32>
      %270 = vector.shape_cast %269 : vector<1x8x8xf32> to vector<8x8xf32>
      %c3_197 = arith.constant 3 : index
      %c0_198 = arith.constant 0 : index
      %c0_199 = arith.constant 0 : index
      %271 = vector.load %arg17[%c3_197, %c0_198, %c0_199] : memref<4x8x1xf32, #tpu.memory_space<vmem>>, vector<1x8x1xf32>
      %272 = vector.shape_cast %271 : vector<1x8x1xf32> to vector<8x1xf32>
      %273 = tpu.reciprocal %272 {approx = true} : vector<8x1xf32> -> vector<8x1xf32>
      %274 = vector.broadcast %273 : vector<8x1xf32> to vector<8x8xf32>
      %275 = arith.mulf %270, %274 : vector<8x8xf32>
      %276 = arith.truncf %275 : vector<8x8xf32> to vector<8x8xbf16>
      %c3_200 = arith.constant 3 : index
      %c0_201 = arith.constant 0 : index
      %c0_202 = arith.constant 0 : index
      %277 = vector.load %arg12[%c3_200, %c0_201, %c0_202] : memref<4x8x32xbf16, #tpu.memory_space<vmem>>, vector<1x8x32xbf16>
      %278 = vector.shape_cast %277 : vector<1x8x32xbf16> to vector<8x32xbf16>
      %cst_203 = arith.constant dense<0.000000e+00> : vector<8x32xf32>
      %279 = tpu.matmul %276, %278, %cst_203 {dimension_numbers = #tpu.dot_dimension_numbers<[1], [0], [0], [1], [0, 0, 1, 1], [], []>} : vector<8x8xbf16>, vector<8x32xbf16>, vector<8x32xf32> -> vector<8x32xf32>
      %280 = arith.addf %268, %279 : vector<8x32xf32>
      %c0_204 = arith.constant 0 : index
      %c0_205 = arith.constant 0 : index
      %281 = vector.load %arg13[%c0_204, %c0_205] : memref<1x32xf32, #tpu.memory_space<vmem>>, vector<1x32xf32>
      %282 = vector.broadcast %281 : vector<1x32xf32> to vector<8x32xf32>
      %283 = arith.addf %280, %282 : vector<8x32xf32>
      %c0_206 = arith.constant 0 : index
      %c0_207 = arith.constant 0 : index
      %c0_208 = arith.constant 0 : index
      %284 = vector.load %arg14[%c0_206, %c0_207, %c0_208] : memref<1x8x32xf32, #tpu.memory_space<vmem>>, vector<1x8x32xf32>
      %285 = vector.shape_cast %284 : vector<1x8x32xf32> to vector<8x32xf32>
      %286 = vector.shape_cast %283 : vector<8x32xf32> to vector<1x8x32xf32>
      tpu.vector_store %arg14[%c0_206, %c0_207, %c0_208], %286 {strides = array<i32>} : memref<1x8x32xf32, #tpu.memory_space<vmem>>, vector<1x8x32xf32>,
    } else {
    }
    return
  }
  func.func @transform_0(%arg0: i32, %arg1: i32, %arg2: i32) -> (i32, i32, i32) {
    %c0_i32 = arith.constant 0 : i32
    %c0_i32_0 = arith.constant 0 : i32
    return %arg0, %arg1, %c0_i32 : i32, i32, i32
  }
  func.func @transform_1(%arg0: i32, %arg1: i32, %arg2: i32) -> (i32, i32, i32) {
    %c0_i32 = arith.constant 0 : i32
    %c0_i32_0 = arith.constant 0 : i32
    return %arg0, %arg2, %c0_i32 : i32, i32, i32
  }
  func.func @transform_2(%arg0: i32, %arg1: i32, %arg2: i32) -> (i32, i32, i32) {
    %c0_i32 = arith.constant 0 : i32
    %c0_i32_0 = arith.constant 0 : i32
    return %arg0, %c0_i32, %arg2 : i32, i32, i32
  }
  func.func @transform_3(%arg0: i32, %arg1: i32, %arg2: i32) -> (i32, i32, i32) {
    %c0_i32 = arith.constant 0 : i32
    %c0_i32_0 = arith.constant 0 : i32
    %c0_i32_1 = arith.constant 0 : i32
    %c0_i32_2 = arith.constant 0 : i32
    return %c0_i32, %c0_i32_0, %c0_i32_1 : i32, i32, i32
  }
  func.func @transform_4(%arg0: i32, %arg1: i32, %arg2: i32) -> (i32, i32, i32) {
    %c0_i32 = arith.constant 0 : i32
    %c0_i32_0 = arith.constant 0 : i32
    %c0_i32_1 = arith.constant 0 : i32
    %c0_i32_2 = arith.constant 0 : i32
    return %c0_i32, %c0_i32_0, %c0_i32_1 : i32, i32, i32
  }
  func.func @transform_5(%arg0: i32, %arg1: i32, %arg2: i32) -> (i32, i32, i32) {
    %c0_i32 = arith.constant 0 : i32
    %c0_i32_0 = arith.constant 0 : i32
    %c0_i32_1 = arith.constant 0 : i32
    %c0_i32_2 = arith.constant 0 : i32
    return %c0_i32, %c0_i32_0, %c0_i32_1 : i32, i32, i32
  }
  func.func @transform_6(%arg0: i32, %arg1: i32, %arg2: i32) -> (i32, i32, i32) {
    %c0_i32 = arith.constant 0 : i32
    %c0_i32_0 = arith.constant 0 : i32
    %c0_i32_1 = arith.constant 0 : i32
    %c0_i32_2 = arith.constant 0 : i32
    return %c0_i32, %c0_i32_0, %c0_i32_1 : i32, i32, i32
  }
  func.func @transform_7(%arg0: i32, %arg1: i32, %arg2: i32) -> (i32, i32, i32) {
    %c0_i32 = arith.constant 0 : i32
    %c0_i32_0 = arith.constant 0 : i32
    %c0_i32_1 = arith.constant 0 : i32
    %c0_i32_2 = arith.constant 0 : i32
    return %c0_i32, %c0_i32_0, %c0_i32_1 : i32, i32, i32
  }
  func.func @transform_8(%arg0: i32, %arg1: i32, %arg2: i32) -> (i32, i32, i32) {
    %c0_i32 = arith.constant 0 : i32
    %c0_i32_0 = arith.constant 0 : i32
    %c0_i32_1 = arith.constant 0 : i32
    %c0_i32_2 = arith.constant 0 : i32
    return %c0_i32, %c0_i32_0, %c0_i32_1 : i32, i32, i32
  }
  func.func @transform_9(%arg0: i32, %arg1: i32, %arg2: i32) -> (i32, i32, i32) {
    %c0_i32 = arith.constant 0 : i32
    %c0_i32_0 = arith.constant 0 : i32
    %c0_i32_1 = arith.constant 0 : i32
    %c0_i32_2 = arith.constant 0 : i32
    return %c0_i32, %c0_i32_0, %c0_i32_1 : i32, i32, i32
  }
  func.func @transform_10(%arg0: i32, %arg1: i32, %arg2: i32) -> (i32, i32) {
    %c0_i32 = arith.constant 0 : i32
    %c0_i32_0 = arith.constant 0 : i32
    %c0_i32_1 = arith.constant 0 : i32
    return %c0_i32, %c0_i32_0 : i32, i32
  }
  func.func @transform_11(%arg0: i32, %arg1: i32, %arg2: i32) -> (i32, i32, i32) {
    %c0_i32 = arith.constant 0 : i32
    %c0_i32_0 = arith.constant 0 : i32
    return %arg0, %arg1, %c0_i32 : i32, i32, i32
  }
}

module attributes {stable_mosaic.version = 11 : i64} {
  func.func @_ffn_kernel(%arg0: i32, %arg1: i32, %arg2: memref<16x32xf32, #tpu.memory_space<vmem>>, %arg3: memref<32x64xbf16, #tpu.memory_space<vmem>>, %arg4: memref<1x64xf32, #tpu.memory_space<vmem>>, %arg5: memref<64x32xbf16, #tpu.memory_space<vmem>>, %arg6: memref<1x32xf32, #tpu.memory_space<vmem>>, %arg7: memref<16x32xf32, #tpu.memory_space<vmem>>, %arg8: memref<16x32xf32, #tpu.memory_space<vmem>>) attributes {dimension_semantics = [#tpu.dimension_semantics<parallel>, #tpu.dimension_semantics<arbitrary>], iteration_bounds = array<i64: 1, 1>, scalar_prefetch = 0 : i64, scratch_operands = 1 : i64, tpu.core_type = #tpu.core_type<tc>, window_params = [{transform_indices = @transform_0, window_bounds = array<i64: 16, 32>}, {transform_indices = @transform_1, window_bounds = array<i64: 32, 64>}, {transform_indices = @transform_2, window_bounds = array<i64: 1, 64>}, {transform_indices = @transform_3, window_bounds = array<i64: 64, 32>}, {pipeline_mode = #tpu.pipeline_mode<synchronous>, transform_indices = @transform_4, window_bounds = array<i64: 1, 32>}, {transform_indices = @transform_5, window_bounds = array<i64: 16, 32>}]} {
    %c0_i32 = arith.constant 0 : i32
    %0 = arith.cmpi eq, %arg1, %c0_i32 : i32
    %1 = arith.extui %0 : i1 to i32
    %c0_i32_0 = arith.constant 0 : i32
    %2 = arith.cmpi ne, %1, %c0_i32_0 : i32
    scf.if %2 {
      %cst_16 = arith.constant 0.000000e+00 : f32
      %21 = vector.broadcast %cst_16 : f32 to vector<16x32xf32>
      %c0_17 = arith.constant 0 : index
      %c0_18 = arith.constant 0 : index
      %22 = vector.load %arg8[%c0_17, %c0_18] : memref<16x32xf32, #tpu.memory_space<vmem>>, vector<16x32xf32>
      tpu.vector_store %arg8[%c0_17, %c0_18], %21 {strides = array<i32>} : memref<16x32xf32, #tpu.memory_space<vmem>>, vector<16x32xf32>,
    } else {
    }
    %c0 = arith.constant 0 : index
    %c0_1 = arith.constant 0 : index
    %3 = vector.load %arg2[%c0, %c0_1] : memref<16x32xf32, #tpu.memory_space<vmem>>, vector<16x32xf32>
    %4 = arith.truncf %3 : vector<16x32xf32> to vector<16x32xbf16>
    %c0_2 = arith.constant 0 : index
    %c0_3 = arith.constant 0 : index
    %5 = vector.load %arg3[%c0_2, %c0_3] : memref<32x64xbf16, #tpu.memory_space<vmem>>, vector<32x64xbf16>
    %cst = arith.constant dense<0.000000e+00> : vector<16x64xf32>
    %6 = tpu.matmul %4, %5, %cst {dimension_numbers = #tpu.dot_dimension_numbers<[1], [0], [0], [1], [0, 0, 1, 1], [], []>} : vector<16x32xbf16>, vector<32x64xbf16>, vector<16x64xf32> -> vector<16x64xf32>
    %c0_4 = arith.constant 0 : index
    %c0_5 = arith.constant 0 : index
    %7 = vector.load %arg4[%c0_4, %c0_5] : memref<1x64xf32, #tpu.memory_space<vmem>>, vector<1x64xf32>
    %8 = vector.broadcast %7 : vector<1x64xf32> to vector<16x64xf32>
    %9 = arith.addf %6, %8 : vector<16x64xf32>
    %cst_6 = arith.constant 0.000000e+00 : f32
    %10 = vector.broadcast %cst_6 : f32 to vector<16x64xf32>
    %11 = arith.maximumf %9, %10 : vector<16x64xf32>
    %c0_7 = arith.constant 0 : index
    %c0_8 = arith.constant 0 : index
    %12 = vector.load %arg8[%c0_7, %c0_8] : memref<16x32xf32, #tpu.memory_space<vmem>>, vector<16x32xf32>
    %13 = arith.truncf %11 : vector<16x64xf32> to vector<16x64xbf16>
    %c0_9 = arith.constant 0 : index
    %c0_10 = arith.constant 0 : index
    %14 = vector.load %arg5[%c0_9, %c0_10] : memref<64x32xbf16, #tpu.memory_space<vmem>>, vector<64x32xbf16>
    %cst_11 = arith.constant dense<0.000000e+00> : vector<16x32xf32>
    %15 = tpu.matmul %13, %14, %cst_11 {dimension_numbers = #tpu.dot_dimension_numbers<[1], [0], [0], [1], [0, 0, 1, 1], [], []>} : vector<16x64xbf16>, vector<64x32xbf16>, vector<16x32xf32> -> vector<16x32xf32>
    %16 = arith.addf %12, %15 : vector<16x32xf32>
    %c0_12 = arith.constant 0 : index
    %c0_13 = arith.constant 0 : index
    %17 = vector.load %arg8[%c0_12, %c0_13] : memref<16x32xf32, #tpu.memory_space<vmem>>, vector<16x32xf32>
    tpu.vector_store %arg8[%c0_12, %c0_13], %16 {strides = array<i32>} : memref<16x32xf32, #tpu.memory_space<vmem>>, vector<16x32xf32>,
    %c0_i32_14 = arith.constant 0 : i32
    %18 = arith.cmpi eq, %arg1, %c0_i32_14 : i32
    %19 = arith.extui %18 : i1 to i32
    %c0_i32_15 = arith.constant 0 : i32
    %20 = arith.cmpi ne, %19, %c0_i32_15 : i32
    scf.if %20 {
      %c0_16 = arith.constant 0 : index
      %c0_17 = arith.constant 0 : index
      %21 = vector.load %arg8[%c0_16, %c0_17] : memref<16x32xf32, #tpu.memory_space<vmem>>, vector<16x32xf32>
      %c0_18 = arith.constant 0 : index
      %c0_19 = arith.constant 0 : index
      %22 = vector.load %arg6[%c0_18, %c0_19] : memref<1x32xf32, #tpu.memory_space<vmem>>, vector<1x32xf32>
      %23 = vector.broadcast %22 : vector<1x32xf32> to vector<16x32xf32>
      %24 = arith.addf %21, %23 : vector<16x32xf32>
      %c0_20 = arith.constant 0 : index
      %c0_21 = arith.constant 0 : index
      %25 = vector.load %arg7[%c0_20, %c0_21] : memref<16x32xf32, #tpu.memory_space<vmem>>, vector<16x32xf32>
      tpu.vector_store %arg7[%c0_20, %c0_21], %24 {strides = array<i32>} : memref<16x32xf32, #tpu.memory_space<vmem>>, vector<16x32xf32>,
    } else {
    }
    return
  }
  func.func @transform_0(%arg0: i32, %arg1: i32) -> (i32, i32) {
    %c0_i32 = arith.constant 0 : i32
    %c0_i32_0 = arith.constant 0 : i32
    return %arg0, %c0_i32 : i32, i32
  }
  func.func @transform_1(%arg0: i32, %arg1: i32) -> (i32, i32) {
    %c0_i32 = arith.constant 0 : i32
    %c0_i32_0 = arith.constant 0 : i32
    return %c0_i32, %arg1 : i32, i32
  }
  func.func @transform_2(%arg0: i32, %arg1: i32) -> (i32, i32) {
    %c0_i32 = arith.constant 0 : i32
    %c0_i32_0 = arith.constant 0 : i32
    return %c0_i32, %arg1 : i32, i32
  }
  func.func @transform_3(%arg0: i32, %arg1: i32) -> (i32, i32) {
    %c0_i32 = arith.constant 0 : i32
    %c0_i32_0 = arith.constant 0 : i32
    return %arg1, %c0_i32 : i32, i32
  }
  func.func @transform_4(%arg0: i32, %arg1: i32) -> (i32, i32) {
    %c0_i32 = arith.constant 0 : i32
    %c0_i32_0 = arith.constant 0 : i32
    %c0_i32_1 = arith.constant 0 : i32
    return %c0_i32, %c0_i32_0 : i32, i32
  }
  func.func @transform_5(%arg0: i32, %arg1: i32) -> (i32, i32) {
    %c0_i32 = arith.constant 0 : i32
    %c0_i32_0 = arith.constant 0 : i32
    return %arg0, %c0_i32 : i32, i32
  }
}

module attributes {stable_mosaic.version = 11 : i64} {
  func.func @_matmul_kernel(%arg0: i32, %arg1: i32, %arg2: i32, %arg3: memref<16x32xf32, #tpu.memory_space<vmem>>, %arg4: memref<32x128xbf16, #tpu.memory_space<vmem>>, %arg5: memref<1x128xf32, #tpu.memory_space<vmem>>, %arg6: memref<16x128xf32, #tpu.memory_space<vmem>>, %arg7: memref<16x128xf32, #tpu.memory_space<vmem>>) attributes {dimension_semantics = [#tpu.dimension_semantics<parallel>, #tpu.dimension_semantics<parallel>, #tpu.dimension_semantics<arbitrary>], iteration_bounds = array<i64: 1, 1, 1>, scalar_prefetch = 0 : i64, scratch_operands = 1 : i64, tpu.core_type = #tpu.core_type<tc>, window_params = [{transform_indices = @transform_0, window_bounds = array<i64: 16, 32>}, {transform_indices = @transform_1, window_bounds = array<i64: 32, 128>}, {transform_indices = @transform_2, window_bounds = array<i64: 1, 128>}, {transform_indices = @transform_3, window_bounds = array<i64: 16, 128>}]} {
    %c0_i32 = arith.constant 0 : i32
    %0 = arith.cmpi eq, %arg2, %c0_i32 : i32
    %1 = arith.extui %0 : i1 to i32
    %c0_i32_0 = arith.constant 0 : i32
    %2 = arith.cmpi ne, %1, %c0_i32_0 : i32
    scf.if %2 {
      %cst_10 = arith.constant 0.000000e+00 : f32
      %13 = vector.broadcast %cst_10 : f32 to vector<16x128xf32>
      %c0_11 = arith.constant 0 : index
      %c0_12 = arith.constant 0 : index
      %14 = vector.load %arg7[%c0_11, %c0_12] : memref<16x128xf32, #tpu.memory_space<vmem>>, vector<16x128xf32>
      tpu.vector_store %arg7[%c0_11, %c0_12], %13 {strides = array<i32>} : memref<16x128xf32, #tpu.memory_space<vmem>>, vector<16x128xf32>,
    } else {
    }
    %c0 = arith.constant 0 : index
    %c0_1 = arith.constant 0 : index
    %3 = vector.load %arg7[%c0, %c0_1] : memref<16x128xf32, #tpu.memory_space<vmem>>, vector<16x128xf32>
    %c0_2 = arith.constant 0 : index
    %c0_3 = arith.constant 0 : index
    %4 = vector.load %arg3[%c0_2, %c0_3] : memref<16x32xf32, #tpu.memory_space<vmem>>, vector<16x32xf32>
    %5 = arith.truncf %4 : vector<16x32xf32> to vector<16x32xbf16>
    %c0_4 = arith.constant 0 : index
    %c0_5 = arith.constant 0 : index
    %6 = vector.load %arg4[%c0_4, %c0_5] : memref<32x128xbf16, #tpu.memory_space<vmem>>, vector<32x128xbf16>
    %cst = arith.constant dense<0.000000e+00> : vector<16x128xf32>
    %7 = tpu.matmul %5, %6, %cst {dimension_numbers = #tpu.dot_dimension_numbers<[1], [0], [0], [1], [0, 0, 1, 1], [], []>} : vector<16x32xbf16>, vector<32x128xbf16>, vector<16x128xf32> -> vector<16x128xf32>
    %8 = arith.addf %3, %7 : vector<16x128xf32>
    %c0_6 = arith.constant 0 : index
    %c0_7 = arith.constant 0 : index
    %9 = vector.load %arg7[%c0_6, %c0_7] : memref<16x128xf32, #tpu.memory_space<vmem>>, vector<16x128xf32>
    tpu.vector_store %arg7[%c0_6, %c0_7], %8 {strides = array<i32>} : memref<16x128xf32, #tpu.memory_space<vmem>>, vector<16x128xf32>,
    %c0_i32_8 = arith.constant 0 : i32
    %10 = arith.cmpi eq, %arg2, %c0_i32_8 : i32
    %11 = arith.extui %10 : i1 to i32
    %c0_i32_9 = arith.constant 0 : i32
    %12 = arith.cmpi ne, %11, %c0_i32_9 : i32
    scf.if %12 {
      %c0_10 = arith.constant 0 : index
      %c0_11 = arith.constant 0 : index
      %13 = vector.load %arg7[%c0_10, %c0_11] : memref<16x128xf32, #tpu.memory_space<vmem>>, vector<16x128xf32>
      %c0_12 = arith.constant 0 : index
      %c0_13 = arith.constant 0 : index
      %14 = vector.load %arg5[%c0_12, %c0_13] : memref<1x128xf32, #tpu.memory_space<vmem>>, vector<1x128xf32>
      %15 = vector.broadcast %14 : vector<1x128xf32> to vector<16x128xf32>
      %16 = arith.addf %13, %15 : vector<16x128xf32>
      %c0_14 = arith.constant 0 : index
      %c0_15 = arith.constant 0 : index
      %17 = vector.load %arg6[%c0_14, %c0_15] : memref<16x128xf32, #tpu.memory_space<vmem>>, vector<16x128xf32>
      tpu.vector_store %arg6[%c0_14, %c0_15], %16 {strides = array<i32>} : memref<16x128xf32, #tpu.memory_space<vmem>>, vector<16x128xf32>,
    } else {
    }
    return
  }
  func.func @transform_0(%arg0: i32, %arg1: i32, %arg2: i32) -> (i32, i32) {
    %c0_i32 = arith.constant 0 : i32
    return %arg0, %arg2 : i32, i32
  }
  func.func @transform_1(%arg0: i32, %arg1: i32, %arg2: i32) -> (i32, i32) {
    %c0_i32 = arith.constant 0 : i32
    return %arg2, %arg1 : i32, i32
  }
  func.func @transform_2(%arg0: i32, %arg1: i32, %arg2: i32) -> (i32, i32) {
    %c0_i32 = arith.constant 0 : i32
    %c0_i32_0 = arith.constant 0 : i32
    return %c0_i32, %arg1 : i32, i32
  }
  func.func @transform_3(%arg0: i32, %arg1: i32, %arg2: i32) -> (i32, i32) {
    %c0_i32 = arith.constant 0 : i32
    return %arg0, %arg1 : i32, i32
  }
}

</mosaic_0001>

<bundles_post_ra>
// kernel: _lambda_.22
= control target key start
LH: loop header
LB: loop body
LE: loop exit
PB: predicated region body
PF: predicated region fallthrough
CT: control target
= control target key end

     0   :  { %vm26_vm0 = vcmask 261120   ;;  %vm33_vm1 = vcmask 257024   ;;  %s170_s0 = inlined_call_operand.vmem [shape: f32[20,32], index: 0, kind: input, shape index: {}]   ;;  %s171_s1 = inlined_call_operand.vmem [shape: f32[20,32], index: 1, kind: input, shape index: {}]   ;;  %s172_s2 = inlined_call_operand.vmem [shape: f32[1,32], index: 2, kind: input, shape index: {}]   ;;  %s173_s3 = inlined_call_operand.vmem [shape: f32[1,32], index: 3, kind: input, shape index: {}]   ;;  %s174_s4 = inlined_call_operand.vmem [shape: f32[20,32], index: 4, kind: output, shape index: {}]  }
   0x1   :  { %v17_v0 = vld [vmem:[%s170_s0] sm:$0xff]  ;;  %v19_v2 = vld [vmem:[%s170_s0 + $0x10] sm:$0xf]  ;;  %v18_v5 = vld [vmem:[%s170_s0 + $0x8] sm:$0xff] }
   0x2   :  { %v20_v1 = vld [vmem:[%s171_s1] sm:$0xff]  ;;  %v22_v4 = vld [vmem:[%s171_s1 + $0x10] sm:$0xf]  ;;  %v21_v6 = vld [vmem:[%s171_s1 + $0x8] sm:$0xff] }
   0x3   :  { %v23_v3 = vadd.f32 %v20_v1, %v17_v0  ;;  %v25_v7 = vadd.f32 %v22_v4, %v19_v2  ;;  %v24_v8 = vadd.f32 %v21_v6, %v18_v5  ;;  %v95_v37 = vld [vmem:[%s172_s2] ss:$0 sm:$0xff] }
   0x4   :  { %v96_v39 = vld [vmem:[%s173_s3] ss:$0 sm:$0xff] }
   0x5   :  { %v27_v9 = vsel %vm26_vm0, %v23_v3, 0.0  ;;  %v34_v10 = vsel %vm33_vm1, %v25_v7, 0.0  ;;  %v30_v11 = vsel %vm26_vm0, %v24_v8, 0.0 }
   0x6   :  { %28 = vadd.xlane.f32.xlu0 %v27_v9  ;;  %35 = vadd.xlane.f32.xlu1 %v34_v10 }
   0xa   :  { %31 = vadd.xlane.f32.xlu0 %v30_v11 }
  0x93   :  { %v29_v12 = vpop.xlane.xlu0 %28  ;;  %v36_v14 = vpop.xlane.xlu1 %35 }
  0x94   :  { %v38_v13 = vmul.f32 0.03125, %v29_v12  ;;  %v40_v15 = vmul.f32 0.03125, %v36_v14 }
  0x96   :  { %v41_v16 = vsub.f32 %v23_v3, %v38_v13  ;;  %v43_v17 = vsub.f32 %v25_v7, %v40_v15 }
  0x97   :  { %v32_v18 = vpop.xlane.xlu0 %31 }
  0x98   :  { %v39_v19 = vmul.f32 0.03125, %v32_v18  ;;  %v44_v20 = vmul.f32 %v41_v16, %v41_v16  ;;  %v46_v21 = vmul.f32 %v43_v17, %v43_v17 }
  0x9a   :  { %v42_v22 = vsub.f32 %v24_v8, %v39_v19  ;;  %v47_v23 = vsel %vm26_vm0, %v44_v20, 0.0  ;;  %v53_v24 = vsel %vm33_vm1, %v46_v21, 0.0 }
  0x9b   :  { %48 = vadd.xlane.f32.xlu1 %v47_v23 }
  0x9c   :  { %v45_v25 = vmul.f32 %v42_v22, %v42_v22 }
  0x9e   :  { %v50_v26 = vsel %vm26_vm0, %v45_v25, 0.0 }
  0x9f   :  { %54 = vadd.xlane.f32.xlu1 %v53_v24  ;;  %51 = vadd.xlane.f32.xlu0 %v50_v26 }
 0x128   :  { %v49_v27 = vpop.xlane.xlu1 %48 }
 0x129   :  { %v56_v28 = vmul.f32 0.03125, %v49_v27 }
 0x12b   :  { %v59_v29 = vadd.f32 1e-05, %v56_v28 }
 0x12c   :  { %v55_v30 = vpop.xlane.xlu1 %54  ;;  %v52_v31 = vpop.xlane.xlu0 %51 }
 0x12d   :  { %97 = vrsqrt.f32 %v59_v29  ;;  %v58_v32 = vmul.f32 0.03125, %v55_v30  ;;  %v57_v33 = vmul.f32 0.03125, %v52_v31 }
 0x12f   :  { %v61_v34 = vadd.f32 1e-05, %v58_v32  ;;  %v60_v35 = vadd.f32 1e-05, %v57_v33 }
 0x131   :  { %99 = vrsqrt.f32 %v61_v34 }
 0x132   :  { %101 = vrsqrt.f32 %v60_v35 }
 0x137   :  { %v98_v36 = vpop.eup %97 }
 0x138   :  { %v65_v38 = vmul.f32 %v98_v36, %v41_v16 }
 0x13a   :  { %v75_v40 = vmul.f32 %v95_v37, %v65_v38 }
 0x13b   :  { %v100_v41 = vpop.eup %99 }
 0x13c   :  { %v102_v42 = vpop.eup %101  ;;  %v85_v43 = vadd.f32 %v96_v39, %v75_v40  ;;  %v67_v44 = vmul.f32 %v100_v41, %v43_v17 }
 0x13d   :  { %v66_v45 = vmul.f32 %v102_v42, %v42_v22 }
 0x13e   :  { %88 = vst.msk [vmem:[%s174_s4] sm:$0xff] %vm26_vm0, %v85_v43  ;;  %v77_v46 = vmul.f32 %v95_v37, %v67_v44 }
 0x13f   :  { %v76_v47 = vmul.f32 %v95_v37, %v66_v45 }
 0x140   :  { %v87_v48 = vadd.f32 %v96_v39, %v77_v46 }
 0x141   :  { %v86_v49 = vadd.f32 %v96_v39, %v76_v47 }
 0x142   :  { %90 = vst.msk [vmem:[%s174_s4 + $0x10] sm:$0xf] %vm33_vm1, %v87_v48 }
 0x143   :  { %89 = vst.msk [vmem:[%s174_s4 + $0x8] sm:$0xff] %vm26_vm0, %v86_v49 }

// kernel: _lambda_.23
= control target key start
LH: loop header
LB: loop body
LE: loop exit
PB: predicated region body
PF: predicated region fallthrough
CT: control target
= control target key end

     0   :  { %vm25_vm0 = vcmask 261120   ;;  %vm28_vm1 = vcmask 257024   ;;  %v287_v11 = vmov 0.0   ;;  %vm153_vm2 = vcmask 523264   ;;  %s371_s1 = inlined_call_operand.vmem [shape: bf16[32,64], index: 1, kind: input, shape index: {}]   ;;  %s372_s0 = inlined_call_operand.vmem [shape: f32[20,32], index: 0, kind: input, shape index: {}]   ;;  %s373_s3 = inlined_call_operand.vmem [shape: bf16[64,32], index: 3, kind: input, shape index: {}]   ;;  %s374_s2 = inlined_call_operand.vmem [shape: f32[1,64], index: 2, kind: input, shape index: {}]   ;;  %s375_s4 = inlined_call_operand.vmem [shape: f32[1,32], index: 4, kind: input, shape index: {}]   ;;  %s376_s5 = inlined_call_operand.vmem [shape: f32[20,32], index: 5, kind: output, shape index: {}]  }
   0x1   :  { %v281_v0 = vld [vmem:[%s371_s1] sm:$0xff]   ;;  %v282_v1 = vld [vmem:[%s371_s1 + $0x8] sm:$0xff]   ;;  %v32_v4 = vld [vmem:[%s372_s0 + $0x10] sm:$0xf]  ;;  %29 = vst.msk [vmem:[#allocation2 + $0x10] sm:$0xf] %vm28_vm1, %v287_v11 }
   0x2   :  { %260 = vmatprep.subr.bf16.mxu0 %v281_v0  ;;  %v30_v2 = vld [vmem:[%s372_s0] sm:$0xff]  ;;  %v31_v3 = vld [vmem:[%s372_s0 + $0x8] sm:$0xff]  ;;  %v34_v8 = vpack.c.bf16 %v32_v4, %v32_v4  ;;  %v285_v9 = vld [vmem:[%s373_s3 + $0x10] sm:$0xff]   ;;  %26 = vst.msk [vmem:[#allocation2] sm:$0xff] %vm25_vm0, %v287_v11 }
   0x3   :  { %261 = vmatpush3.bf16.msra.mxu0 %v281_v0  ;;  %v33_v5 = vpack.c.bf16 %v31_v3, %v30_v2  ;;  %v283_v6 = vld [vmem:[%s373_s3] sm:$0xff]   ;;  %v284_v7 = vld [vmem:[%s373_s3 + $0x8] sm:$0xff]   ;;  %v286_v10 = vld [vmem:[%s373_s3 + $0x18] sm:$0xff]   ;;  %27 = vst.msk [vmem:[#allocation2 + $0x8] sm:$0xff] %vm25_vm0, %v287_v11 }
   0x4   :  { %262 = vmatprep.subr.bf16.mxu0 %v282_v1  ;;  %268 = vmatprep.subr.bf16.mxu1 %v283_v6  ;;  %v238_v12 = vld [vmem:[%s374_s2] ss:$0 sm:$0xff] }
   0x5   :  { %264 = vmatprep.mubr.msk.bf16.mxu0 %vm25_vm0, %v33_v5  ;;  %269 = vmatpush3.bf16.msra.mxu1 %v283_v6  ;;  %v249_v35 = vld [vmem:[%s375_s4] ss:$0 sm:$0xff] }
   0x6   :  { %270 = vmatprep.subr.bf16.mxu1 %v284_v7 }
   0x7   :  { %263 = vmatpush3.bf16.msra.mxu0 %v282_v1 }
   0x8   :  { %v118_v25 = vld [vmem:[#allocation2 + $0x10] sm:$0xf] }
   0x9   :  { %271 = vmatpush3.bf16.msra.mxu1 %v284_v7  ;;  %v116_v26 = vld [vmem:[#allocation2] sm:$0xff] }
   0xa   :  { %265 = vmatmul.mubr.msk.bf16.vlgmr.msra.gmra.mrb[0].mxu0 %vm25_vm0, %v34_v8  ;;  %272 = vmatprep.subr.bf16.mxu1 %v285_v9  ;;  %v117_v30 = vld [vmem:[#allocation2 + $0x8] sm:$0xff] }
   0xd   :  { %273 = vmatpush3.bf16.msra.mxu1 %v285_v9 }
   0xe   :  { %274 = vmatprep.subr.bf16.mxu1 %v286_v10 }
  0x11   :  { %275 = vmatpush3.bf16.msra.mxu1 %v286_v10 }
  0xdd   :  { %v266_v13 = vpop.f32.mrb[0].mxu0 }
  0xde   :  { %v108_v14 = vadd.f32 %v266_v13, %v238_v12  ;;  %v99_v15 = vpop.f32.mrb[1].mxu0 }
  0xdf   :  { %v100_v16 = vadd.f32 %v238_v12, %v99_v15  ;;  %v267_v17 = vpop.f32.mrb[2].mxu0 }
  0xe0   :  { %v102_v18 = vpop.f32.mrb[3].mxu0  ;;  %v115_v20 = vmax.f32 %v108_v14, 0.0 }
  0xe1   :  { %v103_v19 = vadd.f32 %v238_v12, %v102_v18  ;;  %v113_v21 = vmax.f32 %v100_v16, 0.0 }
  0xe2   :  { %v120_v24 = vpack.c.bf16 %v115_v20, %v115_v20 }
  0xe3   :  { %v114_v22 = vmax.f32 %v103_v19, 0.0 }
  0xe5   :  { %v119_v23 = vpack.c.bf16 %v114_v22, %v113_v21 }
  0xe7   :  { %276 = vmatprep.mubr.msk.bf16.mxu1 %vm153_vm2, %v119_v23 }
  0xe8   :  { %277 = vmatmul.mubr.msk.bf16.vlgmr.msra.gmra.mrb[0].mxu1 %vm153_vm2, %v120_v24 }
 0x1bb   :  { %v278_v27 = vpop.f32.mrb[0].mxu1 }
 0x1bc   :  { %v210_v28 = vadd.f32 %v278_v27, %v118_v25  ;;  %v194_v29 = vpop.f32.mrb[1].mxu1 }
 0x1bd   :  { %v208_v31 = vadd.f32 %v194_v29, %v116_v26  ;;  %v279_v32 = vpop.f32.mrb[2].mxu1 }
 0x1be   :  { %214 = vst.msk [vmem:[#allocation2 + $0x10] sm:$0xf] %vm28_vm1, %v210_v28  ;;  %v197_v33 = vpop.f32.mrb[3].mxu1 }
 0x1bf   :  { %211 = vst.msk [vmem:[#allocation2] sm:$0xff] %vm25_vm0, %v208_v31  ;;  %v209_v34 = vadd.f32 %v197_v33, %v117_v30 }
 0x1c1   :  { %212 = vst.msk [vmem:[#allocation2 + $0x8] sm:$0xff] %vm25_vm0, %v209_v34 }
 0x1c5   :  { %v220_v36 = vld [vmem:[#allocation2 + $0x10] sm:$0xf] }
 0x1c6   :  { %v230_v37 = vadd.f32 %v249_v35, %v220_v36  ;;  %v218_v38 = vld [vmem:[#allocation2] sm:$0xff] }
 0x1c7   :  { %v228_v39 = vadd.f32 %v249_v35, %v218_v38 }
 0x1c8   :  { %233 = vst.msk [vmem:[%s376_s5 + $0x10] sm:$0xf] %vm28_vm1, %v230_v37  ;;  %v219_v40 = vld [vmem:[#allocation2 + $0x8] sm:$0xff] }
 0x1c9   :  { %231 = vst.msk [vmem:[%s376_s5] sm:$0xff] %vm25_vm0, %v228_v39  ;;  %v229_v41 = vadd.f32 %v249_v35, %v219_v40 }
 0x1cb   :  { %232 = vst.msk [vmem:[%s376_s5 + $0x8] sm:$0xff] %vm25_vm0, %v229_v41 }

// kernel: _lambda_.21
= control target key start
LH: loop header
LB: loop body
LE: loop exit
PB: predicated region body
PF: predicated region fallthrough
CT: control target
= control target key end

     0   :  { %s2914_s13 = smov 0   ;;  %s2916_s14 = smov 0   ;;  %s3463_s0 = inlined_call_operand.vmem [shape: f32[2,10,32], index: 0, kind: input, shape index: {}, may-alias: {0,1}]   ;;  %s3464_s1 = inlined_call_operand.vmem [shape: f32[2,10,32], index: 1, kind: input, shape index: {}, may-alias: {0,1}]   ;;  %s3465_s2 = inlined_call_operand.vmem [shape: bf16[4,32,8], index: 2, kind: input, shape index: {}]   ;;  %s3466_s3 = inlined_call_operand.vmem [shape: f32[4,1,8], index: 3, kind: input, shape index: {}]   ;;  %s3467_s4 = inlined_call_operand.vmem [shape: bf16[4,32,8], index: 4, kind: input, shape index: {}]   ;;  %s3468_s5 = inlined_call_operand.vmem [shape: f32[4,1,8], index: 5, kind: input, shape index: {}]   ;;  %s3469_s6 = inlined_call_operand.vmem [shape: bf16[4,32,8], index: 6, kind: input, shape index: {}]   ;;  %s3470_s7 = inlined_call_operand.vmem [shape: f32[4,1,8], index: 7, kind: input, shape index: {}]   ;;  %s3471_s8 = inlined_call_operand.vmem [shape: bf16[4,8,32], index: 8, kind: input, shape index: {}]   ;;  %s3472_s9 = inlined_call_operand.vmem [shape: f32[1,32], index: 9, kind: input, shape index: {}]   ;;  %s3473_s10 = inlined_call_operand.vmem [shape: f32[2,10,32], index: 10, kind: output, shape index: {}]  }
   0x1   :  { %s2918_s15 = smov 0  }
   0x2 LB: > { %s39_s16 = sadd.s32 1, %s2849_s14  ;;  %p2380_p0 = scmp.ge.s32.totalorder %s2853_s15, 1  ;;  %s2853_s15 = sphi %s2918_s15, %s20_s15   ;;  %s2849_s14 = sphi %s2916_s14, %s3475_s14   ;;  %s2845_s13 = sphi %s2914_s13, %s3474_s13  }
   0x3   : > { %p41_p1 = scmp.ge.s32.totalorder %s39_s16, 2  ;;  %p357_p2 = scmp.lt.s32.totalorder %s2853_s15, 3 }
   0x5   : > { %s3477_s16 = smov (%p41_p1, %s39_s16), 0  ;;  %p358_p3 = pnand %p2380_p0, %p357_p2 }
   0x6   : > { %v2759_v0 = vld [vmem:[%s3465_s2] sm:$0xff] (!%p358_p3)   ;;  %v2855_v1 = vmov (!%p358_p3), 0.0   ;;  %v2760_v2 = vld [vmem:[%s3465_s2 + $0x8] sm:$0xff] (!%p358_p3)   ;;  %vm2856_vm0 = vmmov (!%p358_p3), 0   ;;  %p413_p4 = scmp.lt.s32.totalorder (!%p358_p3), %s2845_s13, 1  ;;  %vm473_vm1 = vcmask (!%p358_p3), 261120  }
   0x7   : > { %361 = sbr.rel (%p358_p3) target bundleno = 1981 (0x7bd), region = 60  ;;  %2561 = vmatprep.subr.bf16.mxu0 (!%p358_p3), %v2855_v1  ;;  %2569 = vmatprep.subr.bf16.mxu1 (!%p358_p3), %v2855_v1  ;;  %v2761_v5 = vld [vmem:[%s3465_s2 + $0x20] sm:$0xff] (!%p358_p3)   ;;  %v2762_v7 = vld [vmem:[%s3465_s2 + $0x28] sm:$0xff] (!%p358_p3)   ;;  %vm520_vm2 = vcmask (!%p358_p3), 64512   ;;  %vm522_vm3 = vcmask (!%p358_p3), 58368   ;;  %v2765_v13 = vld [vmem:[%s3465_s2 + $0x10] sm:$0xff] (!%p358_p3)  }
   0x8   : > { %2562 = vmatpush3.bf16.msra.mxu0 (!%p358_p3), %v2759_v0  ;;  %2565 = vmatprep.mubr.msk.bf16.mxu0 (!%p358_p3), %vm2856_vm0, %v2855_v1  ;;  %v2763_v8 = vld [vmem:[%s3467_s4] sm:$0xff] (!%p358_p3)   ;;  %v2764_v11 = vld [vmem:[%s3467_s4 + $0x8] sm:$0xff] (!%p358_p3)   ;;  %755 = vst.msk [vmem:[#allocation5] sm:$0xff] (!%p358_p3), %vm520_vm2, %v2855_v1  ;;  %757 = vst.msk [vmem:[#allocation5 + $0x10] sm:$0xff] (!%p358_p3), %vm520_vm2, %v2855_v1  ;;  %vm737_vm4 = vcmask (!%p358_p3), 7168   ;;  %v2857_v57 = vmov (!%p358_p3), -inf  }
   0x9   : > { %2563 = vmatprep.subr.bf16.mxu0 (!%p358_p3), %v2855_v1  ;;  %2573 = vmatprep.mubr.msk.bf16.mxu1 (!%p358_p3), %vm2856_vm0, %v2855_v1  ;;  %759 = vst.msk [vmem:[#allocation5 + $0x20] sm:$0xff] (!%p358_p3), %vm520_vm2, %v2855_v1  ;;  %761 = vst.msk [vmem:[#allocation5 + $0x30] sm:$0xff] (!%p358_p3), %vm520_vm2, %v2855_v1  ;;  %v2766_v14 = vld [vmem:[%s3465_s2 + $0x18] sm:$0xff] (!%p358_p3)   ;;  %v2387_v15 = vld [vmem:[%s3466_s3] ss:$0 sm:$0xff] (!%p358_p3)  ;;  %vm953_vm5 = vcmask (!%p358_p3), 80896  }
   0xa   : > { %756 = vst.msk [vmem:[#allocation5 + $0x8] sm:$0x3] (!%p358_p3), %vm522_vm3, %v2855_v1  ;;  %758 = vst.msk [vmem:[#allocation5 + $0x18] sm:$0x3] (!%p358_p3), %vm522_vm3, %v2855_v1  ;;  %2570 = vmatpush3.bf16.msra.mxu1 (!%p358_p3), %v2765_v13  ;;  %v2405_v24 = vld [vmem:[%s3466_s3 + $0x2] ss:$0 sm:$0xff] (!%p358_p3) }
   0xb   : > { %760 = vst.msk [vmem:[#allocation5 + $0x28] sm:$0x3] (!%p358_p3), %vm522_vm3, %v2855_v1  ;;  %762 = vst.msk [vmem:[#allocation5 + $0x38] sm:$0x3] (!%p358_p3), %vm522_vm3, %v2855_v1  ;;  %2571 = vmatprep.subr.bf16.mxu1 (!%p358_p3), %v2855_v1  ;;  %v2418_v33 = vld [vmem:[%s3468_s5] ss:$0 sm:$0xff] (!%p358_p3) }
   0xc   : > { %2564 = vmatpush3.bf16.msra.mxu0 (!%p358_p3), %v2760_v2  ;;  %v2767_v44 = vld [vmem:[%s3467_s4 + $0x10] sm:$0xff] (!%p358_p3)   ;;  %v2768_v46 = vld [vmem:[%s3467_s4 + $0x18] sm:$0xff] (!%p358_p3)   ;;  %v2396_v47 = vld [vmem:[%s3466_s3 + $0x1] ss:$0 sm:$0xff] (!%p358_p3)  ;;  %738 = vst.msk [vmem:[#allocation3] sm:$0xff] (!%p358_p3), %vm737_vm4, %v2857_v57  ;;  %vm957_vm6 = vcmask (!%p358_p3), 74752  }
   0xd   : > { %2577 = vmatprep.subr.bf16.mxu0 (!%p358_p3), %v2855_v1  ;;  %v2771_v56 = vld [vmem:[%s3465_s2 + $0x30] sm:$0xff] (!%p358_p3)   ;;  %741 = vst.msk [vmem:[#allocation3 + $0x10] sm:$0xff] (!%p358_p3), %vm737_vm4, %v2857_v57  ;;  %743 = vst.msk [vmem:[#allocation3 + $0x20] sm:$0xff] (!%p358_p3), %vm737_vm4, %v2857_v57  ;;  %v2772_v58 = vld [vmem:[%s3465_s2 + $0x38] sm:$0xff] (!%p358_p3)   ;;  %vm739_vm7 = vcmask (!%p358_p3), 1024   ;;  %vm1019_vm8 = vcmask (!%p358_p3), 1044480  }
   0xe   : > { %s3479_s13 = smov (!%p413_p4, %s2845_s13), 1  ;;  %2572 = vmatpush3.bf16.msra.mxu1 %v2766_v14  ;;  %745 = vst.msk [vmem:[#allocation3 + $0x30] sm:$0xff] %vm737_vm4, %v2857_v57  ;;  %747 = vst.msk [vmem:[#allocation4] sm:$0xff] %vm737_vm4, %v2855_v1  ;;  %v2773_v59 = vld [vmem:[%s3469_s6] sm:$0xff]   ;;  %v2774_v60 = vld [vmem:[%s3469_s6 + $0x8] sm:$0xff]   ;;  %v2858_v14 = vmov 0  }
   0xf   : > { %s2945_s21 = sshll.u32 %s3479_s13, 4  ;;  %2585 = vmatprep.subr.bf16.mxu1 %v2855_v1  ;;  %749 = vst.msk [vmem:[#allocation4 + $0x10] sm:$0xff] %vm737_vm4, %v2855_v1  ;;  %751 = vst.msk [vmem:[#allocation4 + $0x20] sm:$0xff] %vm737_vm4, %v2855_v1  ;;  %2757 = vset.pattern.permute.xlu1 %v2858_v14  ;;  %vm2024_vm9 = vcmask 1043456   ;;  %vm2266_vm10 = vcmask 254976  }
  0x10   : > { %s420_s24 = scalar_lea.vmem %s3463_s0, %s2945_s21  ;;  %s430_s13 = scalar_lea.vmem %s3464_s1, %s2945_s21  ;;  %753 = vst.msk [vmem:[#allocation4 + $0x30] sm:$0xff] %vm737_vm4, %v2855_v1  ;;  %2758 = vset.pattern.permute.xlu0 %v2858_v14  ;;  %v2777_v14 = vld [vmem:[%s3469_s6 + $0x10] sm:$0xff]  }
  0x11   : > { %v447_v3 = vld [vmem:[%s420_s24] sm:$0xff]  ;;  %v448_v4 = vld [vmem:[%s420_s24 + $0x8] sm:$0x3]  ;;  %740 = vst.msk [vmem:[#allocation3 + $0x8] sm:$0x3] %vm739_vm7, %v2857_v57  ;;  %s440_s28 = scalar_lea.vmem %s3473_s10, %s2945_s21 }
  0x12   : > { %v2955_v6 = vpack.c.bf16 %v448_v4, %v447_v3  ;;  %v763_v9 = vld [vmem:[%s430_s13] sm:$0xff]  ;;  %v764_v10 = vld [vmem:[%s430_s13 + $0x8] sm:$0x3]  ;;  %742 = vst.msk [vmem:[#allocation3 + $0x18] sm:$0x3] %vm739_vm7, %v2857_v57 }
  0x13   : > { %v2981_v12 = vpack.c.bf16 %v764_v10, %v763_v9  ;;  %v2433_v4 = vld [vmem:[%s3468_s5 + $0x1] ss:$0 sm:$0xff]  ;;  %744 = vst.msk [vmem:[#allocation3 + $0x28] sm:$0x3] %vm739_vm7, %v2857_v57  ;;  %746 = vst.msk [vmem:[#allocation3 + $0x38] sm:$0x3] %vm739_vm7, %v2857_v57 }
  0x14   : > { %2566 = vmatmul.mubr.msk.bf16.vlgmr.msra.gmra.mrb[0].mxu0 %vm473_vm1, %v2955_v6  ;;  %2574 = vmatmul.mubr.msk.bf16.vlgmr.msra.gmra.mrb[0].mxu1 %vm473_vm1, %v2955_v6  ;;  %748 = vst.msk [vmem:[#allocation4 + $0x8] sm:$0x3] %vm739_vm7, %v2855_v1  ;;  %750 = vst.msk [vmem:[#allocation4 + $0x18] sm:$0x3] %vm739_vm7, %v2855_v1 }
  0x15   : > { %2578 = vmatpush3.bf16.msra.mxu0 %v2761_v5  ;;  %2581 = vmatprep.mubr.msk.bf16.mxu0 %vm2856_vm0, %v2855_v1  ;;  %752 = vst.msk [vmem:[#allocation4 + $0x28] sm:$0x3] %vm739_vm7, %v2855_v1  ;;  %754 = vst.msk [vmem:[#allocation4 + $0x38] sm:$0x3] %vm739_vm7, %v2855_v1 }
  0x16   : > { %2579 = vmatprep.subr.bf16.mxu0 %v2855_v1  ;;  %2589 = vmatprep.mubr.msk.bf16.mxu1 %vm2856_vm0, %v2855_v1 }
  0x17   : > { %2586 = vmatpush3.bf16.msra.mxu1 %v2771_v56 }
  0x18   : > { %2587 = vmatprep.subr.bf16.mxu1 %v2855_v1 }
  0x19   : > { %2580 = vmatpush3.bf16.msra.mxu0 %v2762_v7 }
  0x1a   : > { %2593 = vmatprep.subr.bf16.mxu0 %v2855_v1 }
  0x1b   : > { %2588 = vmatpush3.bf16.msra.mxu1 %v2772_v58 }
  0x1c   : > { %2582 = vmatmul.mubr.msk.bf16.vlgmr.msra.gmra.mrb[4].mxu0 %vm473_vm1, %v2955_v6  ;;  %2601 = vmatprep.subr.bf16.mxu1 %v2855_v1 }
  0x1d   : > { %2594 = vmatpush3.bf16.msra.mxu0 %v2763_v8  ;;  %2597 = vmatprep.mubr.msk.bf16.mxu0 %vm2856_vm0, %v2855_v1 }
  0x1e   : > { %2595 = vmatprep.subr.bf16.mxu0 %v2855_v1  ;;  %2590 = vmatmul.mubr.msk.bf16.vlgmr.msra.gmra.mrb[4].mxu1 %vm473_vm1, %v2955_v6 }
  0x1f   : > { %2602 = vmatpush3.bf16.msra.mxu1 %v2773_v59  ;;  %2605 = vmatprep.mubr.msk.bf16.mxu1 %vm2856_vm0, %v2855_v1 }
  0x20   : > { %2603 = vmatprep.subr.bf16.mxu1 %v2855_v1 }
  0x21   : > { %2596 = vmatpush3.bf16.msra.mxu0 %v2764_v11 }
  0x22   : > { %2609 = vmatprep.subr.bf16.mxu0 %v2855_v1 }
  0x23   : > { %2604 = vmatpush3.bf16.msra.mxu1 %v2774_v60 }
  0x24   : > { %2598 = vmatmul.mubr.msk.bf16.vlgmr.msra.gmra.mrb[8].mxu0 %vm473_vm1, %v2981_v12  ;;  %2615 = vmatprep.subr.bf16.mxu1 %v2855_v1 }
  0x25   : > { %2611 = vmatprep.mubr.msk.bf16.mxu0 %vm2856_vm0, %v2855_v1 }
  0x26   : > { %2606 = vmatmul.mubr.msk.bf16.vlgmr.msra.gmra.mrb[8].mxu1 %vm473_vm1, %v2981_v12 }
  0x27   : > { %2617 = vmatprep.mubr.msk.bf16.mxu1 %vm2856_vm0, %v2855_v1 }
  0xe7   : > { %v511_v16 = vpop.f32.mrb[0].mxu0  ;;  %v583_v48 = vpop.f32.mrb[0].mxu1 }
  0xe8   : > { %v512_v17 = vadd.f32 %v2387_v15, %v511_v16  ;;  %v2567_v18 = vpop.f32.mrb[1].mxu0  ;;  %v584_v49 = vadd.f32 %v2396_v47, %v583_v48  ;;  %v2575_v50 = vpop.f32.mrb[1].mxu1 }
  0xe9   : > { %v514_v19 = vpop.f32.mrb[2].mxu0  ;;  %v586_v51 = vpop.f32.mrb[2].mxu1 }
  0xea   : > { %v518_v20 = vmul.f32 0.35355338, %v512_v17  ;;  %v515_v21 = vadd.f32 %v2387_v15, %v514_v19  ;;  %v2568_v22 = vpop.f32.mrb[3].mxu0  ;;  %v590_v52 = vmul.f32 0.35355338, %v584_v49  ;;  %v587_v53 = vadd.f32 %v2396_v47, %v586_v51  ;;  %v2576_v54 = vpop.f32.mrb[3].mxu1 }
  0xeb   : > { %v2769_v17 = vld [vmem:[%s3467_s4 + $0x20] sm:$0xff]   ;;  %v2770_v19 = vld [vmem:[%s3467_s4 + $0x28] sm:$0xff]  }
  0xec   : > { %521 = vst.msk [vmem:[#allocation2] sm:$0xff] %vm520_vm2, %v518_v20  ;;  %v519_v23 = vmul.f32 0.35355338, %v515_v21  ;;  %593 = vst.msk [vmem:[#allocation2 + $0x10] sm:$0xff] %vm520_vm2, %v590_v52  ;;  %v591_v55 = vmul.f32 0.35355338, %v587_v53 }
  0xed   : > { %v3127_v20 = vld [vmem:[#allocation3] sm:$0xff] }
  0xee   : > { %523 = vst.msk [vmem:[#allocation2 + $0x8] sm:$0x3] %vm522_vm3, %v519_v23  ;;  %594 = vst.msk [vmem:[#allocation2 + $0x18] sm:$0x3] %vm522_vm3, %v591_v55  ;;  %v3132_v23 = vld [vmem:[#allocation3 + $0x8] sm:$0x3] }
  0xef   : > { %v654_v25 = vpop.f32.mrb[4].mxu0  ;;  %v2453_v52 = vld [vmem:[%s3468_s5 + $0x2] ss:$0 sm:$0xff] }
  0xf0   : > { %v655_v26 = vadd.f32 %v2405_v24, %v654_v25  ;;  %v2583_v27 = vpop.f32.mrb[5].mxu0 }
  0xf1   : > { %v657_v28 = vpop.f32.mrb[6].mxu0 }
  0xf2   : > { %v661_v29 = vmul.f32 0.35355338, %v655_v26  ;;  %v658_v30 = vadd.f32 %v2405_v24, %v657_v28  ;;  %v2584_v31 = vpop.f32.mrb[7].mxu0  ;;  %v725_v28 = vpop.f32.mrb[4].mxu1 }
  0xf3   : > { %v900_v43 = vld [vmem:[#allocation2] sm:$0xff]  ;;  %v1206_v15 = vld [vmem:[#allocation2 + $0x10] sm:$0xff] }
  0xf4   : > { %664 = vst.msk [vmem:[#allocation2 + $0x20] sm:$0xff] %vm520_vm2, %v661_v29  ;;  %v662_v32 = vmul.f32 0.35355338, %v658_v30  ;;  %v2591_v29 = vpop.f32.mrb[5].mxu1  ;;  %v2414_v30 = vld [vmem:[%s3466_s3 + $0x3] ss:$0 sm:$0xff] }
  0xf5   : > { %v901_v42 = vld [vmem:[#allocation2 + $0x8] sm:$0x3]  ;;  %v1207_v16 = vld [vmem:[#allocation2 + $0x18] sm:$0x3]  ;;  %v728_v31 = vpop.f32.mrb[6].mxu1 }
  0xf6   : > { %665 = vst.msk [vmem:[#allocation2 + $0x28] sm:$0x3] %vm522_vm3, %v662_v32  ;;  %v902_v45 = vpack.c.bf16 %v901_v42, %v900_v43  ;;  %v1208_v18 = vpack.c.bf16 %v1207_v16, %v1206_v15  ;;  %v2422_v32 = vld [vmem:[%s3470_s7] ss:$0 sm:$0xff] }
  0xf7   : > { %v827_v34 = vpop.f32.mrb[8].mxu0 }
  0xf8   : > { %v2599_v35 = vpop.f32.mrb[9].mxu0  ;;  %v828_v37 = vadd.f32 %v2418_v33, %v827_v34  ;;  %v729_v34 = vadd.f32 %v2414_v30, %v728_v31 }
  0xf9   : > { %v830_v36 = vpop.f32.mrb[10].mxu0  ;;  %v2592_v35 = vpop.f32.mrb[7].mxu1 }
  0xfa   : > { %v831_v38 = vadd.f32 %v2418_v33, %v830_v36  ;;  %v2600_v39 = vpop.f32.mrb[11].mxu0  ;;  %v726_v33 = vadd.f32 %v2414_v30, %v725_v28  ;;  %v892_v36 = vpop.f32.mrb[8].mxu1  ;;  %v2473_v35 = vld [vmem:[%s3468_s5 + $0x3] ss:$0 sm:$0xff] }
  0xfb   : > { %v893_v39 = vadd.f32 %v2422_v32, %v892_v36 }
  0xfc   : > { %v834_v40 = vpack.c.bf16 %v831_v38, %v828_v37  ;;  %v732_v37 = vmul.f32 0.35355338, %v726_v33  ;;  %v733_v38 = vmul.f32 0.35355338, %v729_v34 }
  0xfe   : > { %v908_v41 = vsel %vm520_vm2, %v834_v40, 0  ;;  %v2607_v40 = vpop.f32.mrb[9].mxu1  ;;  %735 = vst.msk [vmem:[#allocation2 + $0x30] sm:$0xff] %vm520_vm2, %v732_v37 }
  0xff   : > { %2610 = vmatpush3.bf16.xpose.msra.mxu0 %v908_v41  ;;  %v895_v41 = vpop.f32.mrb[10].mxu1  ;;  %736 = vst.msk [vmem:[#allocation2 + $0x38] sm:$0x3] %vm522_vm3, %v733_v38 }
 0x100   : > { %2621 = vmatprep.subr.bf16.mxu0 %v2855_v1  ;;  %v896_v42 = vadd.f32 %v2422_v32, %v895_v41  ;;  %v2608_v43 = vpop.f32.mrb[11].mxu1 }
 0x106   : > { %2612 = vmatmul.mubr.msk.bf16.vlgmr.msra.gmra.mrb[12].mxu0 %vm520_vm2, %v902_v45 }
 0x107   : > { %2622 = vmatpush3.bf16.msra.mxu0 %v2767_v44  ;;  %2625 = vmatprep.mubr.msk.bf16.mxu0 %vm2856_vm0, %v2855_v1  ;;  %v899_v44 = vpack.c.bf16 %v896_v42, %v893_v39 }
 0x108   : > { %2623 = vmatprep.subr.bf16.mxu0 %v2855_v1 }
 0x109   : > { %v1021_v45 = vsel %vm1019_vm8, %v899_v44, 0  ;;  %v1810_v44 = vld [vmem:[#allocation2 + $0x30] sm:$0xff] }
 0x10a   : > { %2616 = vmatpush3.bf16.msra.mxu1 %v1021_v45  ;;  %v1811_v45 = vld [vmem:[#allocation2 + $0x38] sm:$0x3] }
 0x10b   : > { %2624 = vmatpush3.bf16.msra.mxu0 %v2768_v46  ;;  %2629 = vmatprep.subr.bf16.mxu1 %v2855_v1 }
 0x10c   : > { %2637 = vmatprep.subr.bf16.mxu0 %v2855_v1 }
 0x10e   : > { %2626 = vmatmul.mubr.msk.bf16.vlgmr.msra.gmra.mrb[16].mxu0 %vm473_vm1, %v2981_v12 }
 0x10f   : > { %2639 = vmatprep.mubr.msk.bf16.mxu0 %vm2856_vm0, %v2855_v1 }
 0x1d9   : > { %v3087_v61 = vpop.f32.mrb[12].mxu0 }
 0x1da   : > { %v2613_v62 = vpop.f32.mrb[13].mxu0  ;;  %v954_v63 = vsel %vm953_vm5, %v3087_v61, -inf }
 0x1db   : > { %955 = vmax.xlane.f32.xlu0 %v954_v63  ;;  %v3091_v0 = vpop.f32.mrb[14].mxu0  ;;  %v1509_v62 = vld [vmem:[#allocation2 + $0x28] sm:$0x3]  ;;  %v1508_v63 = vld [vmem:[#allocation2 + $0x20] sm:$0xff] }
 0x1dc   : > { %v2614_v2 = vpop.f32.mrb[15].mxu0  ;;  %v958_v3 = vsel %vm957_vm6, %v3091_v0, -inf }
 0x1dd   : > { %v2775_v2 = vld [vmem:[%s3467_s4 + $0x30] sm:$0xff]  }
 0x1df   : > { %959 = vmax.xlane.f32.xlu0 %v958_v3  ;;  %v1510_v3 = vpack.c.bf16 %v1509_v62, %v1508_v63 }
 0x1e1   : > { %v1130_v5 = vpop.f32.mrb[16].mxu0 }
 0x1e2   : > { %v2627_v6 = vpop.f32.mrb[17].mxu0  ;;  %v1131_v8 = vadd.f32 %v2433_v4, %v1130_v5 }
 0x1e3   : > { %v1133_v7 = vpop.f32.mrb[18].mxu0 }
 0x1e4   : > { %v1134_v9 = vadd.f32 %v2433_v4, %v1133_v7  ;;  %v2628_v10 = vpop.f32.mrb[19].mxu0  ;;  %v2776_v4 = vld [vmem:[%s3467_s4 + $0x38] sm:$0xff]  }
 0x1e6   : > { %v1137_v11 = vpack.c.bf16 %v1134_v9, %v1131_v8 }
 0x1e8   : > { %v1213_v13 = vsel %vm520_vm2, %v1137_v11, 0 }
 0x1e9   : > { %2638 = vmatpush3.bf16.xpose.msra.mxu0 %v1213_v13 }
 0x1ea   : > { %2649 = vmatprep.subr.bf16.mxu0 %v2855_v1 }
 0x1f0   : > { %2640 = vmatmul.mubr.msk.bf16.vlgmr.msra.gmra.mrb[20].mxu0 %vm520_vm2, %v1208_v18 }
 0x1f1   : > { %2650 = vmatpush3.bf16.msra.mxu0 %v2769_v17  ;;  %2653 = vmatprep.mubr.msk.bf16.mxu0 %vm2856_vm0, %v2855_v1  ;;  %v3210_v17 = vld [vmem:[#allocation3 + $0x18] sm:$0x3] }
 0x1f2   : > { %2651 = vmatprep.subr.bf16.mxu0 %v2855_v1 }
 0x1f5   : > { %2652 = vmatpush3.bf16.msra.mxu0 %v2770_v19 }
 0x1f6   : > { %2665 = vmatprep.subr.bf16.mxu0 %v2855_v1 }
 0x1f8   : > { %2654 = vmatmul.mubr.msk.bf16.vlgmr.msra.gmra.mrb[24].mxu0 %vm473_vm1, %v2981_v12 }
 0x1f9   : > { %2667 = vmatprep.mubr.msk.bf16.mxu0 %vm2856_vm0, %v2855_v1 }
 0x268   : > { %v956_v21 = vpop.xlane.xlu0 %955 }
 0x269   : > { %v3130_v22 = vmax.f32 %v3127_v20, %v956_v21 }
 0x26b   : > { %v963_v24 = vsub.f32 %v3127_v20, %v3130_v22  ;;  %1069 = vst.msk [vmem:[#allocation3] sm:$0xff] %vm737_vm4, %v3130_v22  ;;  %971 = vperm.xlu1 %2757, %v3130_v22  }
 0x26c   : > { %v960_v25 = vpop.xlane.xlu0 %959 }
 0x26d   : > { %v3140_v26 = vmax.f32 %v3132_v23, %v960_v25 }
 0x26f   : > { %v964_v27 = vsub.f32 %v3132_v23, %v3140_v26  ;;  %1070 = vst.msk [vmem:[#allocation3 + $0x8] sm:$0x3] %vm739_vm7, %v3140_v26  ;;  %976 = vperm.xlu1 %2757, %v3140_v26   ;;  %v1290_v26 = vld [vmem:[#allocation4 + $0x10] sm:$0xff] }
 0x2c3   : > { %v3157_v46 = vpop.f32.mrb[20].mxu0 }
 0x2c4   : > { %v2641_v47 = vpop.f32.mrb[21].mxu0  ;;  %v1259_v48 = vsel %vm953_vm5, %v3157_v46, -inf }
 0x2c5   : > { %1260 = vmax.xlane.f32.xlu0 %v1259_v48  ;;  %v3161_v49 = vpop.f32.mrb[22].mxu0  ;;  %v1812_v47 = vpack.c.bf16 %v1811_v45, %v1810_v44 }
 0x2c6   : > { %v2642_v50 = vpop.f32.mrb[23].mxu0  ;;  %v1262_v51 = vsel %vm957_vm6, %v3161_v49, -inf }
 0x2c7   : > { %1263 = vmax.xlane.f32.xlu1 %v1262_v51 }
 0x2cb   : > { %v1432_v53 = vpop.f32.mrb[24].mxu0 }
 0x2cc   : > { %v2655_v54 = vpop.f32.mrb[25].mxu0  ;;  %v1433_v56 = vadd.f32 %v2453_v52, %v1432_v53 }
 0x2cd   : > { %v1435_v55 = vpop.f32.mrb[26].mxu0 }
 0x2ce   : > { %v1436_v57 = vadd.f32 %v2453_v52, %v1435_v55  ;;  %v2656_v58 = vpop.f32.mrb[27].mxu0 }
 0x2d0   : > { %v1439_v59 = vpack.c.bf16 %v1436_v57, %v1433_v56 }
 0x2d2   : > { %v1515_v60 = vsel %vm520_vm2, %v1439_v59, 0  ;;  %v2442_v59 = vld [vmem:[%s3470_s7 + $0x1] ss:$0 sm:$0xff] }
 0x2d3   : > { %2666 = vmatpush3.bf16.xpose.msra.mxu0 %v1515_v60 }
 0x2d4   : > { %2677 = vmatprep.subr.bf16.mxu0 %v2855_v1 }
 0x2da   : > { %2668 = vmatmul.mubr.msk.bf16.vlgmr.msra.gmra.mrb[28].mxu0 %vm520_vm2, %v1510_v3 }
 0x2db   : > { %2678 = vmatpush3.bf16.msra.mxu0 %v2775_v2  ;;  %2681 = vmatprep.mubr.msk.bf16.mxu0 %vm2856_vm0, %v2855_v1 }
 0x2dc   : > { %2679 = vmatprep.subr.bf16.mxu0 %v2855_v1 }
 0x2df   : > { %2680 = vmatpush3.bf16.msra.mxu0 %v2776_v4 }
 0x2e0   : > { %2693 = vmatprep.subr.bf16.mxu0 %v2855_v1 }
 0x2e2   : > { %2682 = vmatmul.mubr.msk.bf16.vlgmr.msra.gmra.mrb[32].mxu0 %vm473_vm1, %v2981_v12 }
 0x2e3   : > { %2695 = vmatprep.mubr.msk.bf16.mxu0 %vm2856_vm0, %v2855_v1 }
 0x2ea   : > { %v972_v5 = vpop.permute.xlu1 %971 }
 0x2eb   : > { %v979_v6 = vsub.f32 %v3087_v61, %v972_v5  ;;  %v2778_v61 = vld [vmem:[%s3469_s6 + $0x18] sm:$0xff]  }
 0x2ed   : > { %v981_v7 = vmul.f32 1.442695, %v979_v6 }
 0x2ee   : > { %v977_v8 = vpop.permute.xlu1 %976 }
 0x2ef   : > { %v980_v9 = vsub.f32 %v3091_v0, %v977_v8  ;;  %2783 = vpow2.f32 %v981_v7  ;;  %v3208_v0 = vld [vmem:[#allocation3 + $0x10] sm:$0xff]  ;;  %v2779_v7 = vld [vmem:[%s3469_s6 + $0x20] sm:$0xff]  }
 0x2f1   : > { %v983_v10 = vmul.f32 1.442695, %v980_v9  ;;  %v2780_v9 = vld [vmem:[%s3469_s6 + $0x28] sm:$0xff]  }
 0x2f3   : > { %2785 = vpow2.f32 %v983_v10  ;;  %v3276_v10 = vld [vmem:[#allocation3 + $0x20] sm:$0xff] }
 0x2f9   : > { %v3187_v11 = vpop.eup %2783 }
 0x2fd   : > { %v3189_v13 = vpop.eup %2785 }
 0x2fe   : > { %v1015_v15 = vpack.c.bf16 %v3189_v13, %v3187_v11 }
 0x300   : > { %2618 = vmatmul.mubr.msk.bf16.vlgmr.msra.gmra.mrb[12].mxu1 %vm953_vm5, %v1015_v15  ;;  %v3278_v15 = vld [vmem:[#allocation3 + $0x28] sm:$0x3] }
 0x301   : > { %2630 = vmatpush3.bf16.msra.mxu1 %v2777_v14  ;;  %2633 = vmatprep.mubr.msk.bf16.mxu1 %vm2856_vm0, %v2855_v1 }
 0x302   : > { %2631 = vmatprep.subr.bf16.mxu1 %v2855_v1 }
 0x305   : > { %2632 = vmatpush3.bf16.msra.mxu1 %v2778_v61 }
 0x306   : > { %2643 = vmatprep.subr.bf16.mxu1 %v2855_v1 }
 0x308   : > { %2634 = vmatmul.mubr.msk.bf16.vlgmr.msra.gmra.mrb[16].mxu1 %vm473_vm1, %v2981_v12 }
 0x309   : > { %2645 = vmatprep.mubr.msk.bf16.mxu1 %vm2856_vm0, %v2855_v1 }
 0x352   : > { %v1261_v16 = vpop.xlane.xlu0 %1260 }
 0x353   : > { %v3213_v18 = vmax.f32 %v3208_v0, %v1261_v16 }
 0x354   : > { %v1264_v19 = vpop.xlane.xlu1 %1263 }
 0x355   : > { %v1267_v21 = vsub.f32 %v3208_v0, %v3213_v18  ;;  %1371 = vst.msk [vmem:[#allocation3 + $0x10] sm:$0xff] %vm737_vm4, %v3213_v18  ;;  %v3220_v25 = vmax.f32 %v3210_v17, %v1264_v19  ;;  %1275 = vperm.xlu0 %2758, %v3213_v18  }
 0x357   : > { %v1268_v28 = vsub.f32 %v3210_v17, %v3220_v25  ;;  %1372 = vst.msk [vmem:[#allocation3 + $0x18] sm:$0x3] %vm739_vm7, %v3220_v25  ;;  %1280 = vperm.xlu1 %2757, %v3220_v25  }
 0x3ad   : > { %v3228_v29 = vpop.f32.mrb[28].mxu0 }
 0x3ae   : > { %v2669_v30 = vpop.f32.mrb[29].mxu0  ;;  %v1561_v31 = vsel %vm953_vm5, %v3228_v29, -inf }
 0x3af   : > { %1562 = vmax.xlane.f32.xlu0 %v1561_v31  ;;  %v3232_v32 = vpop.f32.mrb[30].mxu0 }
 0x3b0   : > { %v2670_v33 = vpop.f32.mrb[31].mxu0  ;;  %v1564_v34 = vsel %vm957_vm6, %v3232_v32, -inf }
 0x3b1   : > { %1565 = vmax.xlane.f32.xlu1 %v1564_v34 }
 0x3b5   : > { %v1734_v36 = vpop.f32.mrb[32].mxu0 }
 0x3b6   : > { %v2683_v37 = vpop.f32.mrb[33].mxu0  ;;  %v1735_v39 = vadd.f32 %v2473_v35, %v1734_v36 }
 0x3b7   : > { %v1737_v38 = vpop.f32.mrb[34].mxu0 }
 0x3b8   : > { %v1738_v40 = vadd.f32 %v2473_v35, %v1737_v38  ;;  %v2684_v41 = vpop.f32.mrb[35].mxu0 }
 0x3ba   : > { %v1741_v42 = vpack.c.bf16 %v1738_v40, %v1735_v39 }
 0x3bc   : > { %v1817_v43 = vsel %vm520_vm2, %v1741_v42, 0 }
 0x3bd   : > { %2694 = vmatpush3.bf16.xpose.msra.mxu0 %v1817_v43 }
 0x3be   : > { %2705 = vmatprep.subr.bf16.mxu0 %v2855_v1 }
 0x3c4   : > { %2696 = vmatmul.mubr.msk.bf16.vlgmr.msra.gmra.mrb[36].mxu0 %vm520_vm2, %v1812_v47 }
 0x3c5   : > { %2707 = vmatprep.mubr.msk.bf16.mxu0 %vm2856_vm0, %v2855_v1 }
 0x3d3   : > { %v3244_v48 = vpop.f32.mrb[12].mxu1 }
 0x3d4   : > { %v2619_v50 = vpop.f32.mrb[13].mxu1  ;;  %v1276_v51 = vpop.permute.xlu0 %1275 }
 0x3d5   : > { %v1283_v52 = vsub.f32 %v3157_v46, %v1276_v51  ;;  %v3247_v53 = vpop.f32.mrb[14].mxu1  ;;  %v2462_v51 = vld [vmem:[%s3470_s7 + $0x2] ss:$0 sm:$0xff] }
 0x3d6   : > { %v2620_v54 = vpop.f32.mrb[15].mxu1  ;;  %v1281_v55 = vpop.permute.xlu1 %1280 }
 0x3d7   : > { %v1285_v56 = vmul.f32 1.442695, %v1283_v52  ;;  %v1284_v57 = vsub.f32 %v3161_v49, %v1281_v55 }
 0x3d9   : > { %v1287_v58 = vmul.f32 1.442695, %v1284_v57  ;;  %2787 = vpow2.f32 %v1285_v56 }
 0x3db   : > { %2789 = vpow2.f32 %v1287_v58  ;;  %v1197_v60 = vpop.f32.mrb[16].mxu1 }
 0x3dc   : > { %v1198_v62 = vadd.f32 %v2442_v59, %v1197_v60  ;;  %v2635_v63 = vpop.f32.mrb[17].mxu1 }
 0x3dd   : > { %v1200_v2 = vpop.f32.mrb[18].mxu1  ;;  %v2781_v63 = vld [vmem:[%s3469_s6 + $0x30] sm:$0xff]  }
 0x3de   : > { %v1201_v3 = vadd.f32 %v2442_v59, %v1200_v2  ;;  %v2636_v46 = vpop.f32.mrb[19].mxu1 }
 0x3df   : > { %v3330_v46 = vld [vmem:[#allocation3 + $0x30] sm:$0xff] }
 0x3e0   : > { %v1204_v4 = vpack.c.bf16 %v1201_v3, %v1198_v62  ;;  %v2782_v3 = vld [vmem:[%s3469_s6 + $0x38] sm:$0xff]  }
 0x3e2   : > { %v1324_v5 = vsel %vm1019_vm8, %v1204_v4, 0 }
 0x3e3   : > { %2644 = vmatpush3.bf16.msra.mxu1 %v1324_v5  ;;  %v3254_v6 = vpop.eup %2787  ;;  %v3332_v5 = vld [vmem:[#allocation3 + $0x38] sm:$0x3] }
 0x3e4   : > { %2657 = vmatprep.subr.bf16.mxu1 %v2855_v1 }
 0x3e5   : > { %v3257_v49 = vpop.eup %2789 }
 0x3e6   : > { %v1319_v8 = vpack.c.bf16 %v3257_v49, %v3254_v6 }
 0x3e8   : > { %2646 = vmatmul.mubr.msk.bf16.vlgmr.msra.gmra.mrb[20].mxu1 %vm953_vm5, %v1319_v8 }
 0x3e9   : > { %2658 = vmatpush3.bf16.msra.mxu1 %v2779_v7  ;;  %2661 = vmatprep.mubr.msk.bf16.mxu1 %vm2856_vm0, %v2855_v1 }
 0x3ea   : > { %2659 = vmatprep.subr.bf16.mxu1 %v2855_v1 }
 0x3ed   : > { %2660 = vmatpush3.bf16.msra.mxu1 %v2780_v9 }
 0x3ee   : > { %2671 = vmatprep.subr.bf16.mxu1 %v2855_v1 }
 0x3f0   : > { %2662 = vmatmul.mubr.msk.bf16.vlgmr.msra.gmra.mrb[24].mxu1 %vm473_vm1, %v2981_v12 }
 0x3f1   : > { %2673 = vmatprep.mubr.msk.bf16.mxu1 %vm2856_vm0, %v2855_v1 }
 0x43c   : > { %v1563_v14 = vpop.xlane.xlu0 %1562 }
 0x43d   : > { %v3281_v61 = vmax.f32 %v3276_v10, %v1563_v14 }
 0x43e   : > { %v1566_v16 = vpop.xlane.xlu1 %1565 }
 0x43f   : > { %v1569_v19 = vsub.f32 %v3276_v10, %v3281_v61  ;;  %1673 = vst.msk [vmem:[#allocation3 + $0x20] sm:$0xff] %vm737_vm4, %v3281_v61  ;;  %v3288_v30 = vmax.f32 %v3278_v15, %v1566_v16  ;;  %1577 = vperm.xlu0 %2758, %v3281_v61   ;;  %v1294_v16 = vsel %vm953_vm5, %v3254_v6, 0.0  ;;  %v985_v10 = vld [vmem:[#allocation4] sm:$0xff] }
 0x441   : > { %v1570_v31 = vsub.f32 %v3278_v15, %v3288_v30  ;;  %1674 = vst.msk [vmem:[#allocation3 + $0x28] sm:$0x3] %vm739_vm7, %v3288_v30  ;;  %1582 = vperm.xlu1 %2757, %v3288_v30   ;;  %v1571_v17 = vmul.f32 1.442695, %v1569_v19 }
 0x443   : > { %v1573_v0 = vmul.f32 1.442695, %v1570_v31  ;;  %v1291_v31 = vld [vmem:[#allocation4 + $0x18] sm:$0x3] }
 0x497   : > { %v3296_v33 = vpop.f32.mrb[36].mxu0 }
 0x498   : > { %v2697_v34 = vpop.f32.mrb[37].mxu0  ;;  %v1863_v35 = vsel %vm953_vm5, %v3296_v33, -inf }
 0x499   : > { %1864 = vmax.xlane.f32.xlu0 %v1863_v35  ;;  %v3300_v36 = vpop.f32.mrb[38].mxu0  ;;  %v989_v34 = vsel %vm953_vm5, %v3187_v11, 0.0  ;;  %v1297_v35 = vsel %vm957_vm6, %v3257_v49, 0.0 }
 0x49a   : > { %v2698_v37 = vpop.f32.mrb[39].mxu0  ;;  %v1866_v38 = vsel %vm957_vm6, %v3300_v36, -inf }
 0x49b   : > { %1867 = vmax.xlane.f32.xlu1 %v1866_v38  ;;  %v992_v37 = vsel %vm957_vm6, %v3189_v13, 0.0 }
 0x4bb   : > { %v3304_v39 = vpop.f32.mrb[20].mxu1 }
 0x4bc   : > { %v2647_v40 = vpop.f32.mrb[21].mxu1 }
 0x4bd   : > { %v3306_v41 = vpop.f32.mrb[22].mxu1 }
 0x4be   : > { %v2648_v42 = vpop.f32.mrb[23].mxu1  ;;  %v1578_v43 = vpop.permute.xlu0 %1577 }
 0x4bf   : > { %v1585_v44 = vsub.f32 %v3228_v29, %v1578_v43 }
 0x4c0   : > { %v1583_v45 = vpop.permute.xlu1 %1582 }
 0x4c1   : > { %v1587_v47 = vmul.f32 1.442695, %v1585_v44  ;;  %v1586_v50 = vsub.f32 %v3232_v32, %v1583_v45 }
 0x4c3   : > { %v1589_v52 = vmul.f32 1.442695, %v1586_v50  ;;  %v1499_v54 = vpop.f32.mrb[24].mxu1  ;;  %2791 = vpow2.f32 %v1587_v47  ;;  %v2482_v50 = vld [vmem:[%s3470_s7 + $0x3] ss:$0 sm:$0xff] }
 0x4c4   : > { %v1500_v55 = vadd.f32 %v2462_v51, %v1499_v54  ;;  %v2663_v56 = vpop.f32.mrb[25].mxu1 }
 0x4c5   : > { %2793 = vpow2.f32 %v1589_v52  ;;  %v1502_v57 = vpop.f32.mrb[26].mxu1 }
 0x4c6   : > { %v1503_v58 = vadd.f32 %v2462_v51, %v1502_v57  ;;  %v2664_v59 = vpop.f32.mrb[27].mxu1 }
 0x4c8   : > { %v1506_v60 = vpack.c.bf16 %v1503_v58, %v1500_v55 }
 0x4ca   : > { %v1626_v29 = vsel %vm1019_vm8, %v1506_v60, 0 }
 0x4cb   : > { %2672 = vmatpush3.bf16.msra.mxu1 %v1626_v29 }
 0x4cc   : > { %2685 = vmatprep.subr.bf16.mxu1 %v2855_v1 }
 0x4cd   : > { %v2792_v32 = vpop.eup %2791 }
 0x4ce   : > { %v1596_v40 = vsel %vm953_vm5, %v2792_v32, 0.0 }
 0x4cf   : > { %v2794_v62 = vpop.eup %2793 }
 0x4d0   : > { %v1621_v2 = vpack.c.bf16 %v2794_v62, %v2792_v32  ;;  %v1599_v38 = vsel %vm957_vm6, %v2794_v62, 0.0 }
 0x4d2   : > { %2674 = vmatmul.mubr.msk.bf16.vlgmr.msra.gmra.mrb[28].mxu1 %vm953_vm5, %v1621_v2  ;;  %v1269_v2 = vmul.f32 1.442695, %v1267_v21 }
 0x4d3   : > { %2686 = vmatpush3.bf16.msra.mxu1 %v2781_v63  ;;  %2689 = vmatprep.mubr.msk.bf16.mxu1 %vm2856_vm0, %v2855_v1  ;;  %v1271_v63 = vmul.f32 1.442695, %v1268_v28 }
 0x4d4   : > { %2687 = vmatprep.subr.bf16.mxu1 %v2855_v1 }
 0x4d7   : > { %2688 = vmatpush3.bf16.msra.mxu1 %v2782_v3  ;;  %v965_v3 = vmul.f32 1.442695, %v963_v24 }
 0x4d8   : > { %2699 = vmatprep.subr.bf16.mxu1 %v2855_v1 }
 0x4da   : > { %2690 = vmatmul.mubr.msk.bf16.vlgmr.msra.gmra.mrb[32].mxu1 %vm473_vm1, %v2981_v12 }
 0x4db   : > { %2701 = vmatprep.mubr.msk.bf16.mxu1 %vm2856_vm0, %v2855_v1 }
 0x526   : > { %v1865_v4 = vpop.xlane.xlu0 %1864 }
 0x527   : > { %v3335_v7 = vmax.f32 %v3330_v46, %v1865_v4 }
 0x528   : > { %v1868_v8 = vpop.xlane.xlu1 %1867 }
 0x529   : > { %v1871_v9 = vsub.f32 %v3330_v46, %v3335_v7  ;;  %1975 = vst.msk [vmem:[#allocation3 + $0x30] sm:$0xff] %vm737_vm4, %v3335_v7  ;;  %v3342_v12 = vmax.f32 %v3332_v5, %v1868_v8  ;;  %1879 = vperm.xlu0 %2758, %v3335_v7   ;;  %v967_v46 = vmul.f32 1.442695, %v964_v27 }
 0x52b   : > { %v1872_v14 = vsub.f32 %v3332_v5, %v3342_v12  ;;  %1976 = vst.msk [vmem:[#allocation3 + $0x38] sm:$0x3] %vm739_vm7, %v3342_v12  ;;  %1884 = vperm.xlu1 %2757, %v3342_v12   ;;  %v1873_v18 = vmul.f32 1.442695, %v1871_v9  ;;  %v986_v5 = vld [vmem:[#allocation4 + $0x8] sm:$0x3] }
 0x52d   : > { %v1875_v22 = vmul.f32 1.442695, %v1872_v14 }
 0x548   : > { %1295 = vadd.xlane.f32.xlu0 %v1294_v16  ;;  %v1593_v16 = vld [vmem:[#allocation4 + $0x28] sm:$0x3] }
 0x54c   : > { %990 = vadd.xlane.f32.xlu0 %v989_v34 }
 0x54f   : > { %1298 = vadd.xlane.f32.xlu1 %v1297_v35 }
 0x550   : > { %993 = vadd.xlane.f32.xlu0 %v992_v37  ;;  %v1592_v37 = vld [vmem:[#allocation4 + $0x20] sm:$0xff] }
 0x553   : > { %1600 = vadd.xlane.f32.xlu1 %v1599_v38 }
 0x554   : > { %1597 = vadd.xlane.f32.xlu0 %v1596_v40 }
 0x5a5   : > { %v3360_v6 = vpop.f32.mrb[28].mxu1 }
 0x5a6   : > { %v2675_v42 = vpop.f32.mrb[29].mxu1 }
 0x5a7   : > { %v3362_v43 = vpop.f32.mrb[30].mxu1 }
 0x5a8   : > { %v2676_v11 = vpop.f32.mrb[31].mxu1  ;;  %v1880_v44 = vpop.permute.xlu0 %1879 }
 0x5a9   : > { %v1887_v49 = vsub.f32 %v3296_v33, %v1880_v44 }
 0x5aa   : > { %v1885_v45 = vpop.permute.xlu1 %1884 }
 0x5ab   : > { %v1889_v47 = vmul.f32 1.442695, %v1887_v49  ;;  %v1888_v13 = vsub.f32 %v3300_v36, %v1885_v45 }
 0x5ad   : > { %2795 = vpow2.f32 %v1889_v47  ;;  %v1891_v51 = vmul.f32 1.442695, %v1888_v13  ;;  %v1801_v52 = vpop.f32.mrb[32].mxu1 }
 0x5ae   : > { %v1802_v54 = vadd.f32 %v2482_v50, %v1801_v52  ;;  %v2691_v55 = vpop.f32.mrb[33].mxu1 }
 0x5af   : > { %2797 = vpow2.f32 %v1891_v51  ;;  %v1804_v56 = vpop.f32.mrb[34].mxu1 }
 0x5b0   : > { %v1805_v57 = vadd.f32 %v2482_v50, %v1804_v56  ;;  %v2692_v58 = vpop.f32.mrb[35].mxu1  ;;  %2799 = vpow2.f32 %v1271_v63  ;;  %v1895_v63 = vld [vmem:[#allocation4 + $0x38] sm:$0x3] }
 0x5b1   : > { %2801 = vpow2.f32 %v1269_v2  ;;  %v2488_v58 = vld [vmem:[%s3471_s8 + $0x4] sm:$0xf] }
 0x5b2   : > { %v1808_v59 = vpack.c.bf16 %v1805_v57, %v1802_v54  ;;  %2803 = vpow2.f32 %v965_v3 }
 0x5b3   : > { %2805 = vpow2.f32 %v967_v46 }
 0x5b4   : > { %v1928_v33 = vsel %vm1019_vm8, %v1808_v59, 0  ;;  %2807 = vpow2.f32 %v1571_v17  ;;  %v2026_v59 = vsel %vm2024_vm9, %v2488_v58, 0 }
 0x5b5   : > { %2700 = vmatpush3.bf16.msra.mxu1 %v1928_v33  ;;  %2809 = vpow2.f32 %v1573_v0  ;;  %2706 = vmatpush3.bf16.msra.mxu0 %v2026_v59 }
 0x5b6   : > { %2711 = vmatprep.subr.bf16.mxu1 %v2855_v1  ;;  %2811 = vpow2.f32 %v1873_v18  ;;  %2717 = vmatprep.subr.bf16.mxu0 %v2855_v1 }
 0x5b7   : > { %v2796_v36 = vpop.eup %2795  ;;  %2813 = vpow2.f32 %v1875_v22 }
 0x5b8   : > { %v1898_v60 = vsel %vm953_vm5, %v2796_v36, 0.0 }
 0x5b9   : > { %v2798_v29 = vpop.eup %2797  ;;  %1899 = vadd.xlane.f32.xlu0 %v1898_v60 }
 0x5ba   : > { %v1901_v32 = vsel %vm957_vm6, %v2798_v29, 0.0  ;;  %v1923_v62 = vpack.c.bf16 %v2798_v29, %v2796_v36  ;;  %v2800_v20 = vpop.eup %2799  ;;  %v1999_v36 = vld [vmem:[%s3471_s8] sm:$0xf] }
 0x5bb   : > { %1902 = vadd.xlane.f32.xlu1 %v1901_v32  ;;  %v2802_v23 = vpop.eup %2801  ;;  %v1293_v9 = vmul.f32 %v2800_v20, %v1291_v31  ;;  %v2073_v29 = vsel %vm2024_vm9, %v1999_v36, 0  ;;  %v1607_v31 = vld [vmem:[#allocation5 + $0x20] sm:$0xff] }
 0x5bc   : > { %2702 = vmatmul.mubr.msk.bf16.vlgmr.msra.gmra.mrb[36].mxu1 %vm953_vm5, %v1923_v62  ;;  %v2804_v24 = vpop.eup %2803  ;;  %v1292_v25 = vmul.f32 %v2802_v23, %v1290_v26  ;;  %v1894_v62 = vld [vmem:[#allocation4 + $0x30] sm:$0xff] }
 0x5bd   : > { %2713 = vmatprep.mubr.msk.bf16.mxu1 %vm2856_vm0, %v2855_v1  ;;  %v2806_v27 = vpop.eup %2805  ;;  %v987_v30 = vmul.f32 %v2804_v24, %v985_v10  ;;  %2712 = vmatpush3.bf16.msra.mxu1 %v2073_v29  ;;  %v1002_v10 = vld [vmem:[#allocation5 + $0x8] sm:$0x3] }
 0x5be   : > { %v2808_v21 = vpop.eup %2807  ;;  %v988_v14 = vmul.f32 %v2806_v27, %v986_v5  ;;  %2723 = vmatprep.subr.bf16.mxu1 %v2855_v1 }
 0x5bf   : > { %v2810_v15 = vpop.eup %2809  ;;  %v1594_v44 = vmul.f32 %v2808_v21, %v1592_v37 }
 0x5c0   : > { %v3394_v19 = vpop.eup %2811  ;;  %v1595_v40 = vmul.f32 %v2810_v15, %v1593_v16 }
 0x5c1   : > { %v2814_v7 = vpop.eup %2813  ;;  %v1896_v2 = vmul.f32 %v3394_v19, %v1894_v62  ;;  %v1909_v62 = vld [vmem:[#allocation5 + $0x30] sm:$0xff] }
 0x5c2   : > { %v1897_v17 = vmul.f32 %v2814_v7, %v1895_v63  ;;  %v1910_v63 = vld [vmem:[#allocation5 + $0x38] sm:$0x3] }
 0x5cc   : > { %1314 = vperm.xlu1 %2757, %v2800_v20   ;;  %v1306_v20 = vld [vmem:[#allocation5 + $0x18] sm:$0x3] }
 0x5cf   : > { %1309 = vperm.xlu0 %2758, %v2802_v23   ;;  %v1305_v23 = vld [vmem:[#allocation5 + $0x10] sm:$0xff] }
 0x5d0   : > { %1005 = vperm.xlu1 %2757, %v2804_v24  }
 0x5d3   : > { %1010 = vperm.xlu0 %2758, %v2806_v27   ;;  %v1001_v27 = vld [vmem:[#allocation5] sm:$0xff] }
 0x5d4   : > { %1611 = vperm.xlu1 %2757, %v2808_v21  }
 0x5d5   : > { %v1296_v28 = vpop.xlane.xlu0 %1295 }
 0x5d6   : > { %v1300_v61 = vadd.f32 %v1296_v28, %v1292_v25 }
 0x5d7   : > { %1616 = vperm.xlu0 %2758, %v2810_v15  }
 0x5d8   : > { %1302 = vst.msk [vmem:[#allocation4 + $0x10] sm:$0xff] %vm737_vm4, %v1300_v61  ;;  %1913 = vperm.xlu1 %2757, %v3394_v19  }
 0x5d9   : > { %v991_v4 = vpop.xlane.xlu0 %990 }
 0x5da   : > { %v995_v8 = vadd.f32 %v991_v4, %v987_v30 }
 0x5db   : > { %1918 = vperm.xlu0 %2758, %v2814_v7  }
 0x5dc   : > { %998 = vst.msk [vmem:[#allocation4] sm:$0xff] %vm737_vm4, %v995_v8  ;;  %v1299_v12 = vpop.xlane.xlu1 %1298  ;;  %v1608_v8 = vld [vmem:[#allocation5 + $0x28] sm:$0x3] }
 0x5dd   : > { %v1301_v34 = vadd.f32 %v1299_v12, %v1293_v9  ;;  %v994_v35 = vpop.xlane.xlu0 %993 }
 0x5de   : > { %v996_v38 = vadd.f32 %v994_v35, %v988_v14 }
 0x5df   : > { %1303 = vst.msk [vmem:[#allocation4 + $0x18] sm:$0x3] %vm739_vm7, %v1301_v34  ;;  %v2002_v42 = vld [vmem:[#allocation4 + $0x10] sm:$0xff] }
 0x5e0   : > { %1000 = vst.msk [vmem:[#allocation4 + $0x8] sm:$0x3] %vm739_vm7, %v996_v38  ;;  %v1601_v11 = vpop.xlane.xlu1 %1600  ;;  %2815 = vrcp.f32 %v2002_v42 }
 0x5e1   : > { %v1603_v49 = vadd.f32 %v1601_v11, %v1595_v40  ;;  %v1598_v45 = vpop.xlane.xlu0 %1597 }
 0x5e2   : > { %v1602_v47 = vadd.f32 %v1598_v45, %v1594_v44 }
 0x5e3   : > { %1605 = vst.msk [vmem:[#allocation4 + $0x28] sm:$0x3] %vm739_vm7, %v1603_v49  ;;  %v1982_v13 = vld [vmem:[#allocation4] sm:$0xff] }
 0x5e4   : > { %1604 = vst.msk [vmem:[#allocation4 + $0x20] sm:$0xff] %vm737_vm4, %v1602_v47  ;;  %2817 = vrcp.f32 %v1982_v13 }
 0x5e6   : > { %v2003_v50 = vld [vmem:[#allocation4 + $0x18] sm:$0x3] }
 0x5e7   : > { %2819 = vrcp.f32 %v2003_v50  ;;  %v1983_v51 = vld [vmem:[#allocation4 + $0x8] sm:$0x3] }
 0x5e8   : > { %2821 = vrcp.f32 %v1983_v51 }
 0x5ea   : > { %v2816_v52 = vpop.eup %2815  ;;  %v2119_v55 = vld [vmem:[#allocation4 + $0x28] sm:$0x3] }
 0x5eb   : > { %2008 = vperm.xlu1 %2757, %v2816_v52   ;;  %v2118_v54 = vld [vmem:[#allocation4 + $0x20] sm:$0xff]  ;;  %v2493_v52 = vld [vmem:[%s3471_s8 + $0xc] sm:$0xf] }
 0x5ec   : > { %2823 = vrcp.f32 %v2118_v54  ;;  %v2211_v58 = vsel %vm2024_vm9, %v2493_v52, 0 }
 0x5ed   : > { %2825 = vrcp.f32 %v2119_v55 }
 0x5ee   : > { %v2818_v56 = vpop.eup %2817 }
 0x5ef   : > { %1988 = vperm.xlu1 %2757, %v2818_v56  }
 0x5f1   : > { %v2820_v57 = vpop.eup %2819 }
 0x5f2   : > { %2013 = vperm.xlu0 %2758, %v2820_v57   ;;  %v2822_v33 = vpop.eup %2821 }
 0x5f6   : > { %v2824_v60 = vpop.eup %2823  ;;  %1993 = vperm.xlu0 %2758, %v2822_v33  }
 0x5f7   : > { %2124 = vperm.xlu1 %2757, %v2824_v60   ;;  %v2826_v32 = vpop.eup %2825 }
 0x5fa   : > { %2129 = vperm.xlu0 %2758, %v2826_v32  }
 0x646   : > { %v1900_v3 = vpop.xlane.xlu0 %1899 }
 0x647   : > { %v1904_v46 = vadd.f32 %v1900_v3, %v1896_v2 }
 0x648   : > { %v1903_v0 = vpop.xlane.xlu1 %1902 }
 0x649   : > { %1906 = vst.msk [vmem:[#allocation4 + $0x30] sm:$0xff] %vm737_vm4, %v1904_v46  ;;  %v1905_v18 = vadd.f32 %v1903_v0, %v1897_v17 }
 0x64b   : > { %1907 = vst.msk [vmem:[#allocation4 + $0x38] sm:$0x3] %vm739_vm7, %v1905_v18 }
 0x64c   : > { %v1315_v22 = vpop.permute.xlu1 %1314 }
 0x64d   : > { %v1318_v24 = vmul.f32 %v1315_v22, %v1306_v20 }
 0x64e   : > { %v1310_v26 = vpop.permute.xlu0 %1309 }
 0x64f   : > { %v1368_v21 = vadd.f32 %v3306_v41, %v1318_v24  ;;  %v1317_v25 = vmul.f32 %v1310_v26, %v1305_v23 }
 0x650   : > { %v1006_v28 = vpop.permute.xlu1 %1005  ;;  %v2188_v15 = vld [vmem:[#allocation4 + $0x30] sm:$0xff] }
 0x651   : > { %1370 = vst.msk [vmem:[#allocation5 + $0x18] sm:$0x3] %vm522_vm3, %v1368_v21  ;;  %v1367_v61 = vadd.f32 %v3304_v39, %v1317_v25  ;;  %v1013_v19 = vmul.f32 %v1006_v28, %v1001_v27  ;;  %2827 = vrcp.f32 %v2188_v15 }
 0x652   : > { %v1011_v30 = vpop.permute.xlu0 %1010  ;;  %v2189_v4 = vld [vmem:[#allocation4 + $0x38] sm:$0x3] }
 0x653   : > { %1369 = vst.msk [vmem:[#allocation5 + $0x10] sm:$0xff] %vm520_vm2, %v1367_v61  ;;  %v1064_v5 = vadd.f32 %v3244_v48, %v1013_v19  ;;  %v1014_v7 = vmul.f32 %v1011_v30, %v1002_v10  ;;  %2829 = vrcp.f32 %v2189_v4 }
 0x654   : > { %v1612_v41 = vpop.permute.xlu1 %1611 }
 0x655   : > { %1066 = vst.msk [vmem:[#allocation5] sm:$0xff] %vm520_vm2, %v1064_v5  ;;  %v1065_v9 = vadd.f32 %v3247_v53, %v1014_v7  ;;  %v1619_v12 = vmul.f32 %v1612_v41, %v1607_v31 }
 0x656   : > { %v1617_v14 = vpop.permute.xlu0 %1616 }
 0x657   : > { %1068 = vst.msk [vmem:[#allocation5 + $0x8] sm:$0x3] %vm522_vm3, %v1065_v9  ;;  %v1669_v39 = vadd.f32 %v3360_v6, %v1619_v12  ;;  %v1620_v16 = vmul.f32 %v1617_v14, %v1608_v8  ;;  %v2491_v6 = vld [vmem:[%s3471_s8 + $0x8] sm:$0xf] }
 0x658   : > { %v1914_v37 = vpop.permute.xlu1 %1913  ;;  %v2001_v42 = vld [vmem:[#allocation5 + $0x18] sm:$0x3]  ;;  %v2141_v47 = vsel %vm2024_vm9, %v2491_v6, 0 }
 0x659   : > { %1671 = vst.msk [vmem:[#allocation5 + $0x20] sm:$0xff] %vm520_vm2, %v1669_v39  ;;  %v1670_v34 = vadd.f32 %v3362_v43, %v1620_v16  ;;  %v1921_v2 = vmul.f32 %v1914_v37, %v1909_v62 }
 0x65a   : > { %v1919_v38 = vpop.permute.xlu0 %1918  ;;  %v2000_v40 = vld [vmem:[#allocation5 + $0x10] sm:$0xff] }
 0x65b   : > { %v2828_v48 = vpop.eup %2827  ;;  %1672 = vst.msk [vmem:[#allocation5 + $0x28] sm:$0x3] %vm522_vm3, %v1670_v34  ;;  %v1922_v46 = vmul.f32 %v1919_v38, %v1910_v63  ;;  %v2495_v34 = vld [vmem:[%s3472_s9] ss:$0 sm:$0xff] }
 0x65c   : > { %2194 = vperm.xlu1 %2757, %v2828_v48   ;;  %v1980_v13 = vld [vmem:[#allocation5] sm:$0xff] }
 0x65d   : > { %v2830_v35 = vpop.eup %2829 }
 0x65e   : > { %2199 = vperm.xlu0 %2758, %v2830_v35   ;;  %v1981_v50 = vld [vmem:[#allocation5 + $0x8] sm:$0x3] }
 0x660   : > { %v2116_v59 = vld [vmem:[#allocation5 + $0x20] sm:$0xff] }
 0x662   : > { %v2117_v33 = vld [vmem:[#allocation5 + $0x28] sm:$0x3] }
 0x66a   : > { %v2009_v53 = vpop.permute.xlu1 %2008 }
 0x66b   : > { %v2016_v44 = vmul.f32 %v2009_v53, %v2000_v40 }
 0x66e   : > { %v1989_v45 = vpop.permute.xlu1 %1988 }
 0x66f   : > { %v1996_v54 = vmul.f32 %v1989_v45, %v1980_v13 }
 0x671   : > { %v2014_v11 = vpop.permute.xlu0 %2013 }
 0x672   : > { %v2017_v49 = vmul.f32 %v2014_v11, %v2001_v42 }
 0x674   : > { %v2018_v43 = vpack.c.bf16 %v2017_v49, %v2016_v44 }
 0x675   : > { %v1994_v51 = vpop.permute.xlu0 %1993 }
 0x676   : > { %v1997_v55 = vmul.f32 %v1994_v51, %v1981_v50  ;;  %2708 = vmatmul.mubr.msk.bf16.vlgmr.msra.gmra.mrb[40].mxu0 %vm520_vm2, %v2018_v43  ;;  %v2125_v56 = vpop.permute.xlu1 %2124 }
 0x677   : > { %2718 = vmatpush3.bf16.msra.mxu0 %v2141_v47  ;;  %2719 = vmatprep.mubr.msk.bf16.mxu0 %vm2856_vm0, %v2855_v1  ;;  %v2132_v60 = vmul.f32 %v2125_v56, %v2116_v59 }
 0x678   : > { %v1998_v57 = vpack.c.bf16 %v1997_v55, %v1996_v54 }
 0x679   : > { %v2130_v36 = vpop.permute.xlu0 %2129 }
 0x67a   : > { %v2133_v29 = vmul.f32 %v2130_v36, %v2117_v33  ;;  %2714 = vmatmul.mubr.msk.bf16.vlgmr.msra.gmra.mrb[40].mxu1 %vm520_vm2, %v1998_v57 }
 0x67b   : > { %2724 = vmatpush3.bf16.msra.mxu1 %v2211_v58  ;;  %2725 = vmatprep.mubr.msk.bf16.mxu1 %vm2856_vm0, %v2855_v1 }
 0x67c   : > { %v2134_v32 = vpack.c.bf16 %v2133_v29, %v2132_v60 }
 0x67e   : > { %2720 = vmatmul.mubr.msk.bf16.vlgmr.msra.gmra.mrb[44].mxu0 %vm520_vm2, %v2134_v32 }
 0x68f   : > { %v1964_v3 = vpop.f32.mrb[36].mxu1 }
 0x690   : > { %v1971_v17 = vadd.f32 %v1964_v3, %v1921_v2  ;;  %v2703_v0 = vpop.f32.mrb[37].mxu1 }
 0x691   : > { %v1967_v18 = vpop.f32.mrb[38].mxu1 }
 0x692   : > { %1973 = vst.msk [vmem:[#allocation5 + $0x30] sm:$0xff] %vm520_vm2, %v1971_v17  ;;  %v1972_v20 = vadd.f32 %v1967_v18, %v1922_v46  ;;  %v2704_v22 = vpop.f32.mrb[39].mxu1 }
 0x694   : > { %1974 = vst.msk [vmem:[#allocation5 + $0x38] sm:$0x3] %vm522_vm3, %v1972_v20 }
 0x699   : > { %v2186_v24 = vld [vmem:[#allocation5 + $0x30] sm:$0xff] }
 0x69b   : > { %v2187_v1 = vld [vmem:[#allocation5 + $0x38] sm:$0x3] }
 0x6db   : > { %v2195_v23 = vpop.permute.xlu1 %2194 }
 0x6dc   : > { %v2202_v27 = vmul.f32 %v2195_v23, %v2186_v24 }
 0x6dd   : > { %v2200_v26 = vpop.permute.xlu0 %2199 }
 0x6de   : > { %v2203_v21 = vmul.f32 %v2200_v26, %v2187_v1 }
 0x6e0   : > { %v2204_v25 = vpack.c.bf16 %v2203_v21, %v2202_v27 }
 0x6e2   : > { %2726 = vmatmul.mubr.msk.bf16.vlgmr.msra.gmra.mrb[44].mxu1 %vm520_vm2, %v2204_v25 }
 0x749   : > { %v2062_v28 = vpop.f32.mrb[40].mxu0 }
 0x74a   : > { %v2709_v10 = vpop.f32.mrb[41].mxu0 }
 0x74b   : > { %v2065_v15 = vpop.f32.mrb[42].mxu0 }
 0x74c   : > { %v2710_v61 = vpop.f32.mrb[43].mxu0 }
 0x74d   : > { %v2109_v19 = vpop.f32.mrb[40].mxu1 }
 0x74e   : > { %v2110_v30 = vadd.f32 %v2109_v19, %v2062_v28  ;;  %v2715_v31 = vpop.f32.mrb[41].mxu1 }
 0x74f   : > { %v2112_v4 = vpop.f32.mrb[42].mxu1 }
 0x750   : > { %v2113_v5 = vadd.f32 %v2112_v4, %v2065_v15  ;;  %v2716_v7 = vpop.f32.mrb[43].mxu1 }
 0x751   : > { %v2177_v41 = vpop.f32.mrb[44].mxu0 }
 0x752   : > { %v2184_v8 = vadd.f32 %v2177_v41, %v2110_v30  ;;  %v2721_v9 = vpop.f32.mrb[45].mxu0 }
 0x753   : > { %v2180_v12 = vpop.f32.mrb[46].mxu0 }
 0x754   : > { %v2185_v14 = vadd.f32 %v2180_v12, %v2113_v5  ;;  %v2722_v39 = vpop.f32.mrb[47].mxu0 }
 0x7b5   : > { %v2247_v16 = vpop.f32.mrb[44].mxu1 }
 0x7b6   : > { %v2254_v48 = vadd.f32 %v2247_v16, %v2184_v8  ;;  %v2727_v35 = vpop.f32.mrb[45].mxu1 }
 0x7b7   : > { %v2250_v37 = vpop.f32.mrb[46].mxu1 }
 0x7b8   : > { %v2263_v38 = vadd.f32 %v2495_v34, %v2254_v48  ;;  %v2255_v53 = vadd.f32 %v2250_v37, %v2185_v14  ;;  %v2728_v40 = vpop.f32.mrb[47].mxu1 }
 0x7ba   : > { %2265 = vst.msk [vmem:[%s440_s28] sm:$0xff] %vm473_vm1, %v2263_v38  ;;  %v2264_v42 = vadd.f32 %v2495_v34, %v2255_v53 }
 0x7bc   : > { %2267 = vst.msk [vmem:[%s440_s28 + $0x8] sm:$0x3] %vm2266_vm10, %v2264_v42 }
 0x7bd PF: > { %s20_s15 = sadd.s32 1, %s2853_s15   ;;  %s3474_s13 = smov %s2849_s14 }
 0x7be   : > { %p17_p5 = scmp.ge.s32.totalorder %s20_s15, 4   ;;  %s3475_s14 = smov %s3477_s16 }
 0x7c0   :  { %19 = sbr.rel (!%p17_p5) target bundleno = 2 (0x2), region = 137 }

// kernel: _lambda_.29
= control target key start
LH: loop header
LB: loop body
LE: loop exit
PB: predicated region body
PF: predicated region fallthrough
CT: control target
= control target key end

     0   :  { %s2708_s17 = smov 0   ;;  %s2710_s18 = smov 0   ;;  %s3127_s0 = inlined_call_operand.vmem [shape: f32[2,8,32], index: 0, kind: input, shape index: {}, may-alias: {0,1}]   ;;  %s3128_s1 = inlined_call_operand.vmem [shape: f32[2,8,32], index: 1, kind: input, shape index: {}, may-alias: {0,1}]   ;;  %s3129_s2 = inlined_call_operand.vmem [shape: f32[2,1,8], index: 2, kind: input, shape index: {}]   ;;  %s3130_s3 = inlined_call_operand.vmem [shape: bf16[4,32,8], index: 3, kind: input, shape index: {}]   ;;  %s3131_s4 = inlined_call_operand.vmem [shape: f32[4,1,8], index: 4, kind: input, shape index: {}]   ;;  %s3132_s5 = inlined_call_operand.vmem [shape: bf16[4,32,8], index: 5, kind: input, shape index: {}]   ;;  %s3133_s6 = inlined_call_operand.vmem [shape: f32[4,1,8], index: 6, kind: input, shape index: {}]   ;;  %s3134_s7 = inlined_call_operand.vmem [shape: bf16[4,32,8], index: 7, kind: input, shape index: {}]   ;;  %s3135_s8 = inlined_call_operand.vmem [shape: f32[4,1,8], index: 8, kind: input, shape index: {}]   ;;  %s3136_s9 = inlined_call_operand.vmem [shape: bf16[4,8,32], index: 9, kind: input, shape index: {}]   ;;  %s3137_s10 = inlined_call_operand.vmem [shape: f32[1,32], index: 10, kind: input, shape index: {}]   ;;  %s3138_s11 = inlined_call_operand.vmem [shape: f32[2,8,32], index: 11, kind: output, shape index: {}]  }
   0x1   :  { %s2712_s19 = smov 0  }
   0x2 LB: > { %s40_s20 = sadd.s32 1, %s2638_s18  ;;  %p2199_p0 = scmp.ge.s32.totalorder %s2642_s19, 1  ;;  %s2642_s19 = sphi %s2712_s19, %s21_s19   ;;  %s2638_s18 = sphi %s2710_s18, %s3140_s18   ;;  %s2634_s17 = sphi %s2708_s17, %s3139_s17  }
   0x3   : > { %p42_p1 = scmp.ge.s32.totalorder %s40_s20, 2  ;;  %p389_p2 = scmp.lt.s32.totalorder %s2642_s19, 3 }
   0x5   : > { %s3142_s20 = smov (%p42_p1, %s40_s20), 0  ;;  %p390_p3 = pnand %p2199_p0, %p389_p2 }
   0x6   : > { %v2572_v0 = vld [vmem:[%s3130_s3] sm:$0xff] (!%p390_p3)   ;;  %v2644_v1 = vmov (!%p390_p3), 0.0   ;;  %v2573_v2 = vld [vmem:[%s3130_s3 + $0x8] sm:$0xff] (!%p390_p3)   ;;  %vm2645_vm0 = vmmov (!%p390_p3), 0   ;;  %p446_p4 = scmp.lt.s32.totalorder (!%p390_p3), %s2634_s17, 1  ;;  %vm503_vm1 = vcmask (!%p390_p3), 261120   ;;  %v773_v51 = vlaneseq (!%p390_p3) }
   0x7   : > { %393 = sbr.rel (%p390_p3) target bundleno = 1971 (0x7b3), region = 64  ;;  %2374 = vmatprep.subr.bf16.mxu0 (!%p390_p3), %v2644_v1  ;;  %2382 = vmatprep.subr.bf16.mxu1 (!%p390_p3), %v2644_v1  ;;  %v2574_v4 = vld [vmem:[%s3130_s3 + $0x20] sm:$0xff] (!%p390_p3)   ;;  %v2575_v6 = vld [vmem:[%s3130_s3 + $0x28] sm:$0xff] (!%p390_p3)   ;;  %vm548_vm2 = vcmask (!%p390_p3), 64512   ;;  %v2578_v11 = vld [vmem:[%s3130_s3 + $0x10] sm:$0xff] (!%p390_p3)   ;;  %vm754_vm3 = vcmask (!%p390_p3), 7168  }
   0x8   : > { %2375 = vmatpush3.bf16.msra.mxu0 (!%p390_p3), %v2572_v0  ;;  %2378 = vmatprep.mubr.msk.bf16.mxu0 (!%p390_p3), %vm2645_vm0, %v2644_v1  ;;  %v2576_v7 = vld [vmem:[%s3132_s5] sm:$0xff] (!%p390_p3)   ;;  %v2577_v9 = vld [vmem:[%s3132_s5 + $0x8] sm:$0xff] (!%p390_p3)   ;;  %763 = vst.msk [vmem:[#allocation5] sm:$0xff] (!%p390_p3), %vm548_vm2, %v2644_v1  ;;  %764 = vst.msk [vmem:[#allocation5 + $0x8] sm:$0xff] (!%p390_p3), %vm548_vm2, %v2644_v1  ;;  %v2646_v47 = vmov (!%p390_p3), -inf   ;;  %v774_v53 = vshrl.u32 (!%p390_p3), %v773_v51, 7 }
   0x9   : > { %2376 = vmatprep.subr.bf16.mxu0 (!%p390_p3), %v2644_v1  ;;  %2386 = vmatprep.mubr.msk.bf16.mxu1 (!%p390_p3), %vm2645_vm0, %v2644_v1  ;;  %765 = vst.msk [vmem:[#allocation5 + $0x10] sm:$0xff] (!%p390_p3), %vm548_vm2, %v2644_v1  ;;  %766 = vst.msk [vmem:[#allocation5 + $0x18] sm:$0xff] (!%p390_p3), %vm548_vm2, %v2644_v1  ;;  %v2579_v12 = vld [vmem:[%s3130_s3 + $0x18] sm:$0xff] (!%p390_p3)   ;;  %v2203_v13 = vld [vmem:[%s3131_s4] ss:$0 sm:$0xff] (!%p390_p3)  ;;  %v779_v54 = vand.u32 (!%p390_p3), 127, %v773_v51 }
   0xa   : > { %2383 = vmatpush3.bf16.msra.mxu1 (!%p390_p3), %v2578_v11  ;;  %v2221_v20 = vld [vmem:[%s3131_s4 + $0x2] ss:$0 sm:$0xff] (!%p390_p3)  ;;  %v2234_v27 = vld [vmem:[%s3133_s6] ss:$0 sm:$0xff] (!%p390_p3)  ;;  %v2580_v36 = vld [vmem:[%s3132_s5 + $0x10] sm:$0xff] (!%p390_p3)   ;;  %755 = vst.msk [vmem:[#allocation3] sm:$0xff] (!%p390_p3), %vm754_vm3, %v2646_v47 }
   0xb   : > { %2384 = vmatprep.subr.bf16.mxu1 (!%p390_p3), %v2644_v1  ;;  %v2581_v38 = vld [vmem:[%s3132_s5 + $0x18] sm:$0xff] (!%p390_p3)   ;;  %v2212_v39 = vld [vmem:[%s3131_s4 + $0x1] ss:$0 sm:$0xff] (!%p390_p3)  ;;  %v2584_v46 = vld [vmem:[%s3130_s3 + $0x30] sm:$0xff] (!%p390_p3)   ;;  %756 = vst.msk [vmem:[#allocation3 + $0x8] sm:$0xff] (!%p390_p3), %vm754_vm3, %v2646_v47  ;;  %v787_v55 = vsub.s32 (!%p390_p3), 0, %v774_v53  ;;  %vm782_vm5 = vcmp.gt.s32.totalorder (!%p390_p3), %v779_v54, %v774_v53 }
   0xc   : > { %2377 = vmatpush3.bf16.msra.mxu0 (!%p390_p3), %v2573_v2  ;;  %757 = vst.msk [vmem:[#allocation3 + $0x10] sm:$0xff] (!%p390_p3), %vm754_vm3, %v2646_v47  ;;  %758 = vst.msk [vmem:[#allocation3 + $0x18] sm:$0xff] (!%p390_p3), %vm754_vm3, %v2646_v47  ;;  %v2585_v48 = vld [vmem:[%s3130_s3 + $0x38] sm:$0xff] (!%p390_p3)   ;;  %v2586_v49 = vld [vmem:[%s3134_s7] sm:$0xff] (!%p390_p3)   ;;  %v783_v58 = vsel (!%p390_p3), %vm782_vm5, -1e+09, %v2644_v1 }
   0xd   : > { %2390 = vmatprep.subr.bf16.mxu0 (!%p390_p3), %v2644_v1  ;;  %759 = vst.msk [vmem:[#allocation4] sm:$0xff] (!%p390_p3), %vm754_vm3, %v2644_v1  ;;  %760 = vst.msk [vmem:[#allocation4 + $0x8] sm:$0xff] (!%p390_p3), %vm754_vm3, %v2644_v1  ;;  %v2587_v50 = vld [vmem:[%s3134_s7 + $0x8] sm:$0xff] (!%p390_p3)   ;;  %vm1007_vm6 = vcmask (!%p390_p3), 1043456   ;;  %v2588_v51 = vld [vmem:[%s3132_s5 + $0x30] sm:$0xff] (!%p390_p3)  }
   0xe   : > { %s3144_s17 = smov (!%p446_p4, %s2634_s17), 1  ;;  %2385 = vmatpush3.bf16.msra.mxu1 %v2579_v12  ;;  %761 = vst.msk [vmem:[#allocation4 + $0x10] sm:$0xff] %vm754_vm3, %v2644_v1  ;;  %762 = vst.msk [vmem:[#allocation4 + $0x18] sm:$0xff] %vm754_vm3, %v2644_v1  ;;  %v2589_v53 = vld [vmem:[%s3132_s5 + $0x38] sm:$0xff]  }
   0xf   : > { %s2742_s25 = sshll.u32 %s3144_s17, 3  ;;  %2398 = vmatprep.subr.bf16.mxu1 %v2644_v1  ;;  %s465_s23 = scalar_lea.vmem %s3129_s2, %s3144_s17 }
  0x10   : > { %s452_s28 = scalar_lea.vmem %s3127_s0, %s2742_s25  ;;  %s459_s22 = scalar_lea.vmem %s3128_s1, %s2742_s25  ;;  %v769_v52 = vld [vmem:[%s465_s23] sm:$0x1] }
  0x11   : > { %v478_v3 = vld [vmem:[%s452_s28] sm:$0xff]  ;;  %vm770_vm4 = vcmp.gt.f32.partialorder %v769_v52, 0.5  ;;  %s472_s27 = scalar_lea.vmem %s3138_s11, %s2742_s25 }
  0x12   : > { %v2752_v5 = vpack.c.bf16 %v478_v3, %v478_v3  ;;  %v767_v8 = vld [vmem:[%s459_s22] sm:$0xff]  ;;  %v771_v56 = vsel %vm770_vm4, -1e+09, %v2644_v1 }
  0x13   : > { %v2778_v10 = vpack.c.bf16 %v767_v8, %v767_v8  ;;  %v788_v57 = vrot.slane %v771_v56, %v787_v55  ;;  %v2249_v3 = vld [vmem:[%s3133_s6 + $0x1] ss:$0 sm:$0xff] }
  0x14   : > { %2379 = vmatmul.mubr.msk.bf16.vlgmr.msra.gmra.mrb[0].mxu0 %vm503_vm1, %v2752_v5  ;;  %2387 = vmatmul.mubr.msk.bf16.vlgmr.msra.gmra.mrb[0].mxu1 %vm503_vm1, %v2752_v5 }
  0x15   : > { %2391 = vmatpush3.bf16.msra.mxu0 %v2574_v4  ;;  %2394 = vmatprep.mubr.msk.bf16.mxu0 %vm2645_vm0, %v2644_v1  ;;  %v2879_v59 = vadd.f32 %v788_v57, %v783_v58  ;;  %v2590_v58 = vld [vmem:[%s3134_s7 + $0x10] sm:$0xff]  }
  0x16   : > { %2392 = vmatprep.subr.bf16.mxu0 %v2644_v1  ;;  %2402 = vmatprep.mubr.msk.bf16.mxu1 %vm2645_vm0, %v2644_v1 }
  0x17   : > { %2399 = vmatpush3.bf16.msra.mxu1 %v2584_v46 }
  0x18   : > { %2400 = vmatprep.subr.bf16.mxu1 %v2644_v1 }
  0x19   : > { %2393 = vmatpush3.bf16.msra.mxu0 %v2575_v6 }
  0x1a   : > { %2406 = vmatprep.subr.bf16.mxu0 %v2644_v1 }
  0x1b   : > { %2401 = vmatpush3.bf16.msra.mxu1 %v2585_v48 }
  0x1c   : > { %2395 = vmatmul.mubr.msk.bf16.vlgmr.msra.gmra.mrb[4].mxu0 %vm503_vm1, %v2752_v5  ;;  %2414 = vmatprep.subr.bf16.mxu1 %v2644_v1 }
  0x1d   : > { %2407 = vmatpush3.bf16.msra.mxu0 %v2576_v7  ;;  %2410 = vmatprep.mubr.msk.bf16.mxu0 %vm2645_vm0, %v2644_v1 }
  0x1e   : > { %2408 = vmatprep.subr.bf16.mxu0 %v2644_v1  ;;  %2403 = vmatmul.mubr.msk.bf16.vlgmr.msra.gmra.mrb[4].mxu1 %vm503_vm1, %v2752_v5 }
  0x1f   : > { %2415 = vmatpush3.bf16.msra.mxu1 %v2586_v49  ;;  %2418 = vmatprep.mubr.msk.bf16.mxu1 %vm2645_vm0, %v2644_v1 }
  0x20   : > { %2416 = vmatprep.subr.bf16.mxu1 %v2644_v1 }
  0x21   : > { %2409 = vmatpush3.bf16.msra.mxu0 %v2577_v9 }
  0x22   : > { %2422 = vmatprep.subr.bf16.mxu0 %v2644_v1 }
  0x23   : > { %2417 = vmatpush3.bf16.msra.mxu1 %v2587_v50 }
  0x24   : > { %2411 = vmatmul.mubr.msk.bf16.vlgmr.msra.gmra.mrb[8].mxu0 %vm503_vm1, %v2778_v10  ;;  %2428 = vmatprep.subr.bf16.mxu1 %v2644_v1 }
  0x25   : > { %2424 = vmatprep.mubr.msk.bf16.mxu0 %vm2645_vm0, %v2644_v1 }
  0x26   : > { %2419 = vmatmul.mubr.msk.bf16.vlgmr.msra.gmra.mrb[8].mxu1 %vm503_vm1, %v2778_v10 }
  0x27   : > { %2430 = vmatprep.mubr.msk.bf16.mxu1 %vm2645_vm0, %v2644_v1 }
  0xe7   : > { %v541_v14 = vpop.f32.mrb[0].mxu0  ;;  %v609_v40 = vpop.f32.mrb[0].mxu1 }
  0xe8   : > { %v542_v15 = vadd.f32 %v2203_v13, %v541_v14  ;;  %v2380_v16 = vpop.f32.mrb[1].mxu0  ;;  %v610_v41 = vadd.f32 %v2212_v39, %v609_v40  ;;  %v2388_v42 = vpop.f32.mrb[1].mxu1  ;;  %v2582_v14 = vld [vmem:[%s3132_s5 + $0x20] sm:$0xff]  }
  0xe9   : > { %v544_v17 = vpop.f32.mrb[2].mxu0  ;;  %v612_v43 = vpop.f32.mrb[2].mxu1  ;;  %v2583_v16 = vld [vmem:[%s3132_s5 + $0x28] sm:$0xff]   ;;  %v2269_v42 = vld [vmem:[%s3133_s6 + $0x2] ss:$0 sm:$0xff] }
  0xea   : > { %v547_v18 = vmul.f32 0.35355338, %v542_v15  ;;  %v2381_v19 = vpop.f32.mrb[3].mxu0  ;;  %v615_v44 = vmul.f32 0.35355338, %v610_v41  ;;  %v2389_v45 = vpop.f32.mrb[3].mxu1 }
  0xeb   : > { %v2647_v15 = vmov 0   ;;  %v2906_v17 = vld [vmem:[#allocation3] sm:$0xff] }
  0xec   : > { %549 = vst.msk [vmem:[#allocation2] sm:$0xff] %vm548_vm2, %v547_v18  ;;  %617 = vst.msk [vmem:[#allocation2 + $0x8] sm:$0xff] %vm548_vm2, %v615_v44  ;;  %2570 = vset.pattern.permute.xlu0 %v2647_v15  ;;  %2571 = vset.pattern.permute.xlu1 %v2647_v15 }
  0xef   : > { %v677_v21 = vpop.f32.mrb[4].mxu0 }
  0xf0   : > { %v678_v22 = vadd.f32 %v2221_v20, %v677_v21  ;;  %v2396_v23 = vpop.f32.mrb[5].mxu0  ;;  %v2230_v21 = vld [vmem:[%s3131_s4 + $0x3] ss:$0 sm:$0xff] }
  0xf1   : > { %v680_v24 = vpop.f32.mrb[6].mxu0 }
  0xf2   : > { %v683_v25 = vmul.f32 0.35355338, %v678_v22  ;;  %v2397_v26 = vpop.f32.mrb[7].mxu0  ;;  %v745_v22 = vpop.f32.mrb[4].mxu1 }
  0xf3   : > { %v923_v35 = vld [vmem:[#allocation2] sm:$0xff]  ;;  %v1187_v12 = vld [vmem:[#allocation2 + $0x8] sm:$0xff]  ;;  %v746_v23 = vadd.f32 %v2230_v21, %v745_v22  ;;  %v2404_v24 = vpop.f32.mrb[5].mxu1 }
  0xf4   : > { %685 = vst.msk [vmem:[#allocation2 + $0x10] sm:$0xff] %vm548_vm2, %v683_v25  ;;  %v924_v37 = vpack.c.bf16 %v923_v35, %v923_v35  ;;  %v1188_v13 = vpack.c.bf16 %v1187_v12, %v1187_v12  ;;  %v748_v25 = vpop.f32.mrb[6].mxu1  ;;  %v2238_v26 = vld [vmem:[%s3135_s8] ss:$0 sm:$0xff] }
  0xf7   : > { %v852_v28 = vpop.f32.mrb[8].mxu0 }
  0xf8   : > { %v853_v29 = vadd.f32 %v2234_v27, %v852_v28  ;;  %v2412_v30 = vpop.f32.mrb[9].mxu0  ;;  %v751_v27 = vmul.f32 0.35355338, %v746_v23  ;;  %v2405_v28 = vpop.f32.mrb[7].mxu1 }
  0xf9   : > { %v855_v31 = vpop.f32.mrb[10].mxu0 }
  0xfa   : > { %v858_v32 = vpack.c.bf16 %v853_v29, %v853_v29  ;;  %v2413_v33 = vpop.f32.mrb[11].mxu0  ;;  %v916_v29 = vpop.f32.mrb[8].mxu1  ;;  %753 = vst.msk [vmem:[#allocation2 + $0x18] sm:$0xff] %vm548_vm2, %v751_v27 }
  0xfb   : > { %v917_v30 = vadd.f32 %v2238_v26, %v916_v29  ;;  %v2420_v31 = vpop.f32.mrb[9].mxu1  ;;  %v1451_v50 = vld [vmem:[#allocation2 + $0x10] sm:$0xff] }
  0xfc   : > { %v930_v34 = vsel %vm548_vm2, %v858_v32, 0  ;;  %v919_v32 = vpop.f32.mrb[10].mxu1  ;;  %v1452_v52 = vpack.c.bf16 %v1451_v50, %v1451_v50 }
  0xfd   : > { %2423 = vmatpush3.bf16.xpose.msra.mxu0 %v930_v34  ;;  %v922_v33 = vpack.c.bf16 %v917_v30, %v917_v30  ;;  %v2421_v34 = vpop.f32.mrb[11].mxu1  ;;  %v2258_v30 = vld [vmem:[%s3135_s8 + $0x1] ss:$0 sm:$0xff] }
  0xfe   : > { %2434 = vmatprep.subr.bf16.mxu0 %v2644_v1 }
  0xff   : > { %v1009_v35 = vsel %vm1007_vm6, %v922_v33, 0 }
 0x100   : > { %2429 = vmatpush3.bf16.msra.mxu1 %v1009_v35 }
 0x101   : > { %2442 = vmatprep.subr.bf16.mxu1 %v2644_v1  ;;  %v1715_v21 = vld [vmem:[#allocation2 + $0x18] sm:$0xff] }
 0x102   : > { %v1716_v22 = vpack.c.bf16 %v1715_v21, %v1715_v21  ;;  %v988_v21 = vld [vmem:[#allocation4] sm:$0xff] }
 0x104   : > { %2425 = vmatmul.mubr.msk.bf16.vlgmr.msra.gmra.mrb[12].mxu0 %vm548_vm2, %v924_v37 }
 0x105   : > { %2435 = vmatpush3.bf16.msra.mxu0 %v2580_v36  ;;  %2438 = vmatprep.mubr.msk.bf16.mxu0 %vm2645_vm0, %v2644_v1 }
 0x106   : > { %2436 = vmatprep.subr.bf16.mxu0 %v2644_v1 }
 0x109   : > { %2437 = vmatpush3.bf16.msra.mxu0 %v2581_v38 }
 0x10a   : > { %2450 = vmatprep.subr.bf16.mxu0 %v2644_v1 }
 0x10c   : > { %2439 = vmatmul.mubr.msk.bf16.vlgmr.msra.gmra.mrb[16].mxu0 %vm503_vm1, %v2778_v10 }
 0x10d   : > { %2452 = vmatprep.mubr.msk.bf16.mxu0 %vm2645_vm0, %v2644_v1 }
 0x1d7   : > { %v966_v60 = vpop.f32.mrb[12].mxu0 }
 0x1d8   : > { %v2882_v61 = vadd.f32 %v966_v60, %v2879_v59  ;;  %v2426_v62 = vpop.f32.mrb[13].mxu0 }
 0x1d9   : > { %v969_v63 = vpop.f32.mrb[14].mxu0  ;;  %v2591_v62 = vld [vmem:[%s3134_s7 + $0x18] sm:$0xff]  }
 0x1da   : > { %v2427_v0 = vpop.f32.mrb[15].mxu0  ;;  %v973_v2 = vsel %vm548_vm2, %v2882_v61, -inf }
 0x1db   : > { %974 = vmax.xlane.f32.xlu0 %v973_v2 }
 0x1df   : > { %v1113_v4 = vpop.f32.mrb[16].mxu0 }
 0x1e0   : > { %v1114_v5 = vadd.f32 %v2249_v3, %v1113_v4  ;;  %v2440_v6 = vpop.f32.mrb[17].mxu0 }
 0x1e1   : > { %v1116_v7 = vpop.f32.mrb[18].mxu0 }
 0x1e2   : > { %v1119_v8 = vpack.c.bf16 %v1114_v5, %v1114_v5  ;;  %v2441_v9 = vpop.f32.mrb[19].mxu0 }
 0x1e3   : > { %v2289_v9 = vld [vmem:[%s3133_s6 + $0x3] ss:$0 sm:$0xff] }
 0x1e4   : > { %v1193_v11 = vsel %vm548_vm2, %v1119_v8, 0 }
 0x1e5   : > { %2451 = vmatpush3.bf16.xpose.msra.mxu0 %v1193_v11 }
 0x1e6   : > { %2462 = vmatprep.subr.bf16.mxu0 %v2644_v1 }
 0x1ec   : > { %2453 = vmatmul.mubr.msk.bf16.vlgmr.msra.gmra.mrb[20].mxu0 %vm548_vm2, %v1188_v13 }
 0x1ed   : > { %2463 = vmatpush3.bf16.msra.mxu0 %v2582_v14  ;;  %2466 = vmatprep.mubr.msk.bf16.mxu0 %vm2645_vm0, %v2644_v1 }
 0x1ee   : > { %2464 = vmatprep.subr.bf16.mxu0 %v2644_v1 }
 0x1f1   : > { %2465 = vmatpush3.bf16.msra.mxu0 %v2583_v16 }
 0x1f2   : > { %2478 = vmatprep.subr.bf16.mxu0 %v2644_v1 }
 0x1f4   : > { %2467 = vmatmul.mubr.msk.bf16.vlgmr.msra.gmra.mrb[24].mxu0 %vm503_vm1, %v2778_v10 }
 0x1f5   : > { %2480 = vmatprep.mubr.msk.bf16.mxu0 %vm2645_vm0, %v2644_v1 }
 0x268   : > { %v975_v18 = vpop.xlane.xlu0 %974 }
 0x269   : > { %v2909_v19 = vmax.f32 %v2906_v17, %v975_v18 }
 0x26b   : > { %v977_v20 = vsub.f32 %v2906_v17, %v2909_v19  ;;  %1053 = vst.msk [vmem:[#allocation3] sm:$0xff] %vm754_vm3, %v2909_v19  ;;  %982 = vperm.xlu0 %2570, %v2909_v19  }
 0x2bf   : > { %v1229_v36 = vpop.f32.mrb[20].mxu0 }
 0x2c0   : > { %v2926_v37 = vadd.f32 %v1229_v36, %v2879_v59  ;;  %v2454_v38 = vpop.f32.mrb[21].mxu0 }
 0x2c1   : > { %v1232_v39 = vpop.f32.mrb[22].mxu0 }
 0x2c2   : > { %v2455_v40 = vpop.f32.mrb[23].mxu0  ;;  %v1237_v41 = vsel %vm548_vm2, %v2926_v37, -inf }
 0x2c3   : > { %1238 = vmax.xlane.f32.xlu1 %v1237_v41  ;;  %v2593_v41 = vld [vmem:[%s3134_s7 + $0x28] sm:$0xff]  }
 0x2c7   : > { %v1377_v43 = vpop.f32.mrb[24].mxu0 }
 0x2c8   : > { %v1378_v44 = vadd.f32 %v2269_v42, %v1377_v43  ;;  %v2468_v45 = vpop.f32.mrb[25].mxu0  ;;  %v1500_v42 = vld [vmem:[#allocation3 + $0x10] sm:$0xff] }
 0x2c9   : > { %v1380_v46 = vpop.f32.mrb[26].mxu0 }
 0x2ca   : > { %v1383_v47 = vpack.c.bf16 %v1378_v44, %v1378_v44  ;;  %v2469_v48 = vpop.f32.mrb[27].mxu0 }
 0x2cc   : > { %v1457_v49 = vsel %vm548_vm2, %v1383_v47, 0 }
 0x2cd   : > { %2479 = vmatpush3.bf16.xpose.msra.mxu0 %v1457_v49 }
 0x2ce   : > { %2490 = vmatprep.subr.bf16.mxu0 %v2644_v1 }
 0x2d4   : > { %2481 = vmatmul.mubr.msk.bf16.vlgmr.msra.gmra.mrb[28].mxu0 %vm548_vm2, %v1452_v52 }
 0x2d5   : > { %2491 = vmatpush3.bf16.msra.mxu0 %v2588_v51  ;;  %2494 = vmatprep.mubr.msk.bf16.mxu0 %vm2645_vm0, %v2644_v1 }
 0x2d6   : > { %2492 = vmatprep.subr.bf16.mxu0 %v2644_v1 }
 0x2d9   : > { %2493 = vmatpush3.bf16.msra.mxu0 %v2589_v53 }
 0x2da   : > { %2506 = vmatprep.subr.bf16.mxu0 %v2644_v1 }
 0x2dc   : > { %2495 = vmatmul.mubr.msk.bf16.vlgmr.msra.gmra.mrb[32].mxu0 %vm503_vm1, %v2778_v10 }
 0x2dd   : > { %2508 = vmatprep.mubr.msk.bf16.mxu0 %vm2645_vm0, %v2644_v1 }
 0x2ea   : > { %v983_v54 = vpop.permute.xlu0 %982 }
 0x2eb   : > { %v985_v55 = vsub.f32 %v2882_v61, %v983_v54  ;;  %v2970_v61 = vld [vmem:[#allocation3 + $0x8] sm:$0xff] }
 0x2ed   : > { %v986_v56 = vmul.f32 1.442695, %v985_v55 }
 0x2ef   : > { %2596 = vpow2.f32 %v986_v56 }
 0x2f9   : > { %v2951_v57 = vpop.eup %2596 }
 0x2fa   : > { %v1003_v60 = vpack.c.bf16 %v2951_v57, %v2951_v57  ;;  %v990_v52 = vsel %vm548_vm2, %v2951_v57, 0.0 }
 0x2fc   : > { %2431 = vmatmul.mubr.msk.bf16.vlgmr.msra.gmra.mrb[12].mxu1 %vm548_vm2, %v1003_v60 }
 0x2fd   : > { %2443 = vmatpush3.bf16.msra.mxu1 %v2590_v58  ;;  %2446 = vmatprep.mubr.msk.bf16.mxu1 %vm2645_vm0, %v2644_v1 }
 0x2fe   : > { %2444 = vmatprep.subr.bf16.mxu1 %v2644_v1 }
 0x301   : > { %2445 = vmatpush3.bf16.msra.mxu1 %v2591_v62  ;;  %v2278_v62 = vld [vmem:[%s3135_s8 + $0x2] ss:$0 sm:$0xff] }
 0x302   : > { %2456 = vmatprep.subr.bf16.mxu1 %v2644_v1 }
 0x304   : > { %2447 = vmatmul.mubr.msk.bf16.vlgmr.msra.gmra.mrb[16].mxu1 %vm503_vm1, %v2778_v10 }
 0x305   : > { %2458 = vmatprep.mubr.msk.bf16.mxu1 %vm2645_vm0, %v2644_v1 }
 0x350   : > { %v1239_v63 = vpop.xlane.xlu1 %1238 }
 0x351   : > { %v2973_v0 = vmax.f32 %v2970_v61, %v1239_v63 }
 0x353   : > { %v1241_v2 = vsub.f32 %v2970_v61, %v2973_v0  ;;  %1317 = vst.msk [vmem:[#allocation3 + $0x8] sm:$0xff] %vm754_vm3, %v2973_v0  ;;  %1246 = vperm.xlu1 %2571, %v2973_v0  }
 0x3a7   : > { %v1493_v3 = vpop.f32.mrb[28].mxu0 }
 0x3a8   : > { %v2981_v4 = vadd.f32 %v1493_v3, %v2879_v59  ;;  %v2482_v5 = vpop.f32.mrb[29].mxu0 }
 0x3a9   : > { %v1496_v6 = vpop.f32.mrb[30].mxu0 }
 0x3aa   : > { %v2483_v7 = vpop.f32.mrb[31].mxu0  ;;  %v1501_v8 = vsel %vm548_vm2, %v2981_v4, -inf }
 0x3ab   : > { %1502 = vmax.xlane.f32.xlu1 %v1501_v8 }
 0x3af   : > { %v1641_v11 = vpop.f32.mrb[32].mxu0 }
 0x3b0   : > { %v1642_v12 = vadd.f32 %v2289_v9, %v1641_v11  ;;  %v2496_v13 = vpop.f32.mrb[33].mxu0 }
 0x3b1   : > { %v1644_v14 = vpop.f32.mrb[34].mxu0  ;;  %v2595_v13 = vld [vmem:[%s3134_s7 + $0x38] sm:$0xff]  }
 0x3b2   : > { %v1647_v15 = vpack.c.bf16 %v1642_v12, %v1642_v12  ;;  %v2497_v16 = vpop.f32.mrb[35].mxu0  ;;  %v978_v14 = vmul.f32 1.442695, %v977_v20 }
 0x3b4   : > { %v1721_v18 = vsel %vm548_vm2, %v1647_v15, 0  ;;  %v1764_v15 = vld [vmem:[#allocation3 + $0x18] sm:$0xff] }
 0x3b5   : > { %2507 = vmatpush3.bf16.xpose.msra.mxu0 %v1721_v18 }
 0x3b6   : > { %2518 = vmatprep.subr.bf16.mxu0 %v2644_v1 }
 0x3bc   : > { %2509 = vmatmul.mubr.msk.bf16.vlgmr.msra.gmra.mrb[36].mxu0 %vm548_vm2, %v1716_v22 }
 0x3bd   : > { %2520 = vmatprep.mubr.msk.bf16.mxu0 %vm2645_vm0, %v2644_v1 }
 0x3cf   : > { %v2993_v23 = vpop.f32.mrb[12].mxu1 }
 0x3d0   : > { %v2432_v24 = vpop.f32.mrb[13].mxu1 }
 0x3d1   : > { %v1048_v25 = vpop.f32.mrb[14].mxu1 }
 0x3d2   : > { %v2433_v26 = vpop.f32.mrb[15].mxu1  ;;  %v1247_v27 = vpop.permute.xlu1 %1246 }
 0x3d3   : > { %v1249_v28 = vsub.f32 %v2926_v37, %v1247_v27  ;;  %v2592_v37 = vld [vmem:[%s3134_s7 + $0x20] sm:$0xff]  }
 0x3d5   : > { %v1250_v29 = vmul.f32 1.442695, %v1249_v28  ;;  %v1517_v28 = vld [vmem:[#allocation4 + $0x10] sm:$0xff] }
 0x3d7   : > { %2598 = vpow2.f32 %v1250_v29  ;;  %v1179_v31 = vpop.f32.mrb[16].mxu1 }
 0x3d8   : > { %v1180_v32 = vadd.f32 %v2258_v30, %v1179_v31  ;;  %v2448_v33 = vpop.f32.mrb[17].mxu1 }
 0x3d9   : > { %v1182_v34 = vpop.f32.mrb[18].mxu1 }
 0x3da   : > { %v1185_v35 = vpack.c.bf16 %v1180_v32, %v1180_v32  ;;  %v2449_v36 = vpop.f32.mrb[19].mxu1 }
 0x3dc   : > { %v1273_v38 = vsel %vm1007_vm6, %v1185_v35, 0 }
 0x3dd   : > { %2457 = vmatpush3.bf16.msra.mxu1 %v1273_v38 }
 0x3de   : > { %2470 = vmatprep.subr.bf16.mxu1 %v2644_v1 }
 0x3e1   : > { %v3001_v39 = vpop.eup %2598 }
 0x3e2   : > { %v1268_v40 = vpack.c.bf16 %v3001_v39, %v3001_v39  ;;  %v1255_v17 = vsel %vm548_vm2, %v3001_v39, 0.0 }
 0x3e4   : > { %2459 = vmatmul.mubr.msk.bf16.vlgmr.msra.gmra.mrb[20].mxu1 %vm548_vm2, %v1268_v40  ;;  %v2298_v40 = vld [vmem:[%s3135_s8 + $0x3] ss:$0 sm:$0xff] }
 0x3e5   : > { %2471 = vmatpush3.bf16.msra.mxu1 %v2592_v37  ;;  %2474 = vmatprep.mubr.msk.bf16.mxu1 %vm2645_vm0, %v2644_v1 }
 0x3e6   : > { %2472 = vmatprep.subr.bf16.mxu1 %v2644_v1 }
 0x3e9   : > { %2473 = vmatpush3.bf16.msra.mxu1 %v2593_v41 }
 0x3ea   : > { %2484 = vmatprep.subr.bf16.mxu1 %v2644_v1 }
 0x3ec   : > { %2475 = vmatmul.mubr.msk.bf16.vlgmr.msra.gmra.mrb[24].mxu1 %vm503_vm1, %v2778_v10 }
 0x3ed   : > { %2486 = vmatprep.mubr.msk.bf16.mxu1 %vm2645_vm0, %v2644_v1 }
 0x438   : > { %v1503_v43 = vpop.xlane.xlu1 %1502 }
 0x439   : > { %v1504_v44 = vmax.f32 %v1500_v42, %v1503_v43 }
 0x43b   : > { %v1505_v45 = vsub.f32 %v1500_v42, %v1504_v44  ;;  %1581 = vst.msk [vmem:[#allocation3 + $0x10] sm:$0xff] %vm754_vm3, %v1504_v44  ;;  %1510 = vperm.xlu0 %2570, %v1504_v44  }
 0x43d   : > { %v1506_v27 = vmul.f32 1.442695, %v1505_v45 }
 0x48f   : > { %v1757_v46 = vpop.f32.mrb[36].mxu0 }
 0x490   : > { %v3022_v47 = vadd.f32 %v1757_v46, %v2879_v59  ;;  %v2510_v48 = vpop.f32.mrb[37].mxu0 }
 0x491   : > { %v1760_v49 = vpop.f32.mrb[38].mxu0 }
 0x492   : > { %v2511_v50 = vpop.f32.mrb[39].mxu0  ;;  %v1765_v51 = vsel %vm548_vm2, %v3022_v47, -inf }
 0x493   : > { %1766 = vmax.xlane.f32.xlu0 %v1765_v51 }
 0x497   : > { %991 = vadd.xlane.f32.xlu0 %v990_v52 }
 0x4b7   : > { %v3028_v53 = vpop.f32.mrb[20].mxu1 }
 0x4b8   : > { %v2460_v54 = vpop.f32.mrb[21].mxu1 }
 0x4b9   : > { %v1312_v55 = vpop.f32.mrb[22].mxu1  ;;  %v1242_v54 = vmul.f32 1.442695, %v1241_v2 }
 0x4ba   : > { %v2461_v56 = vpop.f32.mrb[23].mxu1  ;;  %v1511_v58 = vpop.permute.xlu0 %1510 }
 0x4bb   : > { %v1513_v59 = vsub.f32 %v2981_v4, %v1511_v58  ;;  %v2594_v4 = vld [vmem:[%s3134_s7 + $0x30] sm:$0xff]  }
 0x4bd   : > { %v1514_v60 = vmul.f32 1.442695, %v1513_v59  ;;  %v1253_v59 = vld [vmem:[#allocation4 + $0x8] sm:$0xff] }
 0x4bf   : > { %2600 = vpow2.f32 %v1514_v60  ;;  %v1443_v63 = vpop.f32.mrb[24].mxu1 }
 0x4c0   : > { %v1444_v3 = vadd.f32 %v2278_v62, %v1443_v63  ;;  %v2476_v5 = vpop.f32.mrb[25].mxu1  ;;  %2602 = vpow2.f32 %v978_v14 }
 0x4c1   : > { %v1446_v6 = vpop.f32.mrb[26].mxu1  ;;  %2604 = vpow2.f32 %v1506_v27 }
 0x4c2   : > { %v1449_v57 = vpack.c.bf16 %v1444_v3, %v1444_v3  ;;  %v2477_v7 = vpop.f32.mrb[27].mxu1  ;;  %v996_v3 = vld [vmem:[#allocation5] sm:$0xff] }
 0x4c4   : > { %v1537_v8 = vsel %vm1007_vm6, %v1449_v57, 0 }
 0x4c5   : > { %2485 = vmatpush3.bf16.msra.mxu1 %v1537_v8 }
 0x4c6   : > { %2498 = vmatprep.subr.bf16.mxu1 %v2644_v1 }
 0x4c9   : > { %v2601_v9 = vpop.eup %2600 }
 0x4ca   : > { %v1519_v11 = vsel %vm548_vm2, %v2601_v9, 0.0  ;;  %v1532_v12 = vpack.c.bf16 %v2601_v9, %v2601_v9  ;;  %v2603_v16 = vpop.eup %2602 }
 0x4cb   : > { %1520 = vadd.xlane.f32.xlu0 %v1519_v11  ;;  %v989_v25 = vmul.f32 %v2603_v16, %v988_v21  ;;  %v2605_v20 = vpop.eup %2604  ;;  %v2304_v11 = vld [vmem:[%s3136_s9 + $0x4] sm:$0xf] }
 0x4cc   : > { %2487 = vmatmul.mubr.msk.bf16.vlgmr.msra.gmra.mrb[28].mxu1 %vm548_vm2, %v1532_v12  ;;  %v1518_v29 = vmul.f32 %v2605_v20, %v1517_v28 }
 0x4cd   : > { %2499 = vmatpush3.bf16.msra.mxu1 %v2594_v4  ;;  %2502 = vmatprep.mubr.msk.bf16.mxu1 %vm2645_vm0, %v2644_v1 }
 0x4ce   : > { %2500 = vmatprep.subr.bf16.mxu1 %v2644_v1 }
 0x4d1   : > { %2501 = vmatpush3.bf16.msra.mxu1 %v2595_v13  ;;  %v1781_v13 = vld [vmem:[#allocation4 + $0x18] sm:$0xff] }
 0x4d2   : > { %2512 = vmatprep.subr.bf16.mxu1 %v2644_v1 }
 0x4d4   : > { %2503 = vmatmul.mubr.msk.bf16.vlgmr.msra.gmra.mrb[32].mxu1 %vm503_vm1, %v2778_v10 }
 0x4d5   : > { %2514 = vmatprep.mubr.msk.bf16.mxu1 %vm2645_vm0, %v2644_v1 }
 0x520   : > { %v1767_v18 = vpop.xlane.xlu0 %1766 }
 0x521   : > { %v1768_v22 = vmax.f32 %v1764_v15, %v1767_v18 }
 0x523   : > { %v1769_v24 = vsub.f32 %v1764_v15, %v1768_v22  ;;  %1845 = vst.msk [vmem:[#allocation3 + $0x18] sm:$0xff] %vm754_vm3, %v1768_v22  ;;  %1774 = vperm.xlu1 %2571, %v1768_v22   ;;  %v2309_v15 = vld [vmem:[%s3136_s9 + $0xc] sm:$0xf] }
 0x524   : > { %v992_v26 = vpop.xlane.xlu0 %991  ;;  %v2039_v18 = vsel %vm1007_vm6, %v2309_v15, 0  ;;  %v1261_v22 = vld [vmem:[#allocation5 + $0x8] sm:$0xff] }
 0x525   : > { %v993_v10 = vadd.f32 %v992_v26, %v989_v25  ;;  %v1770_v55 = vmul.f32 1.442695, %v1769_v24  ;;  %v1525_v26 = vld [vmem:[#allocation5 + $0x10] sm:$0xff] }
 0x527   : > { %995 = vst.msk [vmem:[#allocation4] sm:$0xff] %vm754_vm3, %v993_v10 }
 0x52e   : > { %v1850_v19 = vld [vmem:[#allocation4] sm:$0xff] }
 0x52f   : > { %2606 = vrcp.f32 %v1850_v19 }
 0x539   : > { %v2607_v32 = vpop.eup %2606 }
 0x547   : > { %1256 = vadd.xlane.f32.xlu1 %v1255_v17 }
 0x558   : > { %999 = vperm.xlu1 %2571, %v2603_v16   ;;  %v1521_v30 = vpop.xlane.xlu0 %1520 }
 0x559   : > { %v1522_v31 = vadd.f32 %v1521_v30, %v1518_v29 }
 0x55b   : > { %1523 = vst.msk [vmem:[#allocation4 + $0x10] sm:$0xff] %vm754_vm3, %v1522_v31 }
 0x55c   : > { %1854 = vperm.xlu1 %2571, %v2607_v32   ;;  %v2307_v32 = vld [vmem:[%s3136_s9 + $0x8] sm:$0xf] }
 0x562   : > { %v1965_v2 = vld [vmem:[#allocation4 + $0x10] sm:$0xff] }
 0x59f   : > { %v3060_v33 = vpop.f32.mrb[28].mxu1 }
 0x5a0   : > { %v2488_v34 = vpop.f32.mrb[29].mxu1 }
 0x5a1   : > { %v1576_v35 = vpop.f32.mrb[30].mxu1 }
 0x5a2   : > { %v2489_v36 = vpop.f32.mrb[31].mxu1  ;;  %v1775_v38 = vpop.permute.xlu1 %1774  ;;  %v1980_v35 = vsel %vm1007_vm6, %v2307_v32, 0 }
 0x5a3   : > { %v1777_v39 = vsub.f32 %v3022_v47, %v1775_v38  ;;  %v1859_v47 = vld [vmem:[%s3136_s9] sm:$0xf] }
 0x5a4   : > { %v1922_v52 = vsel %vm1007_vm6, %v1859_v47, 0 }
 0x5a5   : > { %v1778_v37 = vmul.f32 1.442695, %v1777_v39 }
 0x5a7   : > { %2608 = vpow2.f32 %v1778_v37  ;;  %v1707_v41 = vpop.f32.mrb[32].mxu1  ;;  %v1789_v37 = vld [vmem:[#allocation5 + $0x18] sm:$0xff] }
 0x5a8   : > { %v1708_v42 = vadd.f32 %v2298_v40, %v1707_v41  ;;  %v2504_v43 = vpop.f32.mrb[33].mxu1  ;;  %2610 = vpow2.f32 %v1242_v54 }
 0x5a9   : > { %v1710_v44 = vpop.f32.mrb[34].mxu1  ;;  %2612 = vpow2.f32 %v1770_v55 }
 0x5aa   : > { %v1713_v45 = vpack.c.bf16 %v1708_v42, %v1708_v42  ;;  %v2505_v46 = vpop.f32.mrb[35].mxu1 }
 0x5ac   : > { %v1801_v48 = vsel %vm1007_vm6, %v1713_v45, 0 }
 0x5ad   : > { %2513 = vmatpush3.bf16.msra.mxu1 %v1801_v48 }
 0x5ae   : > { %2524 = vmatprep.subr.bf16.mxu1 %v2644_v1 }
 0x5b1   : > { %v2609_v49 = vpop.eup %2608 }
 0x5b2   : > { %v1783_v50 = vsel %vm548_vm2, %v2609_v49, 0.0  ;;  %v1796_v51 = vpack.c.bf16 %v2609_v49, %v2609_v49  ;;  %v2611_v56 = vpop.eup %2610 }
 0x5b3   : > { %1784 = vadd.xlane.f32.xlu0 %v1783_v50  ;;  %v2613_v58 = vpop.eup %2612  ;;  %v1254_v60 = vmul.f32 %v2611_v56, %v1253_v59 }
 0x5b4   : > { %2515 = vmatmul.mubr.msk.bf16.vlgmr.msra.gmra.mrb[36].mxu1 %vm548_vm2, %v1796_v51  ;;  %v1782_v14 = vmul.f32 %v2613_v58, %v1781_v13 }
 0x5b5   : > { %2525 = vmatpush3.bf16.msra.mxu1 %v1922_v52  ;;  %2526 = vmatprep.mubr.msk.bf16.mxu1 %vm2645_vm0, %v2644_v1 }
 0x5b6   : > { %2536 = vmatprep.subr.bf16.mxu1 %v2644_v1 }
 0x5c9   : > { %1264 = vperm.xlu0 %2570, %v2611_v56  }
 0x5cd   : > { %1528 = vperm.xlu0 %2570, %v2605_v20  }
 0x5d1   : > { %1792 = vperm.xlu0 %2570, %v2613_v58  }
 0x5d4   : > { %v1257_v62 = vpop.xlane.xlu1 %1256 }
 0x5d5   : > { %v1258_v63 = vadd.f32 %v1257_v62, %v1254_v60 }
 0x5d7   : > { %1259 = vst.msk [vmem:[#allocation4 + $0x8] sm:$0xff] %vm754_vm3, %v1258_v63 }
 0x5d8   : > { %v1000_v5 = vpop.permute.xlu1 %999 }
 0x5d9   : > { %v1002_v6 = vmul.f32 %v1000_v5, %v996_v3 }
 0x5db   : > { %v1051_v61 = vadd.f32 %v2993_v23, %v1002_v6  ;;  %v1876_v23 = vsel %vm1007_vm6, %v2304_v11, 0 }
 0x5dc   : > { %v1855_v7 = vpop.permute.xlu1 %1854  ;;  %2519 = vmatpush3.bf16.msra.mxu0 %v1876_v23 }
 0x5dd   : > { %1052 = vst.msk [vmem:[#allocation5] sm:$0xff] %vm548_vm2, %v1051_v61  ;;  %2530 = vmatprep.subr.bf16.mxu0 %v2644_v1  ;;  %v2311_v61 = vld [vmem:[%s3137_s10] ss:$0 sm:$0xff] }
 0x5de   : > { %v1861_v0 = vld [vmem:[#allocation4 + $0x8] sm:$0xff] }
 0x5df   : > { %2614 = vrcp.f32 %v1861_v0 }
 0x5e0   : > { %2616 = vrcp.f32 %v1965_v2 }
 0x5e4   : > { %v1849_v57 = vld [vmem:[#allocation5] sm:$0xff] }
 0x5e5   : > { %v1857_v8 = vmul.f32 %v1855_v7, %v1849_v57 }
 0x5e7   : > { %v1858_v9 = vpack.c.bf16 %v1857_v8, %v1857_v8 }
 0x5e9   : > { %v2615_v4 = vpop.eup %2614  ;;  %2527 = vmatmul.mubr.msk.bf16.vlgmr.msra.gmra.mrb[40].mxu1 %vm548_vm2, %v1858_v9 }
 0x5ea   : > { %1865 = vperm.xlu0 %2570, %v2615_v4   ;;  %2538 = vmatprep.mubr.msk.bf16.mxu1 %vm2645_vm0, %v2644_v1  ;;  %v2617_v12 = vpop.eup %2616 }
 0x5eb   : > { %2537 = vmatpush3.bf16.msra.mxu1 %v2039_v18 }
 0x5ee   : > { %1969 = vperm.xlu0 %2570, %v2617_v12  }
 0x640   : > { %v1785_v16 = vpop.xlane.xlu0 %1784 }
 0x641   : > { %v1786_v21 = vadd.f32 %v1785_v16, %v1782_v14 }
 0x643   : > { %1787 = vst.msk [vmem:[#allocation4 + $0x18] sm:$0xff] %vm754_vm3, %v1786_v21 }
 0x648   : > { %v1265_v24 = vpop.permute.xlu0 %1264 }
 0x649   : > { %v1267_v25 = vmul.f32 %v1265_v24, %v1261_v22 }
 0x64a   : > { %v2024_v10 = vld [vmem:[#allocation4 + $0x18] sm:$0xff] }
 0x64b   : > { %v1315_v27 = vadd.f32 %v3028_v53, %v1267_v25  ;;  %2618 = vrcp.f32 %v2024_v10 }
 0x64c   : > { %v1529_v17 = vpop.permute.xlu0 %1528 }
 0x64d   : > { %1316 = vst.msk [vmem:[#allocation5 + $0x8] sm:$0xff] %vm548_vm2, %v1315_v27  ;;  %v1531_v19 = vmul.f32 %v1529_v17, %v1525_v26 }
 0x64f   : > { %v1579_v20 = vadd.f32 %v3060_v33, %v1531_v19 }
 0x650   : > { %v1793_v29 = vpop.permute.xlu0 %1792 }
 0x651   : > { %1580 = vst.msk [vmem:[#allocation5 + $0x10] sm:$0xff] %vm548_vm2, %v1579_v20  ;;  %v1795_v40 = vmul.f32 %v1793_v29, %v1789_v37 }
 0x654   : > { %v1860_v30 = vld [vmem:[#allocation5 + $0x8] sm:$0xff] }
 0x655   : > { %v2619_v28 = vpop.eup %2618 }
 0x656   : > { %2028 = vperm.xlu1 %2571, %v2619_v28  }
 0x658   : > { %v1964_v38 = vld [vmem:[#allocation5 + $0x10] sm:$0xff] }
 0x669   : > { %v1866_v31 = vpop.permute.xlu0 %1865 }
 0x66a   : > { %v1868_v34 = vmul.f32 %v1866_v31, %v1860_v30 }
 0x66c   : > { %v1869_v53 = vpack.c.bf16 %v1868_v34, %v1868_v34 }
 0x66d   : > { %v1970_v36 = vpop.permute.xlu0 %1969 }
 0x66e   : > { %2521 = vmatmul.mubr.msk.bf16.vlgmr.msra.gmra.mrb[40].mxu0 %vm548_vm2, %v1869_v53  ;;  %v1972_v33 = vmul.f32 %v1970_v36, %v1964_v38 }
 0x66f   : > { %2531 = vmatpush3.bf16.msra.mxu0 %v1980_v35  ;;  %2532 = vmatprep.mubr.msk.bf16.mxu0 %vm2645_vm0, %v2644_v1 }
 0x670   : > { %v1973_v39 = vpack.c.bf16 %v1972_v33, %v1972_v33 }
 0x676   : > { %2533 = vmatmul.mubr.msk.bf16.vlgmr.msra.gmra.mrb[44].mxu0 %vm548_vm2, %v1973_v39 }
 0x687   : > { %v1837_v41 = vpop.f32.mrb[36].mxu1 }
 0x688   : > { %v1843_v42 = vadd.f32 %v1837_v41, %v1795_v40  ;;  %v2516_v43 = vpop.f32.mrb[37].mxu1 }
 0x689   : > { %v1840_v44 = vpop.f32.mrb[38].mxu1 }
 0x68a   : > { %1844 = vst.msk [vmem:[#allocation5 + $0x18] sm:$0xff] %vm548_vm2, %v1843_v42  ;;  %v2517_v45 = vpop.f32.mrb[39].mxu1 }
 0x691   : > { %v2023_v51 = vld [vmem:[#allocation5 + $0x18] sm:$0xff] }
 0x6bc   : > { %v1958_v46 = vpop.f32.mrb[40].mxu1 }
 0x6bd   : > { %v2528_v48 = vpop.f32.mrb[41].mxu1 }
 0x6be   : > { %v1961_v47 = vpop.f32.mrb[42].mxu1 }
 0x6bf   : > { %v2529_v49 = vpop.f32.mrb[43].mxu1 }
 0x6d5   : > { %v2029_v50 = vpop.permute.xlu1 %2028 }
 0x6d6   : > { %v2031_v1 = vmul.f32 %v2029_v50, %v2023_v51 }
 0x6d8   : > { %v2032_v52 = vpack.c.bf16 %v2031_v1, %v2031_v1 }
 0x6da   : > { %2539 = vmatmul.mubr.msk.bf16.vlgmr.msra.gmra.mrb[44].mxu1 %vm548_vm2, %v2032_v52 }
 0x741   : > { %v1912_v54 = vpop.f32.mrb[40].mxu0 }
 0x742   : > { %v1959_v55 = vadd.f32 %v1958_v46, %v1912_v54  ;;  %v2522_v56 = vpop.f32.mrb[41].mxu0 }
 0x743   : > { %v1915_v58 = vpop.f32.mrb[42].mxu0 }
 0x744   : > { %v2523_v59 = vpop.f32.mrb[43].mxu0 }
 0x749   : > { %v2016_v60 = vpop.f32.mrb[44].mxu0 }
 0x74a   : > { %v2022_v62 = vadd.f32 %v2016_v60, %v1959_v55  ;;  %v2534_v63 = vpop.f32.mrb[45].mxu0 }
 0x74b   : > { %v2019_v3 = vpop.f32.mrb[46].mxu0 }
 0x74c   : > { %v2535_v5 = vpop.f32.mrb[47].mxu0 }
 0x7ad   : > { %v2075_v6 = vpop.f32.mrb[44].mxu1 }
 0x7ae   : > { %v2081_v0 = vadd.f32 %v2075_v6, %v2022_v62  ;;  %v2540_v2 = vpop.f32.mrb[45].mxu1 }
 0x7af   : > { %v2078_v57 = vpop.f32.mrb[46].mxu1 }
 0x7b0   : > { %v2089_v7 = vadd.f32 %v2311_v61, %v2081_v0  ;;  %v2541_v8 = vpop.f32.mrb[47].mxu1 }
 0x7b2   : > { %2090 = vst.msk [vmem:[%s472_s27] sm:$0xff] %vm503_vm1, %v2089_v7 }
 0x7b3 PF: > { %s21_s19 = sadd.s32 1, %s2642_s19   ;;  %s3139_s17 = smov %s2638_s18 }
 0x7b4   : > { %p18_p5 = scmp.ge.s32.totalorder %s21_s19, 4   ;;  %s3140_s18 = smov %s3142_s20 }
 0x7b6   :  { %20 = sbr.rel (!%p18_p5) target bundleno = 2 (0x2), region = 144 }

// kernel: _lambda_.30
= control target key start
LH: loop header
LB: loop body
LE: loop exit
PB: predicated region body
PF: predicated region fallthrough
CT: control target
= control target key end

     0   :  { %vm23_vm0 = vcmask 261120   ;;  %s136_s0 = inlined_call_operand.vmem [shape: f32[16,32], index: 0, kind: input, shape index: {}]   ;;  %s137_s1 = inlined_call_operand.vmem [shape: f32[16,32], index: 1, kind: input, shape index: {}]   ;;  %s138_s2 = inlined_call_operand.vmem [shape: f32[1,32], index: 2, kind: input, shape index: {}]   ;;  %s139_s3 = inlined_call_operand.vmem [shape: f32[1,32], index: 3, kind: input, shape index: {}]   ;;  %s140_s4 = inlined_call_operand.vmem [shape: f32[16,32], index: 4, kind: output, shape index: {}]  }
   0x1   :  { %v17_v0 = vld [vmem:[%s136_s0] sm:$0xff]  ;;  %v18_v2 = vld [vmem:[%s136_s0 + $0x8] sm:$0xff] }
   0x2   :  { %v19_v1 = vld [vmem:[%s137_s1] sm:$0xff]  ;;  %v20_v4 = vld [vmem:[%s137_s1 + $0x8] sm:$0xff] }
   0x3   :  { %v21_v3 = vadd.f32 %v19_v1, %v17_v0  ;;  %v22_v5 = vadd.f32 %v20_v4, %v18_v2  ;;  %v75_v25 = vld [vmem:[%s138_s2] ss:$0 sm:$0xff] }
   0x4   :  { %v76_v27 = vld [vmem:[%s139_s3] ss:$0 sm:$0xff] }
   0x5   :  { %v24_v6 = vsel %vm23_vm0, %v21_v3, 0.0  ;;  %v27_v7 = vsel %vm23_vm0, %v22_v5, 0.0 }
   0x6   :  { %25 = vadd.xlane.f32.xlu0 %v24_v6 }
   0xa   :  { %28 = vadd.xlane.f32.xlu0 %v27_v7 }
  0x93   :  { %v26_v8 = vpop.xlane.xlu0 %25 }
  0x94   :  { %v31_v9 = vmul.f32 0.03125, %v26_v8 }
  0x96   :  { %v33_v10 = vsub.f32 %v21_v3, %v31_v9 }
  0x97   :  { %v29_v11 = vpop.xlane.xlu0 %28 }
  0x98   :  { %v32_v12 = vmul.f32 0.03125, %v29_v11  ;;  %v35_v13 = vmul.f32 %v33_v10, %v33_v10 }
  0x9a   :  { %v34_v14 = vsub.f32 %v22_v5, %v32_v12  ;;  %v37_v15 = vsel %vm23_vm0, %v35_v13, 0.0 }
  0x9b   :  { %38 = vadd.xlane.f32.xlu1 %v37_v15 }
  0x9c   :  { %v36_v16 = vmul.f32 %v34_v14, %v34_v14 }
  0x9e   :  { %v40_v17 = vsel %vm23_vm0, %v36_v16, 0.0 }
  0x9f   :  { %41 = vadd.xlane.f32.xlu1 %v40_v17 }
 0x128   :  { %v39_v18 = vpop.xlane.xlu1 %38 }
 0x129   :  { %v43_v19 = vmul.f32 0.03125, %v39_v18 }
 0x12b   :  { %v45_v20 = vadd.f32 1e-05, %v43_v19 }
 0x12c   :  { %v42_v21 = vpop.xlane.xlu1 %41 }
 0x12d   :  { %77 = vrsqrt.f32 %v45_v20  ;;  %v44_v22 = vmul.f32 0.03125, %v42_v21 }
 0x12f   :  { %v46_v23 = vadd.f32 1e-05, %v44_v22 }
 0x131   :  { %79 = vrsqrt.f32 %v46_v23 }
 0x137   :  { %v78_v24 = vpop.eup %77 }
 0x138   :  { %v49_v26 = vmul.f32 %v78_v24, %v33_v10 }
 0x13a   :  { %v58_v28 = vmul.f32 %v75_v25, %v49_v26 }
 0x13b   :  { %v80_v29 = vpop.eup %79 }
 0x13c   :  { %v67_v30 = vadd.f32 %v76_v27, %v58_v28  ;;  %v50_v31 = vmul.f32 %v80_v29, %v34_v14 }
 0x13e   :  { %69 = vst.msk [vmem:[%s140_s4] sm:$0xff] %vm23_vm0, %v67_v30  ;;  %v59_v32 = vmul.f32 %v75_v25, %v50_v31 }
 0x140   :  { %v68_v33 = vadd.f32 %v76_v27, %v59_v32 }
 0x142   :  { %70 = vst.msk [vmem:[%s140_s4 + $0x8] sm:$0xff] %vm23_vm0, %v68_v33 }

// kernel: _lambda_.33
= control target key start
LH: loop header
LB: loop body
LE: loop exit
PB: predicated region body
PF: predicated region fallthrough
CT: control target
= control target key end

     0   :  { %vm25_vm0 = vcmask 261120   ;;  %v251_v0 = vmov 0.0   ;;  %vm252_vm1 = vmmov 0   ;;  %vm136_vm2 = vcmask 523264   ;;  %s326_s1 = inlined_call_operand.vmem [shape: bf16[32,64], index: 1, kind: input, shape index: {}]   ;;  %s327_s0 = inlined_call_operand.vmem [shape: f32[16,32], index: 0, kind: input, shape index: {}]   ;;  %s328_s3 = inlined_call_operand.vmem [shape: bf16[64,32], index: 3, kind: input, shape index: {}]   ;;  %s329_s2 = inlined_call_operand.vmem [shape: f32[1,64], index: 2, kind: input, shape index: {}]   ;;  %s330_s4 = inlined_call_operand.vmem [shape: f32[1,32], index: 4, kind: input, shape index: {}]   ;;  %s331_s5 = inlined_call_operand.vmem [shape: f32[16,32], index: 5, kind: output, shape index: {}]  }
   0x1   :  { %223 = vmatprep.subr.bf16.mxu0 %v251_v0  ;;  %v245_v1 = vld [vmem:[%s326_s1] sm:$0xff]   ;;  %227 = vmatprep.mubr.msk.bf16.mxu0 %vm252_vm1, %v251_v0  ;;  %26 = vst.msk [vmem:[#allocation2] sm:$0xff] %vm25_vm0, %v251_v0  ;;  %27 = vst.msk [vmem:[#allocation2 + $0x8] sm:$0xff] %vm25_vm0, %v251_v0  ;;  %v246_v2 = vld [vmem:[%s326_s1 + $0x8] sm:$0xff]  }
   0x2   :  { %231 = vmatprep.subr.bf16.mxu1 %v251_v0  ;;  %239 = vmatprep.mubr.msk.bf16.mxu1 %vm252_vm1, %v251_v0  ;;  %v28_v3 = vld [vmem:[%s327_s0] sm:$0xff]  ;;  %v29_v4 = vld [vmem:[%s327_s0 + $0x8] sm:$0xff]  ;;  %v249_v8 = vld [vmem:[%s328_s3 + $0x10] sm:$0xff]  }
   0x3   :  { %224 = vmatpush3.bf16.msra.mxu0 %v245_v1  ;;  %v247_v5 = vld [vmem:[%s328_s3] sm:$0xff]   ;;  %v248_v6 = vld [vmem:[%s328_s3 + $0x8] sm:$0xff]   ;;  %v30_v7 = vpack.c.bf16 %v29_v4, %v28_v3  ;;  %v250_v9 = vld [vmem:[%s328_s3 + $0x18] sm:$0xff]  }
   0x4   :  { %225 = vmatprep.subr.bf16.mxu0 %v251_v0  ;;  %232 = vmatpush3.bf16.msra.mxu1 %v247_v5  ;;  %v205_v10 = vld [vmem:[%s329_s2] ss:$0 sm:$0xff] }
   0x5   :  { %233 = vmatprep.subr.bf16.mxu1 %v251_v0  ;;  %v214_v28 = vld [vmem:[%s330_s4] ss:$0 sm:$0xff] }
   0x7   :  { %226 = vmatpush3.bf16.msra.mxu0 %v246_v2 }
   0x8   :  { %234 = vmatpush3.bf16.msra.mxu1 %v248_v6  ;;  %v101_v20 = vld [vmem:[#allocation2] sm:$0xff]  ;;  %v102_v22 = vld [vmem:[#allocation2 + $0x8] sm:$0xff] }
   0x9   :  { %235 = vmatprep.subr.bf16.mxu1 %v251_v0 }
   0xa   :  { %228 = vmatmul.mubr.msk.bf16.vlgmr.msra.gmra.mrb[0].mxu0 %vm25_vm0, %v30_v7 }
   0xc   :  { %236 = vmatpush3.bf16.msra.mxu1 %v249_v8 }
   0xd   :  { %237 = vmatprep.subr.bf16.mxu1 %v251_v0 }
  0x10   :  { %238 = vmatpush3.bf16.msra.mxu1 %v250_v9 }
  0xdd   :  { %v92_v11 = vpop.f32.mrb[0].mxu0 }
  0xde   :  { %v93_v12 = vadd.f32 %v205_v10, %v92_v11  ;;  %v229_v13 = vpop.f32.mrb[1].mxu0 }
  0xdf   :  { %v95_v14 = vpop.f32.mrb[2].mxu0 }
  0xe0   :  { %v96_v15 = vadd.f32 %v205_v10, %v95_v14  ;;  %v230_v16 = vpop.f32.mrb[3].mxu0  ;;  %v99_v17 = vmax.f32 %v93_v12, 0.0 }
  0xe2   :  { %v100_v18 = vmax.f32 %v96_v15, 0.0 }
  0xe4   :  { %v103_v19 = vpack.c.bf16 %v100_v18, %v99_v17 }
  0xe6   :  { %240 = vmatmul.mubr.msk.bf16.vlgmr.msra.gmra.mrb[0].mxu1 %vm136_vm2, %v103_v19 }
 0x1b9   :  { %v174_v21 = vpop.f32.mrb[0].mxu1 }
 0x1ba   :  { %v181_v23 = vadd.f32 %v174_v21, %v101_v20  ;;  %v241_v24 = vpop.f32.mrb[1].mxu1 }
 0x1bb   :  { %v177_v25 = vpop.f32.mrb[2].mxu1 }
 0x1bc   :  { %183 = vst.msk [vmem:[#allocation2] sm:$0xff] %vm25_vm0, %v181_v23  ;;  %v182_v26 = vadd.f32 %v177_v25, %v102_v22  ;;  %v242_v27 = vpop.f32.mrb[3].mxu1 }
 0x1be   :  { %184 = vst.msk [vmem:[#allocation2 + $0x8] sm:$0xff] %vm25_vm0, %v182_v26 }
 0x1c3   :  { %v188_v29 = vld [vmem:[#allocation2] sm:$0xff] }
 0x1c4   :  { %v197_v30 = vadd.f32 %v214_v28, %v188_v29 }
 0x1c5   :  { %v189_v31 = vld [vmem:[#allocation2 + $0x8] sm:$0xff] }
 0x1c6   :  { %199 = vst.msk [vmem:[%s331_s5] sm:$0xff] %vm25_vm0, %v197_v30  ;;  %v198_v32 = vadd.f32 %v214_v28, %v189_v31 }
 0x1c8   :  { %200 = vst.msk [vmem:[%s331_s5 + $0x8] sm:$0xff] %vm25_vm0, %v198_v32 }

// kernel: _lambda_.41
= control target key start
LH: loop header
LB: loop body
LE: loop exit
PB: predicated region body
PF: predicated region fallthrough
CT: control target
= control target key end

     0   :  { %v130_v0 = vmov 0.0   ;;  %vm131_vm0 = vmmov 0   ;;  %vm42_vm1 = vcmask 261120   ;;  %s173_s1 = inlined_call_operand.vmem [shape: bf16[32,128], index: 1, kind: input, shape index: {}]   ;;  %s174_s0 = inlined_call_operand.vmem [shape: f32[16,32], index: 0, kind: input, shape index: {}]   ;;  %s175_s2 = inlined_call_operand.vmem [shape: f32[1,128], index: 2, kind: input, shape index: {}]   ;;  %s176_s3 = inlined_call_operand.vmem [shape: f32[16,128], index: 3, kind: output, shape index: {}]  }
   0x1   :  { %118 = vmatprep.subr.bf16.mxu0 %v130_v0  ;;  %v128_v1 = vld [vmem:[%s173_s1] sm:$0xff]   ;;  %122 = vmatprep.mubr.msk.bf16.mxu0 %vm131_vm0, %v130_v0  ;;  %v129_v2 = vld [vmem:[%s173_s1 + $0x8] sm:$0xff]  }
   0x2   :  { %119 = vmatpush3.bf16.msra.mxu0 %v128_v1  ;;  %v23_v3 = vld [vmem:[%s174_s0] sm:$0xff]  ;;  %v24_v4 = vld [vmem:[%s174_s0 + $0x8] sm:$0xff] }
   0x3   :  { %120 = vmatprep.subr.bf16.mxu0 %v130_v0  ;;  %v25_v5 = vpack.c.bf16 %v24_v4, %v23_v3  ;;  %v114_v6 = vld [vmem:[%s175_s2] ss:$0 sm:$0xff] }
   0x6   :  { %121 = vmatpush3.bf16.msra.mxu0 %v129_v2 }
   0x9   :  { %123 = vmatmul.mubr.msk.bf16.vlgmr.msra.gmra.mrb[0].mxu0 %vm42_vm1, %v25_v5 }
  0xdc   :  { %v80_v7 = vpop.f32.mrb[0].mxu0 }
  0xdd   :  { %v103_v8 = vadd.f32 %v114_v6, %v80_v7  ;;  %v124_v9 = vpop.f32.mrb[1].mxu0 }
  0xde   :  { %v83_v10 = vpop.f32.mrb[2].mxu0 }
  0xdf   :  { %105 = vst [vmem:[%s176_s3] sm:$0xff] %v103_v8  ;;  %v104_v11 = vadd.f32 %v114_v6, %v83_v10  ;;  %v125_v12 = vpop.f32.mrb[3].mxu0 }
  0xe1   :  { %106 = vst [vmem:[%s176_s3 + $0x8] sm:$0xff] %v104_v11 }

// kernel: _lambda_.31
= control target key start
LH: loop header
LB: loop body
LE: loop exit
PB: predicated region body
PF: predicated region fallthrough
CT: control target
= control target key end

     0   :  { %s2719_s17 = smov 0   ;;  %s2721_s18 = smov 0   ;;  %s3137_s0 = inlined_call_operand.vmem [shape: f32[2,8,32], index: 0, kind: input, shape index: {}]   ;;  %s3138_s1 = inlined_call_operand.vmem [shape: f32[2,10,32], index: 1, kind: input, shape index: {}]   ;;  %s3139_s2 = inlined_call_operand.vmem [shape: f32[2,1,10], index: 2, kind: input, shape index: {}]   ;;  %s3140_s3 = inlined_call_operand.vmem [shape: bf16[4,32,8], index: 3, kind: input, shape index: {}]   ;;  %s3141_s4 = inlined_call_operand.vmem [shape: f32[4,1,8], index: 4, kind: input, shape index: {}]   ;;  %s3142_s5 = inlined_call_operand.vmem [shape: bf16[4,32,8], index: 5, kind: input, shape index: {}]   ;;  %s3143_s6 = inlined_call_operand.vmem [shape: f32[4,1,8], index: 6, kind: input, shape index: {}]   ;;  %s3144_s7 = inlined_call_operand.vmem [shape: bf16[4,32,8], index: 7, kind: input, shape index: {}]   ;;  %s3145_s8 = inlined_call_operand.vmem [shape: f32[4,1,8], index: 8, kind: input, shape index: {}]   ;;  %s3146_s9 = inlined_call_operand.vmem [shape: bf16[4,8,32], index: 9, kind: input, shape index: {}]   ;;  %s3147_s10 = inlined_call_operand.vmem [shape: f32[1,32], index: 10, kind: input, shape index: {}]   ;;  %s3148_s11 = inlined_call_operand.vmem [shape: f32[2,8,32], index: 11, kind: output, shape index: {}]  }
   0x1   :  { %s2723_s19 = smov 0  }
   0x2 LB: > { %s40_s20 = sadd.s32 1, %s2649_s18  ;;  %p2208_p0 = scmp.ge.s32.totalorder %s2653_s19, 1  ;;  %s2653_s19 = sphi %s2723_s19, %s21_s19   ;;  %s2649_s18 = sphi %s2721_s18, %s3150_s18   ;;  %s2645_s17 = sphi %s2719_s17, %s3149_s17  }
   0x3   : > { %p42_p1 = scmp.ge.s32.totalorder %s40_s20, 2  ;;  %p392_p2 = scmp.lt.s32.totalorder %s2653_s19, 3 }
   0x5   : > { %s3152_s20 = smov (%p42_p1, %s40_s20), 0  ;;  %p393_p3 = pnand %p2208_p0, %p392_p2 }
   0x6   : > { %v2583_v0 = vld [vmem:[%s3140_s3] sm:$0xff] (!%p393_p3)   ;;  %v2655_v1 = vmov (!%p393_p3), 0.0   ;;  %v2584_v2 = vld [vmem:[%s3140_s3 + $0x8] sm:$0xff] (!%p393_p3)   ;;  %vm2656_vm0 = vmmov (!%p393_p3), 0   ;;  %p451_p4 = scmp.lt.s32.totalorder (!%p393_p3), %s2645_s17, 1  ;;  %vm511_vm1 = vcmask (!%p393_p3), 261120   ;;  %v918_v53 = vlaneseq (!%p393_p3) }
   0x7   : > { %396 = sbr.rel (%p393_p3) target bundleno = 1979 (0x7bb), region = 64  ;;  %2385 = vmatprep.subr.bf16.mxu0 (!%p393_p3), %v2655_v1  ;;  %2393 = vmatprep.subr.bf16.mxu1 (!%p393_p3), %v2655_v1  ;;  %v2585_v4 = vld [vmem:[%s3140_s3 + $0x20] sm:$0xff] (!%p393_p3)   ;;  %v2586_v6 = vld [vmem:[%s3140_s3 + $0x28] sm:$0xff] (!%p393_p3)   ;;  %vm556_vm2 = vcmask (!%p393_p3), 64512   ;;  %v2589_v12 = vld [vmem:[%s3140_s3 + $0x10] sm:$0xff] (!%p393_p3)   ;;  %vm762_vm3 = vcmask (!%p393_p3), 7168  }
   0x8   : > { %2386 = vmatpush3.bf16.msra.mxu0 (!%p393_p3), %v2583_v0  ;;  %2389 = vmatprep.mubr.msk.bf16.mxu0 (!%p393_p3), %vm2656_vm0, %v2655_v1  ;;  %v2587_v7 = vld [vmem:[%s3142_s5] sm:$0xff] (!%p393_p3)   ;;  %v2588_v10 = vld [vmem:[%s3142_s5 + $0x8] sm:$0xff] (!%p393_p3)   ;;  %771 = vst.msk [vmem:[#allocation5] sm:$0xff] (!%p393_p3), %vm556_vm2, %v2655_v1  ;;  %772 = vst.msk [vmem:[#allocation5 + $0x8] sm:$0xff] (!%p393_p3), %vm556_vm2, %v2655_v1  ;;  %v2657_v49 = vmov (!%p393_p3), -inf   ;;  %v919_v55 = vshrl.u32 (!%p393_p3), %v918_v53, 7 }
   0x9   : > { %2387 = vmatprep.subr.bf16.mxu0 (!%p393_p3), %v2655_v1  ;;  %2397 = vmatprep.mubr.msk.bf16.mxu1 (!%p393_p3), %vm2656_vm0, %v2655_v1  ;;  %773 = vst.msk [vmem:[#allocation5 + $0x10] sm:$0xff] (!%p393_p3), %vm556_vm2, %v2655_v1  ;;  %774 = vst.msk [vmem:[#allocation5 + $0x18] sm:$0xff] (!%p393_p3), %vm556_vm2, %v2655_v1  ;;  %v2591_v13 = vld [vmem:[%s3140_s3 + $0x18] sm:$0xff] (!%p393_p3)   ;;  %v2213_v14 = vld [vmem:[%s3141_s4] ss:$0 sm:$0xff] (!%p393_p3)  ;;  %vm971_vm5 = vcmask (!%p393_p3), 80896  }
   0xa   : > { %2394 = vmatpush3.bf16.msra.mxu1 (!%p393_p3), %v2589_v12  ;;  %v2231_v21 = vld [vmem:[%s3141_s4 + $0x2] ss:$0 sm:$0xff] (!%p393_p3)  ;;  %v2244_v28 = vld [vmem:[%s3143_s6] ss:$0 sm:$0xff] (!%p393_p3)  ;;  %v2590_v38 = vld [vmem:[%s3142_s5 + $0x10] sm:$0xff] (!%p393_p3)   ;;  %763 = vst.msk [vmem:[#allocation3] sm:$0xff] (!%p393_p3), %vm762_vm3, %v2657_v49 }
   0xb   : > { %2395 = vmatprep.subr.bf16.mxu1 (!%p393_p3), %v2655_v1  ;;  %v2592_v40 = vld [vmem:[%s3142_s5 + $0x18] sm:$0xff] (!%p393_p3)   ;;  %v2222_v41 = vld [vmem:[%s3141_s4 + $0x1] ss:$0 sm:$0xff] (!%p393_p3)  ;;  %v2595_v48 = vld [vmem:[%s3140_s3 + $0x30] sm:$0xff] (!%p393_p3)   ;;  %764 = vst.msk [vmem:[#allocation3 + $0x8] sm:$0xff] (!%p393_p3), %vm762_vm3, %v2657_v49  ;;  %v920_v56 = vsub.s32 (!%p393_p3), 0, %v919_v55 }
   0xc   : > { %2388 = vmatpush3.bf16.msra.mxu0 (!%p393_p3), %v2584_v2  ;;  %765 = vst.msk [vmem:[#allocation3 + $0x10] sm:$0xff] (!%p393_p3), %vm762_vm3, %v2657_v49  ;;  %766 = vst.msk [vmem:[#allocation3 + $0x18] sm:$0xff] (!%p393_p3), %vm762_vm3, %v2657_v49  ;;  %v2596_v50 = vld [vmem:[%s3140_s3 + $0x38] sm:$0xff] (!%p393_p3)   ;;  %v2597_v51 = vld [vmem:[%s3144_s7] sm:$0xff] (!%p393_p3)   ;;  %vm1006_vm6 = vcmask (!%p393_p3), 1044480   ;;  %vm1880_vm7 = vcmask (!%p393_p3), 1043456  }
   0xd   : > { %2401 = vmatprep.subr.bf16.mxu0 (!%p393_p3), %v2655_v1  ;;  %767 = vst.msk [vmem:[#allocation4] sm:$0xff] (!%p393_p3), %vm762_vm3, %v2655_v1  ;;  %768 = vst.msk [vmem:[#allocation4 + $0x8] sm:$0xff] (!%p393_p3), %vm762_vm3, %v2655_v1  ;;  %v2598_v52 = vld [vmem:[%s3144_s7 + $0x8] sm:$0xff] (!%p393_p3)   ;;  %v2259_v2 = vld [vmem:[%s3143_s6 + $0x1] ss:$0 sm:$0xff] (!%p393_p3) }
   0xe   : > { %s3154_s17 = smov (!%p451_p4, %s2645_s17), 1  ;;  %2396 = vmatpush3.bf16.msra.mxu1 %v2591_v13  ;;  %769 = vst.msk [vmem:[#allocation4 + $0x10] sm:$0xff] %vm762_vm3, %v2655_v1  ;;  %770 = vst.msk [vmem:[#allocation4 + $0x18] sm:$0xff] %vm762_vm3, %v2655_v1  ;;  %v2599_v53 = vld [vmem:[%s3142_s5 + $0x30] sm:$0xff]   ;;  %v2600_v55 = vld [vmem:[%s3142_s5 + $0x38] sm:$0xff]  }
   0xf   : > { %s2209_s25 = sshll.u32 %s3154_s17, 3  ;;  %s2324_s29 = sshll.u32 %s3154_s17, 4  ;;  %2409 = vmatprep.subr.bf16.mxu1 %v2655_v1 }
  0x10   : > { %s457_s28 = scalar_lea.vmem %s3137_s0, %s2209_s25  ;;  %s466_s23 = scalar_lea.vmem %s3138_s1, %s2324_s29 }
  0x11   : > { %v486_v3 = vld [vmem:[%s457_s28] sm:$0xff]  ;;  %v776_v9 = vld [vmem:[%s466_s23 + $0x8] sm:$0x3]  ;;  %s473_s24 = scalar_lea.vmem %s3139_s2, %s3154_s17  ;;  %s480_s13 = scalar_lea.vmem %s3148_s11, %s2209_s25 }
  0x12   : > { %v2763_v5 = vpack.c.bf16 %v486_v3, %v486_v3  ;;  %v775_v8 = vld [vmem:[%s466_s23] sm:$0xff] }
  0x13   : > { %v2788_v11 = vpack.c.bf16 %v776_v9, %v775_v8  ;;  %v778_v54 = vld [vmem:[%s473_s24] sm:$0x1] }
  0x14   : > { %2390 = vmatmul.mubr.msk.bf16.vlgmr.msra.gmra.mrb[0].mxu0 %vm511_vm1, %v2763_v5  ;;  %2398 = vmatmul.mubr.msk.bf16.vlgmr.msra.gmra.mrb[0].mxu1 %vm511_vm1, %v2763_v5  ;;  %vm779_vm4 = vcmp.gt.f32.partialorder %v778_v54, 0.5 }
  0x15   : > { %2402 = vmatpush3.bf16.msra.mxu0 %v2585_v4  ;;  %2405 = vmatprep.mubr.msk.bf16.mxu0 %vm2656_vm0, %v2655_v1  ;;  %v780_v57 = vsel %vm779_vm4, -1e+09, %v2655_v1 }
  0x16   : > { %2403 = vmatprep.subr.bf16.mxu0 %v2655_v1  ;;  %2413 = vmatprep.mubr.msk.bf16.mxu1 %vm2656_vm0, %v2655_v1  ;;  %v2888_v58 = vrot.slane %v780_v57, %v920_v56 }
  0x17   : > { %2410 = vmatpush3.bf16.msra.mxu1 %v2595_v48 }
  0x18   : > { %2411 = vmatprep.subr.bf16.mxu1 %v2655_v1 }
  0x19   : > { %2404 = vmatpush3.bf16.msra.mxu0 %v2586_v6 }
  0x1a   : > { %2417 = vmatprep.subr.bf16.mxu0 %v2655_v1 }
  0x1b   : > { %2412 = vmatpush3.bf16.msra.mxu1 %v2596_v50 }
  0x1c   : > { %2406 = vmatmul.mubr.msk.bf16.vlgmr.msra.gmra.mrb[4].mxu0 %vm511_vm1, %v2763_v5  ;;  %2425 = vmatprep.subr.bf16.mxu1 %v2655_v1 }
  0x1d   : > { %2418 = vmatpush3.bf16.msra.mxu0 %v2587_v7  ;;  %2421 = vmatprep.mubr.msk.bf16.mxu0 %vm2656_vm0, %v2655_v1 }
  0x1e   : > { %2419 = vmatprep.subr.bf16.mxu0 %v2655_v1  ;;  %2414 = vmatmul.mubr.msk.bf16.vlgmr.msra.gmra.mrb[4].mxu1 %vm511_vm1, %v2763_v5 }
  0x1f   : > { %2426 = vmatpush3.bf16.msra.mxu1 %v2597_v51  ;;  %2429 = vmatprep.mubr.msk.bf16.mxu1 %vm2656_vm0, %v2655_v1 }
  0x20   : > { %2427 = vmatprep.subr.bf16.mxu1 %v2655_v1 }
  0x21   : > { %2420 = vmatpush3.bf16.msra.mxu0 %v2588_v10 }
  0x22   : > { %2433 = vmatprep.subr.bf16.mxu0 %v2655_v1 }
  0x23   : > { %2428 = vmatpush3.bf16.msra.mxu1 %v2598_v52 }
  0x24   : > { %2422 = vmatmul.mubr.msk.bf16.vlgmr.msra.gmra.mrb[8].mxu0 %vm511_vm1, %v2788_v11  ;;  %2439 = vmatprep.subr.bf16.mxu1 %v2655_v1 }
  0x25   : > { %2435 = vmatprep.mubr.msk.bf16.mxu0 %vm2656_vm0, %v2655_v1 }
  0x26   : > { %2430 = vmatmul.mubr.msk.bf16.vlgmr.msra.gmra.mrb[8].mxu1 %vm511_vm1, %v2788_v11 }
  0x27   : > { %2441 = vmatprep.mubr.msk.bf16.mxu1 %vm2656_vm0, %v2655_v1 }
  0xe7   : > { %v549_v15 = vpop.f32.mrb[0].mxu0  ;;  %v617_v42 = vpop.f32.mrb[0].mxu1 }
  0xe8   : > { %v550_v16 = vadd.f32 %v2213_v14, %v549_v15  ;;  %v2391_v17 = vpop.f32.mrb[1].mxu0  ;;  %v618_v43 = vadd.f32 %v2222_v41, %v617_v42  ;;  %v2399_v44 = vpop.f32.mrb[1].mxu1  ;;  %v2658_v14 = vmov 0   ;;  %v2593_v15 = vld [vmem:[%s3142_s5 + $0x20] sm:$0xff]  }
  0xe9   : > { %v552_v18 = vpop.f32.mrb[2].mxu0  ;;  %v620_v45 = vpop.f32.mrb[2].mxu1  ;;  %2581 = vset.pattern.permute.xlu0 %v2658_v14  ;;  %2582 = vset.pattern.permute.xlu1 %v2658_v14  ;;  %v2915_v17 = vld [vmem:[#allocation3] sm:$0xff] }
  0xea   : > { %v555_v19 = vmul.f32 0.35355338, %v550_v16  ;;  %v2392_v20 = vpop.f32.mrb[3].mxu0  ;;  %v623_v46 = vmul.f32 0.35355338, %v618_v43  ;;  %v2400_v47 = vpop.f32.mrb[3].mxu1 }
  0xeb   : > { %v2594_v16 = vld [vmem:[%s3142_s5 + $0x28] sm:$0xff]   ;;  %v2279_v43 = vld [vmem:[%s3143_s6 + $0x2] ss:$0 sm:$0xff] }
  0xec   : > { %557 = vst.msk [vmem:[#allocation2] sm:$0xff] %vm556_vm2, %v555_v19  ;;  %625 = vst.msk [vmem:[#allocation2 + $0x8] sm:$0xff] %vm556_vm2, %v623_v46 }
  0xef   : > { %v685_v22 = vpop.f32.mrb[4].mxu0 }
  0xf0   : > { %v686_v23 = vadd.f32 %v2231_v21, %v685_v22  ;;  %v2407_v24 = vpop.f32.mrb[5].mxu0 }
  0xf1   : > { %v688_v25 = vpop.f32.mrb[6].mxu0  ;;  %v753_v21 = vpop.f32.mrb[4].mxu1 }
  0xf2   : > { %v691_v26 = vmul.f32 0.35355338, %v686_v23  ;;  %v2408_v27 = vpop.f32.mrb[7].mxu0  ;;  %v2415_v22 = vpop.f32.mrb[5].mxu1  ;;  %v2240_v23 = vld [vmem:[%s3141_s4 + $0x3] ss:$0 sm:$0xff] }
  0xf3   : > { %v915_v37 = vld [vmem:[#allocation2] sm:$0xff]  ;;  %v1188_v12 = vld [vmem:[#allocation2 + $0x8] sm:$0xff]  ;;  %v756_v24 = vpop.f32.mrb[6].mxu1 }
  0xf4   : > { %693 = vst.msk [vmem:[#allocation2 + $0x10] sm:$0xff] %vm556_vm2, %v691_v26  ;;  %v916_v39 = vpack.c.bf16 %v915_v37, %v915_v37  ;;  %v1189_v13 = vpack.c.bf16 %v1188_v12, %v1188_v12  ;;  %v2248_v25 = vld [vmem:[%s3145_s8] ss:$0 sm:$0xff]  ;;  %v754_v26 = vadd.f32 %v2240_v23, %v753_v21  ;;  %v2416_v27 = vpop.f32.mrb[7].mxu1  ;;  %v2299_v12 = vld [vmem:[%s3143_s6 + $0x3] ss:$0 sm:$0xff] }
  0xf7   : > { %v842_v29 = vpop.f32.mrb[8].mxu0 }
  0xf8   : > { %v2423_v30 = vpop.f32.mrb[9].mxu0  ;;  %v843_v32 = vadd.f32 %v2244_v28, %v842_v29  ;;  %v759_v29 = vmul.f32 0.35355338, %v754_v26 }
  0xf9   : > { %v845_v31 = vpop.f32.mrb[10].mxu0 }
  0xfa   : > { %v846_v33 = vadd.f32 %v2244_v28, %v845_v31  ;;  %v2424_v34 = vpop.f32.mrb[11].mxu0  ;;  %v907_v28 = vpop.f32.mrb[8].mxu1  ;;  %761 = vst.msk [vmem:[#allocation2 + $0x18] sm:$0xff] %vm556_vm2, %v759_v29 }
  0xfb   : > { %v908_v30 = vadd.f32 %v2248_v25, %v907_v28  ;;  %v2431_v31 = vpop.f32.mrb[9].mxu1  ;;  %v1454_v52 = vld [vmem:[#allocation2 + $0x10] sm:$0xff] }
  0xfc   : > { %v849_v35 = vpack.c.bf16 %v846_v33, %v843_v32  ;;  %v910_v32 = vpop.f32.mrb[10].mxu1  ;;  %v1455_v54 = vpack.c.bf16 %v1454_v52, %v1454_v52 }
  0xfd   : > { %v911_v33 = vadd.f32 %v2248_v25, %v910_v32  ;;  %v2432_v34 = vpop.f32.mrb[11].mxu1  ;;  %v2268_v32 = vld [vmem:[%s3145_s8 + $0x1] ss:$0 sm:$0xff] }
  0xfe   : > { %v928_v36 = vsel %vm556_vm2, %v849_v35, 0 }
  0xff   : > { %2434 = vmatpush3.bf16.xpose.msra.mxu0 %v928_v36  ;;  %v914_v35 = vpack.c.bf16 %v911_v33, %v908_v30 }
 0x100   : > { %2445 = vmatprep.subr.bf16.mxu0 %v2655_v1 }
 0x101   : > { %v1008_v36 = vsel %vm1006_vm6, %v914_v35, 0  ;;  %v1720_v24 = vld [vmem:[#allocation2 + $0x18] sm:$0xff] }
 0x102   : > { %2440 = vmatpush3.bf16.msra.mxu1 %v1008_v36  ;;  %v1721_v25 = vpack.c.bf16 %v1720_v24, %v1720_v24 }
 0x103   : > { %2453 = vmatprep.subr.bf16.mxu1 %v2655_v1 }
 0x106   : > { %2436 = vmatmul.mubr.msk.bf16.vlgmr.msra.gmra.mrb[12].mxu0 %vm556_vm2, %v916_v39 }
 0x107   : > { %2446 = vmatpush3.bf16.msra.mxu0 %v2590_v38  ;;  %2449 = vmatprep.mubr.msk.bf16.mxu0 %vm2656_vm0, %v2655_v1 }
 0x108   : > { %2447 = vmatprep.subr.bf16.mxu0 %v2655_v1 }
 0x10b   : > { %2448 = vmatpush3.bf16.msra.mxu0 %v2592_v40 }
 0x10c   : > { %2461 = vmatprep.subr.bf16.mxu0 %v2655_v1 }
 0x10e   : > { %2450 = vmatmul.mubr.msk.bf16.vlgmr.msra.gmra.mrb[16].mxu0 %vm511_vm1, %v2788_v11 }
 0x10f   : > { %2463 = vmatprep.mubr.msk.bf16.mxu0 %vm2656_vm0, %v2655_v1 }
 0x1d9   : > { %v964_v59 = vpop.f32.mrb[12].mxu0 }
 0x1da   : > { %v2891_v60 = vadd.f32 %v964_v59, %v2888_v58  ;;  %v2437_v61 = vpop.f32.mrb[13].mxu0 }
 0x1db   : > { %v967_v62 = vpop.f32.mrb[14].mxu0 }
 0x1dc   : > { %v2438_v63 = vpop.f32.mrb[15].mxu0  ;;  %v972_v0 = vsel %vm971_vm5, %v2891_v60, -inf  ;;  %v2601_v62 = vld [vmem:[%s3144_s7 + $0x10] sm:$0xff]  }
 0x1dd   : > { %973 = vmax.xlane.f32.xlu0 %v972_v0  ;;  %v2602_v0 = vld [vmem:[%s3144_s7 + $0x18] sm:$0xff]  }
 0x1e1   : > { %v1112_v3 = vpop.f32.mrb[16].mxu0 }
 0x1e2   : > { %v2451_v4 = vpop.f32.mrb[17].mxu0  ;;  %v1113_v6 = vadd.f32 %v2259_v2, %v1112_v3 }
 0x1e3   : > { %v1115_v5 = vpop.f32.mrb[18].mxu0 }
 0x1e4   : > { %v1116_v7 = vadd.f32 %v2259_v2, %v1115_v5  ;;  %v2452_v8 = vpop.f32.mrb[19].mxu0 }
 0x1e6   : > { %v1119_v9 = vpack.c.bf16 %v1116_v7, %v1113_v6 }
 0x1e8   : > { %v1194_v10 = vsel %vm556_vm2, %v1119_v9, 0 }
 0x1e9   : > { %2462 = vmatpush3.bf16.xpose.msra.mxu0 %v1194_v10 }
 0x1ea   : > { %2473 = vmatprep.subr.bf16.mxu0 %v2655_v1 }
 0x1f0   : > { %2464 = vmatmul.mubr.msk.bf16.vlgmr.msra.gmra.mrb[20].mxu0 %vm556_vm2, %v1189_v13 }
 0x1f1   : > { %2474 = vmatpush3.bf16.msra.mxu0 %v2593_v15  ;;  %2477 = vmatprep.mubr.msk.bf16.mxu0 %vm2656_vm0, %v2655_v1 }
 0x1f2   : > { %2475 = vmatprep.subr.bf16.mxu0 %v2655_v1 }
 0x1f5   : > { %2476 = vmatpush3.bf16.msra.mxu0 %v2594_v16 }
 0x1f6   : > { %2489 = vmatprep.subr.bf16.mxu0 %v2655_v1 }
 0x1f8   : > { %2478 = vmatmul.mubr.msk.bf16.vlgmr.msra.gmra.mrb[24].mxu0 %vm511_vm1, %v2788_v11 }
 0x1f9   : > { %2491 = vmatprep.mubr.msk.bf16.mxu0 %vm2656_vm0, %v2655_v1 }
 0x26a   : > { %v974_v18 = vpop.xlane.xlu0 %973 }
 0x26b   : > { %v2918_v19 = vmax.f32 %v2915_v17, %v974_v18 }
 0x26d   : > { %v976_v20 = vsub.f32 %v2915_v17, %v2918_v19  ;;  %1052 = vst.msk [vmem:[#allocation3] sm:$0xff] %vm762_vm3, %v2918_v19  ;;  %981 = vperm.xlu0 %2581, %v2918_v19  }
 0x2c3   : > { %v1230_v37 = vpop.f32.mrb[20].mxu0 }
 0x2c4   : > { %v2935_v38 = vadd.f32 %v1230_v37, %v2888_v58  ;;  %v2465_v39 = vpop.f32.mrb[21].mxu0 }
 0x2c5   : > { %v1233_v40 = vpop.f32.mrb[22].mxu0 }
 0x2c6   : > { %v2466_v41 = vpop.f32.mrb[23].mxu0  ;;  %v1238_v42 = vsel %vm971_vm5, %v2935_v38, -inf }
 0x2c7   : > { %1239 = vmax.xlane.f32.xlu1 %v1238_v42 }
 0x2cb   : > { %v1378_v44 = vpop.f32.mrb[24].mxu0 }
 0x2cc   : > { %v2479_v45 = vpop.f32.mrb[25].mxu0  ;;  %v1379_v47 = vadd.f32 %v2279_v43, %v1378_v44 }
 0x2cd   : > { %v1381_v46 = vpop.f32.mrb[26].mxu0  ;;  %v2604_v45 = vld [vmem:[%s3144_s7 + $0x28] sm:$0xff]  }
 0x2ce   : > { %v1382_v48 = vadd.f32 %v2279_v43, %v1381_v46  ;;  %v2480_v49 = vpop.f32.mrb[27].mxu0  ;;  %v1503_v46 = vld [vmem:[#allocation3 + $0x10] sm:$0xff] }
 0x2d0   : > { %v1385_v50 = vpack.c.bf16 %v1382_v48, %v1379_v47 }
 0x2d2   : > { %v1460_v51 = vsel %vm556_vm2, %v1385_v50, 0 }
 0x2d3   : > { %2490 = vmatpush3.bf16.xpose.msra.mxu0 %v1460_v51 }
 0x2d4   : > { %2501 = vmatprep.subr.bf16.mxu0 %v2655_v1 }
 0x2da   : > { %2492 = vmatmul.mubr.msk.bf16.vlgmr.msra.gmra.mrb[28].mxu0 %vm556_vm2, %v1455_v54 }
 0x2db   : > { %2502 = vmatpush3.bf16.msra.mxu0 %v2599_v53  ;;  %2505 = vmatprep.mubr.msk.bf16.mxu0 %vm2656_vm0, %v2655_v1 }
 0x2dc   : > { %2503 = vmatprep.subr.bf16.mxu0 %v2655_v1 }
 0x2df   : > { %2504 = vmatpush3.bf16.msra.mxu0 %v2600_v55 }
 0x2e0   : > { %2517 = vmatprep.subr.bf16.mxu0 %v2655_v1 }
 0x2e2   : > { %2506 = vmatmul.mubr.msk.bf16.vlgmr.msra.gmra.mrb[32].mxu0 %vm511_vm1, %v2788_v11 }
 0x2e3   : > { %2519 = vmatprep.mubr.msk.bf16.mxu0 %vm2656_vm0, %v2655_v1 }
 0x2ec   : > { %v982_v56 = vpop.permute.xlu0 %981 }
 0x2ed   : > { %v984_v57 = vsub.f32 %v2891_v60, %v982_v56  ;;  %v2979_v60 = vld [vmem:[#allocation3 + $0x8] sm:$0xff] }
 0x2ef   : > { %v985_v59 = vmul.f32 1.442695, %v984_v57 }
 0x2f1   : > { %2607 = vpow2.f32 %v985_v59 }
 0x2fb   : > { %v2960_v61 = vpop.eup %2607 }
 0x2fc   : > { %v1002_v63 = vpack.c.bf16 %v2960_v61, %v2960_v61  ;;  %v989_v56 = vsel %vm971_vm5, %v2960_v61, 0.0 }
 0x2fe   : > { %2442 = vmatmul.mubr.msk.bf16.vlgmr.msra.gmra.mrb[12].mxu1 %vm971_vm5, %v1002_v63 }
 0x2ff   : > { %2454 = vmatpush3.bf16.msra.mxu1 %v2601_v62  ;;  %2457 = vmatprep.mubr.msk.bf16.mxu1 %vm2656_vm0, %v2655_v1 }
 0x300   : > { %2455 = vmatprep.subr.bf16.mxu1 %v2655_v1 }
 0x303   : > { %2456 = vmatpush3.bf16.msra.mxu1 %v2602_v0 }
 0x304   : > { %2467 = vmatprep.subr.bf16.mxu1 %v2655_v1 }
 0x306   : > { %2458 = vmatmul.mubr.msk.bf16.vlgmr.msra.gmra.mrb[16].mxu1 %vm511_vm1, %v2788_v11 }
 0x307   : > { %2469 = vmatprep.mubr.msk.bf16.mxu1 %vm2656_vm0, %v2655_v1 }
 0x354   : > { %v1240_v2 = vpop.xlane.xlu1 %1239 }
 0x355   : > { %v2982_v3 = vmax.f32 %v2979_v60, %v1240_v2  ;;  %v2288_v2 = vld [vmem:[%s3145_s8 + $0x2] ss:$0 sm:$0xff] }
 0x357   : > { %v1242_v4 = vsub.f32 %v2979_v60, %v2982_v3  ;;  %1318 = vst.msk [vmem:[#allocation3 + $0x8] sm:$0xff] %vm762_vm3, %v2982_v3  ;;  %1247 = vperm.xlu1 %2582, %v2982_v3  }
 0x3ad   : > { %v1496_v5 = vpop.f32.mrb[28].mxu0 }
 0x3ae   : > { %v2990_v6 = vadd.f32 %v1496_v5, %v2888_v58  ;;  %v2493_v7 = vpop.f32.mrb[29].mxu0 }
 0x3af   : > { %v1499_v8 = vpop.f32.mrb[30].mxu0 }
 0x3b0   : > { %v2494_v9 = vpop.f32.mrb[31].mxu0  ;;  %v1504_v10 = vsel %vm971_vm5, %v2990_v6, -inf }
 0x3b1   : > { %1505 = vmax.xlane.f32.xlu1 %v1504_v10 }
 0x3b5   : > { %v1644_v13 = vpop.f32.mrb[32].mxu0 }
 0x3b6   : > { %v2507_v14 = vpop.f32.mrb[33].mxu0  ;;  %v1645_v16 = vadd.f32 %v2299_v12, %v1644_v13 }
 0x3b7   : > { %v1647_v15 = vpop.f32.mrb[34].mxu0 }
 0x3b8   : > { %v1648_v18 = vadd.f32 %v2299_v12, %v1647_v15  ;;  %v2508_v21 = vpop.f32.mrb[35].mxu0 }
 0x3b9   : > { %v2606_v21 = vld [vmem:[%s3144_s7 + $0x38] sm:$0xff]  }
 0x3ba   : > { %v1651_v22 = vpack.c.bf16 %v1648_v18, %v1645_v16 }
 0x3bc   : > { %v1726_v23 = vsel %vm556_vm2, %v1651_v22, 0  ;;  %v977_v22 = vmul.f32 1.442695, %v976_v20 }
 0x3bd   : > { %2518 = vmatpush3.bf16.xpose.msra.mxu0 %v1726_v23  ;;  %v1769_v23 = vld [vmem:[#allocation3 + $0x18] sm:$0xff] }
 0x3be   : > { %2529 = vmatprep.subr.bf16.mxu0 %v2655_v1 }
 0x3c4   : > { %2520 = vmatmul.mubr.msk.bf16.vlgmr.msra.gmra.mrb[36].mxu0 %vm556_vm2, %v1721_v25 }
 0x3c5   : > { %2531 = vmatprep.mubr.msk.bf16.mxu0 %vm2656_vm0, %v2655_v1 }
 0x3d1   : > { %v3002_v26 = vpop.f32.mrb[12].mxu1 }
 0x3d2   : > { %v2443_v27 = vpop.f32.mrb[13].mxu1 }
 0x3d3   : > { %v1047_v28 = vpop.f32.mrb[14].mxu1  ;;  %v987_v27 = vld [vmem:[#allocation4] sm:$0xff] }
 0x3d4   : > { %v2444_v29 = vpop.f32.mrb[15].mxu1 }
 0x3d6   : > { %v1248_v30 = vpop.permute.xlu1 %1247 }
 0x3d7   : > { %v1250_v31 = vsub.f32 %v2935_v38, %v1248_v30  ;;  %v2603_v38 = vld [vmem:[%s3144_s7 + $0x20] sm:$0xff]  }
 0x3d9   : > { %v1251_v33 = vmul.f32 1.442695, %v1250_v31  ;;  %v1179_v34 = vpop.f32.mrb[16].mxu1 }
 0x3da   : > { %v1180_v35 = vadd.f32 %v2268_v32, %v1179_v34  ;;  %v2459_v36 = vpop.f32.mrb[17].mxu1 }
 0x3db   : > { %2609 = vpow2.f32 %v1251_v33  ;;  %v1182_v37 = vpop.f32.mrb[18].mxu1  ;;  %v1520_v33 = vld [vmem:[#allocation4 + $0x10] sm:$0xff] }
 0x3dc   : > { %v1183_v39 = vadd.f32 %v2268_v32, %v1182_v37  ;;  %v2460_v40 = vpop.f32.mrb[19].mxu1 }
 0x3de   : > { %v1186_v41 = vpack.c.bf16 %v1183_v39, %v1180_v35 }
 0x3e0   : > { %v1274_v42 = vsel %vm1006_vm6, %v1186_v41, 0 }
 0x3e1   : > { %2468 = vmatpush3.bf16.msra.mxu1 %v1274_v42 }
 0x3e2   : > { %2481 = vmatprep.subr.bf16.mxu1 %v2655_v1 }
 0x3e5   : > { %v3010_v43 = vpop.eup %2609 }
 0x3e6   : > { %v1269_v44 = vpack.c.bf16 %v3010_v43, %v3010_v43  ;;  %v1256_v17 = vsel %vm971_vm5, %v3010_v43, 0.0 }
 0x3e8   : > { %2470 = vmatmul.mubr.msk.bf16.vlgmr.msra.gmra.mrb[20].mxu1 %vm971_vm5, %v1269_v44  ;;  %v2308_v44 = vld [vmem:[%s3145_s8 + $0x3] ss:$0 sm:$0xff] }
 0x3e9   : > { %2482 = vmatpush3.bf16.msra.mxu1 %v2603_v38  ;;  %2485 = vmatprep.mubr.msk.bf16.mxu1 %vm2656_vm0, %v2655_v1 }
 0x3ea   : > { %2483 = vmatprep.subr.bf16.mxu1 %v2655_v1 }
 0x3ed   : > { %2484 = vmatpush3.bf16.msra.mxu1 %v2604_v45 }
 0x3ee   : > { %2495 = vmatprep.subr.bf16.mxu1 %v2655_v1 }
 0x3f0   : > { %2486 = vmatmul.mubr.msk.bf16.vlgmr.msra.gmra.mrb[24].mxu1 %vm511_vm1, %v2788_v11 }
 0x3f1   : > { %2497 = vmatprep.mubr.msk.bf16.mxu1 %vm2656_vm0, %v2655_v1 }
 0x43e   : > { %v1506_v47 = vpop.xlane.xlu1 %1505 }
 0x43f   : > { %v1507_v48 = vmax.f32 %v1503_v46, %v1506_v47 }
 0x441   : > { %v1508_v49 = vsub.f32 %v1503_v46, %v1507_v48  ;;  %1584 = vst.msk [vmem:[#allocation3 + $0x10] sm:$0xff] %vm762_vm3, %v1507_v48  ;;  %1513 = vperm.xlu0 %2581, %v1507_v48  }
 0x443   : > { %v1509_v32 = vmul.f32 1.442695, %v1508_v49 }
 0x497   : > { %v1762_v50 = vpop.f32.mrb[36].mxu0 }
 0x498   : > { %v3031_v51 = vadd.f32 %v1762_v50, %v2888_v58  ;;  %v2521_v52 = vpop.f32.mrb[37].mxu0 }
 0x499   : > { %v1765_v53 = vpop.f32.mrb[38].mxu0 }
 0x49a   : > { %v2522_v54 = vpop.f32.mrb[39].mxu0  ;;  %v1770_v55 = vsel %vm971_vm5, %v3031_v51, -inf }
 0x49b   : > { %1771 = vmax.xlane.f32.xlu0 %v1770_v55 }
 0x49f   : > { %990 = vadd.xlane.f32.xlu0 %v989_v56 }
 0x4bb   : > { %v3037_v57 = vpop.f32.mrb[20].mxu1 }
 0x4bc   : > { %v2471_v59 = vpop.f32.mrb[21].mxu1 }
 0x4bd   : > { %v1313_v62 = vpop.f32.mrb[22].mxu1 }
 0x4be   : > { %v2472_v63 = vpop.f32.mrb[23].mxu1 }
 0x4bf   : > { %v1243_v63 = vmul.f32 1.442695, %v1242_v4 }
 0x4c0   : > { %v1514_v0 = vpop.permute.xlu0 %1513 }
 0x4c1   : > { %v1516_v58 = vsub.f32 %v2990_v6, %v1514_v0  ;;  %v2605_v6 = vld [vmem:[%s3144_s7 + $0x30] sm:$0xff]  }
 0x4c3   : > { %v1517_v5 = vmul.f32 1.442695, %v1516_v58  ;;  %v1445_v7 = vpop.f32.mrb[24].mxu1 }
 0x4c4   : > { %v1446_v8 = vadd.f32 %v2288_v2, %v1445_v7  ;;  %v2487_v9 = vpop.f32.mrb[25].mxu1 }
 0x4c5   : > { %2611 = vpow2.f32 %v1517_v5  ;;  %v1448_v10 = vpop.f32.mrb[26].mxu1  ;;  %v1254_v5 = vld [vmem:[#allocation4 + $0x8] sm:$0xff] }
 0x4c6   : > { %v1449_v61 = vadd.f32 %v2288_v2, %v1448_v10  ;;  %v2488_v12 = vpop.f32.mrb[27].mxu1  ;;  %2613 = vpow2.f32 %v977_v22  ;;  %v995_v10 = vld [vmem:[#allocation5] sm:$0xff]  ;;  %v1786_v22 = vld [vmem:[#allocation4 + $0x18] sm:$0xff] }
 0x4c7   : > { %2615 = vpow2.f32 %v1509_v32 }
 0x4c8   : > { %v1452_v13 = vpack.c.bf16 %v1449_v61, %v1446_v8 }
 0x4ca   : > { %v1540_v14 = vsel %vm1006_vm6, %v1452_v13, 0 }
 0x4cb   : > { %2496 = vmatpush3.bf16.msra.mxu1 %v1540_v14 }
 0x4cc   : > { %2509 = vmatprep.subr.bf16.mxu1 %v2655_v1 }
 0x4cf   : > { %v2612_v15 = vpop.eup %2611 }
 0x4d0   : > { %v1522_v16 = vsel %vm971_vm5, %v2612_v15, 0.0  ;;  %v1535_v18 = vpack.c.bf16 %v2612_v15, %v2612_v15  ;;  %v2614_v24 = vpop.eup %2613 }
 0x4d1   : > { %1523 = vadd.xlane.f32.xlu0 %v1522_v16  ;;  %v988_v30 = vmul.f32 %v2614_v24, %v987_v27  ;;  %v2616_v20 = vpop.eup %2615 }
 0x4d2   : > { %2498 = vmatmul.mubr.msk.bf16.vlgmr.msra.gmra.mrb[28].mxu1 %vm971_vm5, %v1535_v18  ;;  %v1521_v34 = vmul.f32 %v2616_v20, %v1520_v33  ;;  %v2314_v18 = vld [vmem:[%s3146_s9 + $0x4] sm:$0xf] }
 0x4d3   : > { %2510 = vmatpush3.bf16.msra.mxu1 %v2605_v6  ;;  %2513 = vmatprep.mubr.msk.bf16.mxu1 %vm2656_vm0, %v2655_v1 }
 0x4d4   : > { %2511 = vmatprep.subr.bf16.mxu1 %v2655_v1 }
 0x4d7   : > { %2512 = vmatpush3.bf16.msra.mxu1 %v2606_v21 }
 0x4d8   : > { %2523 = vmatprep.subr.bf16.mxu1 %v2655_v1 }
 0x4da   : > { %2514 = vmatmul.mubr.msk.bf16.vlgmr.msra.gmra.mrb[32].mxu1 %vm511_vm1, %v2788_v11 }
 0x4db   : > { %2525 = vmatprep.mubr.msk.bf16.mxu1 %vm2656_vm0, %v2655_v1 }
 0x528   : > { %v1772_v25 = vpop.xlane.xlu0 %1771 }
 0x529   : > { %v1773_v28 = vmax.f32 %v1769_v23, %v1772_v25 }
 0x52b   : > { %v1774_v29 = vsub.f32 %v1769_v23, %v1773_v28  ;;  %1850 = vst.msk [vmem:[#allocation3 + $0x18] sm:$0xff] %vm762_vm3, %v1773_v28  ;;  %1779 = vperm.xlu1 %2582, %v1773_v28  }
 0x52c   : > { %v991_v31 = vpop.xlane.xlu0 %990 }
 0x52d   : > { %v992_v11 = vadd.f32 %v991_v31, %v988_v30  ;;  %v1775_v0 = vmul.f32 1.442695, %v1774_v29  ;;  %v1262_v29 = vld [vmem:[#allocation5 + $0x8] sm:$0xff] }
 0x52f   : > { %994 = vst.msk [vmem:[#allocation4] sm:$0xff] %vm762_vm3, %v992_v11  ;;  %v1528_v11 = vld [vmem:[#allocation5 + $0x10] sm:$0xff] }
 0x536   : > { %v1855_v19 = vld [vmem:[#allocation4] sm:$0xff] }
 0x537   : > { %2617 = vrcp.f32 %v1855_v19 }
 0x541   : > { %v2618_v37 = vpop.eup %2617 }
 0x54f   : > { %1257 = vadd.xlane.f32.xlu1 %v1256_v17 }
 0x55e   : > { %v1524_v35 = vpop.xlane.xlu0 %1523 }
 0x55f   : > { %v1525_v36 = vadd.f32 %v1524_v35, %v1521_v34 }
 0x560   : > { %998 = vperm.xlu1 %2582, %v2614_v24   ;;  %v2319_v24 = vld [vmem:[%s3146_s9 + $0xc] sm:$0xf] }
 0x561   : > { %1526 = vst.msk [vmem:[#allocation4 + $0x10] sm:$0xff] %vm762_vm3, %v1525_v36  ;;  %v2045_v27 = vsel %vm1880_vm7, %v2319_v24, 0 }
 0x564   : > { %1859 = vperm.xlu1 %2582, %v2618_v37  }
 0x568   : > { %v1971_v4 = vld [vmem:[#allocation4 + $0x10] sm:$0xff] }
 0x5a5   : > { %v3069_v39 = vpop.f32.mrb[28].mxu1 }
 0x5a6   : > { %v2499_v40 = vpop.f32.mrb[29].mxu1 }
 0x5a7   : > { %v1579_v41 = vpop.f32.mrb[30].mxu1  ;;  %v2317_v40 = vld [vmem:[%s3146_s9 + $0x8] sm:$0xf] }
 0x5a8   : > { %v2500_v42 = vpop.f32.mrb[31].mxu1 }
 0x5a9   : > { %v1986_v42 = vsel %vm1880_vm7, %v2317_v40, 0 }
 0x5aa   : > { %v1780_v43 = vpop.permute.xlu1 %1779 }
 0x5ab   : > { %v1782_v38 = vsub.f32 %v3031_v51, %v1780_v43  ;;  %v1864_v51 = vld [vmem:[%s3146_s9] sm:$0xf] }
 0x5ac   : > { %v1928_v62 = vsel %vm1880_vm7, %v1864_v51, 0 }
 0x5ad   : > { %v1783_v45 = vmul.f32 1.442695, %v1782_v38  ;;  %v1711_v46 = vpop.f32.mrb[32].mxu1 }
 0x5ae   : > { %v1712_v47 = vadd.f32 %v2308_v44, %v1711_v46  ;;  %v2515_v48 = vpop.f32.mrb[33].mxu1 }
 0x5af   : > { %2619 = vpow2.f32 %v1783_v45  ;;  %v1714_v49 = vpop.f32.mrb[34].mxu1  ;;  %v1794_v45 = vld [vmem:[#allocation5 + $0x18] sm:$0xff] }
 0x5b0   : > { %v1715_v50 = vadd.f32 %v2308_v44, %v1714_v49  ;;  %v2516_v52 = vpop.f32.mrb[35].mxu1  ;;  %2621 = vpow2.f32 %v1243_v63 }
 0x5b1   : > { %2623 = vpow2.f32 %v1775_v0 }
 0x5b2   : > { %v1718_v53 = vpack.c.bf16 %v1715_v50, %v1712_v47 }
 0x5b4   : > { %v1806_v54 = vsel %vm1006_vm6, %v1718_v53, 0 }
 0x5b5   : > { %2524 = vmatpush3.bf16.msra.mxu1 %v1806_v54 }
 0x5b6   : > { %2535 = vmatprep.subr.bf16.mxu1 %v2655_v1 }
 0x5b9   : > { %v2620_v55 = vpop.eup %2619 }
 0x5ba   : > { %v1788_v56 = vsel %vm971_vm5, %v2620_v55, 0.0  ;;  %v1801_v59 = vpack.c.bf16 %v2620_v55, %v2620_v55  ;;  %v2622_v58 = vpop.eup %2621 }
 0x5bb   : > { %1789 = vadd.xlane.f32.xlu0 %v1788_v56  ;;  %v2624_v2 = vpop.eup %2623  ;;  %v1255_v7 = vmul.f32 %v2622_v58, %v1254_v5 }
 0x5bc   : > { %2526 = vmatmul.mubr.msk.bf16.vlgmr.msra.gmra.mrb[36].mxu1 %vm971_vm5, %v1801_v59  ;;  %v1787_v23 = vmul.f32 %v2624_v2, %v1786_v22 }
 0x5bd   : > { %2536 = vmatpush3.bf16.msra.mxu1 %v1928_v62  ;;  %2537 = vmatprep.mubr.msk.bf16.mxu1 %vm2656_vm0, %v2655_v1 }
 0x5be   : > { %2547 = vmatprep.subr.bf16.mxu1 %v2655_v1 }
 0x5d1   : > { %1265 = vperm.xlu0 %2581, %v2622_v58  }
 0x5d5   : > { %1531 = vperm.xlu0 %2581, %v2616_v20  }
 0x5d9   : > { %1797 = vperm.xlu0 %2581, %v2624_v2  }
 0x5dc   : > { %v1258_v8 = vpop.xlane.xlu1 %1257 }
 0x5dd   : > { %v1259_v9 = vadd.f32 %v1258_v8, %v1255_v7 }
 0x5df   : > { %1260 = vst.msk [vmem:[#allocation4 + $0x8] sm:$0xff] %vm762_vm3, %v1259_v9 }
 0x5e0   : > { %v999_v61 = vpop.permute.xlu1 %998 }
 0x5e1   : > { %v1001_v12 = vmul.f32 %v999_v61, %v995_v10 }
 0x5e3   : > { %v1050_v60 = vadd.f32 %v3002_v26, %v1001_v12  ;;  %v1882_v26 = vsel %vm1880_vm7, %v2314_v18, 0 }
 0x5e4   : > { %v1860_v14 = vpop.permute.xlu1 %1859  ;;  %2530 = vmatpush3.bf16.msra.mxu0 %v1882_v26 }
 0x5e5   : > { %1051 = vst.msk [vmem:[#allocation5] sm:$0xff] %vm556_vm2, %v1050_v60  ;;  %2541 = vmatprep.subr.bf16.mxu0 %v2655_v1  ;;  %v2321_v60 = vld [vmem:[%s3147_s10] ss:$0 sm:$0xff] }
 0x5e6   : > { %v1866_v3 = vld [vmem:[#allocation4 + $0x8] sm:$0xff] }
 0x5e7   : > { %2625 = vrcp.f32 %v1866_v3 }
 0x5e8   : > { %2627 = vrcp.f32 %v1971_v4 }
 0x5ec   : > { %v1854_v13 = vld [vmem:[#allocation5] sm:$0xff] }
 0x5ed   : > { %v1862_v15 = vmul.f32 %v1860_v14, %v1854_v13 }
 0x5ef   : > { %v1863_v6 = vpack.c.bf16 %v1862_v15, %v1862_v15 }
 0x5f1   : > { %v2626_v16 = vpop.eup %2625  ;;  %2538 = vmatmul.mubr.msk.bf16.vlgmr.msra.gmra.mrb[40].mxu1 %vm556_vm2, %v1863_v6 }
 0x5f2   : > { %1870 = vperm.xlu0 %2581, %v2626_v16   ;;  %2549 = vmatprep.mubr.msk.bf16.mxu1 %vm2656_vm0, %v2655_v1  ;;  %v2628_v21 = vpop.eup %2627 }
 0x5f3   : > { %2548 = vmatpush3.bf16.msra.mxu1 %v2045_v27 }
 0x5f6   : > { %1975 = vperm.xlu0 %2581, %v2628_v21  }
 0x648   : > { %v1790_v25 = vpop.xlane.xlu0 %1789 }
 0x649   : > { %v1791_v28 = vadd.f32 %v1790_v25, %v1787_v23 }
 0x64b   : > { %1792 = vst.msk [vmem:[#allocation4 + $0x18] sm:$0xff] %vm762_vm3, %v1791_v28 }
 0x650   : > { %v1266_v30 = vpop.permute.xlu0 %1265 }
 0x651   : > { %v1268_v31 = vmul.f32 %v1266_v30, %v1262_v29 }
 0x652   : > { %v2030_v32 = vld [vmem:[#allocation4 + $0x18] sm:$0xff] }
 0x653   : > { %v1316_v17 = vadd.f32 %v3037_v57, %v1268_v31  ;;  %2629 = vrcp.f32 %v2030_v32 }
 0x654   : > { %v1532_v19 = vpop.permute.xlu0 %1531 }
 0x655   : > { %1317 = vst.msk [vmem:[#allocation5 + $0x8] sm:$0xff] %vm556_vm2, %v1316_v17  ;;  %v1534_v20 = vmul.f32 %v1532_v19, %v1528_v11 }
 0x657   : > { %v1582_v33 = vadd.f32 %v3069_v39, %v1534_v20 }
 0x658   : > { %v1798_v35 = vpop.permute.xlu0 %1797 }
 0x659   : > { %1583 = vst.msk [vmem:[#allocation5 + $0x10] sm:$0xff] %vm556_vm2, %v1582_v33  ;;  %v1800_v46 = vmul.f32 %v1798_v35, %v1794_v45 }
 0x65c   : > { %v1865_v36 = vld [vmem:[#allocation5 + $0x8] sm:$0xff] }
 0x65d   : > { %v2630_v34 = vpop.eup %2629 }
 0x65e   : > { %2034 = vperm.xlu1 %2582, %v2630_v34  }
 0x660   : > { %v1970_v38 = vld [vmem:[#allocation5 + $0x10] sm:$0xff] }
 0x671   : > { %v1871_v37 = vpop.permute.xlu0 %1870 }
 0x672   : > { %v1873_v41 = vmul.f32 %v1871_v37, %v1865_v36 }
 0x674   : > { %v1874_v57 = vpack.c.bf16 %v1873_v41, %v1873_v41 }
 0x675   : > { %v1976_v43 = vpop.permute.xlu0 %1975 }
 0x676   : > { %2532 = vmatmul.mubr.msk.bf16.vlgmr.msra.gmra.mrb[40].mxu0 %vm556_vm2, %v1874_v57  ;;  %v1978_v39 = vmul.f32 %v1976_v43, %v1970_v38 }
 0x677   : > { %2542 = vmatpush3.bf16.msra.mxu0 %v1986_v42  ;;  %2543 = vmatprep.mubr.msk.bf16.mxu0 %vm2656_vm0, %v2655_v1 }
 0x678   : > { %v1979_v44 = vpack.c.bf16 %v1978_v39, %v1978_v39 }
 0x67e   : > { %2544 = vmatmul.mubr.msk.bf16.vlgmr.msra.gmra.mrb[44].mxu0 %vm556_vm2, %v1979_v44 }
 0x68f   : > { %v1842_v47 = vpop.f32.mrb[36].mxu1 }
 0x690   : > { %v1848_v48 = vadd.f32 %v1842_v47, %v1800_v46  ;;  %v2527_v49 = vpop.f32.mrb[37].mxu1 }
 0x691   : > { %v1845_v50 = vpop.f32.mrb[38].mxu1 }
 0x692   : > { %1849 = vst.msk [vmem:[#allocation5 + $0x18] sm:$0xff] %vm556_vm2, %v1848_v48  ;;  %v2528_v52 = vpop.f32.mrb[39].mxu1 }
 0x699   : > { %v2029_v59 = vld [vmem:[#allocation5 + $0x18] sm:$0xff] }
 0x6c4   : > { %v1964_v53 = vpop.f32.mrb[40].mxu1 }
 0x6c5   : > { %v2539_v54 = vpop.f32.mrb[41].mxu1 }
 0x6c6   : > { %v1967_v51 = vpop.f32.mrb[42].mxu1 }
 0x6c7   : > { %v2540_v55 = vpop.f32.mrb[43].mxu1 }
 0x6dd   : > { %v2035_v56 = vpop.permute.xlu1 %2034 }
 0x6de   : > { %v2037_v1 = vmul.f32 %v2035_v56, %v2029_v59 }
 0x6e0   : > { %v2038_v62 = vpack.c.bf16 %v2037_v1, %v2037_v1 }
 0x6e2   : > { %2550 = vmatmul.mubr.msk.bf16.vlgmr.msra.gmra.mrb[44].mxu1 %vm556_vm2, %v2038_v62 }
 0x749   : > { %v1918_v63 = vpop.f32.mrb[40].mxu0 }
 0x74a   : > { %v1965_v0 = vadd.f32 %v1964_v53, %v1918_v63  ;;  %v2533_v58 = vpop.f32.mrb[41].mxu0 }
 0x74b   : > { %v1921_v2 = vpop.f32.mrb[42].mxu0 }
 0x74c   : > { %v2534_v5 = vpop.f32.mrb[43].mxu0 }
 0x751   : > { %v2022_v7 = vpop.f32.mrb[44].mxu0 }
 0x752   : > { %v2028_v8 = vadd.f32 %v2022_v7, %v1965_v0  ;;  %v2545_v9 = vpop.f32.mrb[45].mxu0 }
 0x753   : > { %v2025_v10 = vpop.f32.mrb[46].mxu0 }
 0x754   : > { %v2546_v61 = vpop.f32.mrb[47].mxu0 }
 0x7b5   : > { %v2081_v12 = vpop.f32.mrb[44].mxu1 }
 0x7b6   : > { %v2087_v3 = vadd.f32 %v2081_v12, %v2028_v8  ;;  %v2551_v4 = vpop.f32.mrb[45].mxu1 }
 0x7b7   : > { %v2084_v13 = vpop.f32.mrb[46].mxu1 }
 0x7b8   : > { %v2095_v14 = vadd.f32 %v2321_v60, %v2087_v3  ;;  %v2552_v15 = vpop.f32.mrb[47].mxu1 }
 0x7ba   : > { %2096 = vst.msk [vmem:[%s480_s13] sm:$0xff] %vm511_vm1, %v2095_v14 }
 0x7bb PF: > { %s21_s19 = sadd.s32 1, %s2653_s19   ;;  %s3149_s17 = smov %s2649_s18 }
 0x7bc   : > { %p18_p5 = scmp.ge.s32.totalorder %s21_s19, 4   ;;  %s3150_s18 = smov %s3152_s20 }
 0x7be   :  { %20 = sbr.rel (!%p18_p5) target bundleno = 2 (0x2), region = 144 }

</bundles_post_ra>
